<compile_context>
chip_gen: v7x
topology: tpu7x:2x2x1
jax: 0.10.0
libtpu: 0.0.40
codegen_flags: <defaults>
</compile_context>

<pallas_src>
from functools import partial

import numpy as np
import jax
import jax.numpy as jnp
from jax.experimental import pallas as pl
from jax.experimental.pallas import tpu as pltpu


# ----------------------------------------------------------------------------- helpers
def _reflect_upsample_map(size, scale, pad):
    """padded-upsampled index -> original index (nearest upsample x scale, then reflect pad)."""
    up = size * scale
    assert pad <= up - 1, f"ReflectionPad2d pad={pad} needs upsampled extent > pad (got {up})"
    idx = []
    for r in range(up + 2 * pad):
        i = r - pad
        if i < 0:                      # ReflectionPad2d: -1 -> 1, -2 -> 2 (no edge repeat)
            i = -i
        elif i >= up:                  # up -> up-2, up+1 -> up-3
            i = 2 * (up - 1) - i
        idx.append(i // scale)         # nearest upsample: up-index j reads orig index j//scale
    return np.asarray(idx, dtype=np.int64)


def _row_selection_matrix(h, scale, pad, hp_pad):
    """(hp_pad, h) 0/1 matrix; row r selects original row map[r]; rows >= Hp are zero pad."""
    idx = _reflect_upsample_map(h, scale, pad)
    m = np.zeros((hp_pad, h), dtype=np.float32)
    m[np.arange(idx.shape[0]), idx] = 1.0
    return m


def _col_tap_matrices(w, scale, pad, ksize, stride, ow):
    """(k, w, ow) 0/1 matrices; Cw[kw][src, j] = 1 iff padded-upsampled column j*stride + kw
    maps to original column src.  Folds nearest-upsample + reflection pad + conv column
    stride + the kw tap offset into a single column-selection matmul."""
    idx = _reflect_upsample_map(w, scale, pad)
    m = np.zeros((ksize, w, ow), dtype=np.float32)
    for kw in range(ksize):
        for j in range(ow):
            m[kw, idx[j * stride + kw], j] = 1.0
    return m


# ------------------------------------------------------------------------------ kernel
def _upsample_conv_kernel(x_ref, sh_ref, cw_ref, w_ref, b_ref, o_ref, *,
                          cin, cout, ksize, stride, th, ow, nrows_pad):
    # x_ref : (1, Cin, H, W)    original input, one batch element (resident across OH bands)
    # sh_ref: (Hp_pad, H)       row-selection (upsample+reflect) matrix, zero-padded, VMEM
    # cw_ref: (k, W, OW)        per-kw column-selection matrices (stride + tap folded), VMEM
    # w_ref : (Cout, Cin*k*k)   conv weights OIHW flattened over (ci, kh, kw), SMEM scalars
    # b_ref : (Cout,)           bias, SMEM
    # o_ref : (1, Cout, TH, OW) output row band, NCHW
    t = pl.program_id(1)

    row0 = t * (th * stride)
    if (th * stride) % 8 == 0:
        row0 = pl.multiple_of(row0, 8)          # 8-sublane aligned dynamic-slice start

    # 8-aligned row band of the selection matrix (review #8: nrows_pad % 8 == 0 -> view).
    sh_win = sh_ref[pl.ds(row0, nrows_pad), :]                        # (nrows_pad, H)

    # Row-select FIRST (review #1): per-channel (nrows_pad, W) bands instead of full (H, Wp).
    bands = [jnp.dot(sh_win, x_ref[0, ci], preferred_element_type=jnp.float32)
             for ci in range(cin)]                                    # cin x (nrows_pad, W)

    # Column select per kw tap with conv stride folded in (review #4).
    slabs = [[jnp.dot(bands[ci], cw_ref[kw], preferred_element_type=jnp.float32)
              for kw in range(ksize)]
             for ci in range(cin)]                                    # cin x k x (nrows_pad, OW)

    # VPU conv: co is the OUTER loop, a single (TH, OW) accumulator, stored immediately
    # (review #2).  Tap = contiguous row window of a slab (no lane-strided slices).
    last = (th - 1) * stride + 1
    for co in range(cout):
        acc = jnp.full((th, ow), b_ref[co], jnp.float32)
        for ci in range(cin):
            base_ci = ci * ksize * ksize
            for kh in range(ksize):
                for kw in range(ksize):
                    tap = slabs[ci][kw][kh:kh + last:stride]          # (TH, OW)
                    acc = acc + w_ref[co, base_ci + kh * ksize + kw] * tap
        o_ref[0, co, :, :] = acc.astype(o_ref.dtype)


# ----------------------------------------------------------------------------- wrapper
def _pick_tile_oh(oh, *, n, cin, cout, h, w, ow, ksize, stride, scale, pad,
                  vmem_budget=24 * 1024 * 1024):
    """Largest OH band that (a) divides OH, (b) is sublane-friendly, (c) fits an explicit
    per-step VMEM estimate (v7x-safe budget), (d) preferably leaves >= 2 total grid steps so
    both v7x TensorCores get work (reviews #6 / #7)."""
    hp = scale * h + 2 * pad

    def est_bytes(th):
        nrows_pad = -(-((th - 1) * stride + ksize) // 8) * 8
        hp_pad = max(hp, (oh // th - 1) * th * stride + nrows_pad)
        inputs = 2 * 4 * (cin * h * w + hp_pad * h + ksize * w * ow)   # double-buffered f32
        scratch = 4 * (cin * nrows_pad * w + cin * ksize * nrows_pad * ow + th * ow)
        outband = 2 * 4 * cout * th * ow                                # double-buffered
        return inputs + scratch + outband

    cands = [d for d in range(oh, 0, -1) if oh % d == 0 and (d % 8 == 0 or d == oh)]
    fitting = [d for d in cands if est_bytes(d) <= vmem_budget] or [cands[-1]]
    for d in fitting:                       # prefer >= 2 total grid steps (v7x: 2 TCs/chip)
        if n * (oh // d) >= 2:
            return d
    return fitting[0]


def upsample_conv_layer(x_nchw, weight_oihw, bias, *, kernel_size, stride,
                        upsample=None, tile_oh=None, out_dtype=None):
    """Forward pass equivalent to UpsampleConvLayer.forward (NCHW in / NCHW out)."""
    n, cin, h, w = x_nchw.shape
    cout = weight_oihw.shape[0]
    scale = int(upsample) if upsample else 1
    pad = kernel_size // 2
    hp = scale * h + 2 * pad
    wp = scale * w + 2 * pad
    oh = (hp - kernel_size) // stride + 1
    ow = (wp - kernel_size) // stride + 1
    out_dtype = x_nchw.dtype if out_dtype is None else out_dtype

    if tile_oh is None:
        tile_oh = _pick_tile_oh(oh, n=n, cin=cin, cout=cout, h=h, w=w, ow=ow,
                                ksize=kernel_size, stride=stride, scale=scale, pad=pad)
    assert oh % tile_oh == 0 and (tile_oh % 8 == 0 or tile_oh == oh), \
        f"tile_oh={tile_oh} must divide OH={oh} and be a multiple of 8 (or equal OH)"

    # 8-sublane aligned band height for the sh dynamic slice (review #8).
    nrows = (tile_oh - 1) * stride + kernel_size
    nrows_pad = -(-nrows // 8) * 8
    hp_pad = max(hp, (oh // tile_oh - 1) * tile_oh * stride + nrows_pad)

    # 0/1 selection matrices (tiny, host-built): rows encode upsample+reflect; columns encode
    # upsample+reflect + conv column stride + per-kw tap offset.
    sh = jnp.asarray(_row_selection_matrix(h, scale, pad, hp_pad))               # (Hp_pad, H)
    cw = jnp.asarray(_col_tap_matrices(w, scale, pad, kernel_size, stride, ow))  # (k, W, OW)

    # Conv parameters: weights flattened once (OIHW -> (Cout, Cin*k*k)), SMEM scalar table.
    w2 = weight_oihw.reshape(cout, cin * kernel_size * kernel_size).astype(jnp.float32)
    b = bias.astype(jnp.float32)

    kern = partial(_upsample_conv_kernel, cin=cin, cout=cout, ksize=kernel_size,
                   stride=stride, th=tile_oh, ow=ow, nrows_pad=nrows_pad)

    grid = (n, oh // tile_oh)
    return pl.pallas_call(
        kern,
        out_shape=jax.ShapeDtypeStruct((n, cout, oh, ow), out_dtype),
        grid=grid,
        in_specs=[
            # original x, one batch element; index_map ignores the band axis so the block
            # stays resident across it (read from HBM once per batch element)
            pl.BlockSpec((1, cin, h, w), lambda b_, t: (b_, 0, 0, 0)),
            pl.BlockSpec((hp_pad, h), lambda b_, t: (0, 0)),             # row selection
            pl.BlockSpec((kernel_size, w, ow), lambda b_, t: (0, 0, 0)), # per-kw col selection
            pl.BlockSpec(memory_space=pltpu.MemorySpace.SMEM),           # weights (scalars)
            pl.BlockSpec(memory_space=pltpu.MemorySpace.SMEM),           # bias
        ],
        out_specs=pl.BlockSpec((1, cout, tile_oh, ow), lambda b_, t: (b_, 0, t, 0)),
        compiler_params=pltpu.CompilerParams(
            dimension_semantics=("parallel", "parallel"),    # batch + OH band on both TCs
            vmem_limit_bytes=32 * 1024 * 1024),              # explicit, v7x-safe budget
    )(x_nchw, sh, cw, w2, b)


# --------------------------------------------------------------------------- reference
def _reference_forward(x, w_oihw, b, *, kernel_size, stride, upsample):
    """Pure-JAX reference mirroring the PyTorch module (for correctness check)."""
    xi = x
    if upsample:
        xi = jnp.repeat(jnp.repeat(xi, upsample, axis=2), upsample, axis=3)
    p = kernel_size // 2
    xi = jnp.pad(xi, ((0, 0), (0, 0), (p, p), (p, p)), mode="reflect")
    out = jax.lax.conv_general_dilated(
        xi, w_oihw, window_strides=(stride, stride), padding="VALID",
        dimension_numbers=("NCHW", "OIHW", "NCHW"),
    )
    return out + b.reshape(1, -1, 1, 1)


if __name__ == "__main__":
    # module config: UpsampleConvLayer(in_channels=4, out_channels=8, kernel_size=3,
    #                                  stride=1, upsample=2)
    in_channels, out_channels, kernel_size, stride, upsample = 4, 8, 3, 1, 2

    key = jax.random.PRNGKey(0)
    kx, kwgt, kb = jax.random.split(key, 3)

    # input: NCHW, small shapes
    x = jax.random.normal(kx, (2, in_channels, 16, 16), dtype=jnp.float32)

    # deterministic synthetic parameters (torch Conv2d shapes: weight OIHW, bias (Cout,))
    fan_in = in_channels * kernel_size * kernel_size
    bound = 1.0 / (fan_in ** 0.5)
    weight = jax.random.uniform(
        kwgt, (out_channels, in_channels, kernel_size, kernel_size),
        minval=-bound, maxval=bound, dtype=jnp.float32)
    bias = jax.random.uniform(kb, (out_channels,), minval=-bound, maxval=bound,
                              dtype=jnp.float32)

    ref = _reference_forward(x, weight, bias, kernel_size=kernel_size,
                             stride=stride, upsample=upsample)
    ref = jax.block_until_ready(ref)

    # explicit multi-band tiling (exercises the aligned dynamic sh row-band slice)
    out_banded = upsample_conv_layer(x, weight, bias, kernel_size=kernel_size,
                                     stride=stride, upsample=upsample, tile_oh=16)
    out_banded = jax.block_until_ready(out_banded)

    # auto band selection (VMEM-gated, prefers >= 2 grid steps)
    out_auto = upsample_conv_layer(x, weight, bias, kernel_size=kernel_size,
                                   stride=stride, upsample=upsample)
    out_auto = jax.block_until_ready(out_auto)

    assert out_banded.shape == (2, out_channels, 16 * upsample, 16 * upsample), out_banded.shape
    for out in (out_banded, out_auto):
        err = float(jnp.max(jnp.abs(out - ref)))
        assert jnp.allclose(out, ref, atol=2e-4, rtol=2e-4), err

    print("KERNEL_OK")
</pallas_src>

<mosaic_0001>
module attributes {stable_mosaic.version = 11 : i64} {
  func.func @_upsample_conv_kernel(%arg0: i32, %arg1: i32, %arg2: memref<1x4x16x16xf32, #tpu.memory_space<vmem>>, %arg3: memref<40x16xf32, #tpu.memory_space<vmem>>, %arg4: memref<3x16x32xf32, #tpu.memory_space<vmem>>, %arg5: memref<8x36xf32, #tpu.memory_space<smem>>, %arg6: memref<8xf32, #tpu.memory_space<smem>>, %arg7: memref<1x8x16x32xf32, #tpu.memory_space<vmem>>) attributes {dimension_semantics = [#tpu.dimension_semantics<parallel>, #tpu.dimension_semantics<parallel>], iteration_bounds = array<i64: 2, 2>, scalar_prefetch = 0 : i64, scratch_operands = 0 : i64, tpu.core_type = #tpu.core_type<tc>, window_params = [{transform_indices = @transform_0, window_bounds = array<i64: 1, 4, 16, 16>}, {pipeline_mode = #tpu.pipeline_mode<synchronous>, transform_indices = @transform_1, window_bounds = array<i64: 40, 16>}, {pipeline_mode = #tpu.pipeline_mode<synchronous>, transform_indices = @transform_2, window_bounds = array<i64: 3, 16, 32>}, {transform_indices = @transform_3, window_bounds = array<i64: 8, 36>}, {transform_indices = @transform_4, window_bounds = array<i64: 8>}, {transform_indices = @transform_5, window_bounds = array<i64: 1, 8, 16, 32>}]} {
    %c16_i32 = arith.constant 16 : i32
    %0 = arith.muli %arg1, %c16_i32 : i32
    %1 = tpu.assume_multiple %0, 8 : i32
    %2 = arith.index_cast %1 : i32 to index
    %c0 = arith.constant 0 : index
    %3 = vector.load %arg3[%2, %c0] : memref<40x16xf32, #tpu.memory_space<vmem>>, vector<24x16xf32>
    %c0_0 = arith.constant 0 : index
    %c0_1 = arith.constant 0 : index
    %c0_2 = arith.constant 0 : index
    %c0_3 = arith.constant 0 : index
    %4 = vector.load %arg2[%c0_0, %c0_1, %c0_2, %c0_3] : memref<1x4x16x16xf32, #tpu.memory_space<vmem>>, vector<1x1x16x16xf32>
    %5 = vector.shape_cast %4 : vector<1x1x16x16xf32> to vector<16x16xf32>
    %cst = arith.constant dense<0.000000e+00> : vector<24x16xf32>
    %6 = tpu.matmul %3, %5, %cst {dimension_numbers = #tpu.dot_dimension_numbers<[1], [0], [0], [1], [0, 0, 1, 1], [], []>} : vector<24x16xf32>, vector<16x16xf32>, vector<24x16xf32> -> vector<24x16xf32>
    %c0_4 = arith.constant 0 : index
    %c1 = arith.constant 1 : index
    %c0_5 = arith.constant 0 : index
    %c0_6 = arith.constant 0 : index
    %7 = vector.load %arg2[%c0_4, %c1, %c0_5, %c0_6] : memref<1x4x16x16xf32, #tpu.memory_space<vmem>>, vector<1x1x16x16xf32>
    %8 = vector.shape_cast %7 : vector<1x1x16x16xf32> to vector<16x16xf32>
    %cst_7 = arith.constant dense<0.000000e+00> : vector<24x16xf32>
    %9 = tpu.matmul %3, %8, %cst_7 {dimension_numbers = #tpu.dot_dimension_numbers<[1], [0], [0], [1], [0, 0, 1, 1], [], []>} : vector<24x16xf32>, vector<16x16xf32>, vector<24x16xf32> -> vector<24x16xf32>
    %c0_8 = arith.constant 0 : index
    %c2 = arith.constant 2 : index
    %c0_9 = arith.constant 0 : index
    %c0_10 = arith.constant 0 : index
    %10 = vector.load %arg2[%c0_8, %c2, %c0_9, %c0_10] : memref<1x4x16x16xf32, #tpu.memory_space<vmem>>, vector<1x1x16x16xf32>
    %11 = vector.shape_cast %10 : vector<1x1x16x16xf32> to vector<16x16xf32>
    %cst_11 = arith.constant dense<0.000000e+00> : vector<24x16xf32>
    %12 = tpu.matmul %3, %11, %cst_11 {dimension_numbers = #tpu.dot_dimension_numbers<[1], [0], [0], [1], [0, 0, 1, 1], [], []>} : vector<24x16xf32>, vector<16x16xf32>, vector<24x16xf32> -> vector<24x16xf32>
    %c0_12 = arith.constant 0 : index
    %c3 = arith.constant 3 : index
    %c0_13 = arith.constant 0 : index
    %c0_14 = arith.constant 0 : index
    %13 = vector.load %arg2[%c0_12, %c3, %c0_13, %c0_14] : memref<1x4x16x16xf32, #tpu.memory_space<vmem>>, vector<1x1x16x16xf32>
    %14 = vector.shape_cast %13 : vector<1x1x16x16xf32> to vector<16x16xf32>
    %cst_15 = arith.constant dense<0.000000e+00> : vector<24x16xf32>
    %15 = tpu.matmul %3, %14, %cst_15 {dimension_numbers = #tpu.dot_dimension_numbers<[1], [0], [0], [1], [0, 0, 1, 1], [], []>} : vector<24x16xf32>, vector<16x16xf32>, vector<24x16xf32> -> vector<24x16xf32>
    %c0_16 = arith.constant 0 : index
    %c0_17 = arith.constant 0 : index
    %c0_18 = arith.constant 0 : index
    %16 = vector.load %arg4[%c0_16, %c0_17, %c0_18] : memref<3x16x32xf32, #tpu.memory_space<vmem>>, vector<1x16x32xf32>
    %17 = vector.shape_cast %16 : vector<1x16x32xf32> to vector<16x32xf32>
    %cst_19 = arith.constant dense<0.000000e+00> : vector<24x32xf32>
    %18 = tpu.matmul %6, %17, %cst_19 {dimension_numbers = #tpu.dot_dimension_numbers<[1], [0], [0], [1], [0, 0, 1, 1], [], []>} : vector<24x16xf32>, vector<16x32xf32>, vector<24x32xf32> -> vector<24x32xf32>
    %c1_20 = arith.constant 1 : index
    %c0_21 = arith.constant 0 : index
    %c0_22 = arith.constant 0 : index
    %19 = vector.load %arg4[%c1_20, %c0_21, %c0_22] : memref<3x16x32xf32, #tpu.memory_space<vmem>>, vector<1x16x32xf32>
    %20 = vector.shape_cast %19 : vector<1x16x32xf32> to vector<16x32xf32>
    %cst_23 = arith.constant dense<0.000000e+00> : vector<24x32xf32>
    %21 = tpu.matmul %6, %20, %cst_23 {dimension_numbers = #tpu.dot_dimension_numbers<[1], [0], [0], [1], [0, 0, 1, 1], [], []>} : vector<24x16xf32>, vector<16x32xf32>, vector<24x32xf32> -> vector<24x32xf32>
    %c2_24 = arith.constant 2 : index
    %c0_25 = arith.constant 0 : index
    %c0_26 = arith.constant 0 : index
    %22 = vector.load %arg4[%c2_24, %c0_25, %c0_26] : memref<3x16x32xf32, #tpu.memory_space<vmem>>, vector<1x16x32xf32>
    %23 = vector.shape_cast %22 : vector<1x16x32xf32> to vector<16x32xf32>
    %cst_27 = arith.constant dense<0.000000e+00> : vector<24x32xf32>
    %24 = tpu.matmul %6, %23, %cst_27 {dimension_numbers = #tpu.dot_dimension_numbers<[1], [0], [0], [1], [0, 0, 1, 1], [], []>} : vector<24x16xf32>, vector<16x32xf32>, vector<24x32xf32> -> vector<24x32xf32>
    %c0_28 = arith.constant 0 : index
    %c0_29 = arith.constant 0 : index
    %c0_30 = arith.constant 0 : index
    %25 = vector.load %arg4[%c0_28, %c0_29, %c0_30] : memref<3x16x32xf32, #tpu.memory_space<vmem>>, vector<1x16x32xf32>
    %26 = vector.shape_cast %25 : vector<1x16x32xf32> to vector<16x32xf32>
    %cst_31 = arith.constant dense<0.000000e+00> : vector<24x32xf32>
    %27 = tpu.matmul %9, %26, %cst_31 {dimension_numbers = #tpu.dot_dimension_numbers<[1], [0], [0], [1], [0, 0, 1, 1], [], []>} : vector<24x16xf32>, vector<16x32xf32>, vector<24x32xf32> -> vector<24x32xf32>
    %c1_32 = arith.constant 1 : index
    %c0_33 = arith.constant 0 : index
    %c0_34 = arith.constant 0 : index
    %28 = vector.load %arg4[%c1_32, %c0_33, %c0_34] : memref<3x16x32xf32, #tpu.memory_space<vmem>>, vector<1x16x32xf32>
    %29 = vector.shape_cast %28 : vector<1x16x32xf32> to vector<16x32xf32>
    %cst_35 = arith.constant dense<0.000000e+00> : vector<24x32xf32>
    %30 = tpu.matmul %9, %29, %cst_35 {dimension_numbers = #tpu.dot_dimension_numbers<[1], [0], [0], [1], [0, 0, 1, 1], [], []>} : vector<24x16xf32>, vector<16x32xf32>, vector<24x32xf32> -> vector<24x32xf32>
    %c2_36 = arith.constant 2 : index
    %c0_37 = arith.constant 0 : index
    %c0_38 = arith.constant 0 : index
    %31 = vector.load %arg4[%c2_36, %c0_37, %c0_38] : memref<3x16x32xf32, #tpu.memory_space<vmem>>, vector<1x16x32xf32>
    %32 = vector.shape_cast %31 : vector<1x16x32xf32> to vector<16x32xf32>
    %cst_39 = arith.constant dense<0.000000e+00> : vector<24x32xf32>
    %33 = tpu.matmul %9, %32, %cst_39 {dimension_numbers = #tpu.dot_dimension_numbers<[1], [0], [0], [1], [0, 0, 1, 1], [], []>} : vector<24x16xf32>, vector<16x32xf32>, vector<24x32xf32> -> vector<24x32xf32>
    %c0_40 = arith.constant 0 : index
    %c0_41 = arith.constant 0 : index
    %c0_42 = arith.constant 0 : index
    %34 = vector.load %arg4[%c0_40, %c0_41, %c0_42] : memref<3x16x32xf32, #tpu.memory_space<vmem>>, vector<1x16x32xf32>
    %35 = vector.shape_cast %34 : vector<1x16x32xf32> to vector<16x32xf32>
    %cst_43 = arith.constant dense<0.000000e+00> : vector<24x32xf32>
    %36 = tpu.matmul %12, %35, %cst_43 {dimension_numbers = #tpu.dot_dimension_numbers<[1], [0], [0], [1], [0, 0, 1, 1], [], []>} : vector<24x16xf32>, vector<16x32xf32>, vector<24x32xf32> -> vector<24x32xf32>
    %c1_44 = arith.constant 1 : index
    %c0_45 = arith.constant 0 : index
    %c0_46 = arith.constant 0 : index
    %37 = vector.load %arg4[%c1_44, %c0_45, %c0_46] : memref<3x16x32xf32, #tpu.memory_space<vmem>>, vector<1x16x32xf32>
    %38 = vector.shape_cast %37 : vector<1x16x32xf32> to vector<16x32xf32>
    %cst_47 = arith.constant dense<0.000000e+00> : vector<24x32xf32>
    %39 = tpu.matmul %12, %38, %cst_47 {dimension_numbers = #tpu.dot_dimension_numbers<[1], [0], [0], [1], [0, 0, 1, 1], [], []>} : vector<24x16xf32>, vector<16x32xf32>, vector<24x32xf32> -> vector<24x32xf32>
    %c2_48 = arith.constant 2 : index
    %c0_49 = arith.constant 0 : index
    %c0_50 = arith.constant 0 : index
    %40 = vector.load %arg4[%c2_48, %c0_49, %c0_50] : memref<3x16x32xf32, #tpu.memory_space<vmem>>, vector<1x16x32xf32>
    %41 = vector.shape_cast %40 : vector<1x16x32xf32> to vector<16x32xf32>
    %cst_51 = arith.constant dense<0.000000e+00> : vector<24x32xf32>
    %42 = tpu.matmul %12, %41, %cst_51 {dimension_numbers = #tpu.dot_dimension_numbers<[1], [0], [0], [1], [0, 0, 1, 1], [], []>} : vector<24x16xf32>, vector<16x32xf32>, vector<24x32xf32> -> vector<24x32xf32>
    %c0_52 = arith.constant 0 : index
    %c0_53 = arith.constant 0 : index
    %c0_54 = arith.constant 0 : index
    %43 = vector.load %arg4[%c0_52, %c0_53, %c0_54] : memref<3x16x32xf32, #tpu.memory_space<vmem>>, vector<1x16x32xf32>
    %44 = vector.shape_cast %43 : vector<1x16x32xf32> to vector<16x32xf32>
    %cst_55 = arith.constant dense<0.000000e+00> : vector<24x32xf32>
    %45 = tpu.matmul %15, %44, %cst_55 {dimension_numbers = #tpu.dot_dimension_numbers<[1], [0], [0], [1], [0, 0, 1, 1], [], []>} : vector<24x16xf32>, vector<16x32xf32>, vector<24x32xf32> -> vector<24x32xf32>
    %c1_56 = arith.constant 1 : index
    %c0_57 = arith.constant 0 : index
    %c0_58 = arith.constant 0 : index
    %46 = vector.load %arg4[%c1_56, %c0_57, %c0_58] : memref<3x16x32xf32, #tpu.memory_space<vmem>>, vector<1x16x32xf32>
    %47 = vector.shape_cast %46 : vector<1x16x32xf32> to vector<16x32xf32>
    %cst_59 = arith.constant dense<0.000000e+00> : vector<24x32xf32>
    %48 = tpu.matmul %15, %47, %cst_59 {dimension_numbers = #tpu.dot_dimension_numbers<[1], [0], [0], [1], [0, 0, 1, 1], [], []>} : vector<24x16xf32>, vector<16x32xf32>, vector<24x32xf32> -> vector<24x32xf32>
    %c2_60 = arith.constant 2 : index
    %c0_61 = arith.constant 0 : index
    %c0_62 = arith.constant 0 : index
    %49 = vector.load %arg4[%c2_60, %c0_61, %c0_62] : memref<3x16x32xf32, #tpu.memory_space<vmem>>, vector<1x16x32xf32>
    %50 = vector.shape_cast %49 : vector<1x16x32xf32> to vector<16x32xf32>
    %cst_63 = arith.constant dense<0.000000e+00> : vector<24x32xf32>
    %51 = tpu.matmul %15, %50, %cst_63 {dimension_numbers = #tpu.dot_dimension_numbers<[1], [0], [0], [1], [0, 0, 1, 1], [], []>} : vector<24x16xf32>, vector<16x32xf32>, vector<24x32xf32> -> vector<24x32xf32>
    %c0_64 = arith.constant 0 : index
    %52 = memref.load %arg6[%c0_64] : memref<8xf32, #tpu.memory_space<smem>>
    %53 = vector.broadcast %52 : f32 to vector<16x32xf32>
    %54 = vector.extract_strided_slice %18 {offsets = [0, 0], sizes = [16, 32], strides = [1, 1]} : vector<24x32xf32> to vector<16x32xf32>
    %c0_65 = arith.constant 0 : index
    %c0_66 = arith.constant 0 : index
    %55 = memref.load %arg5[%c0_65, %c0_66] : memref<8x36xf32, #tpu.memory_space<smem>>
    %56 = vector.broadcast %55 : f32 to vector<16x32xf32>
    %57 = arith.mulf %56, %54 : vector<16x32xf32>
    %58 = arith.addf %53, %57 : vector<16x32xf32>
    %59 = vector.extract_strided_slice %21 {offsets = [0, 0], sizes = [16, 32], strides = [1, 1]} : vector<24x32xf32> to vector<16x32xf32>
    %c0_67 = arith.constant 0 : index
    %c1_68 = arith.constant 1 : index
    %60 = memref.load %arg5[%c0_67, %c1_68] : memref<8x36xf32, #tpu.memory_space<smem>>
    %61 = vector.broadcast %60 : f32 to vector<16x32xf32>
    %62 = arith.mulf %61, %59 : vector<16x32xf32>
    %63 = arith.addf %58, %62 : vector<16x32xf32>
    %64 = vector.extract_strided_slice %24 {offsets = [0, 0], sizes = [16, 32], strides = [1, 1]} : vector<24x32xf32> to vector<16x32xf32>
    %c0_69 = arith.constant 0 : index
    %c2_70 = arith.constant 2 : index
    %65 = memref.load %arg5[%c0_69, %c2_70] : memref<8x36xf32, #tpu.memory_space<smem>>
    %66 = vector.broadcast %65 : f32 to vector<16x32xf32>
    %67 = arith.mulf %66, %64 : vector<16x32xf32>
    %68 = arith.addf %63, %67 : vector<16x32xf32>
    %69 = vector.extract_strided_slice %18 {offsets = [1, 0], sizes = [16, 32], strides = [1, 1]} : vector<24x32xf32> to vector<16x32xf32>
    %c0_71 = arith.constant 0 : index
    %c3_72 = arith.constant 3 : index
    %70 = memref.load %arg5[%c0_71, %c3_72] : memref<8x36xf32, #tpu.memory_space<smem>>
    %71 = vector.broadcast %70 : f32 to vector<16x32xf32>
    %72 = arith.mulf %71, %69 : vector<16x32xf32>
    %73 = arith.addf %68, %72 : vector<16x32xf32>
    %74 = vector.extract_strided_slice %21 {offsets = [1, 0], sizes = [16, 32], strides = [1, 1]} : vector<24x32xf32> to vector<16x32xf32>
    %c0_73 = arith.constant 0 : index
    %c4 = arith.constant 4 : index
    %75 = memref.load %arg5[%c0_73, %c4] : memref<8x36xf32, #tpu.memory_space<smem>>
    %76 = vector.broadcast %75 : f32 to vector<16x32xf32>
    %77 = arith.mulf %76, %74 : vector<16x32xf32>
    %78 = arith.addf %73, %77 : vector<16x32xf32>
    %79 = vector.extract_strided_slice %24 {offsets = [1, 0], sizes = [16, 32], strides = [1, 1]} : vector<24x32xf32> to vector<16x32xf32>
    %c0_74 = arith.constant 0 : index
    %c5 = arith.constant 5 : index
    %80 = memref.load %arg5[%c0_74, %c5] : memref<8x36xf32, #tpu.memory_space<smem>>
    %81 = vector.broadcast %80 : f32 to vector<16x32xf32>
    %82 = arith.mulf %81, %79 : vector<16x32xf32>
    %83 = arith.addf %78, %82 : vector<16x32xf32>
    %84 = vector.extract_strided_slice %18 {offsets = [2, 0], sizes = [16, 32], strides = [1, 1]} : vector<24x32xf32> to vector<16x32xf32>
    %c0_75 = arith.constant 0 : index
    %c6 = arith.constant 6 : index
    %85 = memref.load %arg5[%c0_75, %c6] : memref<8x36xf32, #tpu.memory_space<smem>>
    %86 = vector.broadcast %85 : f32 to vector<16x32xf32>
    %87 = arith.mulf %86, %84 : vector<16x32xf32>
    %88 = arith.addf %83, %87 : vector<16x32xf32>
    %89 = vector.extract_strided_slice %21 {offsets = [2, 0], sizes = [16, 32], strides = [1, 1]} : vector<24x32xf32> to vector<16x32xf32>
    %c0_76 = arith.constant 0 : index
    %c7 = arith.constant 7 : index
    %90 = memref.load %arg5[%c0_76, %c7] : memref<8x36xf32, #tpu.memory_space<smem>>
    %91 = vector.broadcast %90 : f32 to vector<16x32xf32>
    %92 = arith.mulf %91, %89 : vector<16x32xf32>
    %93 = arith.addf %88, %92 : vector<16x32xf32>
    %94 = vector.extract_strided_slice %24 {offsets = [2, 0], sizes = [16, 32], strides = [1, 1]} : vector<24x32xf32> to vector<16x32xf32>
    %c0_77 = arith.constant 0 : index
    %c8 = arith.constant 8 : index
    %95 = memref.load %arg5[%c0_77, %c8] : memref<8x36xf32, #tpu.memory_space<smem>>
    %96 = vector.broadcast %95 : f32 to vector<16x32xf32>
    %97 = arith.mulf %96, %94 : vector<16x32xf32>
    %98 = arith.addf %93, %97 : vector<16x32xf32>
    %99 = vector.extract_strided_slice %27 {offsets = [0, 0], sizes = [16, 32], strides = [1, 1]} : vector<24x32xf32> to vector<16x32xf32>
    %c0_78 = arith.constant 0 : index
    %c9 = arith.constant 9 : index
    %100 = memref.load %arg5[%c0_78, %c9] : memref<8x36xf32, #tpu.memory_space<smem>>
    %101 = vector.broadcast %100 : f32 to vector<16x32xf32>
    %102 = arith.mulf %101, %99 : vector<16x32xf32>
    %103 = arith.addf %98, %102 : vector<16x32xf32>
    %104 = vector.extract_strided_slice %30 {offsets = [0, 0], sizes = [16, 32], strides = [1, 1]} : vector<24x32xf32> to vector<16x32xf32>
    %c0_79 = arith.constant 0 : index
    %c10 = arith.constant 10 : index
    %105 = memref.load %arg5[%c0_79, %c10] : memref<8x36xf32, #tpu.memory_space<smem>>
    %106 = vector.broadcast %105 : f32 to vector<16x32xf32>
    %107 = arith.mulf %106, %104 : vector<16x32xf32>
    %108 = arith.addf %103, %107 : vector<16x32xf32>
    %109 = vector.extract_strided_slice %33 {offsets = [0, 0], sizes = [16, 32], strides = [1, 1]} : vector<24x32xf32> to vector<16x32xf32>
    %c0_80 = arith.constant 0 : index
    %c11 = arith.constant 11 : index
    %110 = memref.load %arg5[%c0_80, %c11] : memref<8x36xf32, #tpu.memory_space<smem>>
    %111 = vector.broadcast %110 : f32 to vector<16x32xf32>
    %112 = arith.mulf %111, %109 : vector<16x32xf32>
    %113 = arith.addf %108, %112 : vector<16x32xf32>
    %114 = vector.extract_strided_slice %27 {offsets = [1, 0], sizes = [16, 32], strides = [1, 1]} : vector<24x32xf32> to vector<16x32xf32>
    %c0_81 = arith.constant 0 : index
    %c12 = arith.constant 12 : index
    %115 = memref.load %arg5[%c0_81, %c12] : memref<8x36xf32, #tpu.memory_space<smem>>
    %116 = vector.broadcast %115 : f32 to vector<16x32xf32>
    %117 = arith.mulf %116, %114 : vector<16x32xf32>
    %118 = arith.addf %113, %117 : vector<16x32xf32>
    %119 = vector.extract_strided_slice %30 {offsets = [1, 0], sizes = [16, 32], strides = [1, 1]} : vector<24x32xf32> to vector<16x32xf32>
    %c0_82 = arith.constant 0 : index
    %c13 = arith.constant 13 : index
    %120 = memref.load %arg5[%c0_82, %c13] : memref<8x36xf32, #tpu.memory_space<smem>>
    %121 = vector.broadcast %120 : f32 to vector<16x32xf32>
    %122 = arith.mulf %121, %119 : vector<16x32xf32>
    %123 = arith.addf %118, %122 : vector<16x32xf32>
    %124 = vector.extract_strided_slice %33 {offsets = [1, 0], sizes = [16, 32], strides = [1, 1]} : vector<24x32xf32> to vector<16x32xf32>
    %c0_83 = arith.constant 0 : index
    %c14 = arith.constant 14 : index
    %125 = memref.load %arg5[%c0_83, %c14] : memref<8x36xf32, #tpu.memory_space<smem>>
    %126 = vector.broadcast %125 : f32 to vector<16x32xf32>
    %127 = arith.mulf %126, %124 : vector<16x32xf32>
    %128 = arith.addf %123, %127 : vector<16x32xf32>
    %129 = vector.extract_strided_slice %27 {offsets = [2, 0], sizes = [16, 32], strides = [1, 1]} : vector<24x32xf32> to vector<16x32xf32>
    %c0_84 = arith.constant 0 : index
    %c15 = arith.constant 15 : index
    %130 = memref.load %arg5[%c0_84, %c15] : memref<8x36xf32, #tpu.memory_space<smem>>
    %131 = vector.broadcast %130 : f32 to vector<16x32xf32>
    %132 = arith.mulf %131, %129 : vector<16x32xf32>
    %133 = arith.addf %128, %132 : vector<16x32xf32>
    %134 = vector.extract_strided_slice %30 {offsets = [2, 0], sizes = [16, 32], strides = [1, 1]} : vector<24x32xf32> to vector<16x32xf32>
    %c0_85 = arith.constant 0 : index
    %c16 = arith.constant 16 : index
    %135 = memref.load %arg5[%c0_85, %c16] : memref<8x36xf32, #tpu.memory_space<smem>>
    %136 = vector.broadcast %135 : f32 to vector<16x32xf32>
    %137 = arith.mulf %136, %134 : vector<16x32xf32>
    %138 = arith.addf %133, %137 : vector<16x32xf32>
    %139 = vector.extract_strided_slice %33 {offsets = [2, 0], sizes = [16, 32], strides = [1, 1]} : vector<24x32xf32> to vector<16x32xf32>
    %c0_86 = arith.constant 0 : index
    %c17 = arith.constant 17 : index
    %140 = memref.load %arg5[%c0_86, %c17] : memref<8x36xf32, #tpu.memory_space<smem>>
    %141 = vector.broadcast %140 : f32 to vector<16x32xf32>
    %142 = arith.mulf %141, %139 : vector<16x32xf32>
    %143 = arith.addf %138, %142 : vector<16x32xf32>
    %144 = vector.extract_strided_slice %36 {offsets = [0, 0], sizes = [16, 32], strides = [1, 1]} : vector<24x32xf32> to vector<16x32xf32>
    %c0_87 = arith.constant 0 : index
    %c18 = arith.constant 18 : index
    %145 = memref.load %arg5[%c0_87, %c18] : memref<8x36xf32, #tpu.memory_space<smem>>
    %146 = vector.broadcast %145 : f32 to vector<16x32xf32>
    %147 = arith.mulf %146, %144 : vector<16x32xf32>
    %148 = arith.addf %143, %147 : vector<16x32xf32>
    %149 = vector.extract_strided_slice %39 {offsets = [0, 0], sizes = [16, 32], strides = [1, 1]} : vector<24x32xf32> to vector<16x32xf32>
    %c0_88 = arith.constant 0 : index
    %c19 = arith.constant 19 : index
    %150 = memref.load %arg5[%c0_88, %c19] : memref<8x36xf32, #tpu.memory_space<smem>>
    %151 = vector.broadcast %150 : f32 to vector<16x32xf32>
    %152 = arith.mulf %151, %149 : vector<16x32xf32>
    %153 = arith.addf %148, %152 : vector<16x32xf32>
    %154 = vector.extract_strided_slice %42 {offsets = [0, 0], sizes = [16, 32], strides = [1, 1]} : vector<24x32xf32> to vector<16x32xf32>
    %c0_89 = arith.constant 0 : index
    %c20 = arith.constant 20 : index
    %155 = memref.load %arg5[%c0_89, %c20] : memref<8x36xf32, #tpu.memory_space<smem>>
    %156 = vector.broadcast %155 : f32 to vector<16x32xf32>
    %157 = arith.mulf %156, %154 : vector<16x32xf32>
    %158 = arith.addf %153, %157 : vector<16x32xf32>
    %159 = vector.extract_strided_slice %36 {offsets = [1, 0], sizes = [16, 32], strides = [1, 1]} : vector<24x32xf32> to vector<16x32xf32>
    %c0_90 = arith.constant 0 : index
    %c21 = arith.constant 21 : index
    %160 = memref.load %arg5[%c0_90, %c21] : memref<8x36xf32, #tpu.memory_space<smem>>
    %161 = vector.broadcast %160 : f32 to vector<16x32xf32>
    %162 = arith.mulf %161, %159 : vector<16x32xf32>
    %163 = arith.addf %158, %162 : vector<16x32xf32>
    %164 = vector.extract_strided_slice %39 {offsets = [1, 0], sizes = [16, 32], strides = [1, 1]} : vector<24x32xf32> to vector<16x32xf32>
    %c0_91 = arith.constant 0 : index
    %c22 = arith.constant 22 : index
    %165 = memref.load %arg5[%c0_91, %c22] : memref<8x36xf32, #tpu.memory_space<smem>>
    %166 = vector.broadcast %165 : f32 to vector<16x32xf32>
    %167 = arith.mulf %166, %164 : vector<16x32xf32>
    %168 = arith.addf %163, %167 : vector<16x32xf32>
    %169 = vector.extract_strided_slice %42 {offsets = [1, 0], sizes = [16, 32], strides = [1, 1]} : vector<24x32xf32> to vector<16x32xf32>
    %c0_92 = arith.constant 0 : index
    %c23 = arith.constant 23 : index
    %170 = memref.load %arg5[%c0_92, %c23] : memref<8x36xf32, #tpu.memory_space<smem>>
    %171 = vector.broadcast %170 : f32 to vector<16x32xf32>
    %172 = arith.mulf %171, %169 : vector<16x32xf32>
    %173 = arith.addf %168, %172 : vector<16x32xf32>
    %174 = vector.extract_strided_slice %36 {offsets = [2, 0], sizes = [16, 32], strides = [1, 1]} : vector<24x32xf32> to vector<16x32xf32>
    %c0_93 = arith.constant 0 : index
    %c24 = arith.constant 24 : index
    %175 = memref.load %arg5[%c0_93, %c24] : memref<8x36xf32, #tpu.memory_space<smem>>
    %176 = vector.broadcast %175 : f32 to vector<16x32xf32>
    %177 = arith.mulf %176, %174 : vector<16x32xf32>
    %178 = arith.addf %173, %177 : vector<16x32xf32>
    %179 = vector.extract_strided_slice %39 {offsets = [2, 0], sizes = [16, 32], strides = [1, 1]} : vector<24x32xf32> to vector<16x32xf32>
    %c0_94 = arith.constant 0 : index
    %c25 = arith.constant 25 : index
    %180 = memref.load %arg5[%c0_94, %c25] : memref<8x36xf32, #tpu.memory_space<smem>>
    %181 = vector.broadcast %180 : f32 to vector<16x32xf32>
    %182 = arith.mulf %181, %179 : vector<16x32xf32>
    %183 = arith.addf %178, %182 : vector<16x32xf32>
    %184 = vector.extract_strided_slice %42 {offsets = [2, 0], sizes = [16, 32], strides = [1, 1]} : vector<24x32xf32> to vector<16x32xf32>
    %c0_95 = arith.constant 0 : index
    %c26 = arith.constant 26 : index
    %185 = memref.load %arg5[%c0_95, %c26] : memref<8x36xf32, #tpu.memory_space<smem>>
    %186 = vector.broadcast %185 : f32 to vector<16x32xf32>
    %187 = arith.mulf %186, %184 : vector<16x32xf32>
    %188 = arith.addf %183, %187 : vector<16x32xf32>
    %189 = vector.extract_strided_slice %45 {offsets = [0, 0], sizes = [16, 32], strides = [1, 1]} : vector<24x32xf32> to vector<16x32xf32>
    %c0_96 = arith.constant 0 : index
    %c27 = arith.constant 27 : index
    %190 = memref.load %arg5[%c0_96, %c27] : memref<8x36xf32, #tpu.memory_space<smem>>
    %191 = vector.broadcast %190 : f32 to vector<16x32xf32>
    %192 = arith.mulf %191, %189 : vector<16x32xf32>
    %193 = arith.addf %188, %192 : vector<16x32xf32>
    %194 = vector.extract_strided_slice %48 {offsets = [0, 0], sizes = [16, 32], strides = [1, 1]} : vector<24x32xf32> to vector<16x32xf32>
    %c0_97 = arith.constant 0 : index
    %c28 = arith.constant 28 : index
    %195 = memref.load %arg5[%c0_97, %c28] : memref<8x36xf32, #tpu.memory_space<smem>>
    %196 = vector.broadcast %195 : f32 to vector<16x32xf32>
    %197 = arith.mulf %196, %194 : vector<16x32xf32>
    %198 = arith.addf %193, %197 : vector<16x32xf32>
    %199 = vector.extract_strided_slice %51 {offsets = [0, 0], sizes = [16, 32], strides = [1, 1]} : vector<24x32xf32> to vector<16x32xf32>
    %c0_98 = arith.constant 0 : index
    %c29 = arith.constant 29 : index
    %200 = memref.load %arg5[%c0_98, %c29] : memref<8x36xf32, #tpu.memory_space<smem>>
    %201 = vector.broadcast %200 : f32 to vector<16x32xf32>
    %202 = arith.mulf %201, %199 : vector<16x32xf32>
    %203 = arith.addf %198, %202 : vector<16x32xf32>
    %204 = vector.extract_strided_slice %45 {offsets = [1, 0], sizes = [16, 32], strides = [1, 1]} : vector<24x32xf32> to vector<16x32xf32>
    %c0_99 = arith.constant 0 : index
    %c30 = arith.constant 30 : index
    %205 = memref.load %arg5[%c0_99, %c30] : memref<8x36xf32, #tpu.memory_space<smem>>
    %206 = vector.broadcast %205 : f32 to vector<16x32xf32>
    %207 = arith.mulf %206, %204 : vector<16x32xf32>
    %208 = arith.addf %203, %207 : vector<16x32xf32>
    %209 = vector.extract_strided_slice %48 {offsets = [1, 0], sizes = [16, 32], strides = [1, 1]} : vector<24x32xf32> to vector<16x32xf32>
    %c0_100 = arith.constant 0 : index
    %c31 = arith.constant 31 : index
    %210 = memref.load %arg5[%c0_100, %c31] : memref<8x36xf32, #tpu.memory_space<smem>>
    %211 = vector.broadcast %210 : f32 to vector<16x32xf32>
    %212 = arith.mulf %211, %209 : vector<16x32xf32>
    %213 = arith.addf %208, %212 : vector<16x32xf32>
    %214 = vector.extract_strided_slice %51 {offsets = [1, 0], sizes = [16, 32], strides = [1, 1]} : vector<24x32xf32> to vector<16x32xf32>
    %c0_101 = arith.constant 0 : index
    %c32 = arith.constant 32 : index
    %215 = memref.load %arg5[%c0_101, %c32] : memref<8x36xf32, #tpu.memory_space<smem>>
    %216 = vector.broadcast %215 : f32 to vector<16x32xf32>
    %217 = arith.mulf %216, %214 : vector<16x32xf32>
    %218 = arith.addf %213, %217 : vector<16x32xf32>
    %219 = vector.extract_strided_slice %45 {offsets = [2, 0], sizes = [16, 32], strides = [1, 1]} : vector<24x32xf32> to vector<16x32xf32>
    %c0_102 = arith.constant 0 : index
    %c33 = arith.constant 33 : index
    %220 = memref.load %arg5[%c0_102, %c33] : memref<8x36xf32, #tpu.memory_space<smem>>
    %221 = vector.broadcast %220 : f32 to vector<16x32xf32>
    %222 = arith.mulf %221, %219 : vector<16x32xf32>
    %223 = arith.addf %218, %222 : vector<16x32xf32>
    %224 = vector.extract_strided_slice %48 {offsets = [2, 0], sizes = [16, 32], strides = [1, 1]} : vector<24x32xf32> to vector<16x32xf32>
    %c0_103 = arith.constant 0 : index
    %c34 = arith.constant 34 : index
    %225 = memref.load %arg5[%c0_103, %c34] : memref<8x36xf32, #tpu.memory_space<smem>>
    %226 = vector.broadcast %225 : f32 to vector<16x32xf32>
    %227 = arith.mulf %226, %224 : vector<16x32xf32>
    %228 = arith.addf %223, %227 : vector<16x32xf32>
    %229 = vector.extract_strided_slice %51 {offsets = [2, 0], sizes = [16, 32], strides = [1, 1]} : vector<24x32xf32> to vector<16x32xf32>
    %c0_104 = arith.constant 0 : index
    %c35 = arith.constant 35 : index
    %230 = memref.load %arg5[%c0_104, %c35] : memref<8x36xf32, #tpu.memory_space<smem>>
    %231 = vector.broadcast %230 : f32 to vector<16x32xf32>
    %232 = arith.mulf %231, %229 : vector<16x32xf32>
    %233 = arith.addf %228, %232 : vector<16x32xf32>
    %c0_105 = arith.constant 0 : index
    %c0_106 = arith.constant 0 : index
    %c0_107 = arith.constant 0 : index
    %c0_108 = arith.constant 0 : index
    %234 = vector.load %arg7[%c0_105, %c0_106, %c0_107, %c0_108] : memref<1x8x16x32xf32, #tpu.memory_space<vmem>>, vector<1x1x16x32xf32>
    %235 = vector.shape_cast %234 : vector<1x1x16x32xf32> to vector<16x32xf32>
    %236 = vector.shape_cast %233 : vector<16x32xf32> to vector<1x1x16x32xf32>
    tpu.vector_store %arg7[%c0_105, %c0_106, %c0_107, %c0_108], %236 {strides = array<i32>} : memref<1x8x16x32xf32, #tpu.memory_space<vmem>>, vector<1x1x16x32xf32>,
    %c1_109 = arith.constant 1 : index
    %237 = memref.load %arg6[%c1_109] : memref<8xf32, #tpu.memory_space<smem>>
    %238 = vector.broadcast %237 : f32 to vector<16x32xf32>
    %239 = vector.extract_strided_slice %18 {offsets = [0, 0], sizes = [16, 32], strides = [1, 1]} : vector<24x32xf32> to vector<16x32xf32>
    %c1_110 = arith.constant 1 : index
    %c0_111 = arith.constant 0 : index
    %240 = memref.load %arg5[%c1_110, %c0_111] : memref<8x36xf32, #tpu.memory_space<smem>>
    %241 = vector.broadcast %240 : f32 to vector<16x32xf32>
    %242 = arith.mulf %241, %239 : vector<16x32xf32>
    %243 = arith.addf %238, %242 : vector<16x32xf32>
    %244 = vector.extract_strided_slice %21 {offsets = [0, 0], sizes = [16, 32], strides = [1, 1]} : vector<24x32xf32> to vector<16x32xf32>
    %c1_112 = arith.constant 1 : index
    %c1_113 = arith.constant 1 : index
    %245 = memref.load %arg5[%c1_112, %c1_113] : memref<8x36xf32, #tpu.memory_space<smem>>
    %246 = vector.broadcast %245 : f32 to vector<16x32xf32>
    %247 = arith.mulf %246, %244 : vector<16x32xf32>
    %248 = arith.addf %243, %247 : vector<16x32xf32>
    %249 = vector.extract_strided_slice %24 {offsets = [0, 0], sizes = [16, 32], strides = [1, 1]} : vector<24x32xf32> to vector<16x32xf32>
    %c1_114 = arith.constant 1 : index
    %c2_115 = arith.constant 2 : index
    %250 = memref.load %arg5[%c1_114, %c2_115] : memref<8x36xf32, #tpu.memory_space<smem>>
    %251 = vector.broadcast %250 : f32 to vector<16x32xf32>
    %252 = arith.mulf %251, %249 : vector<16x32xf32>
    %253 = arith.addf %248, %252 : vector<16x32xf32>
    %254 = vector.extract_strided_slice %18 {offsets = [1, 0], sizes = [16, 32], strides = [1, 1]} : vector<24x32xf32> to vector<16x32xf32>
    %c1_116 = arith.constant 1 : index
    %c3_117 = arith.constant 3 : index
    %255 = memref.load %arg5[%c1_116, %c3_117] : memref<8x36xf32, #tpu.memory_space<smem>>
    %256 = vector.broadcast %255 : f32 to vector<16x32xf32>
    %257 = arith.mulf %256, %254 : vector<16x32xf32>
    %258 = arith.addf %253, %257 : vector<16x32xf32>
    %259 = vector.extract_strided_slice %21 {offsets = [1, 0], sizes = [16, 32], strides = [1, 1]} : vector<24x32xf32> to vector<16x32xf32>
    %c1_118 = arith.constant 1 : index
    %c4_119 = arith.constant 4 : index
    %260 = memref.load %arg5[%c1_118, %c4_119] : memref<8x36xf32, #tpu.memory_space<smem>>
    %261 = vector.broadcast %260 : f32 to vector<16x32xf32>
    %262 = arith.mulf %261, %259 : vector<16x32xf32>
    %263 = arith.addf %258, %262 : vector<16x32xf32>
    %264 = vector.extract_strided_slice %24 {offsets = [1, 0], sizes = [16, 32], strides = [1, 1]} : vector<24x32xf32> to vector<16x32xf32>
    %c1_120 = arith.constant 1 : index
    %c5_121 = arith.constant 5 : index
    %265 = memref.load %arg5[%c1_120, %c5_121] : memref<8x36xf32, #tpu.memory_space<smem>>
    %266 = vector.broadcast %265 : f32 to vector<16x32xf32>
    %267 = arith.mulf %266, %264 : vector<16x32xf32>
    %268 = arith.addf %263, %267 : vector<16x32xf32>
    %269 = vector.extract_strided_slice %18 {offsets = [2, 0], sizes = [16, 32], strides = [1, 1]} : vector<24x32xf32> to vector<16x32xf32>
    %c1_122 = arith.constant 1 : index
    %c6_123 = arith.constant 6 : index
    %270 = memref.load %arg5[%c1_122, %c6_123] : memref<8x36xf32, #tpu.memory_space<smem>>
    %271 = vector.broadcast %270 : f32 to vector<16x32xf32>
    %272 = arith.mulf %271, %269 : vector<16x32xf32>
    %273 = arith.addf %268, %272 : vector<16x32xf32>
    %274 = vector.extract_strided_slice %21 {offsets = [2, 0], sizes = [16, 32], strides = [1, 1]} : vector<24x32xf32> to vector<16x32xf32>
    %c1_124 = arith.constant 1 : index
    %c7_125 = arith.constant 7 : index
    %275 = memref.load %arg5[%c1_124, %c7_125] : memref<8x36xf32, #tpu.memory_space<smem>>
    %276 = vector.broadcast %275 : f32 to vector<16x32xf32>
    %277 = arith.mulf %276, %274 : vector<16x32xf32>
    %278 = arith.addf %273, %277 : vector<16x32xf32>
    %279 = vector.extract_strided_slice %24 {offsets = [2, 0], sizes = [16, 32], strides = [1, 1]} : vector<24x32xf32> to vector<16x32xf32>
    %c1_126 = arith.constant 1 : index
    %c8_127 = arith.constant 8 : index
    %280 = memref.load %arg5[%c1_126, %c8_127] : memref<8x36xf32, #tpu.memory_space<smem>>
    %281 = vector.broadcast %280 : f32 to vector<16x32xf32>
    %282 = arith.mulf %281, %279 : vector<16x32xf32>
    %283 = arith.addf %278, %282 : vector<16x32xf32>
    %284 = vector.extract_strided_slice %27 {offsets = [0, 0], sizes = [16, 32], strides = [1, 1]} : vector<24x32xf32> to vector<16x32xf32>
    %c1_128 = arith.constant 1 : index
    %c9_129 = arith.constant 9 : index
    %285 = memref.load %arg5[%c1_128, %c9_129] : memref<8x36xf32, #tpu.memory_space<smem>>
    %286 = vector.broadcast %285 : f32 to vector<16x32xf32>
    %287 = arith.mulf %286, %284 : vector<16x32xf32>
    %288 = arith.addf %283, %287 : vector<16x32xf32>
    %289 = vector.extract_strided_slice %30 {offsets = [0, 0], sizes = [16, 32], strides = [1, 1]} : vector<24x32xf32> to vector<16x32xf32>
    %c1_130 = arith.constant 1 : index
    %c10_131 = arith.constant 10 : index
    %290 = memref.load %arg5[%c1_130, %c10_131] : memref<8x36xf32, #tpu.memory_space<smem>>
    %291 = vector.broadcast %290 : f32 to vector<16x32xf32>
    %292 = arith.mulf %291, %289 : vector<16x32xf32>
    %293 = arith.addf %288, %292 : vector<16x32xf32>
    %294 = vector.extract_strided_slice %33 {offsets = [0, 0], sizes = [16, 32], strides = [1, 1]} : vector<24x32xf32> to vector<16x32xf32>
    %c1_132 = arith.constant 1 : index
    %c11_133 = arith.constant 11 : index
    %295 = memref.load %arg5[%c1_132, %c11_133] : memref<8x36xf32, #tpu.memory_space<smem>>
    %296 = vector.broadcast %295 : f32 to vector<16x32xf32>
    %297 = arith.mulf %296, %294 : vector<16x32xf32>
    %298 = arith.addf %293, %297 : vector<16x32xf32>
    %299 = vector.extract_strided_slice %27 {offsets = [1, 0], sizes = [16, 32], strides = [1, 1]} : vector<24x32xf32> to vector<16x32xf32>
    %c1_134 = arith.constant 1 : index
    %c12_135 = arith.constant 12 : index
    %300 = memref.load %arg5[%c1_134, %c12_135] : memref<8x36xf32, #tpu.memory_space<smem>>
    %301 = vector.broadcast %300 : f32 to vector<16x32xf32>
    %302 = arith.mulf %301, %299 : vector<16x32xf32>
    %303 = arith.addf %298, %302 : vector<16x32xf32>
    %304 = vector.extract_strided_slice %30 {offsets = [1, 0], sizes = [16, 32], strides = [1, 1]} : vector<24x32xf32> to vector<16x32xf32>
    %c1_136 = arith.constant 1 : index
    %c13_137 = arith.constant 13 : index
    %305 = memref.load %arg5[%c1_136, %c13_137] : memref<8x36xf32, #tpu.memory_space<smem>>
    %306 = vector.broadcast %305 : f32 to vector<16x32xf32>
    %307 = arith.mulf %306, %304 : vector<16x32xf32>
    %308 = arith.addf %303, %307 : vector<16x32xf32>
    %309 = vector.extract_strided_slice %33 {offsets = [1, 0], sizes = [16, 32], strides = [1, 1]} : vector<24x32xf32> to vector<16x32xf32>
    %c1_138 = arith.constant 1 : index
    %c14_139 = arith.constant 14 : index
    %310 = memref.load %arg5[%c1_138, %c14_139] : memref<8x36xf32, #tpu.memory_space<smem>>
    %311 = vector.broadcast %310 : f32 to vector<16x32xf32>
    %312 = arith.mulf %311, %309 : vector<16x32xf32>
    %313 = arith.addf %308, %312 : vector<16x32xf32>
    %314 = vector.extract_strided_slice %27 {offsets = [2, 0], sizes = [16, 32], strides = [1, 1]} : vector<24x32xf32> to vector<16x32xf32>
    %c1_140 = arith.constant 1 : index
    %c15_141 = arith.constant 15 : index
    %315 = memref.load %arg5[%c1_140, %c15_141] : memref<8x36xf32, #tpu.memory_space<smem>>
    %316 = vector.broadcast %315 : f32 to vector<16x32xf32>
    %317 = arith.mulf %316, %314 : vector<16x32xf32>
    %318 = arith.addf %313, %317 : vector<16x32xf32>
    %319 = vector.extract_strided_slice %30 {offsets = [2, 0], sizes = [16, 32], strides = [1, 1]} : vector<24x32xf32> to vector<16x32xf32>
    %c1_142 = arith.constant 1 : index
    %c16_143 = arith.constant 16 : index
    %320 = memref.load %arg5[%c1_142, %c16_143] : memref<8x36xf32, #tpu.memory_space<smem>>
    %321 = vector.broadcast %320 : f32 to vector<16x32xf32>
    %322 = arith.mulf %321, %319 : vector<16x32xf32>
    %323 = arith.addf %318, %322 : vector<16x32xf32>
    %324 = vector.extract_strided_slice %33 {offsets = [2, 0], sizes = [16, 32], strides = [1, 1]} : vector<24x32xf32> to vector<16x32xf32>
    %c1_144 = arith.constant 1 : index
    %c17_145 = arith.constant 17 : index
    %325 = memref.load %arg5[%c1_144, %c17_145] : memref<8x36xf32, #tpu.memory_space<smem>>
    %326 = vector.broadcast %325 : f32 to vector<16x32xf32>
    %327 = arith.mulf %326, %324 : vector<16x32xf32>
    %328 = arith.addf %323, %327 : vector<16x32xf32>
    %329 = vector.extract_strided_slice %36 {offsets = [0, 0], sizes = [16, 32], strides = [1, 1]} : vector<24x32xf32> to vector<16x32xf32>
    %c1_146 = arith.constant 1 : index
    %c18_147 = arith.constant 18 : index
    %330 = memref.load %arg5[%c1_146, %c18_147] : memref<8x36xf32, #tpu.memory_space<smem>>
    %331 = vector.broadcast %330 : f32 to vector<16x32xf32>
    %332 = arith.mulf %331, %329 : vector<16x32xf32>
    %333 = arith.addf %328, %332 : vector<16x32xf32>
    %334 = vector.extract_strided_slice %39 {offsets = [0, 0], sizes = [16, 32], strides = [1, 1]} : vector<24x32xf32> to vector<16x32xf32>
    %c1_148 = arith.constant 1 : index
    %c19_149 = arith.constant 19 : index
    %335 = memref.load %arg5[%c1_148, %c19_149] : memref<8x36xf32, #tpu.memory_space<smem>>
    %336 = vector.broadcast %335 : f32 to vector<16x32xf32>
    %337 = arith.mulf %336, %334 : vector<16x32xf32>
    %338 = arith.addf %333, %337 : vector<16x32xf32>
    %339 = vector.extract_strided_slice %42 {offsets = [0, 0], sizes = [16, 32], strides = [1, 1]} : vector<24x32xf32> to vector<16x32xf32>
    %c1_150 = arith.constant 1 : index
    %c20_151 = arith.constant 20 : index
    %340 = memref.load %arg5[%c1_150, %c20_151] : memref<8x36xf32, #tpu.memory_space<smem>>
    %341 = vector.broadcast %340 : f32 to vector<16x32xf32>
    %342 = arith.mulf %341, %339 : vector<16x32xf32>
    %343 = arith.addf %338, %342 : vector<16x32xf32>
    %344 = vector.extract_strided_slice %36 {offsets = [1, 0], sizes = [16, 32], strides = [1, 1]} : vector<24x32xf32> to vector<16x32xf32>
    %c1_152 = arith.constant 1 : index
    %c21_153 = arith.constant 21 : index
    %345 = memref.load %arg5[%c1_152, %c21_153] : memref<8x36xf32, #tpu.memory_space<smem>>
    %346 = vector.broadcast %345 : f32 to vector<16x32xf32>
    %347 = arith.mulf %346, %344 : vector<16x32xf32>
    %348 = arith.addf %343, %347 : vector<16x32xf32>
    %349 = vector.extract_strided_slice %39 {offsets = [1, 0], sizes = [16, 32], strides = [1, 1]} : vector<24x32xf32> to vector<16x32xf32>
    %c1_154 = arith.constant 1 : index
    %c22_155 = arith.constant 22 : index
    %350 = memref.load %arg5[%c1_154, %c22_155] : memref<8x36xf32, #tpu.memory_space<smem>>
    %351 = vector.broadcast %350 : f32 to vector<16x32xf32>
    %352 = arith.mulf %351, %349 : vector<16x32xf32>
    %353 = arith.addf %348, %352 : vector<16x32xf32>
    %354 = vector.extract_strided_slice %42 {offsets = [1, 0], sizes = [16, 32], strides = [1, 1]} : vector<24x32xf32> to vector<16x32xf32>
    %c1_156 = arith.constant 1 : index
    %c23_157 = arith.constant 23 : index
    %355 = memref.load %arg5[%c1_156, %c23_157] : memref<8x36xf32, #tpu.memory_space<smem>>
    %356 = vector.broadcast %355 : f32 to vector<16x32xf32>
    %357 = arith.mulf %356, %354 : vector<16x32xf32>
    %358 = arith.addf %353, %357 : vector<16x32xf32>
    %359 = vector.extract_strided_slice %36 {offsets = [2, 0], sizes = [16, 32], strides = [1, 1]} : vector<24x32xf32> to vector<16x32xf32>
    %c1_158 = arith.constant 1 : index
    %c24_159 = arith.constant 24 : index
    %360 = memref.load %arg5[%c1_158, %c24_159] : memref<8x36xf32, #tpu.memory_space<smem>>
    %361 = vector.broadcast %360 : f32 to vector<16x32xf32>
    %362 = arith.mulf %361, %359 : vector<16x32xf32>
    %363 = arith.addf %358, %362 : vector<16x32xf32>
    %364 = vector.extract_strided_slice %39 {offsets = [2, 0], sizes = [16, 32], strides = [1, 1]} : vector<24x32xf32> to vector<16x32xf32>
    %c1_160 = arith.constant 1 : index
    %c25_161 = arith.constant 25 : index
    %365 = memref.load %arg5[%c1_160, %c25_161] : memref<8x36xf32, #tpu.memory_space<smem>>
    %366 = vector.broadcast %365 : f32 to vector<16x32xf32>
    %367 = arith.mulf %366, %364 : vector<16x32xf32>
    %368 = arith.addf %363, %367 : vector<16x32xf32>
    %369 = vector.extract_strided_slice %42 {offsets = [2, 0], sizes = [16, 32], strides = [1, 1]} : vector<24x32xf32> to vector<16x32xf32>
    %c1_162 = arith.constant 1 : index
    %c26_163 = arith.constant 26 : index
    %370 = memref.load %arg5[%c1_162, %c26_163] : memref<8x36xf32, #tpu.memory_space<smem>>
    %371 = vector.broadcast %370 : f32 to vector<16x32xf32>
    %372 = arith.mulf %371, %369 : vector<16x32xf32>
    %373 = arith.addf %368, %372 : vector<16x32xf32>
    %374 = vector.extract_strided_slice %45 {offsets = [0, 0], sizes = [16, 32], strides = [1, 1]} : vector<24x32xf32> to vector<16x32xf32>
    %c1_164 = arith.constant 1 : index
    %c27_165 = arith.constant 27 : index
    %375 = memref.load %arg5[%c1_164, %c27_165] : memref<8x36xf32, #tpu.memory_space<smem>>
    %376 = vector.broadcast %375 : f32 to vector<16x32xf32>
    %377 = arith.mulf %376, %374 : vector<16x32xf32>
    %378 = arith.addf %373, %377 : vector<16x32xf32>
    %379 = vector.extract_strided_slice %48 {offsets = [0, 0], sizes = [16, 32], strides = [1, 1]} : vector<24x32xf32> to vector<16x32xf32>
    %c1_166 = arith.constant 1 : index
    %c28_167 = arith.constant 28 : index
    %380 = memref.load %arg5[%c1_166, %c28_167] : memref<8x36xf32, #tpu.memory_space<smem>>
    %381 = vector.broadcast %380 : f32 to vector<16x32xf32>
    %382 = arith.mulf %381, %379 : vector<16x32xf32>
    %383 = arith.addf %378, %382 : vector<16x32xf32>
    %384 = vector.extract_strided_slice %51 {offsets = [0, 0], sizes = [16, 32], strides = [1, 1]} : vector<24x32xf32> to vector<16x32xf32>
    %c1_168 = arith.constant 1 : index
    %c29_169 = arith.constant 29 : index
    %385 = memref.load %arg5[%c1_168, %c29_169] : memref<8x36xf32, #tpu.memory_space<smem>>
    %386 = vector.broadcast %385 : f32 to vector<16x32xf32>
    %387 = arith.mulf %386, %384 : vector<16x32xf32>
    %388 = arith.addf %383, %387 : vector<16x32xf32>
    %389 = vector.extract_strided_slice %45 {offsets = [1, 0], sizes = [16, 32], strides = [1, 1]} : vector<24x32xf32> to vector<16x32xf32>
    %c1_170 = arith.constant 1 : index
    %c30_171 = arith.constant 30 : index
    %390 = memref.load %arg5[%c1_170, %c30_171] : memref<8x36xf32, #tpu.memory_space<smem>>
    %391 = vector.broadcast %390 : f32 to vector<16x32xf32>
    %392 = arith.mulf %391, %389 : vector<16x32xf32>
    %393 = arith.addf %388, %392 : vector<16x32xf32>
    %394 = vector.extract_strided_slice %48 {offsets = [1, 0], sizes = [16, 32], strides = [1, 1]} : vector<24x32xf32> to vector<16x32xf32>
    %c1_172 = arith.constant 1 : index
    %c31_173 = arith.constant 31 : index
    %395 = memref.load %arg5[%c1_172, %c31_173] : memref<8x36xf32, #tpu.memory_space<smem>>
    %396 = vector.broadcast %395 : f32 to vector<16x32xf32>
    %397 = arith.mulf %396, %394 : vector<16x32xf32>
    %398 = arith.addf %393, %397 : vector<16x32xf32>
    %399 = vector.extract_strided_slice %51 {offsets = [1, 0], sizes = [16, 32], strides = [1, 1]} : vector<24x32xf32> to vector<16x32xf32>
    %c1_174 = arith.constant 1 : index
    %c32_175 = arith.constant 32 : index
    %400 = memref.load %arg5[%c1_174, %c32_175] : memref<8x36xf32, #tpu.memory_space<smem>>
    %401 = vector.broadcast %400 : f32 to vector<16x32xf32>
    %402 = arith.mulf %401, %399 : vector<16x32xf32>
    %403 = arith.addf %398, %402 : vector<16x32xf32>
    %404 = vector.extract_strided_slice %45 {offsets = [2, 0], sizes = [16, 32], strides = [1, 1]} : vector<24x32xf32> to vector<16x32xf32>
    %c1_176 = arith.constant 1 : index
    %c33_177 = arith.constant 33 : index
    %405 = memref.load %arg5[%c1_176, %c33_177] : memref<8x36xf32, #tpu.memory_space<smem>>
    %406 = vector.broadcast %405 : f32 to vector<16x32xf32>
    %407 = arith.mulf %406, %404 : vector<16x32xf32>
    %408 = arith.addf %403, %407 : vector<16x32xf32>
    %409 = vector.extract_strided_slice %48 {offsets = [2, 0], sizes = [16, 32], strides = [1, 1]} : vector<24x32xf32> to vector<16x32xf32>
    %c1_178 = arith.constant 1 : index
    %c34_179 = arith.constant 34 : index
    %410 = memref.load %arg5[%c1_178, %c34_179] : memref<8x36xf32, #tpu.memory_space<smem>>
    %411 = vector.broadcast %410 : f32 to vector<16x32xf32>
    %412 = arith.mulf %411, %409 : vector<16x32xf32>
    %413 = arith.addf %408, %412 : vector<16x32xf32>
    %414 = vector.extract_strided_slice %51 {offsets = [2, 0], sizes = [16, 32], strides = [1, 1]} : vector<24x32xf32> to vector<16x32xf32>
    %c1_180 = arith.constant 1 : index
    %c35_181 = arith.constant 35 : index
    %415 = memref.load %arg5[%c1_180, %c35_181] : memref<8x36xf32, #tpu.memory_space<smem>>
    %416 = vector.broadcast %415 : f32 to vector<16x32xf32>
    %417 = arith.mulf %416, %414 : vector<16x32xf32>
    %418 = arith.addf %413, %417 : vector<16x32xf32>
    %c0_182 = arith.constant 0 : index
    %c1_183 = arith.constant 1 : index
    %c0_184 = arith.constant 0 : index
    %c0_185 = arith.constant 0 : index
    %419 = vector.load %arg7[%c0_182, %c1_183, %c0_184, %c0_185] : memref<1x8x16x32xf32, #tpu.memory_space<vmem>>, vector<1x1x16x32xf32>
    %420 = vector.shape_cast %419 : vector<1x1x16x32xf32> to vector<16x32xf32>
    %421 = vector.shape_cast %418 : vector<16x32xf32> to vector<1x1x16x32xf32>
    tpu.vector_store %arg7[%c0_182, %c1_183, %c0_184, %c0_185], %421 {strides = array<i32>} : memref<1x8x16x32xf32, #tpu.memory_space<vmem>>, vector<1x1x16x32xf32>,
    %c2_186 = arith.constant 2 : index
    %422 = memref.load %arg6[%c2_186] : memref<8xf32, #tpu.memory_space<smem>>
    %423 = vector.broadcast %422 : f32 to vector<16x32xf32>
    %424 = vector.extract_strided_slice %18 {offsets = [0, 0], sizes = [16, 32], strides = [1, 1]} : vector<24x32xf32> to vector<16x32xf32>
    %c2_187 = arith.constant 2 : index
    %c0_188 = arith.constant 0 : index
    %425 = memref.load %arg5[%c2_187, %c0_188] : memref<8x36xf32, #tpu.memory_space<smem>>
    %426 = vector.broadcast %425 : f32 to vector<16x32xf32>
    %427 = arith.mulf %426, %424 : vector<16x32xf32>
    %428 = arith.addf %423, %427 : vector<16x32xf32>
    %429 = vector.extract_strided_slice %21 {offsets = [0, 0], sizes = [16, 32], strides = [1, 1]} : vector<24x32xf32> to vector<16x32xf32>
    %c2_189 = arith.constant 2 : index
    %c1_190 = arith.constant 1 : index
    %430 = memref.load %arg5[%c2_189, %c1_190] : memref<8x36xf32, #tpu.memory_space<smem>>
    %431 = vector.broadcast %430 : f32 to vector<16x32xf32>
    %432 = arith.mulf %431, %429 : vector<16x32xf32>
    %433 = arith.addf %428, %432 : vector<16x32xf32>
    %434 = vector.extract_strided_slice %24 {offsets = [0, 0], sizes = [16, 32], strides = [1, 1]} : vector<24x32xf32> to vector<16x32xf32>
    %c2_191 = arith.constant 2 : index
    %c2_192 = arith.constant 2 : index
    %435 = memref.load %arg5[%c2_191, %c2_192] : memref<8x36xf32, #tpu.memory_space<smem>>
    %436 = vector.broadcast %435 : f32 to vector<16x32xf32>
    %437 = arith.mulf %436, %434 : vector<16x32xf32>
    %438 = arith.addf %433, %437 : vector<16x32xf32>
    %439 = vector.extract_strided_slice %18 {offsets = [1, 0], sizes = [16, 32], strides = [1, 1]} : vector<24x32xf32> to vector<16x32xf32>
    %c2_193 = arith.constant 2 : index
    %c3_194 = arith.constant 3 : index
    %440 = memref.load %arg5[%c2_193, %c3_194] : memref<8x36xf32, #tpu.memory_space<smem>>
    %441 = vector.broadcast %440 : f32 to vector<16x32xf32>
    %442 = arith.mulf %441, %439 : vector<16x32xf32>
    %443 = arith.addf %438, %442 : vector<16x32xf32>
    %444 = vector.extract_strided_slice %21 {offsets = [1, 0], sizes = [16, 32], strides = [1, 1]} : vector<24x32xf32> to vector<16x32xf32>
    %c2_195 = arith.constant 2 : index
    %c4_196 = arith.constant 4 : index
    %445 = memref.load %arg5[%c2_195, %c4_196] : memref<8x36xf32, #tpu.memory_space<smem>>
    %446 = vector.broadcast %445 : f32 to vector<16x32xf32>
    %447 = arith.mulf %446, %444 : vector<16x32xf32>
    %448 = arith.addf %443, %447 : vector<16x32xf32>
    %449 = vector.extract_strided_slice %24 {offsets = [1, 0], sizes = [16, 32], strides = [1, 1]} : vector<24x32xf32> to vector<16x32xf32>
    %c2_197 = arith.constant 2 : index
    %c5_198 = arith.constant 5 : index
    %450 = memref.load %arg5[%c2_197, %c5_198] : memref<8x36xf32, #tpu.memory_space<smem>>
    %451 = vector.broadcast %450 : f32 to vector<16x32xf32>
    %452 = arith.mulf %451, %449 : vector<16x32xf32>
    %453 = arith.addf %448, %452 : vector<16x32xf32>
    %454 = vector.extract_strided_slice %18 {offsets = [2, 0], sizes = [16, 32], strides = [1, 1]} : vector<24x32xf32> to vector<16x32xf32>
    %c2_199 = arith.constant 2 : index
    %c6_200 = arith.constant 6 : index
    %455 = memref.load %arg5[%c2_199, %c6_200] : memref<8x36xf32, #tpu.memory_space<smem>>
    %456 = vector.broadcast %455 : f32 to vector<16x32xf32>
    %457 = arith.mulf %456, %454 : vector<16x32xf32>
    %458 = arith.addf %453, %457 : vector<16x32xf32>
    %459 = vector.extract_strided_slice %21 {offsets = [2, 0], sizes = [16, 32], strides = [1, 1]} : vector<24x32xf32> to vector<16x32xf32>
    %c2_201 = arith.constant 2 : index
    %c7_202 = arith.constant 7 : index
    %460 = memref.load %arg5[%c2_201, %c7_202] : memref<8x36xf32, #tpu.memory_space<smem>>
    %461 = vector.broadcast %460 : f32 to vector<16x32xf32>
    %462 = arith.mulf %461, %459 : vector<16x32xf32>
    %463 = arith.addf %458, %462 : vector<16x32xf32>
    %464 = vector.extract_strided_slice %24 {offsets = [2, 0], sizes = [16, 32], strides = [1, 1]} : vector<24x32xf32> to vector<16x32xf32>
    %c2_203 = arith.constant 2 : index
    %c8_204 = arith.constant 8 : index
    %465 = memref.load %arg5[%c2_203, %c8_204] : memref<8x36xf32, #tpu.memory_space<smem>>
    %466 = vector.broadcast %465 : f32 to vector<16x32xf32>
    %467 = arith.mulf %466, %464 : vector<16x32xf32>
    %468 = arith.addf %463, %467 : vector<16x32xf32>
    %469 = vector.extract_strided_slice %27 {offsets = [0, 0], sizes = [16, 32], strides = [1, 1]} : vector<24x32xf32> to vector<16x32xf32>
    %c2_205 = arith.constant 2 : index
    %c9_206 = arith.constant 9 : index
    %470 = memref.load %arg5[%c2_205, %c9_206] : memref<8x36xf32, #tpu.memory_space<smem>>
    %471 = vector.broadcast %470 : f32 to vector<16x32xf32>
    %472 = arith.mulf %471, %469 : vector<16x32xf32>
    %473 = arith.addf %468, %472 : vector<16x32xf32>
    %474 = vector.extract_strided_slice %30 {offsets = [0, 0], sizes = [16, 32], strides = [1, 1]} : vector<24x32xf32> to vector<16x32xf32>
    %c2_207 = arith.constant 2 : index
    %c10_208 = arith.constant 10 : index
    %475 = memref.load %arg5[%c2_207, %c10_208] : memref<8x36xf32, #tpu.memory_space<smem>>
    %476 = vector.broadcast %475 : f32 to vector<16x32xf32>
    %477 = arith.mulf %476, %474 : vector<16x32xf32>
    %478 = arith.addf %473, %477 : vector<16x32xf32>
    %479 = vector.extract_strided_slice %33 {offsets = [0, 0], sizes = [16, 32], strides = [1, 1]} : vector<24x32xf32> to vector<16x32xf32>
    %c2_209 = arith.constant 2 : index
    %c11_210 = arith.constant 11 : index
    %480 = memref.load %arg5[%c2_209, %c11_210] : memref<8x36xf32, #tpu.memory_space<smem>>
    %481 = vector.broadcast %480 : f32 to vector<16x32xf32>
    %482 = arith.mulf %481, %479 : vector<16x32xf32>
    %483 = arith.addf %478, %482 : vector<16x32xf32>
    %484 = vector.extract_strided_slice %27 {offsets = [1, 0], sizes = [16, 32], strides = [1, 1]} : vector<24x32xf32> to vector<16x32xf32>
    %c2_211 = arith.constant 2 : index
    %c12_212 = arith.constant 12 : index
    %485 = memref.load %arg5[%c2_211, %c12_212] : memref<8x36xf32, #tpu.memory_space<smem>>
    %486 = vector.broadcast %485 : f32 to vector<16x32xf32>
    %487 = arith.mulf %486, %484 : vector<16x32xf32>
    %488 = arith.addf %483, %487 : vector<16x32xf32>
    %489 = vector.extract_strided_slice %30 {offsets = [1, 0], sizes = [16, 32], strides = [1, 1]} : vector<24x32xf32> to vector<16x32xf32>
    %c2_213 = arith.constant 2 : index
    %c13_214 = arith.constant 13 : index
    %490 = memref.load %arg5[%c2_213, %c13_214] : memref<8x36xf32, #tpu.memory_space<smem>>
    %491 = vector.broadcast %490 : f32 to vector<16x32xf32>
    %492 = arith.mulf %491, %489 : vector<16x32xf32>
    %493 = arith.addf %488, %492 : vector<16x32xf32>
    %494 = vector.extract_strided_slice %33 {offsets = [1, 0], sizes = [16, 32], strides = [1, 1]} : vector<24x32xf32> to vector<16x32xf32>
    %c2_215 = arith.constant 2 : index
    %c14_216 = arith.constant 14 : index
    %495 = memref.load %arg5[%c2_215, %c14_216] : memref<8x36xf32, #tpu.memory_space<smem>>
    %496 = vector.broadcast %495 : f32 to vector<16x32xf32>
    %497 = arith.mulf %496, %494 : vector<16x32xf32>
    %498 = arith.addf %493, %497 : vector<16x32xf32>
    %499 = vector.extract_strided_slice %27 {offsets = [2, 0], sizes = [16, 32], strides = [1, 1]} : vector<24x32xf32> to vector<16x32xf32>
    %c2_217 = arith.constant 2 : index
    %c15_218 = arith.constant 15 : index
    %500 = memref.load %arg5[%c2_217, %c15_218] : memref<8x36xf32, #tpu.memory_space<smem>>
    %501 = vector.broadcast %500 : f32 to vector<16x32xf32>
    %502 = arith.mulf %501, %499 : vector<16x32xf32>
    %503 = arith.addf %498, %502 : vector<16x32xf32>
    %504 = vector.extract_strided_slice %30 {offsets = [2, 0], sizes = [16, 32], strides = [1, 1]} : vector<24x32xf32> to vector<16x32xf32>
    %c2_219 = arith.constant 2 : index
    %c16_220 = arith.constant 16 : index
    %505 = memref.load %arg5[%c2_219, %c16_220] : memref<8x36xf32, #tpu.memory_space<smem>>
    %506 = vector.broadcast %505 : f32 to vector<16x32xf32>
    %507 = arith.mulf %506, %504 : vector<16x32xf32>
    %508 = arith.addf %503, %507 : vector<16x32xf32>
    %509 = vector.extract_strided_slice %33 {offsets = [2, 0], sizes = [16, 32], strides = [1, 1]} : vector<24x32xf32> to vector<16x32xf32>
    %c2_221 = arith.constant 2 : index
    %c17_222 = arith.constant 17 : index
    %510 = memref.load %arg5[%c2_221, %c17_222] : memref<8x36xf32, #tpu.memory_space<smem>>
    %511 = vector.broadcast %510 : f32 to vector<16x32xf32>
    %512 = arith.mulf %511, %509 : vector<16x32xf32>
    %513 = arith.addf %508, %512 : vector<16x32xf32>
    %514 = vector.extract_strided_slice %36 {offsets = [0, 0], sizes = [16, 32], strides = [1, 1]} : vector<24x32xf32> to vector<16x32xf32>
    %c2_223 = arith.constant 2 : index
    %c18_224 = arith.constant 18 : index
    %515 = memref.load %arg5[%c2_223, %c18_224] : memref<8x36xf32, #tpu.memory_space<smem>>
    %516 = vector.broadcast %515 : f32 to vector<16x32xf32>
    %517 = arith.mulf %516, %514 : vector<16x32xf32>
    %518 = arith.addf %513, %517 : vector<16x32xf32>
    %519 = vector.extract_strided_slice %39 {offsets = [0, 0], sizes = [16, 32], strides = [1, 1]} : vector<24x32xf32> to vector<16x32xf32>
    %c2_225 = arith.constant 2 : index
    %c19_226 = arith.constant 19 : index
    %520 = memref.load %arg5[%c2_225, %c19_226] : memref<8x36xf32, #tpu.memory_space<smem>>
    %521 = vector.broadcast %520 : f32 to vector<16x32xf32>
    %522 = arith.mulf %521, %519 : vector<16x32xf32>
    %523 = arith.addf %518, %522 : vector<16x32xf32>
    %524 = vector.extract_strided_slice %42 {offsets = [0, 0], sizes = [16, 32], strides = [1, 1]} : vector<24x32xf32> to vector<16x32xf32>
    %c2_227 = arith.constant 2 : index
    %c20_228 = arith.constant 20 : index
    %525 = memref.load %arg5[%c2_227, %c20_228] : memref<8x36xf32, #tpu.memory_space<smem>>
    %526 = vector.broadcast %525 : f32 to vector<16x32xf32>
    %527 = arith.mulf %526, %524 : vector<16x32xf32>
    %528 = arith.addf %523, %527 : vector<16x32xf32>
    %529 = vector.extract_strided_slice %36 {offsets = [1, 0], sizes = [16, 32], strides = [1, 1]} : vector<24x32xf32> to vector<16x32xf32>
    %c2_229 = arith.constant 2 : index
    %c21_230 = arith.constant 21 : index
    %530 = memref.load %arg5[%c2_229, %c21_230] : memref<8x36xf32, #tpu.memory_space<smem>>
    %531 = vector.broadcast %530 : f32 to vector<16x32xf32>
    %532 = arith.mulf %531, %529 : vector<16x32xf32>
    %533 = arith.addf %528, %532 : vector<16x32xf32>
    %534 = vector.extract_strided_slice %39 {offsets = [1, 0], sizes = [16, 32], strides = [1, 1]} : vector<24x32xf32> to vector<16x32xf32>
    %c2_231 = arith.constant 2 : index
    %c22_232 = arith.constant 22 : index
    %535 = memref.load %arg5[%c2_231, %c22_232] : memref<8x36xf32, #tpu.memory_space<smem>>
    %536 = vector.broadcast %535 : f32 to vector<16x32xf32>
    %537 = arith.mulf %536, %534 : vector<16x32xf32>
    %538 = arith.addf %533, %537 : vector<16x32xf32>
    %539 = vector.extract_strided_slice %42 {offsets = [1, 0], sizes = [16, 32], strides = [1, 1]} : vector<24x32xf32> to vector<16x32xf32>
    %c2_233 = arith.constant 2 : index
    %c23_234 = arith.constant 23 : index
    %540 = memref.load %arg5[%c2_233, %c23_234] : memref<8x36xf32, #tpu.memory_space<smem>>
    %541 = vector.broadcast %540 : f32 to vector<16x32xf32>
    %542 = arith.mulf %541, %539 : vector<16x32xf32>
    %543 = arith.addf %538, %542 : vector<16x32xf32>
    %544 = vector.extract_strided_slice %36 {offsets = [2, 0], sizes = [16, 32], strides = [1, 1]} : vector<24x32xf32> to vector<16x32xf32>
    %c2_235 = arith.constant 2 : index
    %c24_236 = arith.constant 24 : index
    %545 = memref.load %arg5[%c2_235, %c24_236] : memref<8x36xf32, #tpu.memory_space<smem>>
    %546 = vector.broadcast %545 : f32 to vector<16x32xf32>
    %547 = arith.mulf %546, %544 : vector<16x32xf32>
    %548 = arith.addf %543, %547 : vector<16x32xf32>
    %549 = vector.extract_strided_slice %39 {offsets = [2, 0], sizes = [16, 32], strides = [1, 1]} : vector<24x32xf32> to vector<16x32xf32>
    %c2_237 = arith.constant 2 : index
    %c25_238 = arith.constant 25 : index
    %550 = memref.load %arg5[%c2_237, %c25_238] : memref<8x36xf32, #tpu.memory_space<smem>>
    %551 = vector.broadcast %550 : f32 to vector<16x32xf32>
    %552 = arith.mulf %551, %549 : vector<16x32xf32>
    %553 = arith.addf %548, %552 : vector<16x32xf32>
    %554 = vector.extract_strided_slice %42 {offsets = [2, 0], sizes = [16, 32], strides = [1, 1]} : vector<24x32xf32> to vector<16x32xf32>
    %c2_239 = arith.constant 2 : index
    %c26_240 = arith.constant 26 : index
    %555 = memref.load %arg5[%c2_239, %c26_240] : memref<8x36xf32, #tpu.memory_space<smem>>
    %556 = vector.broadcast %555 : f32 to vector<16x32xf32>
    %557 = arith.mulf %556, %554 : vector<16x32xf32>
    %558 = arith.addf %553, %557 : vector<16x32xf32>
    %559 = vector.extract_strided_slice %45 {offsets = [0, 0], sizes = [16, 32], strides = [1, 1]} : vector<24x32xf32> to vector<16x32xf32>
    %c2_241 = arith.constant 2 : index
    %c27_242 = arith.constant 27 : index
    %560 = memref.load %arg5[%c2_241, %c27_242] : memref<8x36xf32, #tpu.memory_space<smem>>
    %561 = vector.broadcast %560 : f32 to vector<16x32xf32>
    %562 = arith.mulf %561, %559 : vector<16x32xf32>
    %563 = arith.addf %558, %562 : vector<16x32xf32>
    %564 = vector.extract_strided_slice %48 {offsets = [0, 0], sizes = [16, 32], strides = [1, 1]} : vector<24x32xf32> to vector<16x32xf32>
    %c2_243 = arith.constant 2 : index
    %c28_244 = arith.constant 28 : index
    %565 = memref.load %arg5[%c2_243, %c28_244] : memref<8x36xf32, #tpu.memory_space<smem>>
    %566 = vector.broadcast %565 : f32 to vector<16x32xf32>
    %567 = arith.mulf %566, %564 : vector<16x32xf32>
    %568 = arith.addf %563, %567 : vector<16x32xf32>
    %569 = vector.extract_strided_slice %51 {offsets = [0, 0], sizes = [16, 32], strides = [1, 1]} : vector<24x32xf32> to vector<16x32xf32>
    %c2_245 = arith.constant 2 : index
    %c29_246 = arith.constant 29 : index
    %570 = memref.load %arg5[%c2_245, %c29_246] : memref<8x36xf32, #tpu.memory_space<smem>>
    %571 = vector.broadcast %570 : f32 to vector<16x32xf32>
    %572 = arith.mulf %571, %569 : vector<16x32xf32>
    %573 = arith.addf %568, %572 : vector<16x32xf32>
    %574 = vector.extract_strided_slice %45 {offsets = [1, 0], sizes = [16, 32], strides = [1, 1]} : vector<24x32xf32> to vector<16x32xf32>
    %c2_247 = arith.constant 2 : index
    %c30_248 = arith.constant 30 : index
    %575 = memref.load %arg5[%c2_247, %c30_248] : memref<8x36xf32, #tpu.memory_space<smem>>
    %576 = vector.broadcast %575 : f32 to vector<16x32xf32>
    %577 = arith.mulf %576, %574 : vector<16x32xf32>
    %578 = arith.addf %573, %577 : vector<16x32xf32>
    %579 = vector.extract_strided_slice %48 {offsets = [1, 0], sizes = [16, 32], strides = [1, 1]} : vector<24x32xf32> to vector<16x32xf32>
    %c2_249 = arith.constant 2 : index
    %c31_250 = arith.constant 31 : index
    %580 = memref.load %arg5[%c2_249, %c31_250] : memref<8x36xf32, #tpu.memory_space<smem>>
    %581 = vector.broadcast %580 : f32 to vector<16x32xf32>
    %582 = arith.mulf %581, %579 : vector<16x32xf32>
    %583 = arith.addf %578, %582 : vector<16x32xf32>
    %584 = vector.extract_strided_slice %51 {offsets = [1, 0], sizes = [16, 32], strides = [1, 1]} : vector<24x32xf32> to vector<16x32xf32>
    %c2_251 = arith.constant 2 : index
    %c32_252 = arith.constant 32 : index
    %585 = memref.load %arg5[%c2_251, %c32_252] : memref<8x36xf32, #tpu.memory_space<smem>>
    %586 = vector.broadcast %585 : f32 to vector<16x32xf32>
    %587 = arith.mulf %586, %584 : vector<16x32xf32>
    %588 = arith.addf %583, %587 : vector<16x32xf32>
    %589 = vector.extract_strided_slice %45 {offsets = [2, 0], sizes = [16, 32], strides = [1, 1]} : vector<24x32xf32> to vector<16x32xf32>
    %c2_253 = arith.constant 2 : index
    %c33_254 = arith.constant 33 : index
    %590 = memref.load %arg5[%c2_253, %c33_254] : memref<8x36xf32, #tpu.memory_space<smem>>
    %591 = vector.broadcast %590 : f32 to vector<16x32xf32>
    %592 = arith.mulf %591, %589 : vector<16x32xf32>
    %593 = arith.addf %588, %592 : vector<16x32xf32>
    %594 = vector.extract_strided_slice %48 {offsets = [2, 0], sizes = [16, 32], strides = [1, 1]} : vector<24x32xf32> to vector<16x32xf32>
    %c2_255 = arith.constant 2 : index
    %c34_256 = arith.constant 34 : index
    %595 = memref.load %arg5[%c2_255, %c34_256] : memref<8x36xf32, #tpu.memory_space<smem>>
    %596 = vector.broadcast %595 : f32 to vector<16x32xf32>
    %597 = arith.mulf %596, %594 : vector<16x32xf32>
    %598 = arith.addf %593, %597 : vector<16x32xf32>
    %599 = vector.extract_strided_slice %51 {offsets = [2, 0], sizes = [16, 32], strides = [1, 1]} : vector<24x32xf32> to vector<16x32xf32>
    %c2_257 = arith.constant 2 : index
    %c35_258 = arith.constant 35 : index
    %600 = memref.load %arg5[%c2_257, %c35_258] : memref<8x36xf32, #tpu.memory_space<smem>>
    %601 = vector.broadcast %600 : f32 to vector<16x32xf32>
    %602 = arith.mulf %601, %599 : vector<16x32xf32>
    %603 = arith.addf %598, %602 : vector<16x32xf32>
    %c0_259 = arith.constant 0 : index
    %c2_260 = arith.constant 2 : index
    %c0_261 = arith.constant 0 : index
    %c0_262 = arith.constant 0 : index
    %604 = vector.load %arg7[%c0_259, %c2_260, %c0_261, %c0_262] : memref<1x8x16x32xf32, #tpu.memory_space<vmem>>, vector<1x1x16x32xf32>
    %605 = vector.shape_cast %604 : vector<1x1x16x32xf32> to vector<16x32xf32>
    %606 = vector.shape_cast %603 : vector<16x32xf32> to vector<1x1x16x32xf32>
    tpu.vector_store %arg7[%c0_259, %c2_260, %c0_261, %c0_262], %606 {strides = array<i32>} : memref<1x8x16x32xf32, #tpu.memory_space<vmem>>, vector<1x1x16x32xf32>,
    %c3_263 = arith.constant 3 : index
    %607 = memref.load %arg6[%c3_263] : memref<8xf32, #tpu.memory_space<smem>>
    %608 = vector.broadcast %607 : f32 to vector<16x32xf32>
    %609 = vector.extract_strided_slice %18 {offsets = [0, 0], sizes = [16, 32], strides = [1, 1]} : vector<24x32xf32> to vector<16x32xf32>
    %c3_264 = arith.constant 3 : index
    %c0_265 = arith.constant 0 : index
    %610 = memref.load %arg5[%c3_264, %c0_265] : memref<8x36xf32, #tpu.memory_space<smem>>
    %611 = vector.broadcast %610 : f32 to vector<16x32xf32>
    %612 = arith.mulf %611, %609 : vector<16x32xf32>
    %613 = arith.addf %608, %612 : vector<16x32xf32>
    %614 = vector.extract_strided_slice %21 {offsets = [0, 0], sizes = [16, 32], strides = [1, 1]} : vector<24x32xf32> to vector<16x32xf32>
    %c3_266 = arith.constant 3 : index
    %c1_267 = arith.constant 1 : index
    %615 = memref.load %arg5[%c3_266, %c1_267] : memref<8x36xf32, #tpu.memory_space<smem>>
    %616 = vector.broadcast %615 : f32 to vector<16x32xf32>
    %617 = arith.mulf %616, %614 : vector<16x32xf32>
    %618 = arith.addf %613, %617 : vector<16x32xf32>
    %619 = vector.extract_strided_slice %24 {offsets = [0, 0], sizes = [16, 32], strides = [1, 1]} : vector<24x32xf32> to vector<16x32xf32>
    %c3_268 = arith.constant 3 : index
    %c2_269 = arith.constant 2 : index
    %620 = memref.load %arg5[%c3_268, %c2_269] : memref<8x36xf32, #tpu.memory_space<smem>>
    %621 = vector.broadcast %620 : f32 to vector<16x32xf32>
    %622 = arith.mulf %621, %619 : vector<16x32xf32>
    %623 = arith.addf %618, %622 : vector<16x32xf32>
    %624 = vector.extract_strided_slice %18 {offsets = [1, 0], sizes = [16, 32], strides = [1, 1]} : vector<24x32xf32> to vector<16x32xf32>
    %c3_270 = arith.constant 3 : index
    %c3_271 = arith.constant 3 : index
    %625 = memref.load %arg5[%c3_270, %c3_271] : memref<8x36xf32, #tpu.memory_space<smem>>
    %626 = vector.broadcast %625 : f32 to vector<16x32xf32>
    %627 = arith.mulf %626, %624 : vector<16x32xf32>
    %628 = arith.addf %623, %627 : vector<16x32xf32>
    %629 = vector.extract_strided_slice %21 {offsets = [1, 0], sizes = [16, 32], strides = [1, 1]} : vector<24x32xf32> to vector<16x32xf32>
    %c3_272 = arith.constant 3 : index
    %c4_273 = arith.constant 4 : index
    %630 = memref.load %arg5[%c3_272, %c4_273] : memref<8x36xf32, #tpu.memory_space<smem>>
    %631 = vector.broadcast %630 : f32 to vector<16x32xf32>
    %632 = arith.mulf %631, %629 : vector<16x32xf32>
    %633 = arith.addf %628, %632 : vector<16x32xf32>
    %634 = vector.extract_strided_slice %24 {offsets = [1, 0], sizes = [16, 32], strides = [1, 1]} : vector<24x32xf32> to vector<16x32xf32>
    %c3_274 = arith.constant 3 : index
    %c5_275 = arith.constant 5 : index
    %635 = memref.load %arg5[%c3_274, %c5_275] : memref<8x36xf32, #tpu.memory_space<smem>>
    %636 = vector.broadcast %635 : f32 to vector<16x32xf32>
    %637 = arith.mulf %636, %634 : vector<16x32xf32>
    %638 = arith.addf %633, %637 : vector<16x32xf32>
    %639 = vector.extract_strided_slice %18 {offsets = [2, 0], sizes = [16, 32], strides = [1, 1]} : vector<24x32xf32> to vector<16x32xf32>
    %c3_276 = arith.constant 3 : index
    %c6_277 = arith.constant 6 : index
    %640 = memref.load %arg5[%c3_276, %c6_277] : memref<8x36xf32, #tpu.memory_space<smem>>
    %641 = vector.broadcast %640 : f32 to vector<16x32xf32>
    %642 = arith.mulf %641, %639 : vector<16x32xf32>
    %643 = arith.addf %638, %642 : vector<16x32xf32>
    %644 = vector.extract_strided_slice %21 {offsets = [2, 0], sizes = [16, 32], strides = [1, 1]} : vector<24x32xf32> to vector<16x32xf32>
    %c3_278 = arith.constant 3 : index
    %c7_279 = arith.constant 7 : index
    %645 = memref.load %arg5[%c3_278, %c7_279] : memref<8x36xf32, #tpu.memory_space<smem>>
    %646 = vector.broadcast %645 : f32 to vector<16x32xf32>
    %647 = arith.mulf %646, %644 : vector<16x32xf32>
    %648 = arith.addf %643, %647 : vector<16x32xf32>
    %649 = vector.extract_strided_slice %24 {offsets = [2, 0], sizes = [16, 32], strides = [1, 1]} : vector<24x32xf32> to vector<16x32xf32>
    %c3_280 = arith.constant 3 : index
    %c8_281 = arith.constant 8 : index
    %650 = memref.load %arg5[%c3_280, %c8_281] : memref<8x36xf32, #tpu.memory_space<smem>>
    %651 = vector.broadcast %650 : f32 to vector<16x32xf32>
    %652 = arith.mulf %651, %649 : vector<16x32xf32>
    %653 = arith.addf %648, %652 : vector<16x32xf32>
    %654 = vector.extract_strided_slice %27 {offsets = [0, 0], sizes = [16, 32], strides = [1, 1]} : vector<24x32xf32> to vector<16x32xf32>
    %c3_282 = arith.constant 3 : index
    %c9_283 = arith.constant 9 : index
    %655 = memref.load %arg5[%c3_282, %c9_283] : memref<8x36xf32, #tpu.memory_space<smem>>
    %656 = vector.broadcast %655 : f32 to vector<16x32xf32>
    %657 = arith.mulf %656, %654 : vector<16x32xf32>
    %658 = arith.addf %653, %657 : vector<16x32xf32>
    %659 = vector.extract_strided_slice %30 {offsets = [0, 0], sizes = [16, 32], strides = [1, 1]} : vector<24x32xf32> to vector<16x32xf32>
    %c3_284 = arith.constant 3 : index
    %c10_285 = arith.constant 10 : index
    %660 = memref.load %arg5[%c3_284, %c10_285] : memref<8x36xf32, #tpu.memory_space<smem>>
    %661 = vector.broadcast %660 : f32 to vector<16x32xf32>
    %662 = arith.mulf %661, %659 : vector<16x32xf32>
    %663 = arith.addf %658, %662 : vector<16x32xf32>
    %664 = vector.extract_strided_slice %33 {offsets = [0, 0], sizes = [16, 32], strides = [1, 1]} : vector<24x32xf32> to vector<16x32xf32>
    %c3_286 = arith.constant 3 : index
    %c11_287 = arith.constant 11 : index
    %665 = memref.load %arg5[%c3_286, %c11_287] : memref<8x36xf32, #tpu.memory_space<smem>>
    %666 = vector.broadcast %665 : f32 to vector<16x32xf32>
    %667 = arith.mulf %666, %664 : vector<16x32xf32>
    %668 = arith.addf %663, %667 : vector<16x32xf32>
    %669 = vector.extract_strided_slice %27 {offsets = [1, 0], sizes = [16, 32], strides = [1, 1]} : vector<24x32xf32> to vector<16x32xf32>
    %c3_288 = arith.constant 3 : index
    %c12_289 = arith.constant 12 : index
    %670 = memref.load %arg5[%c3_288, %c12_289] : memref<8x36xf32, #tpu.memory_space<smem>>
    %671 = vector.broadcast %670 : f32 to vector<16x32xf32>
    %672 = arith.mulf %671, %669 : vector<16x32xf32>
    %673 = arith.addf %668, %672 : vector<16x32xf32>
    %674 = vector.extract_strided_slice %30 {offsets = [1, 0], sizes = [16, 32], strides = [1, 1]} : vector<24x32xf32> to vector<16x32xf32>
    %c3_290 = arith.constant 3 : index
    %c13_291 = arith.constant 13 : index
    %675 = memref.load %arg5[%c3_290, %c13_291] : memref<8x36xf32, #tpu.memory_space<smem>>
    %676 = vector.broadcast %675 : f32 to vector<16x32xf32>
    %677 = arith.mulf %676, %674 : vector<16x32xf32>
    %678 = arith.addf %673, %677 : vector<16x32xf32>
    %679 = vector.extract_strided_slice %33 {offsets = [1, 0], sizes = [16, 32], strides = [1, 1]} : vector<24x32xf32> to vector<16x32xf32>
    %c3_292 = arith.constant 3 : index
    %c14_293 = arith.constant 14 : index
    %680 = memref.load %arg5[%c3_292, %c14_293] : memref<8x36xf32, #tpu.memory_space<smem>>
    %681 = vector.broadcast %680 : f32 to vector<16x32xf32>
    %682 = arith.mulf %681, %679 : vector<16x32xf32>
    %683 = arith.addf %678, %682 : vector<16x32xf32>
    %684 = vector.extract_strided_slice %27 {offsets = [2, 0], sizes = [16, 32], strides = [1, 1]} : vector<24x32xf32> to vector<16x32xf32>
    %c3_294 = arith.constant 3 : index
    %c15_295 = arith.constant 15 : index
    %685 = memref.load %arg5[%c3_294, %c15_295] : memref<8x36xf32, #tpu.memory_space<smem>>
    %686 = vector.broadcast %685 : f32 to vector<16x32xf32>
    %687 = arith.mulf %686, %684 : vector<16x32xf32>
    %688 = arith.addf %683, %687 : vector<16x32xf32>
    %689 = vector.extract_strided_slice %30 {offsets = [2, 0], sizes = [16, 32], strides = [1, 1]} : vector<24x32xf32> to vector<16x32xf32>
    %c3_296 = arith.constant 3 : index
    %c16_297 = arith.constant 16 : index
    %690 = memref.load %arg5[%c3_296, %c16_297] : memref<8x36xf32, #tpu.memory_space<smem>>
    %691 = vector.broadcast %690 : f32 to vector<16x32xf32>
    %692 = arith.mulf %691, %689 : vector<16x32xf32>
    %693 = arith.addf %688, %692 : vector<16x32xf32>
    %694 = vector.extract_strided_slice %33 {offsets = [2, 0], sizes = [16, 32], strides = [1, 1]} : vector<24x32xf32> to vector<16x32xf32>
    %c3_298 = arith.constant 3 : index
    %c17_299 = arith.constant 17 : index
    %695 = memref.load %arg5[%c3_298, %c17_299] : memref<8x36xf32, #tpu.memory_space<smem>>
    %696 = vector.broadcast %695 : f32 to vector<16x32xf32>
    %697 = arith.mulf %696, %694 : vector<16x32xf32>
    %698 = arith.addf %693, %697 : vector<16x32xf32>
    %699 = vector.extract_strided_slice %36 {offsets = [0, 0], sizes = [16, 32], strides = [1, 1]} : vector<24x32xf32> to vector<16x32xf32>
    %c3_300 = arith.constant 3 : index
    %c18_301 = arith.constant 18 : index
    %700 = memref.load %arg5[%c3_300, %c18_301] : memref<8x36xf32, #tpu.memory_space<smem>>
    %701 = vector.broadcast %700 : f32 to vector<16x32xf32>
    %702 = arith.mulf %701, %699 : vector<16x32xf32>
    %703 = arith.addf %698, %702 : vector<16x32xf32>
    %704 = vector.extract_strided_slice %39 {offsets = [0, 0], sizes = [16, 32], strides = [1, 1]} : vector<24x32xf32> to vector<16x32xf32>
    %c3_302 = arith.constant 3 : index
    %c19_303 = arith.constant 19 : index
    %705 = memref.load %arg5[%c3_302, %c19_303] : memref<8x36xf32, #tpu.memory_space<smem>>
    %706 = vector.broadcast %705 : f32 to vector<16x32xf32>
    %707 = arith.mulf %706, %704 : vector<16x32xf32>
    %708 = arith.addf %703, %707 : vector<16x32xf32>
    %709 = vector.extract_strided_slice %42 {offsets = [0, 0], sizes = [16, 32], strides = [1, 1]} : vector<24x32xf32> to vector<16x32xf32>
    %c3_304 = arith.constant 3 : index
    %c20_305 = arith.constant 20 : index
    %710 = memref.load %arg5[%c3_304, %c20_305] : memref<8x36xf32, #tpu.memory_space<smem>>
    %711 = vector.broadcast %710 : f32 to vector<16x32xf32>
    %712 = arith.mulf %711, %709 : vector<16x32xf32>
    %713 = arith.addf %708, %712 : vector<16x32xf32>
    %714 = vector.extract_strided_slice %36 {offsets = [1, 0], sizes = [16, 32], strides = [1, 1]} : vector<24x32xf32> to vector<16x32xf32>
    %c3_306 = arith.constant 3 : index
    %c21_307 = arith.constant 21 : index
    %715 = memref.load %arg5[%c3_306, %c21_307] : memref<8x36xf32, #tpu.memory_space<smem>>
    %716 = vector.broadcast %715 : f32 to vector<16x32xf32>
    %717 = arith.mulf %716, %714 : vector<16x32xf32>
    %718 = arith.addf %713, %717 : vector<16x32xf32>
    %719 = vector.extract_strided_slice %39 {offsets = [1, 0], sizes = [16, 32], strides = [1, 1]} : vector<24x32xf32> to vector<16x32xf32>
    %c3_308 = arith.constant 3 : index
    %c22_309 = arith.constant 22 : index
    %720 = memref.load %arg5[%c3_308, %c22_309] : memref<8x36xf32, #tpu.memory_space<smem>>
    %721 = vector.broadcast %720 : f32 to vector<16x32xf32>
    %722 = arith.mulf %721, %719 : vector<16x32xf32>
    %723 = arith.addf %718, %722 : vector<16x32xf32>
    %724 = vector.extract_strided_slice %42 {offsets = [1, 0], sizes = [16, 32], strides = [1, 1]} : vector<24x32xf32> to vector<16x32xf32>
    %c3_310 = arith.constant 3 : index
    %c23_311 = arith.constant 23 : index
    %725 = memref.load %arg5[%c3_310, %c23_311] : memref<8x36xf32, #tpu.memory_space<smem>>
    %726 = vector.broadcast %725 : f32 to vector<16x32xf32>
    %727 = arith.mulf %726, %724 : vector<16x32xf32>
    %728 = arith.addf %723, %727 : vector<16x32xf32>
    %729 = vector.extract_strided_slice %36 {offsets = [2, 0], sizes = [16, 32], strides = [1, 1]} : vector<24x32xf32> to vector<16x32xf32>
    %c3_312 = arith.constant 3 : index
    %c24_313 = arith.constant 24 : index
    %730 = memref.load %arg5[%c3_312, %c24_313] : memref<8x36xf32, #tpu.memory_space<smem>>
    %731 = vector.broadcast %730 : f32 to vector<16x32xf32>
    %732 = arith.mulf %731, %729 : vector<16x32xf32>
    %733 = arith.addf %728, %732 : vector<16x32xf32>
    %734 = vector.extract_strided_slice %39 {offsets = [2, 0], sizes = [16, 32], strides = [1, 1]} : vector<24x32xf32> to vector<16x32xf32>
    %c3_314 = arith.constant 3 : index
    %c25_315 = arith.constant 25 : index
    %735 = memref.load %arg5[%c3_314, %c25_315] : memref<8x36xf32, #tpu.memory_space<smem>>
    %736 = vector.broadcast %735 : f32 to vector<16x32xf32>
    %737 = arith.mulf %736, %734 : vector<16x32xf32>
    %738 = arith.addf %733, %737 : vector<16x32xf32>
    %739 = vector.extract_strided_slice %42 {offsets = [2, 0], sizes = [16, 32], strides = [1, 1]} : vector<24x32xf32> to vector<16x32xf32>
    %c3_316 = arith.constant 3 : index
    %c26_317 = arith.constant 26 : index
    %740 = memref.load %arg5[%c3_316, %c26_317] : memref<8x36xf32, #tpu.memory_space<smem>>
    %741 = vector.broadcast %740 : f32 to vector<16x32xf32>
    %742 = arith.mulf %741, %739 : vector<16x32xf32>
    %743 = arith.addf %738, %742 : vector<16x32xf32>
    %744 = vector.extract_strided_slice %45 {offsets = [0, 0], sizes = [16, 32], strides = [1, 1]} : vector<24x32xf32> to vector<16x32xf32>
    %c3_318 = arith.constant 3 : index
    %c27_319 = arith.constant 27 : index
    %745 = memref.load %arg5[%c3_318, %c27_319] : memref<8x36xf32, #tpu.memory_space<smem>>
    %746 = vector.broadcast %745 : f32 to vector<16x32xf32>
    %747 = arith.mulf %746, %744 : vector<16x32xf32>
    %748 = arith.addf %743, %747 : vector<16x32xf32>
    %749 = vector.extract_strided_slice %48 {offsets = [0, 0], sizes = [16, 32], strides = [1, 1]} : vector<24x32xf32> to vector<16x32xf32>
    %c3_320 = arith.constant 3 : index
    %c28_321 = arith.constant 28 : index
    %750 = memref.load %arg5[%c3_320, %c28_321] : memref<8x36xf32, #tpu.memory_space<smem>>
    %751 = vector.broadcast %750 : f32 to vector<16x32xf32>
    %752 = arith.mulf %751, %749 : vector<16x32xf32>
    %753 = arith.addf %748, %752 : vector<16x32xf32>
    %754 = vector.extract_strided_slice %51 {offsets = [0, 0], sizes = [16, 32], strides = [1, 1]} : vector<24x32xf32> to vector<16x32xf32>
    %c3_322 = arith.constant 3 : index
    %c29_323 = arith.constant 29 : index
    %755 = memref.load %arg5[%c3_322, %c29_323] : memref<8x36xf32, #tpu.memory_space<smem>>
    %756 = vector.broadcast %755 : f32 to vector<16x32xf32>
    %757 = arith.mulf %756, %754 : vector<16x32xf32>
    %758 = arith.addf %753, %757 : vector<16x32xf32>
    %759 = vector.extract_strided_slice %45 {offsets = [1, 0], sizes = [16, 32], strides = [1, 1]} : vector<24x32xf32> to vector<16x32xf32>
    %c3_324 = arith.constant 3 : index
    %c30_325 = arith.constant 30 : index
    %760 = memref.load %arg5[%c3_324, %c30_325] : memref<8x36xf32, #tpu.memory_space<smem>>
    %761 = vector.broadcast %760 : f32 to vector<16x32xf32>
    %762 = arith.mulf %761, %759 : vector<16x32xf32>
    %763 = arith.addf %758, %762 : vector<16x32xf32>
    %764 = vector.extract_strided_slice %48 {offsets = [1, 0], sizes = [16, 32], strides = [1, 1]} : vector<24x32xf32> to vector<16x32xf32>
    %c3_326 = arith.constant 3 : index
    %c31_327 = arith.constant 31 : index
    %765 = memref.load %arg5[%c3_326, %c31_327] : memref<8x36xf32, #tpu.memory_space<smem>>
    %766 = vector.broadcast %765 : f32 to vector<16x32xf32>
    %767 = arith.mulf %766, %764 : vector<16x32xf32>
    %768 = arith.addf %763, %767 : vector<16x32xf32>
    %769 = vector.extract_strided_slice %51 {offsets = [1, 0], sizes = [16, 32], strides = [1, 1]} : vector<24x32xf32> to vector<16x32xf32>
    %c3_328 = arith.constant 3 : index
    %c32_329 = arith.constant 32 : index
    %770 = memref.load %arg5[%c3_328, %c32_329] : memref<8x36xf32, #tpu.memory_space<smem>>
    %771 = vector.broadcast %770 : f32 to vector<16x32xf32>
    %772 = arith.mulf %771, %769 : vector<16x32xf32>
    %773 = arith.addf %768, %772 : vector<16x32xf32>
    %774 = vector.extract_strided_slice %45 {offsets = [2, 0], sizes = [16, 32], strides = [1, 1]} : vector<24x32xf32> to vector<16x32xf32>
    %c3_330 = arith.constant 3 : index
    %c33_331 = arith.constant 33 : index
    %775 = memref.load %arg5[%c3_330, %c33_331] : memref<8x36xf32, #tpu.memory_space<smem>>
    %776 = vector.broadcast %775 : f32 to vector<16x32xf32>
    %777 = arith.mulf %776, %774 : vector<16x32xf32>
    %778 = arith.addf %773, %777 : vector<16x32xf32>
    %779 = vector.extract_strided_slice %48 {offsets = [2, 0], sizes = [16, 32], strides = [1, 1]} : vector<24x32xf32> to vector<16x32xf32>
    %c3_332 = arith.constant 3 : index
    %c34_333 = arith.constant 34 : index
    %780 = memref.load %arg5[%c3_332, %c34_333] : memref<8x36xf32, #tpu.memory_space<smem>>
    %781 = vector.broadcast %780 : f32 to vector<16x32xf32>
    %782 = arith.mulf %781, %779 : vector<16x32xf32>
    %783 = arith.addf %778, %782 : vector<16x32xf32>
    %784 = vector.extract_strided_slice %51 {offsets = [2, 0], sizes = [16, 32], strides = [1, 1]} : vector<24x32xf32> to vector<16x32xf32>
    %c3_334 = arith.constant 3 : index
    %c35_335 = arith.constant 35 : index
    %785 = memref.load %arg5[%c3_334, %c35_335] : memref<8x36xf32, #tpu.memory_space<smem>>
    %786 = vector.broadcast %785 : f32 to vector<16x32xf32>
    %787 = arith.mulf %786, %784 : vector<16x32xf32>
    %788 = arith.addf %783, %787 : vector<16x32xf32>
    %c0_336 = arith.constant 0 : index
    %c3_337 = arith.constant 3 : index
    %c0_338 = arith.constant 0 : index
    %c0_339 = arith.constant 0 : index
    %789 = vector.load %arg7[%c0_336, %c3_337, %c0_338, %c0_339] : memref<1x8x16x32xf32, #tpu.memory_space<vmem>>, vector<1x1x16x32xf32>
    %790 = vector.shape_cast %789 : vector<1x1x16x32xf32> to vector<16x32xf32>
    %791 = vector.shape_cast %788 : vector<16x32xf32> to vector<1x1x16x32xf32>
    tpu.vector_store %arg7[%c0_336, %c3_337, %c0_338, %c0_339], %791 {strides = array<i32>} : memref<1x8x16x32xf32, #tpu.memory_space<vmem>>, vector<1x1x16x32xf32>,
    %c4_340 = arith.constant 4 : index
    %792 = memref.load %arg6[%c4_340] : memref<8xf32, #tpu.memory_space<smem>>
    %793 = vector.broadcast %792 : f32 to vector<16x32xf32>
    %794 = vector.extract_strided_slice %18 {offsets = [0, 0], sizes = [16, 32], strides = [1, 1]} : vector<24x32xf32> to vector<16x32xf32>
    %c4_341 = arith.constant 4 : index
    %c0_342 = arith.constant 0 : index
    %795 = memref.load %arg5[%c4_341, %c0_342] : memref<8x36xf32, #tpu.memory_space<smem>>
    %796 = vector.broadcast %795 : f32 to vector<16x32xf32>
    %797 = arith.mulf %796, %794 : vector<16x32xf32>
    %798 = arith.addf %793, %797 : vector<16x32xf32>
    %799 = vector.extract_strided_slice %21 {offsets = [0, 0], sizes = [16, 32], strides = [1, 1]} : vector<24x32xf32> to vector<16x32xf32>
    %c4_343 = arith.constant 4 : index
    %c1_344 = arith.constant 1 : index
    %800 = memref.load %arg5[%c4_343, %c1_344] : memref<8x36xf32, #tpu.memory_space<smem>>
    %801 = vector.broadcast %800 : f32 to vector<16x32xf32>
    %802 = arith.mulf %801, %799 : vector<16x32xf32>
    %803 = arith.addf %798, %802 : vector<16x32xf32>
    %804 = vector.extract_strided_slice %24 {offsets = [0, 0], sizes = [16, 32], strides = [1, 1]} : vector<24x32xf32> to vector<16x32xf32>
    %c4_345 = arith.constant 4 : index
    %c2_346 = arith.constant 2 : index
    %805 = memref.load %arg5[%c4_345, %c2_346] : memref<8x36xf32, #tpu.memory_space<smem>>
    %806 = vector.broadcast %805 : f32 to vector<16x32xf32>
    %807 = arith.mulf %806, %804 : vector<16x32xf32>
    %808 = arith.addf %803, %807 : vector<16x32xf32>
    %809 = vector.extract_strided_slice %18 {offsets = [1, 0], sizes = [16, 32], strides = [1, 1]} : vector<24x32xf32> to vector<16x32xf32>
    %c4_347 = arith.constant 4 : index
    %c3_348 = arith.constant 3 : index
    %810 = memref.load %arg5[%c4_347, %c3_348] : memref<8x36xf32, #tpu.memory_space<smem>>
    %811 = vector.broadcast %810 : f32 to vector<16x32xf32>
    %812 = arith.mulf %811, %809 : vector<16x32xf32>
    %813 = arith.addf %808, %812 : vector<16x32xf32>
    %814 = vector.extract_strided_slice %21 {offsets = [1, 0], sizes = [16, 32], strides = [1, 1]} : vector<24x32xf32> to vector<16x32xf32>
    %c4_349 = arith.constant 4 : index
    %c4_350 = arith.constant 4 : index
    %815 = memref.load %arg5[%c4_349, %c4_350] : memref<8x36xf32, #tpu.memory_space<smem>>
    %816 = vector.broadcast %815 : f32 to vector<16x32xf32>
    %817 = arith.mulf %816, %814 : vector<16x32xf32>
    %818 = arith.addf %813, %817 : vector<16x32xf32>
    %819 = vector.extract_strided_slice %24 {offsets = [1, 0], sizes = [16, 32], strides = [1, 1]} : vector<24x32xf32> to vector<16x32xf32>
    %c4_351 = arith.constant 4 : index
    %c5_352 = arith.constant 5 : index
    %820 = memref.load %arg5[%c4_351, %c5_352] : memref<8x36xf32, #tpu.memory_space<smem>>
    %821 = vector.broadcast %820 : f32 to vector<16x32xf32>
    %822 = arith.mulf %821, %819 : vector<16x32xf32>
    %823 = arith.addf %818, %822 : vector<16x32xf32>
    %824 = vector.extract_strided_slice %18 {offsets = [2, 0], sizes = [16, 32], strides = [1, 1]} : vector<24x32xf32> to vector<16x32xf32>
    %c4_353 = arith.constant 4 : index
    %c6_354 = arith.constant 6 : index
    %825 = memref.load %arg5[%c4_353, %c6_354] : memref<8x36xf32, #tpu.memory_space<smem>>
    %826 = vector.broadcast %825 : f32 to vector<16x32xf32>
    %827 = arith.mulf %826, %824 : vector<16x32xf32>
    %828 = arith.addf %823, %827 : vector<16x32xf32>
    %829 = vector.extract_strided_slice %21 {offsets = [2, 0], sizes = [16, 32], strides = [1, 1]} : vector<24x32xf32> to vector<16x32xf32>
    %c4_355 = arith.constant 4 : index
    %c7_356 = arith.constant 7 : index
    %830 = memref.load %arg5[%c4_355, %c7_356] : memref<8x36xf32, #tpu.memory_space<smem>>
    %831 = vector.broadcast %830 : f32 to vector<16x32xf32>
    %832 = arith.mulf %831, %829 : vector<16x32xf32>
    %833 = arith.addf %828, %832 : vector<16x32xf32>
    %834 = vector.extract_strided_slice %24 {offsets = [2, 0], sizes = [16, 32], strides = [1, 1]} : vector<24x32xf32> to vector<16x32xf32>
    %c4_357 = arith.constant 4 : index
    %c8_358 = arith.constant 8 : index
    %835 = memref.load %arg5[%c4_357, %c8_358] : memref<8x36xf32, #tpu.memory_space<smem>>
    %836 = vector.broadcast %835 : f32 to vector<16x32xf32>
    %837 = arith.mulf %836, %834 : vector<16x32xf32>
    %838 = arith.addf %833, %837 : vector<16x32xf32>
    %839 = vector.extract_strided_slice %27 {offsets = [0, 0], sizes = [16, 32], strides = [1, 1]} : vector<24x32xf32> to vector<16x32xf32>
    %c4_359 = arith.constant 4 : index
    %c9_360 = arith.constant 9 : index
    %840 = memref.load %arg5[%c4_359, %c9_360] : memref<8x36xf32, #tpu.memory_space<smem>>
    %841 = vector.broadcast %840 : f32 to vector<16x32xf32>
    %842 = arith.mulf %841, %839 : vector<16x32xf32>
    %843 = arith.addf %838, %842 : vector<16x32xf32>
    %844 = vector.extract_strided_slice %30 {offsets = [0, 0], sizes = [16, 32], strides = [1, 1]} : vector<24x32xf32> to vector<16x32xf32>
    %c4_361 = arith.constant 4 : index
    %c10_362 = arith.constant 10 : index
    %845 = memref.load %arg5[%c4_361, %c10_362] : memref<8x36xf32, #tpu.memory_space<smem>>
    %846 = vector.broadcast %845 : f32 to vector<16x32xf32>
    %847 = arith.mulf %846, %844 : vector<16x32xf32>
    %848 = arith.addf %843, %847 : vector<16x32xf32>
    %849 = vector.extract_strided_slice %33 {offsets = [0, 0], sizes = [16, 32], strides = [1, 1]} : vector<24x32xf32> to vector<16x32xf32>
    %c4_363 = arith.constant 4 : index
    %c11_364 = arith.constant 11 : index
    %850 = memref.load %arg5[%c4_363, %c11_364] : memref<8x36xf32, #tpu.memory_space<smem>>
    %851 = vector.broadcast %850 : f32 to vector<16x32xf32>
    %852 = arith.mulf %851, %849 : vector<16x32xf32>
    %853 = arith.addf %848, %852 : vector<16x32xf32>
    %854 = vector.extract_strided_slice %27 {offsets = [1, 0], sizes = [16, 32], strides = [1, 1]} : vector<24x32xf32> to vector<16x32xf32>
    %c4_365 = arith.constant 4 : index
    %c12_366 = arith.constant 12 : index
    %855 = memref.load %arg5[%c4_365, %c12_366] : memref<8x36xf32, #tpu.memory_space<smem>>
    %856 = vector.broadcast %855 : f32 to vector<16x32xf32>
    %857 = arith.mulf %856, %854 : vector<16x32xf32>
    %858 = arith.addf %853, %857 : vector<16x32xf32>
    %859 = vector.extract_strided_slice %30 {offsets = [1, 0], sizes = [16, 32], strides = [1, 1]} : vector<24x32xf32> to vector<16x32xf32>
    %c4_367 = arith.constant 4 : index
    %c13_368 = arith.constant 13 : index
    %860 = memref.load %arg5[%c4_367, %c13_368] : memref<8x36xf32, #tpu.memory_space<smem>>
    %861 = vector.broadcast %860 : f32 to vector<16x32xf32>
    %862 = arith.mulf %861, %859 : vector<16x32xf32>
    %863 = arith.addf %858, %862 : vector<16x32xf32>
    %864 = vector.extract_strided_slice %33 {offsets = [1, 0], sizes = [16, 32], strides = [1, 1]} : vector<24x32xf32> to vector<16x32xf32>
    %c4_369 = arith.constant 4 : index
    %c14_370 = arith.constant 14 : index
    %865 = memref.load %arg5[%c4_369, %c14_370] : memref<8x36xf32, #tpu.memory_space<smem>>
    %866 = vector.broadcast %865 : f32 to vector<16x32xf32>
    %867 = arith.mulf %866, %864 : vector<16x32xf32>
    %868 = arith.addf %863, %867 : vector<16x32xf32>
    %869 = vector.extract_strided_slice %27 {offsets = [2, 0], sizes = [16, 32], strides = [1, 1]} : vector<24x32xf32> to vector<16x32xf32>
    %c4_371 = arith.constant 4 : index
    %c15_372 = arith.constant 15 : index
    %870 = memref.load %arg5[%c4_371, %c15_372] : memref<8x36xf32, #tpu.memory_space<smem>>
    %871 = vector.broadcast %870 : f32 to vector<16x32xf32>
    %872 = arith.mulf %871, %869 : vector<16x32xf32>
    %873 = arith.addf %868, %872 : vector<16x32xf32>
    %874 = vector.extract_strided_slice %30 {offsets = [2, 0], sizes = [16, 32], strides = [1, 1]} : vector<24x32xf32> to vector<16x32xf32>
    %c4_373 = arith.constant 4 : index
    %c16_374 = arith.constant 16 : index
    %875 = memref.load %arg5[%c4_373, %c16_374] : memref<8x36xf32, #tpu.memory_space<smem>>
    %876 = vector.broadcast %875 : f32 to vector<16x32xf32>
    %877 = arith.mulf %876, %874 : vector<16x32xf32>
    %878 = arith.addf %873, %877 : vector<16x32xf32>
    %879 = vector.extract_strided_slice %33 {offsets = [2, 0], sizes = [16, 32], strides = [1, 1]} : vector<24x32xf32> to vector<16x32xf32>
    %c4_375 = arith.constant 4 : index
    %c17_376 = arith.constant 17 : index
    %880 = memref.load %arg5[%c4_375, %c17_376] : memref<8x36xf32, #tpu.memory_space<smem>>
    %881 = vector.broadcast %880 : f32 to vector<16x32xf32>
    %882 = arith.mulf %881, %879 : vector<16x32xf32>
    %883 = arith.addf %878, %882 : vector<16x32xf32>
    %884 = vector.extract_strided_slice %36 {offsets = [0, 0], sizes = [16, 32], strides = [1, 1]} : vector<24x32xf32> to vector<16x32xf32>
    %c4_377 = arith.constant 4 : index
    %c18_378 = arith.constant 18 : index
    %885 = memref.load %arg5[%c4_377, %c18_378] : memref<8x36xf32, #tpu.memory_space<smem>>
    %886 = vector.broadcast %885 : f32 to vector<16x32xf32>
    %887 = arith.mulf %886, %884 : vector<16x32xf32>
    %888 = arith.addf %883, %887 : vector<16x32xf32>
    %889 = vector.extract_strided_slice %39 {offsets = [0, 0], sizes = [16, 32], strides = [1, 1]} : vector<24x32xf32> to vector<16x32xf32>
    %c4_379 = arith.constant 4 : index
    %c19_380 = arith.constant 19 : index
    %890 = memref.load %arg5[%c4_379, %c19_380] : memref<8x36xf32, #tpu.memory_space<smem>>
    %891 = vector.broadcast %890 : f32 to vector<16x32xf32>
    %892 = arith.mulf %891, %889 : vector<16x32xf32>
    %893 = arith.addf %888, %892 : vector<16x32xf32>
    %894 = vector.extract_strided_slice %42 {offsets = [0, 0], sizes = [16, 32], strides = [1, 1]} : vector<24x32xf32> to vector<16x32xf32>
    %c4_381 = arith.constant 4 : index
    %c20_382 = arith.constant 20 : index
    %895 = memref.load %arg5[%c4_381, %c20_382] : memref<8x36xf32, #tpu.memory_space<smem>>
    %896 = vector.broadcast %895 : f32 to vector<16x32xf32>
    %897 = arith.mulf %896, %894 : vector<16x32xf32>
    %898 = arith.addf %893, %897 : vector<16x32xf32>
    %899 = vector.extract_strided_slice %36 {offsets = [1, 0], sizes = [16, 32], strides = [1, 1]} : vector<24x32xf32> to vector<16x32xf32>
    %c4_383 = arith.constant 4 : index
    %c21_384 = arith.constant 21 : index
    %900 = memref.load %arg5[%c4_383, %c21_384] : memref<8x36xf32, #tpu.memory_space<smem>>
    %901 = vector.broadcast %900 : f32 to vector<16x32xf32>
    %902 = arith.mulf %901, %899 : vector<16x32xf32>
    %903 = arith.addf %898, %902 : vector<16x32xf32>
    %904 = vector.extract_strided_slice %39 {offsets = [1, 0], sizes = [16, 32], strides = [1, 1]} : vector<24x32xf32> to vector<16x32xf32>
    %c4_385 = arith.constant 4 : index
    %c22_386 = arith.constant 22 : index
    %905 = memref.load %arg5[%c4_385, %c22_386] : memref<8x36xf32, #tpu.memory_space<smem>>
    %906 = vector.broadcast %905 : f32 to vector<16x32xf32>
    %907 = arith.mulf %906, %904 : vector<16x32xf32>
    %908 = arith.addf %903, %907 : vector<16x32xf32>
    %909 = vector.extract_strided_slice %42 {offsets = [1, 0], sizes = [16, 32], strides = [1, 1]} : vector<24x32xf32> to vector<16x32xf32>
    %c4_387 = arith.constant 4 : index
    %c23_388 = arith.constant 23 : index
    %910 = memref.load %arg5[%c4_387, %c23_388] : memref<8x36xf32, #tpu.memory_space<smem>>
    %911 = vector.broadcast %910 : f32 to vector<16x32xf32>
    %912 = arith.mulf %911, %909 : vector<16x32xf32>
    %913 = arith.addf %908, %912 : vector<16x32xf32>
    %914 = vector.extract_strided_slice %36 {offsets = [2, 0], sizes = [16, 32], strides = [1, 1]} : vector<24x32xf32> to vector<16x32xf32>
    %c4_389 = arith.constant 4 : index
    %c24_390 = arith.constant 24 : index
    %915 = memref.load %arg5[%c4_389, %c24_390] : memref<8x36xf32, #tpu.memory_space<smem>>
    %916 = vector.broadcast %915 : f32 to vector<16x32xf32>
    %917 = arith.mulf %916, %914 : vector<16x32xf32>
    %918 = arith.addf %913, %917 : vector<16x32xf32>
    %919 = vector.extract_strided_slice %39 {offsets = [2, 0], sizes = [16, 32], strides = [1, 1]} : vector<24x32xf32> to vector<16x32xf32>
    %c4_391 = arith.constant 4 : index
    %c25_392 = arith.constant 25 : index
    %920 = memref.load %arg5[%c4_391, %c25_392] : memref<8x36xf32, #tpu.memory_space<smem>>
    %921 = vector.broadcast %920 : f32 to vector<16x32xf32>
    %922 = arith.mulf %921, %919 : vector<16x32xf32>
    %923 = arith.addf %918, %922 : vector<16x32xf32>
    %924 = vector.extract_strided_slice %42 {offsets = [2, 0], sizes = [16, 32], strides = [1, 1]} : vector<24x32xf32> to vector<16x32xf32>
    %c4_393 = arith.constant 4 : index
    %c26_394 = arith.constant 26 : index
    %925 = memref.load %arg5[%c4_393, %c26_394] : memref<8x36xf32, #tpu.memory_space<smem>>
    %926 = vector.broadcast %925 : f32 to vector<16x32xf32>
    %927 = arith.mulf %926, %924 : vector<16x32xf32>
    %928 = arith.addf %923, %927 : vector<16x32xf32>
    %929 = vector.extract_strided_slice %45 {offsets = [0, 0], sizes = [16, 32], strides = [1, 1]} : vector<24x32xf32> to vector<16x32xf32>
    %c4_395 = arith.constant 4 : index
    %c27_396 = arith.constant 27 : index
    %930 = memref.load %arg5[%c4_395, %c27_396] : memref<8x36xf32, #tpu.memory_space<smem>>
    %931 = vector.broadcast %930 : f32 to vector<16x32xf32>
    %932 = arith.mulf %931, %929 : vector<16x32xf32>
    %933 = arith.addf %928, %932 : vector<16x32xf32>
    %934 = vector.extract_strided_slice %48 {offsets = [0, 0], sizes = [16, 32], strides = [1, 1]} : vector<24x32xf32> to vector<16x32xf32>
    %c4_397 = arith.constant 4 : index
    %c28_398 = arith.constant 28 : index
    %935 = memref.load %arg5[%c4_397, %c28_398] : memref<8x36xf32, #tpu.memory_space<smem>>
    %936 = vector.broadcast %935 : f32 to vector<16x32xf32>
    %937 = arith.mulf %936, %934 : vector<16x32xf32>
    %938 = arith.addf %933, %937 : vector<16x32xf32>
    %939 = vector.extract_strided_slice %51 {offsets = [0, 0], sizes = [16, 32], strides = [1, 1]} : vector<24x32xf32> to vector<16x32xf32>
    %c4_399 = arith.constant 4 : index
    %c29_400 = arith.constant 29 : index
    %940 = memref.load %arg5[%c4_399, %c29_400] : memref<8x36xf32, #tpu.memory_space<smem>>
    %941 = vector.broadcast %940 : f32 to vector<16x32xf32>
    %942 = arith.mulf %941, %939 : vector<16x32xf32>
    %943 = arith.addf %938, %942 : vector<16x32xf32>
    %944 = vector.extract_strided_slice %45 {offsets = [1, 0], sizes = [16, 32], strides = [1, 1]} : vector<24x32xf32> to vector<16x32xf32>
    %c4_401 = arith.constant 4 : index
    %c30_402 = arith.constant 30 : index
    %945 = memref.load %arg5[%c4_401, %c30_402] : memref<8x36xf32, #tpu.memory_space<smem>>
    %946 = vector.broadcast %945 : f32 to vector<16x32xf32>
    %947 = arith.mulf %946, %944 : vector<16x32xf32>
    %948 = arith.addf %943, %947 : vector<16x32xf32>
    %949 = vector.extract_strided_slice %48 {offsets = [1, 0], sizes = [16, 32], strides = [1, 1]} : vector<24x32xf32> to vector<16x32xf32>
    %c4_403 = arith.constant 4 : index
    %c31_404 = arith.constant 31 : index
    %950 = memref.load %arg5[%c4_403, %c31_404] : memref<8x36xf32, #tpu.memory_space<smem>>
    %951 = vector.broadcast %950 : f32 to vector<16x32xf32>
    %952 = arith.mulf %951, %949 : vector<16x32xf32>
    %953 = arith.addf %948, %952 : vector<16x32xf32>
    %954 = vector.extract_strided_slice %51 {offsets = [1, 0], sizes = [16, 32], strides = [1, 1]} : vector<24x32xf32> to vector<16x32xf32>
    %c4_405 = arith.constant 4 : index
    %c32_406 = arith.constant 32 : index
    %955 = memref.load %arg5[%c4_405, %c32_406] : memref<8x36xf32, #tpu.memory_space<smem>>
    %956 = vector.broadcast %955 : f32 to vector<16x32xf32>
    %957 = arith.mulf %956, %954 : vector<16x32xf32>
    %958 = arith.addf %953, %957 : vector<16x32xf32>
    %959 = vector.extract_strided_slice %45 {offsets = [2, 0], sizes = [16, 32], strides = [1, 1]} : vector<24x32xf32> to vector<16x32xf32>
    %c4_407 = arith.constant 4 : index
    %c33_408 = arith.constant 33 : index
    %960 = memref.load %arg5[%c4_407, %c33_408] : memref<8x36xf32, #tpu.memory_space<smem>>
    %961 = vector.broadcast %960 : f32 to vector<16x32xf32>
    %962 = arith.mulf %961, %959 : vector<16x32xf32>
    %963 = arith.addf %958, %962 : vector<16x32xf32>
    %964 = vector.extract_strided_slice %48 {offsets = [2, 0], sizes = [16, 32], strides = [1, 1]} : vector<24x32xf32> to vector<16x32xf32>
    %c4_409 = arith.constant 4 : index
    %c34_410 = arith.constant 34 : index
    %965 = memref.load %arg5[%c4_409, %c34_410] : memref<8x36xf32, #tpu.memory_space<smem>>
    %966 = vector.broadcast %965 : f32 to vector<16x32xf32>
    %967 = arith.mulf %966, %964 : vector<16x32xf32>
    %968 = arith.addf %963, %967 : vector<16x32xf32>
    %969 = vector.extract_strided_slice %51 {offsets = [2, 0], sizes = [16, 32], strides = [1, 1]} : vector<24x32xf32> to vector<16x32xf32>
    %c4_411 = arith.constant 4 : index
    %c35_412 = arith.constant 35 : index
    %970 = memref.load %arg5[%c4_411, %c35_412] : memref<8x36xf32, #tpu.memory_space<smem>>
    %971 = vector.broadcast %970 : f32 to vector<16x32xf32>
    %972 = arith.mulf %971, %969 : vector<16x32xf32>
    %973 = arith.addf %968, %972 : vector<16x32xf32>
    %c0_413 = arith.constant 0 : index
    %c4_414 = arith.constant 4 : index
    %c0_415 = arith.constant 0 : index
    %c0_416 = arith.constant 0 : index
    %974 = vector.load %arg7[%c0_413, %c4_414, %c0_415, %c0_416] : memref<1x8x16x32xf32, #tpu.memory_space<vmem>>, vector<1x1x16x32xf32>
    %975 = vector.shape_cast %974 : vector<1x1x16x32xf32> to vector<16x32xf32>
    %976 = vector.shape_cast %973 : vector<16x32xf32> to vector<1x1x16x32xf32>
    tpu.vector_store %arg7[%c0_413, %c4_414, %c0_415, %c0_416], %976 {strides = array<i32>} : memref<1x8x16x32xf32, #tpu.memory_space<vmem>>, vector<1x1x16x32xf32>,
    %c5_417 = arith.constant 5 : index
    %977 = memref.load %arg6[%c5_417] : memref<8xf32, #tpu.memory_space<smem>>
    %978 = vector.broadcast %977 : f32 to vector<16x32xf32>
    %979 = vector.extract_strided_slice %18 {offsets = [0, 0], sizes = [16, 32], strides = [1, 1]} : vector<24x32xf32> to vector<16x32xf32>
    %c5_418 = arith.constant 5 : index
    %c0_419 = arith.constant 0 : index
    %980 = memref.load %arg5[%c5_418, %c0_419] : memref<8x36xf32, #tpu.memory_space<smem>>
    %981 = vector.broadcast %980 : f32 to vector<16x32xf32>
    %982 = arith.mulf %981, %979 : vector<16x32xf32>
    %983 = arith.addf %978, %982 : vector<16x32xf32>
    %984 = vector.extract_strided_slice %21 {offsets = [0, 0], sizes = [16, 32], strides = [1, 1]} : vector<24x32xf32> to vector<16x32xf32>
    %c5_420 = arith.constant 5 : index
    %c1_421 = arith.constant 1 : index
    %985 = memref.load %arg5[%c5_420, %c1_421] : memref<8x36xf32, #tpu.memory_space<smem>>
    %986 = vector.broadcast %985 : f32 to vector<16x32xf32>
    %987 = arith.mulf %986, %984 : vector<16x32xf32>
    %988 = arith.addf %983, %987 : vector<16x32xf32>
    %989 = vector.extract_strided_slice %24 {offsets = [0, 0], sizes = [16, 32], strides = [1, 1]} : vector<24x32xf32> to vector<16x32xf32>
    %c5_422 = arith.constant 5 : index
    %c2_423 = arith.constant 2 : index
    %990 = memref.load %arg5[%c5_422, %c2_423] : memref<8x36xf32, #tpu.memory_space<smem>>
    %991 = vector.broadcast %990 : f32 to vector<16x32xf32>
    %992 = arith.mulf %991, %989 : vector<16x32xf32>
    %993 = arith.addf %988, %992 : vector<16x32xf32>
    %994 = vector.extract_strided_slice %18 {offsets = [1, 0], sizes = [16, 32], strides = [1, 1]} : vector<24x32xf32> to vector<16x32xf32>
    %c5_424 = arith.constant 5 : index
    %c3_425 = arith.constant 3 : index
    %995 = memref.load %arg5[%c5_424, %c3_425] : memref<8x36xf32, #tpu.memory_space<smem>>
    %996 = vector.broadcast %995 : f32 to vector<16x32xf32>
    %997 = arith.mulf %996, %994 : vector<16x32xf32>
    %998 = arith.addf %993, %997 : vector<16x32xf32>
    %999 = vector.extract_strided_slice %21 {offsets = [1, 0], sizes = [16, 32], strides = [1, 1]} : vector<24x32xf32> to vector<16x32xf32>
    %c5_426 = arith.constant 5 : index
    %c4_427 = arith.constant 4 : index
    %1000 = memref.load %arg5[%c5_426, %c4_427] : memref<8x36xf32, #tpu.memory_space<smem>>
    %1001 = vector.broadcast %1000 : f32 to vector<16x32xf32>
    %1002 = arith.mulf %1001, %999 : vector<16x32xf32>
    %1003 = arith.addf %998, %1002 : vector<16x32xf32>
    %1004 = vector.extract_strided_slice %24 {offsets = [1, 0], sizes = [16, 32], strides = [1, 1]} : vector<24x32xf32> to vector<16x32xf32>
    %c5_428 = arith.constant 5 : index
    %c5_429 = arith.constant 5 : index
    %1005 = memref.load %arg5[%c5_428, %c5_429] : memref<8x36xf32, #tpu.memory_space<smem>>
    %1006 = vector.broadcast %1005 : f32 to vector<16x32xf32>
    %1007 = arith.mulf %1006, %1004 : vector<16x32xf32>
    %1008 = arith.addf %1003, %1007 : vector<16x32xf32>
    %1009 = vector.extract_strided_slice %18 {offsets = [2, 0], sizes = [16, 32], strides = [1, 1]} : vector<24x32xf32> to vector<16x32xf32>
    %c5_430 = arith.constant 5 : index
    %c6_431 = arith.constant 6 : index
    %1010 = memref.load %arg5[%c5_430, %c6_431] : memref<8x36xf32, #tpu.memory_space<smem>>
    %1011 = vector.broadcast %1010 : f32 to vector<16x32xf32>
    %1012 = arith.mulf %1011, %1009 : vector<16x32xf32>
    %1013 = arith.addf %1008, %1012 : vector<16x32xf32>
    %1014 = vector.extract_strided_slice %21 {offsets = [2, 0], sizes = [16, 32], strides = [1, 1]} : vector<24x32xf32> to vector<16x32xf32>
    %c5_432 = arith.constant 5 : index
    %c7_433 = arith.constant 7 : index
    %1015 = memref.load %arg5[%c5_432, %c7_433] : memref<8x36xf32, #tpu.memory_space<smem>>
    %1016 = vector.broadcast %1015 : f32 to vector<16x32xf32>
    %1017 = arith.mulf %1016, %1014 : vector<16x32xf32>
    %1018 = arith.addf %1013, %1017 : vector<16x32xf32>
    %1019 = vector.extract_strided_slice %24 {offsets = [2, 0], sizes = [16, 32], strides = [1, 1]} : vector<24x32xf32> to vector<16x32xf32>
    %c5_434 = arith.constant 5 : index
    %c8_435 = arith.constant 8 : index
    %1020 = memref.load %arg5[%c5_434, %c8_435] : memref<8x36xf32, #tpu.memory_space<smem>>
    %1021 = vector.broadcast %1020 : f32 to vector<16x32xf32>
    %1022 = arith.mulf %1021, %1019 : vector<16x32xf32>
    %1023 = arith.addf %1018, %1022 : vector<16x32xf32>
    %1024 = vector.extract_strided_slice %27 {offsets = [0, 0], sizes = [16, 32], strides = [1, 1]} : vector<24x32xf32> to vector<16x32xf32>
    %c5_436 = arith.constant 5 : index
    %c9_437 = arith.constant 9 : index
    %1025 = memref.load %arg5[%c5_436, %c9_437] : memref<8x36xf32, #tpu.memory_space<smem>>
    %1026 = vector.broadcast %1025 : f32 to vector<16x32xf32>
    %1027 = arith.mulf %1026, %1024 : vector<16x32xf32>
    %1028 = arith.addf %1023, %1027 : vector<16x32xf32>
    %1029 = vector.extract_strided_slice %30 {offsets = [0, 0], sizes = [16, 32], strides = [1, 1]} : vector<24x32xf32> to vector<16x32xf32>
    %c5_438 = arith.constant 5 : index
    %c10_439 = arith.constant 10 : index
    %1030 = memref.load %arg5[%c5_438, %c10_439] : memref<8x36xf32, #tpu.memory_space<smem>>
    %1031 = vector.broadcast %1030 : f32 to vector<16x32xf32>
    %1032 = arith.mulf %1031, %1029 : vector<16x32xf32>
    %1033 = arith.addf %1028, %1032 : vector<16x32xf32>
    %1034 = vector.extract_strided_slice %33 {offsets = [0, 0], sizes = [16, 32], strides = [1, 1]} : vector<24x32xf32> to vector<16x32xf32>
    %c5_440 = arith.constant 5 : index
    %c11_441 = arith.constant 11 : index
    %1035 = memref.load %arg5[%c5_440, %c11_441] : memref<8x36xf32, #tpu.memory_space<smem>>
    %1036 = vector.broadcast %1035 : f32 to vector<16x32xf32>
    %1037 = arith.mulf %1036, %1034 : vector<16x32xf32>
    %1038 = arith.addf %1033, %1037 : vector<16x32xf32>
    %1039 = vector.extract_strided_slice %27 {offsets = [1, 0], sizes = [16, 32], strides = [1, 1]} : vector<24x32xf32> to vector<16x32xf32>
    %c5_442 = arith.constant 5 : index
    %c12_443 = arith.constant 12 : index
    %1040 = memref.load %arg5[%c5_442, %c12_443] : memref<8x36xf32, #tpu.memory_space<smem>>
    %1041 = vector.broadcast %1040 : f32 to vector<16x32xf32>
    %1042 = arith.mulf %1041, %1039 : vector<16x32xf32>
    %1043 = arith.addf %1038, %1042 : vector<16x32xf32>
    %1044 = vector.extract_strided_slice %30 {offsets = [1, 0], sizes = [16, 32], strides = [1, 1]} : vector<24x32xf32> to vector<16x32xf32>
    %c5_444 = arith.constant 5 : index
    %c13_445 = arith.constant 13 : index
    %1045 = memref.load %arg5[%c5_444, %c13_445] : memref<8x36xf32, #tpu.memory_space<smem>>
    %1046 = vector.broadcast %1045 : f32 to vector<16x32xf32>
    %1047 = arith.mulf %1046, %1044 : vector<16x32xf32>
    %1048 = arith.addf %1043, %1047 : vector<16x32xf32>
    %1049 = vector.extract_strided_slice %33 {offsets = [1, 0], sizes = [16, 32], strides = [1, 1]} : vector<24x32xf32> to vector<16x32xf32>
    %c5_446 = arith.constant 5 : index
    %c14_447 = arith.constant 14 : index
    %1050 = memref.load %arg5[%c5_446, %c14_447] : memref<8x36xf32, #tpu.memory_space<smem>>
    %1051 = vector.broadcast %1050 : f32 to vector<16x32xf32>
    %1052 = arith.mulf %1051, %1049 : vector<16x32xf32>
    %1053 = arith.addf %1048, %1052 : vector<16x32xf32>
    %1054 = vector.extract_strided_slice %27 {offsets = [2, 0], sizes = [16, 32], strides = [1, 1]} : vector<24x32xf32> to vector<16x32xf32>
    %c5_448 = arith.constant 5 : index
    %c15_449 = arith.constant 15 : index
    %1055 = memref.load %arg5[%c5_448, %c15_449] : memref<8x36xf32, #tpu.memory_space<smem>>
    %1056 = vector.broadcast %1055 : f32 to vector<16x32xf32>
    %1057 = arith.mulf %1056, %1054 : vector<16x32xf32>
    %1058 = arith.addf %1053, %1057 : vector<16x32xf32>
    %1059 = vector.extract_strided_slice %30 {offsets = [2, 0], sizes = [16, 32], strides = [1, 1]} : vector<24x32xf32> to vector<16x32xf32>
    %c5_450 = arith.constant 5 : index
    %c16_451 = arith.constant 16 : index
    %1060 = memref.load %arg5[%c5_450, %c16_451] : memref<8x36xf32, #tpu.memory_space<smem>>
    %1061 = vector.broadcast %1060 : f32 to vector<16x32xf32>
    %1062 = arith.mulf %1061, %1059 : vector<16x32xf32>
    %1063 = arith.addf %1058, %1062 : vector<16x32xf32>
    %1064 = vector.extract_strided_slice %33 {offsets = [2, 0], sizes = [16, 32], strides = [1, 1]} : vector<24x32xf32> to vector<16x32xf32>
    %c5_452 = arith.constant 5 : index
    %c17_453 = arith.constant 17 : index
    %1065 = memref.load %arg5[%c5_452, %c17_453] : memref<8x36xf32, #tpu.memory_space<smem>>
    %1066 = vector.broadcast %1065 : f32 to vector<16x32xf32>
    %1067 = arith.mulf %1066, %1064 : vector<16x32xf32>
    %1068 = arith.addf %1063, %1067 : vector<16x32xf32>
    %1069 = vector.extract_strided_slice %36 {offsets = [0, 0], sizes = [16, 32], strides = [1, 1]} : vector<24x32xf32> to vector<16x32xf32>
    %c5_454 = arith.constant 5 : index
    %c18_455 = arith.constant 18 : index
    %1070 = memref.load %arg5[%c5_454, %c18_455] : memref<8x36xf32, #tpu.memory_space<smem>>
    %1071 = vector.broadcast %1070 : f32 to vector<16x32xf32>
    %1072 = arith.mulf %1071, %1069 : vector<16x32xf32>
    %1073 = arith.addf %1068, %1072 : vector<16x32xf32>
    %1074 = vector.extract_strided_slice %39 {offsets = [0, 0], sizes = [16, 32], strides = [1, 1]} : vector<24x32xf32> to vector<16x32xf32>
    %c5_456 = arith.constant 5 : index
    %c19_457 = arith.constant 19 : index
    %1075 = memref.load %arg5[%c5_456, %c19_457] : memref<8x36xf32, #tpu.memory_space<smem>>
    %1076 = vector.broadcast %1075 : f32 to vector<16x32xf32>
    %1077 = arith.mulf %1076, %1074 : vector<16x32xf32>
    %1078 = arith.addf %1073, %1077 : vector<16x32xf32>
    %1079 = vector.extract_strided_slice %42 {offsets = [0, 0], sizes = [16, 32], strides = [1, 1]} : vector<24x32xf32> to vector<16x32xf32>
    %c5_458 = arith.constant 5 : index
    %c20_459 = arith.constant 20 : index
    %1080 = memref.load %arg5[%c5_458, %c20_459] : memref<8x36xf32, #tpu.memory_space<smem>>
    %1081 = vector.broadcast %1080 : f32 to vector<16x32xf32>
    %1082 = arith.mulf %1081, %1079 : vector<16x32xf32>
    %1083 = arith.addf %1078, %1082 : vector<16x32xf32>
    %1084 = vector.extract_strided_slice %36 {offsets = [1, 0], sizes = [16, 32], strides = [1, 1]} : vector<24x32xf32> to vector<16x32xf32>
    %c5_460 = arith.constant 5 : index
    %c21_461 = arith.constant 21 : index
    %1085 = memref.load %arg5[%c5_460, %c21_461] : memref<8x36xf32, #tpu.memory_space<smem>>
    %1086 = vector.broadcast %1085 : f32 to vector<16x32xf32>
    %1087 = arith.mulf %1086, %1084 : vector<16x32xf32>
    %1088 = arith.addf %1083, %1087 : vector<16x32xf32>
    %1089 = vector.extract_strided_slice %39 {offsets = [1, 0], sizes = [16, 32], strides = [1, 1]} : vector<24x32xf32> to vector<16x32xf32>
    %c5_462 = arith.constant 5 : index
    %c22_463 = arith.constant 22 : index
    %1090 = memref.load %arg5[%c5_462, %c22_463] : memref<8x36xf32, #tpu.memory_space<smem>>
    %1091 = vector.broadcast %1090 : f32 to vector<16x32xf32>
    %1092 = arith.mulf %1091, %1089 : vector<16x32xf32>
    %1093 = arith.addf %1088, %1092 : vector<16x32xf32>
    %1094 = vector.extract_strided_slice %42 {offsets = [1, 0], sizes = [16, 32], strides = [1, 1]} : vector<24x32xf32> to vector<16x32xf32>
    %c5_464 = arith.constant 5 : index
    %c23_465 = arith.constant 23 : index
    %1095 = memref.load %arg5[%c5_464, %c23_465] : memref<8x36xf32, #tpu.memory_space<smem>>
    %1096 = vector.broadcast %1095 : f32 to vector<16x32xf32>
    %1097 = arith.mulf %1096, %1094 : vector<16x32xf32>
    %1098 = arith.addf %1093, %1097 : vector<16x32xf32>
    %1099 = vector.extract_strided_slice %36 {offsets = [2, 0], sizes = [16, 32], strides = [1, 1]} : vector<24x32xf32> to vector<16x32xf32>
    %c5_466 = arith.constant 5 : index
    %c24_467 = arith.constant 24 : index
    %1100 = memref.load %arg5[%c5_466, %c24_467] : memref<8x36xf32, #tpu.memory_space<smem>>
    %1101 = vector.broadcast %1100 : f32 to vector<16x32xf32>
    %1102 = arith.mulf %1101, %1099 : vector<16x32xf32>
    %1103 = arith.addf %1098, %1102 : vector<16x32xf32>
    %1104 = vector.extract_strided_slice %39 {offsets = [2, 0], sizes = [16, 32], strides = [1, 1]} : vector<24x32xf32> to vector<16x32xf32>
    %c5_468 = arith.constant 5 : index
    %c25_469 = arith.constant 25 : index
    %1105 = memref.load %arg5[%c5_468, %c25_469] : memref<8x36xf32, #tpu.memory_space<smem>>
    %1106 = vector.broadcast %1105 : f32 to vector<16x32xf32>
    %1107 = arith.mulf %1106, %1104 : vector<16x32xf32>
    %1108 = arith.addf %1103, %1107 : vector<16x32xf32>
    %1109 = vector.extract_strided_slice %42 {offsets = [2, 0], sizes = [16, 32], strides = [1, 1]} : vector<24x32xf32> to vector<16x32xf32>
    %c5_470 = arith.constant 5 : index
    %c26_471 = arith.constant 26 : index
    %1110 = memref.load %arg5[%c5_470, %c26_471] : memref<8x36xf32, #tpu.memory_space<smem>>
    %1111 = vector.broadcast %1110 : f32 to vector<16x32xf32>
    %1112 = arith.mulf %1111, %1109 : vector<16x32xf32>
    %1113 = arith.addf %1108, %1112 : vector<16x32xf32>
    %1114 = vector.extract_strided_slice %45 {offsets = [0, 0], sizes = [16, 32], strides = [1, 1]} : vector<24x32xf32> to vector<16x32xf32>
    %c5_472 = arith.constant 5 : index
    %c27_473 = arith.constant 27 : index
    %1115 = memref.load %arg5[%c5_472, %c27_473] : memref<8x36xf32, #tpu.memory_space<smem>>
    %1116 = vector.broadcast %1115 : f32 to vector<16x32xf32>
    %1117 = arith.mulf %1116, %1114 : vector<16x32xf32>
    %1118 = arith.addf %1113, %1117 : vector<16x32xf32>
    %1119 = vector.extract_strided_slice %48 {offsets = [0, 0], sizes = [16, 32], strides = [1, 1]} : vector<24x32xf32> to vector<16x32xf32>
    %c5_474 = arith.constant 5 : index
    %c28_475 = arith.constant 28 : index
    %1120 = memref.load %arg5[%c5_474, %c28_475] : memref<8x36xf32, #tpu.memory_space<smem>>
    %1121 = vector.broadcast %1120 : f32 to vector<16x32xf32>
    %1122 = arith.mulf %1121, %1119 : vector<16x32xf32>
    %1123 = arith.addf %1118, %1122 : vector<16x32xf32>
    %1124 = vector.extract_strided_slice %51 {offsets = [0, 0], sizes = [16, 32], strides = [1, 1]} : vector<24x32xf32> to vector<16x32xf32>
    %c5_476 = arith.constant 5 : index
    %c29_477 = arith.constant 29 : index
    %1125 = memref.load %arg5[%c5_476, %c29_477] : memref<8x36xf32, #tpu.memory_space<smem>>
    %1126 = vector.broadcast %1125 : f32 to vector<16x32xf32>
    %1127 = arith.mulf %1126, %1124 : vector<16x32xf32>
    %1128 = arith.addf %1123, %1127 : vector<16x32xf32>
    %1129 = vector.extract_strided_slice %45 {offsets = [1, 0], sizes = [16, 32], strides = [1, 1]} : vector<24x32xf32> to vector<16x32xf32>
    %c5_478 = arith.constant 5 : index
    %c30_479 = arith.constant 30 : index
    %1130 = memref.load %arg5[%c5_478, %c30_479] : memref<8x36xf32, #tpu.memory_space<smem>>
    %1131 = vector.broadcast %1130 : f32 to vector<16x32xf32>
    %1132 = arith.mulf %1131, %1129 : vector<16x32xf32>
    %1133 = arith.addf %1128, %1132 : vector<16x32xf32>
    %1134 = vector.extract_strided_slice %48 {offsets = [1, 0], sizes = [16, 32], strides = [1, 1]} : vector<24x32xf32> to vector<16x32xf32>
    %c5_480 = arith.constant 5 : index
    %c31_481 = arith.constant 31 : index
    %1135 = memref.load %arg5[%c5_480, %c31_481] : memref<8x36xf32, #tpu.memory_space<smem>>
    %1136 = vector.broadcast %1135 : f32 to vector<16x32xf32>
    %1137 = arith.mulf %1136, %1134 : vector<16x32xf32>
    %1138 = arith.addf %1133, %1137 : vector<16x32xf32>
    %1139 = vector.extract_strided_slice %51 {offsets = [1, 0], sizes = [16, 32], strides = [1, 1]} : vector<24x32xf32> to vector<16x32xf32>
    %c5_482 = arith.constant 5 : index
    %c32_483 = arith.constant 32 : index
    %1140 = memref.load %arg5[%c5_482, %c32_483] : memref<8x36xf32, #tpu.memory_space<smem>>
    %1141 = vector.broadcast %1140 : f32 to vector<16x32xf32>
    %1142 = arith.mulf %1141, %1139 : vector<16x32xf32>
    %1143 = arith.addf %1138, %1142 : vector<16x32xf32>
    %1144 = vector.extract_strided_slice %45 {offsets = [2, 0], sizes = [16, 32], strides = [1, 1]} : vector<24x32xf32> to vector<16x32xf32>
    %c5_484 = arith.constant 5 : index
    %c33_485 = arith.constant 33 : index
    %1145 = memref.load %arg5[%c5_484, %c33_485] : memref<8x36xf32, #tpu.memory_space<smem>>
    %1146 = vector.broadcast %1145 : f32 to vector<16x32xf32>
    %1147 = arith.mulf %1146, %1144 : vector<16x32xf32>
    %1148 = arith.addf %1143, %1147 : vector<16x32xf32>
    %1149 = vector.extract_strided_slice %48 {offsets = [2, 0], sizes = [16, 32], strides = [1, 1]} : vector<24x32xf32> to vector<16x32xf32>
    %c5_486 = arith.constant 5 : index
    %c34_487 = arith.constant 34 : index
    %1150 = memref.load %arg5[%c5_486, %c34_487] : memref<8x36xf32, #tpu.memory_space<smem>>
    %1151 = vector.broadcast %1150 : f32 to vector<16x32xf32>
    %1152 = arith.mulf %1151, %1149 : vector<16x32xf32>
    %1153 = arith.addf %1148, %1152 : vector<16x32xf32>
    %1154 = vector.extract_strided_slice %51 {offsets = [2, 0], sizes = [16, 32], strides = [1, 1]} : vector<24x32xf32> to vector<16x32xf32>
    %c5_488 = arith.constant 5 : index
    %c35_489 = arith.constant 35 : index
    %1155 = memref.load %arg5[%c5_488, %c35_489] : memref<8x36xf32, #tpu.memory_space<smem>>
    %1156 = vector.broadcast %1155 : f32 to vector<16x32xf32>
    %1157 = arith.mulf %1156, %1154 : vector<16x32xf32>
    %1158 = arith.addf %1153, %1157 : vector<16x32xf32>
    %c0_490 = arith.constant 0 : index
    %c5_491 = arith.constant 5 : index
    %c0_492 = arith.constant 0 : index
    %c0_493 = arith.constant 0 : index
    %1159 = vector.load %arg7[%c0_490, %c5_491, %c0_492, %c0_493] : memref<1x8x16x32xf32, #tpu.memory_space<vmem>>, vector<1x1x16x32xf32>
    %1160 = vector.shape_cast %1159 : vector<1x1x16x32xf32> to vector<16x32xf32>
    %1161 = vector.shape_cast %1158 : vector<16x32xf32> to vector<1x1x16x32xf32>
    tpu.vector_store %arg7[%c0_490, %c5_491, %c0_492, %c0_493], %1161 {strides = array<i32>} : memref<1x8x16x32xf32, #tpu.memory_space<vmem>>, vector<1x1x16x32xf32>,
    %c6_494 = arith.constant 6 : index
    %1162 = memref.load %arg6[%c6_494] : memref<8xf32, #tpu.memory_space<smem>>
    %1163 = vector.broadcast %1162 : f32 to vector<16x32xf32>
    %1164 = vector.extract_strided_slice %18 {offsets = [0, 0], sizes = [16, 32], strides = [1, 1]} : vector<24x32xf32> to vector<16x32xf32>
    %c6_495 = arith.constant 6 : index
    %c0_496 = arith.constant 0 : index
    %1165 = memref.load %arg5[%c6_495, %c0_496] : memref<8x36xf32, #tpu.memory_space<smem>>
    %1166 = vector.broadcast %1165 : f32 to vector<16x32xf32>
    %1167 = arith.mulf %1166, %1164 : vector<16x32xf32>
    %1168 = arith.addf %1163, %1167 : vector<16x32xf32>
    %1169 = vector.extract_strided_slice %21 {offsets = [0, 0], sizes = [16, 32], strides = [1, 1]} : vector<24x32xf32> to vector<16x32xf32>
    %c6_497 = arith.constant 6 : index
    %c1_498 = arith.constant 1 : index
    %1170 = memref.load %arg5[%c6_497, %c1_498] : memref<8x36xf32, #tpu.memory_space<smem>>
    %1171 = vector.broadcast %1170 : f32 to vector<16x32xf32>
    %1172 = arith.mulf %1171, %1169 : vector<16x32xf32>
    %1173 = arith.addf %1168, %1172 : vector<16x32xf32>
    %1174 = vector.extract_strided_slice %24 {offsets = [0, 0], sizes = [16, 32], strides = [1, 1]} : vector<24x32xf32> to vector<16x32xf32>
    %c6_499 = arith.constant 6 : index
    %c2_500 = arith.constant 2 : index
    %1175 = memref.load %arg5[%c6_499, %c2_500] : memref<8x36xf32, #tpu.memory_space<smem>>
    %1176 = vector.broadcast %1175 : f32 to vector<16x32xf32>
    %1177 = arith.mulf %1176, %1174 : vector<16x32xf32>
    %1178 = arith.addf %1173, %1177 : vector<16x32xf32>
    %1179 = vector.extract_strided_slice %18 {offsets = [1, 0], sizes = [16, 32], strides = [1, 1]} : vector<24x32xf32> to vector<16x32xf32>
    %c6_501 = arith.constant 6 : index
    %c3_502 = arith.constant 3 : index
    %1180 = memref.load %arg5[%c6_501, %c3_502] : memref<8x36xf32, #tpu.memory_space<smem>>
    %1181 = vector.broadcast %1180 : f32 to vector<16x32xf32>
    %1182 = arith.mulf %1181, %1179 : vector<16x32xf32>
    %1183 = arith.addf %1178, %1182 : vector<16x32xf32>
    %1184 = vector.extract_strided_slice %21 {offsets = [1, 0], sizes = [16, 32], strides = [1, 1]} : vector<24x32xf32> to vector<16x32xf32>
    %c6_503 = arith.constant 6 : index
    %c4_504 = arith.constant 4 : index
    %1185 = memref.load %arg5[%c6_503, %c4_504] : memref<8x36xf32, #tpu.memory_space<smem>>
    %1186 = vector.broadcast %1185 : f32 to vector<16x32xf32>
    %1187 = arith.mulf %1186, %1184 : vector<16x32xf32>
    %1188 = arith.addf %1183, %1187 : vector<16x32xf32>
    %1189 = vector.extract_strided_slice %24 {offsets = [1, 0], sizes = [16, 32], strides = [1, 1]} : vector<24x32xf32> to vector<16x32xf32>
    %c6_505 = arith.constant 6 : index
    %c5_506 = arith.constant 5 : index
    %1190 = memref.load %arg5[%c6_505, %c5_506] : memref<8x36xf32, #tpu.memory_space<smem>>
    %1191 = vector.broadcast %1190 : f32 to vector<16x32xf32>
    %1192 = arith.mulf %1191, %1189 : vector<16x32xf32>
    %1193 = arith.addf %1188, %1192 : vector<16x32xf32>
    %1194 = vector.extract_strided_slice %18 {offsets = [2, 0], sizes = [16, 32], strides = [1, 1]} : vector<24x32xf32> to vector<16x32xf32>
    %c6_507 = arith.constant 6 : index
    %c6_508 = arith.constant 6 : index
    %1195 = memref.load %arg5[%c6_507, %c6_508] : memref<8x36xf32, #tpu.memory_space<smem>>
    %1196 = vector.broadcast %1195 : f32 to vector<16x32xf32>
    %1197 = arith.mulf %1196, %1194 : vector<16x32xf32>
    %1198 = arith.addf %1193, %1197 : vector<16x32xf32>
    %1199 = vector.extract_strided_slice %21 {offsets = [2, 0], sizes = [16, 32], strides = [1, 1]} : vector<24x32xf32> to vector<16x32xf32>
    %c6_509 = arith.constant 6 : index
    %c7_510 = arith.constant 7 : index
    %1200 = memref.load %arg5[%c6_509, %c7_510] : memref<8x36xf32, #tpu.memory_space<smem>>
    %1201 = vector.broadcast %1200 : f32 to vector<16x32xf32>
    %1202 = arith.mulf %1201, %1199 : vector<16x32xf32>
    %1203 = arith.addf %1198, %1202 : vector<16x32xf32>
    %1204 = vector.extract_strided_slice %24 {offsets = [2, 0], sizes = [16, 32], strides = [1, 1]} : vector<24x32xf32> to vector<16x32xf32>
    %c6_511 = arith.constant 6 : index
    %c8_512 = arith.constant 8 : index
    %1205 = memref.load %arg5[%c6_511, %c8_512] : memref<8x36xf32, #tpu.memory_space<smem>>
    %1206 = vector.broadcast %1205 : f32 to vector<16x32xf32>
    %1207 = arith.mulf %1206, %1204 : vector<16x32xf32>
    %1208 = arith.addf %1203, %1207 : vector<16x32xf32>
    %1209 = vector.extract_strided_slice %27 {offsets = [0, 0], sizes = [16, 32], strides = [1, 1]} : vector<24x32xf32> to vector<16x32xf32>
    %c6_513 = arith.constant 6 : index
    %c9_514 = arith.constant 9 : index
    %1210 = memref.load %arg5[%c6_513, %c9_514] : memref<8x36xf32, #tpu.memory_space<smem>>
    %1211 = vector.broadcast %1210 : f32 to vector<16x32xf32>
    %1212 = arith.mulf %1211, %1209 : vector<16x32xf32>
    %1213 = arith.addf %1208, %1212 : vector<16x32xf32>
    %1214 = vector.extract_strided_slice %30 {offsets = [0, 0], sizes = [16, 32], strides = [1, 1]} : vector<24x32xf32> to vector<16x32xf32>
    %c6_515 = arith.constant 6 : index
    %c10_516 = arith.constant 10 : index
    %1215 = memref.load %arg5[%c6_515, %c10_516] : memref<8x36xf32, #tpu.memory_space<smem>>
    %1216 = vector.broadcast %1215 : f32 to vector<16x32xf32>
    %1217 = arith.mulf %1216, %1214 : vector<16x32xf32>
    %1218 = arith.addf %1213, %1217 : vector<16x32xf32>
    %1219 = vector.extract_strided_slice %33 {offsets = [0, 0], sizes = [16, 32], strides = [1, 1]} : vector<24x32xf32> to vector<16x32xf32>
    %c6_517 = arith.constant 6 : index
    %c11_518 = arith.constant 11 : index
    %1220 = memref.load %arg5[%c6_517, %c11_518] : memref<8x36xf32, #tpu.memory_space<smem>>
    %1221 = vector.broadcast %1220 : f32 to vector<16x32xf32>
    %1222 = arith.mulf %1221, %1219 : vector<16x32xf32>
    %1223 = arith.addf %1218, %1222 : vector<16x32xf32>
    %1224 = vector.extract_strided_slice %27 {offsets = [1, 0], sizes = [16, 32], strides = [1, 1]} : vector<24x32xf32> to vector<16x32xf32>
    %c6_519 = arith.constant 6 : index
    %c12_520 = arith.constant 12 : index
    %1225 = memref.load %arg5[%c6_519, %c12_520] : memref<8x36xf32, #tpu.memory_space<smem>>
    %1226 = vector.broadcast %1225 : f32 to vector<16x32xf32>
    %1227 = arith.mulf %1226, %1224 : vector<16x32xf32>
    %1228 = arith.addf %1223, %1227 : vector<16x32xf32>
    %1229 = vector.extract_strided_slice %30 {offsets = [1, 0], sizes = [16, 32], strides = [1, 1]} : vector<24x32xf32> to vector<16x32xf32>
    %c6_521 = arith.constant 6 : index
    %c13_522 = arith.constant 13 : index
    %1230 = memref.load %arg5[%c6_521, %c13_522] : memref<8x36xf32, #tpu.memory_space<smem>>
    %1231 = vector.broadcast %1230 : f32 to vector<16x32xf32>
    %1232 = arith.mulf %1231, %1229 : vector<16x32xf32>
    %1233 = arith.addf %1228, %1232 : vector<16x32xf32>
    %1234 = vector.extract_strided_slice %33 {offsets = [1, 0], sizes = [16, 32], strides = [1, 1]} : vector<24x32xf32> to vector<16x32xf32>
    %c6_523 = arith.constant 6 : index
    %c14_524 = arith.constant 14 : index
    %1235 = memref.load %arg5[%c6_523, %c14_524] : memref<8x36xf32, #tpu.memory_space<smem>>
    %1236 = vector.broadcast %1235 : f32 to vector<16x32xf32>
    %1237 = arith.mulf %1236, %1234 : vector<16x32xf32>
    %1238 = arith.addf %1233, %1237 : vector<16x32xf32>
    %1239 = vector.extract_strided_slice %27 {offsets = [2, 0], sizes = [16, 32], strides = [1, 1]} : vector<24x32xf32> to vector<16x32xf32>
    %c6_525 = arith.constant 6 : index
    %c15_526 = arith.constant 15 : index
    %1240 = memref.load %arg5[%c6_525, %c15_526] : memref<8x36xf32, #tpu.memory_space<smem>>
    %1241 = vector.broadcast %1240 : f32 to vector<16x32xf32>
    %1242 = arith.mulf %1241, %1239 : vector<16x32xf32>
    %1243 = arith.addf %1238, %1242 : vector<16x32xf32>
    %1244 = vector.extract_strided_slice %30 {offsets = [2, 0], sizes = [16, 32], strides = [1, 1]} : vector<24x32xf32> to vector<16x32xf32>
    %c6_527 = arith.constant 6 : index
    %c16_528 = arith.constant 16 : index
    %1245 = memref.load %arg5[%c6_527, %c16_528] : memref<8x36xf32, #tpu.memory_space<smem>>
    %1246 = vector.broadcast %1245 : f32 to vector<16x32xf32>
    %1247 = arith.mulf %1246, %1244 : vector<16x32xf32>
    %1248 = arith.addf %1243, %1247 : vector<16x32xf32>
    %1249 = vector.extract_strided_slice %33 {offsets = [2, 0], sizes = [16, 32], strides = [1, 1]} : vector<24x32xf32> to vector<16x32xf32>
    %c6_529 = arith.constant 6 : index
    %c17_530 = arith.constant 17 : index
    %1250 = memref.load %arg5[%c6_529, %c17_530] : memref<8x36xf32, #tpu.memory_space<smem>>
    %1251 = vector.broadcast %1250 : f32 to vector<16x32xf32>
    %1252 = arith.mulf %1251, %1249 : vector<16x32xf32>
    %1253 = arith.addf %1248, %1252 : vector<16x32xf32>
    %1254 = vector.extract_strided_slice %36 {offsets = [0, 0], sizes = [16, 32], strides = [1, 1]} : vector<24x32xf32> to vector<16x32xf32>
    %c6_531 = arith.constant 6 : index
    %c18_532 = arith.constant 18 : index
    %1255 = memref.load %arg5[%c6_531, %c18_532] : memref<8x36xf32, #tpu.memory_space<smem>>
    %1256 = vector.broadcast %1255 : f32 to vector<16x32xf32>
    %1257 = arith.mulf %1256, %1254 : vector<16x32xf32>
    %1258 = arith.addf %1253, %1257 : vector<16x32xf32>
    %1259 = vector.extract_strided_slice %39 {offsets = [0, 0], sizes = [16, 32], strides = [1, 1]} : vector<24x32xf32> to vector<16x32xf32>
    %c6_533 = arith.constant 6 : index
    %c19_534 = arith.constant 19 : index
    %1260 = memref.load %arg5[%c6_533, %c19_534] : memref<8x36xf32, #tpu.memory_space<smem>>
    %1261 = vector.broadcast %1260 : f32 to vector<16x32xf32>
    %1262 = arith.mulf %1261, %1259 : vector<16x32xf32>
    %1263 = arith.addf %1258, %1262 : vector<16x32xf32>
    %1264 = vector.extract_strided_slice %42 {offsets = [0, 0], sizes = [16, 32], strides = [1, 1]} : vector<24x32xf32> to vector<16x32xf32>
    %c6_535 = arith.constant 6 : index
    %c20_536 = arith.constant 20 : index
    %1265 = memref.load %arg5[%c6_535, %c20_536] : memref<8x36xf32, #tpu.memory_space<smem>>
    %1266 = vector.broadcast %1265 : f32 to vector<16x32xf32>
    %1267 = arith.mulf %1266, %1264 : vector<16x32xf32>
    %1268 = arith.addf %1263, %1267 : vector<16x32xf32>
    %1269 = vector.extract_strided_slice %36 {offsets = [1, 0], sizes = [16, 32], strides = [1, 1]} : vector<24x32xf32> to vector<16x32xf32>
    %c6_537 = arith.constant 6 : index
    %c21_538 = arith.constant 21 : index
    %1270 = memref.load %arg5[%c6_537, %c21_538] : memref<8x36xf32, #tpu.memory_space<smem>>
    %1271 = vector.broadcast %1270 : f32 to vector<16x32xf32>
    %1272 = arith.mulf %1271, %1269 : vector<16x32xf32>
    %1273 = arith.addf %1268, %1272 : vector<16x32xf32>
    %1274 = vector.extract_strided_slice %39 {offsets = [1, 0], sizes = [16, 32], strides = [1, 1]} : vector<24x32xf32> to vector<16x32xf32>
    %c6_539 = arith.constant 6 : index
    %c22_540 = arith.constant 22 : index
    %1275 = memref.load %arg5[%c6_539, %c22_540] : memref<8x36xf32, #tpu.memory_space<smem>>
    %1276 = vector.broadcast %1275 : f32 to vector<16x32xf32>
    %1277 = arith.mulf %1276, %1274 : vector<16x32xf32>
    %1278 = arith.addf %1273, %1277 : vector<16x32xf32>
    %1279 = vector.extract_strided_slice %42 {offsets = [1, 0], sizes = [16, 32], strides = [1, 1]} : vector<24x32xf32> to vector<16x32xf32>
    %c6_541 = arith.constant 6 : index
    %c23_542 = arith.constant 23 : index
    %1280 = memref.load %arg5[%c6_541, %c23_542] : memref<8x36xf32, #tpu.memory_space<smem>>
    %1281 = vector.broadcast %1280 : f32 to vector<16x32xf32>
    %1282 = arith.mulf %1281, %1279 : vector<16x32xf32>
    %1283 = arith.addf %1278, %1282 : vector<16x32xf32>
    %1284 = vector.extract_strided_slice %36 {offsets = [2, 0], sizes = [16, 32], strides = [1, 1]} : vector<24x32xf32> to vector<16x32xf32>
    %c6_543 = arith.constant 6 : index
    %c24_544 = arith.constant 24 : index
    %1285 = memref.load %arg5[%c6_543, %c24_544] : memref<8x36xf32, #tpu.memory_space<smem>>
    %1286 = vector.broadcast %1285 : f32 to vector<16x32xf32>
    %1287 = arith.mulf %1286, %1284 : vector<16x32xf32>
    %1288 = arith.addf %1283, %1287 : vector<16x32xf32>
    %1289 = vector.extract_strided_slice %39 {offsets = [2, 0], sizes = [16, 32], strides = [1, 1]} : vector<24x32xf32> to vector<16x32xf32>
    %c6_545 = arith.constant 6 : index
    %c25_546 = arith.constant 25 : index
    %1290 = memref.load %arg5[%c6_545, %c25_546] : memref<8x36xf32, #tpu.memory_space<smem>>
    %1291 = vector.broadcast %1290 : f32 to vector<16x32xf32>
    %1292 = arith.mulf %1291, %1289 : vector<16x32xf32>
    %1293 = arith.addf %1288, %1292 : vector<16x32xf32>
    %1294 = vector.extract_strided_slice %42 {offsets = [2, 0], sizes = [16, 32], strides = [1, 1]} : vector<24x32xf32> to vector<16x32xf32>
    %c6_547 = arith.constant 6 : index
    %c26_548 = arith.constant 26 : index
    %1295 = memref.load %arg5[%c6_547, %c26_548] : memref<8x36xf32, #tpu.memory_space<smem>>
    %1296 = vector.broadcast %1295 : f32 to vector<16x32xf32>
    %1297 = arith.mulf %1296, %1294 : vector<16x32xf32>
    %1298 = arith.addf %1293, %1297 : vector<16x32xf32>
    %1299 = vector.extract_strided_slice %45 {offsets = [0, 0], sizes = [16, 32], strides = [1, 1]} : vector<24x32xf32> to vector<16x32xf32>
    %c6_549 = arith.constant 6 : index
    %c27_550 = arith.constant 27 : index
    %1300 = memref.load %arg5[%c6_549, %c27_550] : memref<8x36xf32, #tpu.memory_space<smem>>
    %1301 = vector.broadcast %1300 : f32 to vector<16x32xf32>
    %1302 = arith.mulf %1301, %1299 : vector<16x32xf32>
    %1303 = arith.addf %1298, %1302 : vector<16x32xf32>
    %1304 = vector.extract_strided_slice %48 {offsets = [0, 0], sizes = [16, 32], strides = [1, 1]} : vector<24x32xf32> to vector<16x32xf32>
    %c6_551 = arith.constant 6 : index
    %c28_552 = arith.constant 28 : index
    %1305 = memref.load %arg5[%c6_551, %c28_552] : memref<8x36xf32, #tpu.memory_space<smem>>
    %1306 = vector.broadcast %1305 : f32 to vector<16x32xf32>
    %1307 = arith.mulf %1306, %1304 : vector<16x32xf32>
    %1308 = arith.addf %1303, %1307 : vector<16x32xf32>
    %1309 = vector.extract_strided_slice %51 {offsets = [0, 0], sizes = [16, 32], strides = [1, 1]} : vector<24x32xf32> to vector<16x32xf32>
    %c6_553 = arith.constant 6 : index
    %c29_554 = arith.constant 29 : index
    %1310 = memref.load %arg5[%c6_553, %c29_554] : memref<8x36xf32, #tpu.memory_space<smem>>
    %1311 = vector.broadcast %1310 : f32 to vector<16x32xf32>
    %1312 = arith.mulf %1311, %1309 : vector<16x32xf32>
    %1313 = arith.addf %1308, %1312 : vector<16x32xf32>
    %1314 = vector.extract_strided_slice %45 {offsets = [1, 0], sizes = [16, 32], strides = [1, 1]} : vector<24x32xf32> to vector<16x32xf32>
    %c6_555 = arith.constant 6 : index
    %c30_556 = arith.constant 30 : index
    %1315 = memref.load %arg5[%c6_555, %c30_556] : memref<8x36xf32, #tpu.memory_space<smem>>
    %1316 = vector.broadcast %1315 : f32 to vector<16x32xf32>
    %1317 = arith.mulf %1316, %1314 : vector<16x32xf32>
    %1318 = arith.addf %1313, %1317 : vector<16x32xf32>
    %1319 = vector.extract_strided_slice %48 {offsets = [1, 0], sizes = [16, 32], strides = [1, 1]} : vector<24x32xf32> to vector<16x32xf32>
    %c6_557 = arith.constant 6 : index
    %c31_558 = arith.constant 31 : index
    %1320 = memref.load %arg5[%c6_557, %c31_558] : memref<8x36xf32, #tpu.memory_space<smem>>
    %1321 = vector.broadcast %1320 : f32 to vector<16x32xf32>
    %1322 = arith.mulf %1321, %1319 : vector<16x32xf32>
    %1323 = arith.addf %1318, %1322 : vector<16x32xf32>
    %1324 = vector.extract_strided_slice %51 {offsets = [1, 0], sizes = [16, 32], strides = [1, 1]} : vector<24x32xf32> to vector<16x32xf32>
    %c6_559 = arith.constant 6 : index
    %c32_560 = arith.constant 32 : index
    %1325 = memref.load %arg5[%c6_559, %c32_560] : memref<8x36xf32, #tpu.memory_space<smem>>
    %1326 = vector.broadcast %1325 : f32 to vector<16x32xf32>
    %1327 = arith.mulf %1326, %1324 : vector<16x32xf32>
    %1328 = arith.addf %1323, %1327 : vector<16x32xf32>
    %1329 = vector.extract_strided_slice %45 {offsets = [2, 0], sizes = [16, 32], strides = [1, 1]} : vector<24x32xf32> to vector<16x32xf32>
    %c6_561 = arith.constant 6 : index
    %c33_562 = arith.constant 33 : index
    %1330 = memref.load %arg5[%c6_561, %c33_562] : memref<8x36xf32, #tpu.memory_space<smem>>
    %1331 = vector.broadcast %1330 : f32 to vector<16x32xf32>
    %1332 = arith.mulf %1331, %1329 : vector<16x32xf32>
    %1333 = arith.addf %1328, %1332 : vector<16x32xf32>
    %1334 = vector.extract_strided_slice %48 {offsets = [2, 0], sizes = [16, 32], strides = [1, 1]} : vector<24x32xf32> to vector<16x32xf32>
    %c6_563 = arith.constant 6 : index
    %c34_564 = arith.constant 34 : index
    %1335 = memref.load %arg5[%c6_563, %c34_564] : memref<8x36xf32, #tpu.memory_space<smem>>
    %1336 = vector.broadcast %1335 : f32 to vector<16x32xf32>
    %1337 = arith.mulf %1336, %1334 : vector<16x32xf32>
    %1338 = arith.addf %1333, %1337 : vector<16x32xf32>
    %1339 = vector.extract_strided_slice %51 {offsets = [2, 0], sizes = [16, 32], strides = [1, 1]} : vector<24x32xf32> to vector<16x32xf32>
    %c6_565 = arith.constant 6 : index
    %c35_566 = arith.constant 35 : index
    %1340 = memref.load %arg5[%c6_565, %c35_566] : memref<8x36xf32, #tpu.memory_space<smem>>
    %1341 = vector.broadcast %1340 : f32 to vector<16x32xf32>
    %1342 = arith.mulf %1341, %1339 : vector<16x32xf32>
    %1343 = arith.addf %1338, %1342 : vector<16x32xf32>
    %c0_567 = arith.constant 0 : index
    %c6_568 = arith.constant 6 : index
    %c0_569 = arith.constant 0 : index
    %c0_570 = arith.constant 0 : index
    %1344 = vector.load %arg7[%c0_567, %c6_568, %c0_569, %c0_570] : memref<1x8x16x32xf32, #tpu.memory_space<vmem>>, vector<1x1x16x32xf32>
    %1345 = vector.shape_cast %1344 : vector<1x1x16x32xf32> to vector<16x32xf32>
    %1346 = vector.shape_cast %1343 : vector<16x32xf32> to vector<1x1x16x32xf32>
    tpu.vector_store %arg7[%c0_567, %c6_568, %c0_569, %c0_570], %1346 {strides = array<i32>} : memref<1x8x16x32xf32, #tpu.memory_space<vmem>>, vector<1x1x16x32xf32>,
    %c7_571 = arith.constant 7 : index
    %1347 = memref.load %arg6[%c7_571] : memref<8xf32, #tpu.memory_space<smem>>
    %1348 = vector.broadcast %1347 : f32 to vector<16x32xf32>
    %1349 = vector.extract_strided_slice %18 {offsets = [0, 0], sizes = [16, 32], strides = [1, 1]} : vector<24x32xf32> to vector<16x32xf32>
    %c7_572 = arith.constant 7 : index
    %c0_573 = arith.constant 0 : index
    %1350 = memref.load %arg5[%c7_572, %c0_573] : memref<8x36xf32, #tpu.memory_space<smem>>
    %1351 = vector.broadcast %1350 : f32 to vector<16x32xf32>
    %1352 = arith.mulf %1351, %1349 : vector<16x32xf32>
    %1353 = arith.addf %1348, %1352 : vector<16x32xf32>
    %1354 = vector.extract_strided_slice %21 {offsets = [0, 0], sizes = [16, 32], strides = [1, 1]} : vector<24x32xf32> to vector<16x32xf32>
    %c7_574 = arith.constant 7 : index
    %c1_575 = arith.constant 1 : index
    %1355 = memref.load %arg5[%c7_574, %c1_575] : memref<8x36xf32, #tpu.memory_space<smem>>
    %1356 = vector.broadcast %1355 : f32 to vector<16x32xf32>
    %1357 = arith.mulf %1356, %1354 : vector<16x32xf32>
    %1358 = arith.addf %1353, %1357 : vector<16x32xf32>
    %1359 = vector.extract_strided_slice %24 {offsets = [0, 0], sizes = [16, 32], strides = [1, 1]} : vector<24x32xf32> to vector<16x32xf32>
    %c7_576 = arith.constant 7 : index
    %c2_577 = arith.constant 2 : index
    %1360 = memref.load %arg5[%c7_576, %c2_577] : memref<8x36xf32, #tpu.memory_space<smem>>
    %1361 = vector.broadcast %1360 : f32 to vector<16x32xf32>
    %1362 = arith.mulf %1361, %1359 : vector<16x32xf32>
    %1363 = arith.addf %1358, %1362 : vector<16x32xf32>
    %1364 = vector.extract_strided_slice %18 {offsets = [1, 0], sizes = [16, 32], strides = [1, 1]} : vector<24x32xf32> to vector<16x32xf32>
    %c7_578 = arith.constant 7 : index
    %c3_579 = arith.constant 3 : index
    %1365 = memref.load %arg5[%c7_578, %c3_579] : memref<8x36xf32, #tpu.memory_space<smem>>
    %1366 = vector.broadcast %1365 : f32 to vector<16x32xf32>
    %1367 = arith.mulf %1366, %1364 : vector<16x32xf32>
    %1368 = arith.addf %1363, %1367 : vector<16x32xf32>
    %1369 = vector.extract_strided_slice %21 {offsets = [1, 0], sizes = [16, 32], strides = [1, 1]} : vector<24x32xf32> to vector<16x32xf32>
    %c7_580 = arith.constant 7 : index
    %c4_581 = arith.constant 4 : index
    %1370 = memref.load %arg5[%c7_580, %c4_581] : memref<8x36xf32, #tpu.memory_space<smem>>
    %1371 = vector.broadcast %1370 : f32 to vector<16x32xf32>
    %1372 = arith.mulf %1371, %1369 : vector<16x32xf32>
    %1373 = arith.addf %1368, %1372 : vector<16x32xf32>
    %1374 = vector.extract_strided_slice %24 {offsets = [1, 0], sizes = [16, 32], strides = [1, 1]} : vector<24x32xf32> to vector<16x32xf32>
    %c7_582 = arith.constant 7 : index
    %c5_583 = arith.constant 5 : index
    %1375 = memref.load %arg5[%c7_582, %c5_583] : memref<8x36xf32, #tpu.memory_space<smem>>
    %1376 = vector.broadcast %1375 : f32 to vector<16x32xf32>
    %1377 = arith.mulf %1376, %1374 : vector<16x32xf32>
    %1378 = arith.addf %1373, %1377 : vector<16x32xf32>
    %1379 = vector.extract_strided_slice %18 {offsets = [2, 0], sizes = [16, 32], strides = [1, 1]} : vector<24x32xf32> to vector<16x32xf32>
    %c7_584 = arith.constant 7 : index
    %c6_585 = arith.constant 6 : index
    %1380 = memref.load %arg5[%c7_584, %c6_585] : memref<8x36xf32, #tpu.memory_space<smem>>
    %1381 = vector.broadcast %1380 : f32 to vector<16x32xf32>
    %1382 = arith.mulf %1381, %1379 : vector<16x32xf32>
    %1383 = arith.addf %1378, %1382 : vector<16x32xf32>
    %1384 = vector.extract_strided_slice %21 {offsets = [2, 0], sizes = [16, 32], strides = [1, 1]} : vector<24x32xf32> to vector<16x32xf32>
    %c7_586 = arith.constant 7 : index
    %c7_587 = arith.constant 7 : index
    %1385 = memref.load %arg5[%c7_586, %c7_587] : memref<8x36xf32, #tpu.memory_space<smem>>
    %1386 = vector.broadcast %1385 : f32 to vector<16x32xf32>
    %1387 = arith.mulf %1386, %1384 : vector<16x32xf32>
    %1388 = arith.addf %1383, %1387 : vector<16x32xf32>
    %1389 = vector.extract_strided_slice %24 {offsets = [2, 0], sizes = [16, 32], strides = [1, 1]} : vector<24x32xf32> to vector<16x32xf32>
    %c7_588 = arith.constant 7 : index
    %c8_589 = arith.constant 8 : index
    %1390 = memref.load %arg5[%c7_588, %c8_589] : memref<8x36xf32, #tpu.memory_space<smem>>
    %1391 = vector.broadcast %1390 : f32 to vector<16x32xf32>
    %1392 = arith.mulf %1391, %1389 : vector<16x32xf32>
    %1393 = arith.addf %1388, %1392 : vector<16x32xf32>
    %1394 = vector.extract_strided_slice %27 {offsets = [0, 0], sizes = [16, 32], strides = [1, 1]} : vector<24x32xf32> to vector<16x32xf32>
    %c7_590 = arith.constant 7 : index
    %c9_591 = arith.constant 9 : index
    %1395 = memref.load %arg5[%c7_590, %c9_591] : memref<8x36xf32, #tpu.memory_space<smem>>
    %1396 = vector.broadcast %1395 : f32 to vector<16x32xf32>
    %1397 = arith.mulf %1396, %1394 : vector<16x32xf32>
    %1398 = arith.addf %1393, %1397 : vector<16x32xf32>
    %1399 = vector.extract_strided_slice %30 {offsets = [0, 0], sizes = [16, 32], strides = [1, 1]} : vector<24x32xf32> to vector<16x32xf32>
    %c7_592 = arith.constant 7 : index
    %c10_593 = arith.constant 10 : index
    %1400 = memref.load %arg5[%c7_592, %c10_593] : memref<8x36xf32, #tpu.memory_space<smem>>
    %1401 = vector.broadcast %1400 : f32 to vector<16x32xf32>
    %1402 = arith.mulf %1401, %1399 : vector<16x32xf32>
    %1403 = arith.addf %1398, %1402 : vector<16x32xf32>
    %1404 = vector.extract_strided_slice %33 {offsets = [0, 0], sizes = [16, 32], strides = [1, 1]} : vector<24x32xf32> to vector<16x32xf32>
    %c7_594 = arith.constant 7 : index
    %c11_595 = arith.constant 11 : index
    %1405 = memref.load %arg5[%c7_594, %c11_595] : memref<8x36xf32, #tpu.memory_space<smem>>
    %1406 = vector.broadcast %1405 : f32 to vector<16x32xf32>
    %1407 = arith.mulf %1406, %1404 : vector<16x32xf32>
    %1408 = arith.addf %1403, %1407 : vector<16x32xf32>
    %1409 = vector.extract_strided_slice %27 {offsets = [1, 0], sizes = [16, 32], strides = [1, 1]} : vector<24x32xf32> to vector<16x32xf32>
    %c7_596 = arith.constant 7 : index
    %c12_597 = arith.constant 12 : index
    %1410 = memref.load %arg5[%c7_596, %c12_597] : memref<8x36xf32, #tpu.memory_space<smem>>
    %1411 = vector.broadcast %1410 : f32 to vector<16x32xf32>
    %1412 = arith.mulf %1411, %1409 : vector<16x32xf32>
    %1413 = arith.addf %1408, %1412 : vector<16x32xf32>
    %1414 = vector.extract_strided_slice %30 {offsets = [1, 0], sizes = [16, 32], strides = [1, 1]} : vector<24x32xf32> to vector<16x32xf32>
    %c7_598 = arith.constant 7 : index
    %c13_599 = arith.constant 13 : index
    %1415 = memref.load %arg5[%c7_598, %c13_599] : memref<8x36xf32, #tpu.memory_space<smem>>
    %1416 = vector.broadcast %1415 : f32 to vector<16x32xf32>
    %1417 = arith.mulf %1416, %1414 : vector<16x32xf32>
    %1418 = arith.addf %1413, %1417 : vector<16x32xf32>
    %1419 = vector.extract_strided_slice %33 {offsets = [1, 0], sizes = [16, 32], strides = [1, 1]} : vector<24x32xf32> to vector<16x32xf32>
    %c7_600 = arith.constant 7 : index
    %c14_601 = arith.constant 14 : index
    %1420 = memref.load %arg5[%c7_600, %c14_601] : memref<8x36xf32, #tpu.memory_space<smem>>
    %1421 = vector.broadcast %1420 : f32 to vector<16x32xf32>
    %1422 = arith.mulf %1421, %1419 : vector<16x32xf32>
    %1423 = arith.addf %1418, %1422 : vector<16x32xf32>
    %1424 = vector.extract_strided_slice %27 {offsets = [2, 0], sizes = [16, 32], strides = [1, 1]} : vector<24x32xf32> to vector<16x32xf32>
    %c7_602 = arith.constant 7 : index
    %c15_603 = arith.constant 15 : index
    %1425 = memref.load %arg5[%c7_602, %c15_603] : memref<8x36xf32, #tpu.memory_space<smem>>
    %1426 = vector.broadcast %1425 : f32 to vector<16x32xf32>
    %1427 = arith.mulf %1426, %1424 : vector<16x32xf32>
    %1428 = arith.addf %1423, %1427 : vector<16x32xf32>
    %1429 = vector.extract_strided_slice %30 {offsets = [2, 0], sizes = [16, 32], strides = [1, 1]} : vector<24x32xf32> to vector<16x32xf32>
    %c7_604 = arith.constant 7 : index
    %c16_605 = arith.constant 16 : index
    %1430 = memref.load %arg5[%c7_604, %c16_605] : memref<8x36xf32, #tpu.memory_space<smem>>
    %1431 = vector.broadcast %1430 : f32 to vector<16x32xf32>
    %1432 = arith.mulf %1431, %1429 : vector<16x32xf32>
    %1433 = arith.addf %1428, %1432 : vector<16x32xf32>
    %1434 = vector.extract_strided_slice %33 {offsets = [2, 0], sizes = [16, 32], strides = [1, 1]} : vector<24x32xf32> to vector<16x32xf32>
    %c7_606 = arith.constant 7 : index
    %c17_607 = arith.constant 17 : index
    %1435 = memref.load %arg5[%c7_606, %c17_607] : memref<8x36xf32, #tpu.memory_space<smem>>
    %1436 = vector.broadcast %1435 : f32 to vector<16x32xf32>
    %1437 = arith.mulf %1436, %1434 : vector<16x32xf32>
    %1438 = arith.addf %1433, %1437 : vector<16x32xf32>
    %1439 = vector.extract_strided_slice %36 {offsets = [0, 0], sizes = [16, 32], strides = [1, 1]} : vector<24x32xf32> to vector<16x32xf32>
    %c7_608 = arith.constant 7 : index
    %c18_609 = arith.constant 18 : index
    %1440 = memref.load %arg5[%c7_608, %c18_609] : memref<8x36xf32, #tpu.memory_space<smem>>
    %1441 = vector.broadcast %1440 : f32 to vector<16x32xf32>
    %1442 = arith.mulf %1441, %1439 : vector<16x32xf32>
    %1443 = arith.addf %1438, %1442 : vector<16x32xf32>
    %1444 = vector.extract_strided_slice %39 {offsets = [0, 0], sizes = [16, 32], strides = [1, 1]} : vector<24x32xf32> to vector<16x32xf32>
    %c7_610 = arith.constant 7 : index
    %c19_611 = arith.constant 19 : index
    %1445 = memref.load %arg5[%c7_610, %c19_611] : memref<8x36xf32, #tpu.memory_space<smem>>
    %1446 = vector.broadcast %1445 : f32 to vector<16x32xf32>
    %1447 = arith.mulf %1446, %1444 : vector<16x32xf32>
    %1448 = arith.addf %1443, %1447 : vector<16x32xf32>
    %1449 = vector.extract_strided_slice %42 {offsets = [0, 0], sizes = [16, 32], strides = [1, 1]} : vector<24x32xf32> to vector<16x32xf32>
    %c7_612 = arith.constant 7 : index
    %c20_613 = arith.constant 20 : index
    %1450 = memref.load %arg5[%c7_612, %c20_613] : memref<8x36xf32, #tpu.memory_space<smem>>
    %1451 = vector.broadcast %1450 : f32 to vector<16x32xf32>
    %1452 = arith.mulf %1451, %1449 : vector<16x32xf32>
    %1453 = arith.addf %1448, %1452 : vector<16x32xf32>
    %1454 = vector.extract_strided_slice %36 {offsets = [1, 0], sizes = [16, 32], strides = [1, 1]} : vector<24x32xf32> to vector<16x32xf32>
    %c7_614 = arith.constant 7 : index
    %c21_615 = arith.constant 21 : index
    %1455 = memref.load %arg5[%c7_614, %c21_615] : memref<8x36xf32, #tpu.memory_space<smem>>
    %1456 = vector.broadcast %1455 : f32 to vector<16x32xf32>
    %1457 = arith.mulf %1456, %1454 : vector<16x32xf32>
    %1458 = arith.addf %1453, %1457 : vector<16x32xf32>
    %1459 = vector.extract_strided_slice %39 {offsets = [1, 0], sizes = [16, 32], strides = [1, 1]} : vector<24x32xf32> to vector<16x32xf32>
    %c7_616 = arith.constant 7 : index
    %c22_617 = arith.constant 22 : index
    %1460 = memref.load %arg5[%c7_616, %c22_617] : memref<8x36xf32, #tpu.memory_space<smem>>
    %1461 = vector.broadcast %1460 : f32 to vector<16x32xf32>
    %1462 = arith.mulf %1461, %1459 : vector<16x32xf32>
    %1463 = arith.addf %1458, %1462 : vector<16x32xf32>
    %1464 = vector.extract_strided_slice %42 {offsets = [1, 0], sizes = [16, 32], strides = [1, 1]} : vector<24x32xf32> to vector<16x32xf32>
    %c7_618 = arith.constant 7 : index
    %c23_619 = arith.constant 23 : index
    %1465 = memref.load %arg5[%c7_618, %c23_619] : memref<8x36xf32, #tpu.memory_space<smem>>
    %1466 = vector.broadcast %1465 : f32 to vector<16x32xf32>
    %1467 = arith.mulf %1466, %1464 : vector<16x32xf32>
    %1468 = arith.addf %1463, %1467 : vector<16x32xf32>
    %1469 = vector.extract_strided_slice %36 {offsets = [2, 0], sizes = [16, 32], strides = [1, 1]} : vector<24x32xf32> to vector<16x32xf32>
    %c7_620 = arith.constant 7 : index
    %c24_621 = arith.constant 24 : index
    %1470 = memref.load %arg5[%c7_620, %c24_621] : memref<8x36xf32, #tpu.memory_space<smem>>
    %1471 = vector.broadcast %1470 : f32 to vector<16x32xf32>
    %1472 = arith.mulf %1471, %1469 : vector<16x32xf32>
    %1473 = arith.addf %1468, %1472 : vector<16x32xf32>
    %1474 = vector.extract_strided_slice %39 {offsets = [2, 0], sizes = [16, 32], strides = [1, 1]} : vector<24x32xf32> to vector<16x32xf32>
    %c7_622 = arith.constant 7 : index
    %c25_623 = arith.constant 25 : index
    %1475 = memref.load %arg5[%c7_622, %c25_623] : memref<8x36xf32, #tpu.memory_space<smem>>
    %1476 = vector.broadcast %1475 : f32 to vector<16x32xf32>
    %1477 = arith.mulf %1476, %1474 : vector<16x32xf32>
    %1478 = arith.addf %1473, %1477 : vector<16x32xf32>
    %1479 = vector.extract_strided_slice %42 {offsets = [2, 0], sizes = [16, 32], strides = [1, 1]} : vector<24x32xf32> to vector<16x32xf32>
    %c7_624 = arith.constant 7 : index
    %c26_625 = arith.constant 26 : index
    %1480 = memref.load %arg5[%c7_624, %c26_625] : memref<8x36xf32, #tpu.memory_space<smem>>
    %1481 = vector.broadcast %1480 : f32 to vector<16x32xf32>
    %1482 = arith.mulf %1481, %1479 : vector<16x32xf32>
    %1483 = arith.addf %1478, %1482 : vector<16x32xf32>
    %1484 = vector.extract_strided_slice %45 {offsets = [0, 0], sizes = [16, 32], strides = [1, 1]} : vector<24x32xf32> to vector<16x32xf32>
    %c7_626 = arith.constant 7 : index
    %c27_627 = arith.constant 27 : index
    %1485 = memref.load %arg5[%c7_626, %c27_627] : memref<8x36xf32, #tpu.memory_space<smem>>
    %1486 = vector.broadcast %1485 : f32 to vector<16x32xf32>
    %1487 = arith.mulf %1486, %1484 : vector<16x32xf32>
    %1488 = arith.addf %1483, %1487 : vector<16x32xf32>
    %1489 = vector.extract_strided_slice %48 {offsets = [0, 0], sizes = [16, 32], strides = [1, 1]} : vector<24x32xf32> to vector<16x32xf32>
    %c7_628 = arith.constant 7 : index
    %c28_629 = arith.constant 28 : index
    %1490 = memref.load %arg5[%c7_628, %c28_629] : memref<8x36xf32, #tpu.memory_space<smem>>
    %1491 = vector.broadcast %1490 : f32 to vector<16x32xf32>
    %1492 = arith.mulf %1491, %1489 : vector<16x32xf32>
    %1493 = arith.addf %1488, %1492 : vector<16x32xf32>
    %1494 = vector.extract_strided_slice %51 {offsets = [0, 0], sizes = [16, 32], strides = [1, 1]} : vector<24x32xf32> to vector<16x32xf32>
    %c7_630 = arith.constant 7 : index
    %c29_631 = arith.constant 29 : index
    %1495 = memref.load %arg5[%c7_630, %c29_631] : memref<8x36xf32, #tpu.memory_space<smem>>
    %1496 = vector.broadcast %1495 : f32 to vector<16x32xf32>
    %1497 = arith.mulf %1496, %1494 : vector<16x32xf32>
    %1498 = arith.addf %1493, %1497 : vector<16x32xf32>
    %1499 = vector.extract_strided_slice %45 {offsets = [1, 0], sizes = [16, 32], strides = [1, 1]} : vector<24x32xf32> to vector<16x32xf32>
    %c7_632 = arith.constant 7 : index
    %c30_633 = arith.constant 30 : index
    %1500 = memref.load %arg5[%c7_632, %c30_633] : memref<8x36xf32, #tpu.memory_space<smem>>
    %1501 = vector.broadcast %1500 : f32 to vector<16x32xf32>
    %1502 = arith.mulf %1501, %1499 : vector<16x32xf32>
    %1503 = arith.addf %1498, %1502 : vector<16x32xf32>
    %1504 = vector.extract_strided_slice %48 {offsets = [1, 0], sizes = [16, 32], strides = [1, 1]} : vector<24x32xf32> to vector<16x32xf32>
    %c7_634 = arith.constant 7 : index
    %c31_635 = arith.constant 31 : index
    %1505 = memref.load %arg5[%c7_634, %c31_635] : memref<8x36xf32, #tpu.memory_space<smem>>
    %1506 = vector.broadcast %1505 : f32 to vector<16x32xf32>
    %1507 = arith.mulf %1506, %1504 : vector<16x32xf32>
    %1508 = arith.addf %1503, %1507 : vector<16x32xf32>
    %1509 = vector.extract_strided_slice %51 {offsets = [1, 0], sizes = [16, 32], strides = [1, 1]} : vector<24x32xf32> to vector<16x32xf32>
    %c7_636 = arith.constant 7 : index
    %c32_637 = arith.constant 32 : index
    %1510 = memref.load %arg5[%c7_636, %c32_637] : memref<8x36xf32, #tpu.memory_space<smem>>
    %1511 = vector.broadcast %1510 : f32 to vector<16x32xf32>
    %1512 = arith.mulf %1511, %1509 : vector<16x32xf32>
    %1513 = arith.addf %1508, %1512 : vector<16x32xf32>
    %1514 = vector.extract_strided_slice %45 {offsets = [2, 0], sizes = [16, 32], strides = [1, 1]} : vector<24x32xf32> to vector<16x32xf32>
    %c7_638 = arith.constant 7 : index
    %c33_639 = arith.constant 33 : index
    %1515 = memref.load %arg5[%c7_638, %c33_639] : memref<8x36xf32, #tpu.memory_space<smem>>
    %1516 = vector.broadcast %1515 : f32 to vector<16x32xf32>
    %1517 = arith.mulf %1516, %1514 : vector<16x32xf32>
    %1518 = arith.addf %1513, %1517 : vector<16x32xf32>
    %1519 = vector.extract_strided_slice %48 {offsets = [2, 0], sizes = [16, 32], strides = [1, 1]} : vector<24x32xf32> to vector<16x32xf32>
    %c7_640 = arith.constant 7 : index
    %c34_641 = arith.constant 34 : index
    %1520 = memref.load %arg5[%c7_640, %c34_641] : memref<8x36xf32, #tpu.memory_space<smem>>
    %1521 = vector.broadcast %1520 : f32 to vector<16x32xf32>
    %1522 = arith.mulf %1521, %1519 : vector<16x32xf32>
    %1523 = arith.addf %1518, %1522 : vector<16x32xf32>
    %1524 = vector.extract_strided_slice %51 {offsets = [2, 0], sizes = [16, 32], strides = [1, 1]} : vector<24x32xf32> to vector<16x32xf32>
    %c7_642 = arith.constant 7 : index
    %c35_643 = arith.constant 35 : index
    %1525 = memref.load %arg5[%c7_642, %c35_643] : memref<8x36xf32, #tpu.memory_space<smem>>
    %1526 = vector.broadcast %1525 : f32 to vector<16x32xf32>
    %1527 = arith.mulf %1526, %1524 : vector<16x32xf32>
    %1528 = arith.addf %1523, %1527 : vector<16x32xf32>
    %c0_644 = arith.constant 0 : index
    %c7_645 = arith.constant 7 : index
    %c0_646 = arith.constant 0 : index
    %c0_647 = arith.constant 0 : index
    %1529 = vector.load %arg7[%c0_644, %c7_645, %c0_646, %c0_647] : memref<1x8x16x32xf32, #tpu.memory_space<vmem>>, vector<1x1x16x32xf32>
    %1530 = vector.shape_cast %1529 : vector<1x1x16x32xf32> to vector<16x32xf32>
    %1531 = vector.shape_cast %1528 : vector<16x32xf32> to vector<1x1x16x32xf32>
    tpu.vector_store %arg7[%c0_644, %c7_645, %c0_646, %c0_647], %1531 {strides = array<i32>} : memref<1x8x16x32xf32, #tpu.memory_space<vmem>>, vector<1x1x16x32xf32>,
    return
  }
  func.func @transform_0(%arg0: i32, %arg1: i32) -> (i32, i32, i32, i32) {
    %c0_i32 = arith.constant 0 : i32
    %c0_i32_0 = arith.constant 0 : i32
    %c0_i32_1 = arith.constant 0 : i32
    %c0_i32_2 = arith.constant 0 : i32
    return %arg0, %c0_i32, %c0_i32_0, %c0_i32_1 : i32, i32, i32, i32
  }
  func.func @transform_1(%arg0: i32, %arg1: i32) -> (i32, i32) {
    %c0_i32 = arith.constant 0 : i32
    %c0_i32_0 = arith.constant 0 : i32
    %c0_i32_1 = arith.constant 0 : i32
    return %c0_i32, %c0_i32_0 : i32, i32
  }
  func.func @transform_2(%arg0: i32, %arg1: i32) -> (i32, i32, i32) {
    %c0_i32 = arith.constant 0 : i32
    %c0_i32_0 = arith.constant 0 : i32
    %c0_i32_1 = arith.constant 0 : i32
    %c0_i32_2 = arith.constant 0 : i32
    return %c0_i32, %c0_i32_0, %c0_i32_1 : i32, i32, i32
  }
  func.func @transform_3(%arg0: i32, %arg1: i32) -> (i32, i32) {
    %c0_i32 = arith.constant 0 : i32
    %c0_i32_0 = arith.constant 0 : i32
    %c0_i32_1 = arith.constant 0 : i32
    return %c0_i32, %c0_i32_0 : i32, i32
  }
  func.func @transform_4(%arg0: i32, %arg1: i32) -> i32 {
    %c0_i32 = arith.constant 0 : i32
    %c0_i32_0 = arith.constant 0 : i32
    return %c0_i32 : i32
  }
  func.func @transform_5(%arg0: i32, %arg1: i32) -> (i32, i32, i32, i32) {
    %c0_i32 = arith.constant 0 : i32
    %c0_i32_0 = arith.constant 0 : i32
    %c0_i32_1 = arith.constant 0 : i32
    return %arg0, %c0_i32, %arg1, %c0_i32_0 : i32, i32, i32, i32
  }
}

</mosaic_0001>

<bundles_post_ra>
// kernel: tpu_custom_call.1
= control target key start
LH: loop header
LB: loop body
LE: loop exit
PB: predicated region body
PF: predicated region fallthrough
CT: control target
= control target key end

     0   :  { %s10613_s0 = inlined_call_operand.hbm [shape: f32[2,4,16,16], index: 0, kind: input, shape index: {}]   ;;  %s10614_s1 = inlined_call_operand.vmem [shape: f32[40,16], index: 1, kind: input, shape index: {}]   ;;  %s10615_s2 = inlined_call_operand.vmem [shape: f32[3,16,32], index: 2, kind: input, shape index: {}]   ;;  %s10616_s3 = inlined_call_operand.vmem [shape: f32[8,36], index: 3, kind: input, shape index: {}]   ;;  %s10617_s4 = inlined_call_operand.vmem [shape: f32[8], index: 4, kind: input, shape index: {}]   ;;  %s10618_s5 = inlined_call_operand.hbm [shape: f32[2,8,32,32], index: 5, kind: output, shape index: {}]  }
   0x1   :  { %10687 = sst [smem:[#allocation104_spill]] %s10613_s0 }
   0x2   :  { %10688 = sst [smem:[#allocation105_spill]] %s10614_s1 }
   0x3   :  { %10689 = sst [smem:[#allocation106_spill]] %s10615_s2 }
   0x4   :  { %10690 = sst [smem:[#allocation107_spill]] %s10616_s3 }
   0x5   :  { %10691 = sst [smem:[#allocation108_spill]] %s10617_s4 }
   0x6   :  { %10692 = sst [smem:[#allocation109_spill]] %s10618_s5 }
   0x7   :  { %10 = vsyncpa [#allocation3], 0 }
   0x8   :  { %12 = vsyncpa [#allocation3 + $0x1], 0 }
   0x9   :  { %13 = vsyncpa [#allocation5], 0 }
   0xa   :  { %14 = vsyncpa [#allocation8], 0 }
   0xb   :  { %15 = vsyncpa [#allocation4], 0 }
   0xc   :  { %17 = vsyncpa [#allocation4 + $0x1], 0  ;;  %s6747_s18 = smov 0   ;;  %s6749_s19 = smov 0  }
   0xd   :  { %s6751_s20 = smov 0   ;;  %s6753_s21 = smov 0  }
   0xe   :  { %s6755_s22 = smov 0   ;;  %s6757_s23 = smov 0  }
   0xf   :  { %s6759_s24 = smov 0   ;;  %s6761_s25 = smov 0  }
  0x10   :  { %s6763_s26 = smov 0   ;;  %s6765_s27 = smov 0  }
  0x11   :  { %s6767_s28 = smov 0  }
  0x12 LB: > { %10693 = sst [smem:[#allocation16_spill]] %s6660_s18  ;;  %s5673_s29 = sadd.s32 4294967295, %s6700_s28   ;;  %s6700_s28 = sphi %s6767_s28, %s23_s28   ;;  %s6696_s27 = sphi %s6765_s27, %s11122_s27   ;;  %s6692_s26 = sphi %s6763_s26, %s11121_s26   ;;  %s6688_s25 = sphi %s6761_s25, %s11120_s25   ;;  %s6684_s24 = sphi %s6759_s24, %s11119_s24   ;;  %s6680_s23 = sphi %s6757_s23, %s11118_s23   ;;  %s6676_s22 = sphi %s6755_s22, %s11117_s22   ;;  %s6672_s21 = sphi %s6753_s21, %s11116_s21   ;;  %s6668_s20 = sphi %s6751_s20, %s11115_s20   ;;  %s6664_s19 = sphi %s6749_s19, %s11114_s19   ;;  %s6660_s18 = sphi %s6747_s18, %s11113_s18  }
  0x13   : > { %10694 = sst [smem:[#allocation17_spill]] %s6664_s19  ;;  %s5674_s30 = sadd.s32 4294967294, %s6700_s28  }
  0x14   : > { %10695 = sst [smem:[#allocation18_spill]] %s6668_s20  ;;  %p49_p0 = scmp.ne.s32.totalorder %s6680_s23, %s6676_s22 }
  0x15   : > { %10696 = sst [smem:[#allocation19_spill]] %s6676_s22  ;;  %p50_p1 = scmp.eq.s32.totalorder %s6700_s28, 0 }
  0x16   : > { %10697 = sst [smem:[#allocation20_spill]] %s6680_s23  ;;  %p55_p2 = scmp.ne.s32.totalorder %s6676_s22, %s6672_s21 }
  0x17   : > { %10698 = sst [smem:[#allocation21_spill]] %s6684_s24  ;;  %p6807_p3 = scmp.eq.s32.totalorder %s5673_s29, 0 }
  0x18   : > { %10699 = sst [smem:[#allocation22_spill]] %s6688_s25  ;;  %p6812_p4 = por %p50_p1, %p49_p0 }
  0x19   : > { %10700 = sst [smem:[#allocation23_spill]] %s6692_s26  ;;  %p164_p5 = scmp.ne.s32.totalorder %s6668_s20, %s6664_s19 }
  0x1a   : > { %10701 = sst [smem:[#allocation24_spill]] %s6696_s27  ;;  %p6820_p6 = por %p6807_p3, %p55_p2 }
  0x1b   : > { %10702 = sst [smem:[#allocation25_spill]] %s6700_s28  ;;  %p165_p7 = scmp.eq.s32.totalorder %s5673_s29, 3 }
  0x1c   : > { %s10703_s7 = scalar_select %p6807_p3, 1, 0 }
  0x1d   : > { %s10705_s10 = scalar_select %p6820_p6, 1, 0 }
  0x1e   : > { %p170_p8 = scmp.ne.s32.totalorder %s6664_s19, %s6660_s18  ;;  %p171_p9 = scmp.eq.s32.totalorder %s5674_s30, 3 }
  0x1f   : > { %p6826_p10 = por %p165_p7, %p164_p5  ;;  %p5675_p11 = scmp.ge.s32.totalorder %s6700_s28, 1 }
  0x20   : > { %p6831_p12 = por %p171_p9, %p170_p8  ;;  %p178_p13 = scmp.lt.s32.totalorder %s6700_s28, 5 }
  0x21   : > { %s10706_s11 = scalar_select %p6826_p10, 1, 0 }
  0x22   : > { %s10708_s12 = scalar_select %p6831_p12, 1, 0 }
  0x23   : > { %10707 = sst [smem:[#allocation26_spill]] %s10706_s11  ;;  %s10710_s3 = sld [smem:[#allocation107_spill]] }
  0x24   : > { %10709 = sst [smem:[#allocation27_spill]] %s10708_s12  ;;  %p6839_p0 = pnand %p5675_p11, %p178_p13 }
  0x25   : > { %p6432_p2 = scmp.lt.s32.totalorder %s6700_s28, 4  ;;  %s10712_s4 = sld [smem:[#allocation108_spill]] }
  0x26   : > { %s10711_s16 = scalar_select %p6839_p0, 1, 0 }
  0x27   : > { %p6415_p1 = pneg %p6839_p0  ;;  %p6857_p7 = pnand %p6432_p2, %p6812_p4 }
  0x29   : > { %s197_s15 = sshll.u32 %s10710_s3, 4  ;;  %p6851_p5 = pnand %p6415_p1, %p6807_p3  ;;  %s198_s15 = int_to_ptr.vmem [resolvable:$true] %s197_s15 }
  0x2a   : > { %s10714_s13 = scalar_select %p6857_p7, 1, 0 }
  0x2b   : > { %s208_s29 = sshll.u32 %s10712_s4, 4  ;;  %s6538_s14 = scalar_lea.vmem %s198_s15, 128  ;;  %s209_s29 = int_to_ptr.vmem [resolvable:$true] %s208_s29 }
  0x2c   : > { %p6539_p8 = scmp.ne.s32.totalorder %s198_s15, %s6538_s14  ;;  %p6540_p9 = pneg %p6851_p5 }
  0x2d   : > { %p6546_p12 = scmp.lt.s32.totalorder %s198_s15, %s198_s15  ;;  %p6547_p10 = scmp.lt.s32.totalorder %s6538_s14, %s6538_s14 }
  0x2e   : > { %p6541_p11 = pnand %p6540_p9, %p6539_p8 }
  0x2f   : > { %p6548_p6 = por %p6547_p10, %p6546_p12 }
  0x30   : > { %p6542_p13 = pneg %p6541_p11 }
  0x32   : > { %p6549_p1 = pnand %p6548_p6, %p6542_p13 }
  0x34   : > { %6552 = shalt.err (!%p6549_p1)
}
  0x35   : > { %s6702_s17 = smov [#allocation6]   ;;  %s6553_s9 = scalar_lea.vmem %s209_s29, 16 }
  0x36   : > { %6418 = dma.vmem_to_smem (!%p6851_p5), %s198_s15, 128, %s6702_s17, [#allocation5]  }
  0x37   : > { %p6554_p4 = scmp.ne.s32.totalorder %s209_s29, %s6553_s9  ;;  %p6561_p0 = scmp.lt.s32.totalorder %s209_s29, %s209_s29 }
  0x38   : > { %p6562_p7 = scmp.lt.s32.totalorder %s6553_s9, %s6553_s9 }
  0x39   : > { %p6556_p2 = pnand %p6554_p4, %p6540_p9 }
  0x3a   : > { %p6563_p8 = por %p6562_p7, %p6561_p0 }
  0x3b   : > { %p6557_p3 = pneg %p6556_p2 }
  0x3d   : > { %p6564_p11 = pnand %p6563_p8, %p6557_p3 }
  0x3f   : > { %6567 = shalt.err (!%p6564_p11)
}
  0x40   : > { %s6703_s21 = smov [#allocation7]   ;;  %s32_s15 = sadd.s32 1, %s6692_s26 }
  0x41   : > { %6421 = dma.vmem_to_smem (!%p6851_p5), %s209_s29, 16, %s6703_s21, [#allocation8]  }
  0x42   : > { %p33_p6 = scmp.ge.s32.totalorder %s32_s15, 2  ;;  %s35_s14 = sadd.s32 1, %s6696_s27 }
  0x43   : > { %s219_s17 = sand.u32 1, %s6680_s23   ;;  %s6060_s9 = sshll.u32 %s6696_s27, 10 }
  0x44   : > { %s11124_s15 = smov (%p33_p6, %s32_s15), 0  ;;  %s11126_s14 = smov (!%p33_p6, %s35_s14), %s6696_s27 }
  0x45   : > { %10715 = sst [smem:[#allocation28_spill]] %s11124_s15  ;;  %s150_s30 = ssub.s32 %s6692_s26, %s11124_s15 }
  0x46   : > { %p37_p3 = scmp.ge.s32.totalorder %s11126_s14, 2  ;;  %s5679_s8 = sshll.u32 %s219_s17, 6 }
  0x47   : > { %s10716_s0 = sld [smem:[#allocation104_spill]]  ;;  %s223_s21 = scalar_lea.vmem [#allocation2], %s5679_s8 }
  0x48   : > { %s11128_s14 = smov (%p37_p3, %s11126_s14), 0  ;;  %s230_s4 = sshll.u32 %s223_s21, 4  ;;  %s6885_s4 = int_to_ptr.vmem [resolvable:$true] %s230_s4 }
  0x49   : > { %10717 = sst [smem:[#allocation29_spill]] %s11128_s14  ;;  %s39_s12 = ssub.s32 %s6696_s27, %s11128_s14 }
  0x4a   : > { %p40_p10 = scmp.eq.s32.totalorder %s39_s12, 0  ;;  %s151_s15 = sor.u32 %s150_s30, %s39_s12 }
  0x4b   : > { %p152_p12 = scmp.eq.s32.totalorder %s151_s15, 0  ;;  %s10718_s26 = sadd.s32 1, %s6680_s23 }
  0x4c   : > { %s6890_s3 = scalar_select %p40_p10, %s6680_s23, %s10718_s26  }
  0x4d   : > { %s6879_s29 = scalar_lea.hbm %s10716_s0, %s6060_s9  ;;  %s10720_s6 = sadd.s32 1, %s6668_s20 }
  0x4e   : > { %10719 = sst [smem:[#allocation30_spill]] %s6890_s3  ;;  %s6897_s18 = scalar_lea.sflag [#allocation3], %s219_s17 }
  0x4f   : > { %s6895_s9 = scalar_select %p152_p12, %s6668_s20, %s10720_s6  }
  0x50   : > { %s6568_s28 = scalar_lea.hbm %s6879_s29, 1024  ;;  %p10722_p5 = scmp.ne.s32.totalorder %s10714_s13, 0 }
  0x51   : > { %10721 = sst [smem:[#allocation31_spill]] %s6895_s9  ;;  %p6569_p0 = scmp.ne.s32.totalorder %s6879_s29, %s6568_s28 }
  0x52   : > { %p6570_p7 = pneg %p10722_p5  ;;  %s6573_s12 = scalar_lea.hbm %s10716_s0, 2048 }
  0x53   : > { %p6574_p1 = scmp.lt.u32.totalorder %s6879_s29, %s10716_s0  ;;  %p6575_p4 = scmp.lt.u32.totalorder %s6573_s12, %s6568_s28 }
  0x54   : > { %p6571_p9 = pnand %p6570_p7, %p6569_p0  ;;  %p6577_p8 = scmp.lt.u32.totalorder %s6568_s28, %s6879_s29 }
  0x55   : > { %p6576_p2 = por %p6575_p4, %p6574_p1 }
  0x56   : > { %p6572_p13 = pneg %p6571_p9 }
  0x57   : > { %p6578_p11 = por %p6577_p8, %p6576_p2 }
  0x59   : > { %p6579_p6 = pnand %p6578_p11, %p6572_p13 }
  0x5b   : > { %6582 = shalt.err (!%p6579_p6)
}
  0x5c   : > { %s6583_s17 = scalar_lea.vmem %s6885_s4, 1024  ;;  %s6704_s30 = smov [#allocation2]  }
  0x5d   : > { %p6584_p3 = scmp.ne.s32.totalorder %s6885_s4, %s6583_s17  ;;  %s6588_s6 = sshll.u32 %s6704_s30, 4  ;;  %s6589_s6 = int_to_ptr.vmem [resolvable:$false] %s6588_s6 }
  0x5e   : > { %s6590_s8 = scalar_lea.vmem %s6589_s6, 2048  ;;  %p6591_p0 = scmp.lt.s32.totalorder %s6885_s4, %s6589_s6 }
  0x5f   : > { %p6586_p10 = pnand %p6584_p3, %p6570_p7  ;;  %p6592_p9 = scmp.lt.s32.totalorder %s6590_s8, %s6583_s17 }
  0x61   : > { %p6587_p12 = pneg %p6586_p10  ;;  %p6593_p1 = por %p6592_p9, %p6591_p0 }
  0x63   : > { %p6594_p4 = pnand %p6593_p1, %p6587_p12 }
  0x65   : > { %6597 = shalt.err (!%p6594_p4)
}
  0x66   : > { %s6705_s28 = smov 128   ;;  %s6706_s21 = smov 8  }
  0x67   : > { %6425 = dma.hbm_to_vmem [thread:$0]  (!%p10722_p5), %s6879_s29, 1024, %s6885_s4, %s6897_s18, %s6705_s28, %s6705_s28, %s6706_s21  }
  0x68   : > { %p10723_p7 = scmp.ne.s32.totalorder %s10711_s16, 0 }
  0x6a   : > { %242 = sbr.rel (%p10723_p7) target bundleno = 1228 (0x4cc), region = 40 }
  0x71   : > { %s244_s12 = sand.u32 1, %s6676_s22   ;;  %p10724_p13 = scmp.ne.s32.totalorder %s10705_s10, 0 }
  0x72   : > { %s5683_s15 = sshll.u32 %s244_s12, 6  ;;  %s245_s26 = scalar_lea.sflag [#allocation3], %s244_s12 }
  0x73   : > { %s248_s17 = scalar_lea.vmem [#allocation2], %s5683_s15 }
  0x74   : > { %6643 = dma.done.wait (%p10724_p13), %s245_s26, 1024  }
  0x75   : > { %6645 = vsyncadd (%p10724_p13), %s245_s26, 4294966272  ;;  %p10725_p2 = scmp.ne.s32.totalorder %s10703_s7, 0 }
  0x77   : > { %6647 = dma.done.wait (%p10725_p2), [#allocation5], 128  }
  0x78   : > { %6649 = vsyncadd (%p10725_p2), [#allocation5], 4294967168 }
  0x79   : > { %6651 = dma.done.wait (%p10725_p2), [#allocation8], 16  }
  0x7a   : > { %6653 = vsyncadd (%p10725_p2), [#allocation8], 4294967280 }
  0x7b   : > { %261 = sfence }
  0x7c   : > { %v290_v0 = vld [vmem:[%s248_s17] sm:$0xff]  ;;  %v291_v1 = vld [vmem:[%s248_s17 + $0x8] sm:$0xff]  ;;  %s5687_s4 = sshll.u32 %s6684_s24, 4  ;;  %v6707_v2 = vmov 0.0|0.0   ;;  %vm6708_vm0 = vmmov 0   ;;  %v6709_v4 = vmov 0.0  }
  0x7d   : > { %6349 = vmatprep.subr.bf16.mxu0 %v6707_v2  ;;  %v6350_v3 = vpack.c.bf16 %v291_v1, %v290_v0  ;;  %6145 = vmatprep.mubr.msk.f32.mxu0 %vm6708_vm0, %v6709_v4  ;;  %s10726_s1 = sld [smem:[#allocation105_spill]]  ;;  %v5691_v5 = vld [vmem:[%s248_s17 + $0x10] sm:$0xff]  ;;  %v5692_v6 = vld [vmem:[%s248_s17 + $0x18] sm:$0xff]  ;;  %v5696_v7 = vld [vmem:[%s248_s17 + $0x20] sm:$0xff]  ;;  %vm292_vm1 = vcmask 130048   ;;  %s10727_s2 = sld [smem:[#allocation106_spill]] }
  0x7e   : > { %6352 = vmatprep.subr.bf16.mxu1 %v6707_v2  ;;  %v6353_v9 = vpack.c.bf16 %v5692_v6, %v5691_v5  ;;  %6158 = vmatprep.mubr.msk.f32.mxu1 %vm6708_vm0, %v6709_v4  ;;  %v5697_v10 = vld [vmem:[%s248_s17 + $0x28] sm:$0xff]  ;;  %v5701_v11 = vld [vmem:[%s248_s17 + $0x30] sm:$0xff]  ;;  %v5702_v12 = vld [vmem:[%s248_s17 + $0x38] sm:$0xff]  ;;  %s7152_s18 = sld [smem:[#allocation6 + $0x6]]  ;;  %s7154_s10 = sld [smem:[#allocation6 + $0x83]]  ;;  %vm1663_vm2 = vcmask 1046528  }
  0x7f   : > { %6351 = vmatpush3.bf16.msra.mxu0 %v6350_v3  ;;  %v6356_v13 = vpack.c.bf16 %v5697_v10, %v5696_v7  ;;  %v6359_v14 = vpack.c.bf16 %v5702_v12, %v5701_v11  ;;  %s7158_s7 = sld [smem:[#allocation6 + $0x103]]  ;;  %s7160_s13 = sld [smem:[#allocation6 + $0x106]]  ;;  %vm1715_vm3 = vcmask 1045504   ;;  %vm2119_vm4 = vcmask 261120  }
  0x80   : > { %6354 = vmatpush3.bf16.msra.mxu1 %v6353_v9  ;;  %6355 = vmatprep.subr.bf16.mxu0 %v6707_v2  ;;  %s7162_s29 = sld [smem:[#allocation6 + $0x183]]  ;;  %s7164_s30 = sld [smem:[#allocation6 + $0x186]] }
  0x81   : > { %6358 = vmatprep.subr.bf16.mxu1 %v6707_v2  ;;  %s7166_s6 = sld [smem:[#allocation6 + $0x203]]  ;;  %s7168_s8 = sld [smem:[#allocation6 + $0x206]] }
  0x82   : > { %s7170_s28 = sld [smem:[#allocation6 + $0x283]]  ;;  %s7172_s21 = sld [smem:[#allocation6 + $0x286]] }
  0x83   : > { %s286_s16 = scalar_lea.vmem %s10726_s1, %s5687_s4  ;;  %v631_v17 = vld [vmem:[%s10727_s2] sm:$0xff]  ;;  %v632_v18 = vld [vmem:[%s10727_s2 + $0x8] sm:$0xff]  ;;  %v5709_v19 = vld [vmem:[%s10727_s2 + $0x10] sm:$0xff]  ;;  %s7150_s4 = sld [smem:[#allocation6 + $0x3]] }
  0x84   : > { %v287_v8 = vld [vmem:[%s286_s16] sm:$0xff]  ;;  %v288_v15 = vld [vmem:[%s286_s16 + $0x8] sm:$0xff]  ;;  %v289_v16 = vld [vmem:[%s286_s16 + $0x10] sm:$0xff]  ;;  %v6984_v21 = vpack.c.bf16 %v632_v18, %v631_v17  ;;  %s7156_s16 = sld [smem:[#allocation6 + $0x86]]  ;;  %s7174_s12 = sld [smem:[#allocation6 + $0x303]]  ;;  %v7258_v51 = vstv %s7152_s18 }
  0x85   : > { %6146 = vmatmul.mubr.msk.f32.vlgmr.msra.gmra.mrb[0].mxu0 %vm292_vm1, %v287_v8  ;;  %6159 = vmatmul.mubr.msk.f32.vlgmr.msra.gmra.mrb[0].mxu1 %vm292_vm1, %v287_v8  ;;  %v5710_v20 = vld [vmem:[%s10727_s2 + $0x18] sm:$0xff]  ;;  %v5714_v23 = vld [vmem:[%s10727_s2 + $0x20] sm:$0xff]  ;;  %v5715_v24 = vld [vmem:[%s10727_s2 + $0x28] sm:$0xff]  ;;  %s7176_s15 = sld [smem:[#allocation6 + $0x306]]  ;;  %s7178_s26 = sld [smem:[#allocation6 + $0x383]]  ;;  %v7261_v52 = vstv %s7154_s10 }
  0x86   : > { %6148 = vmatprep.mubr.msk.f32.mxu0 %vm6708_vm0, %v6709_v4  ;;  %6161 = vmatprep.mubr.msk.f32.mxu1 %vm6708_vm0, %v6709_v4  ;;  %v6986_v22 = vpack.c.bf16 %v5710_v20, %v5709_v19  ;;  %v7016_v25 = vpack.c.bf16 %v5715_v24, %v5714_v23  ;;  %s7180_s17 = sld [smem:[#allocation6 + $0x386]]  ;;  %s7182_s0 = sld [smem:[#allocation6 + $0x4]]  ;;  %v7267_v54 = vstv %s7158_s7  ;;  %v7274_v55 = vstv %s7160_s13 }
  0x87   : > { %6357 = vmatpush3.bf16.msra.mxu0 %v6356_v13  ;;  %6360 = vmatpush3.bf16.msra.mxu1 %v6359_v14  ;;  %s7184_s1 = sld [smem:[#allocation6 + $0x7]]  ;;  %s7186_s2 = sld [smem:[#allocation6 + $0x84]]  ;;  %v7277_v56 = vstv %s7162_s29  ;;  %v7280_v57 = vstv %s7164_s30  ;;  %v7283_v58 = vstv %s7166_s6  ;;  %v7290_v59 = vstv %s7168_s8 }
  0x88   : > { %6361 = vmatprep.subr.bf16.mxu0 %v6707_v2  ;;  %6364 = vmatprep.subr.bf16.mxu1 %v6707_v2  ;;  %s7188_s14 = sld [smem:[#allocation6 + $0x87]]  ;;  %s7190_s27 = sld [smem:[#allocation6 + $0x104]]  ;;  %v7293_v60 = vstv %s7170_s28  ;;  %v7296_v61 = vstv %s7172_s21 }
  0x89   : > { %6149 = vmatmul.mubr.msk.f32.gmra.mrb[2].mxu0 %vm292_vm1, %v288_v15  ;;  %6162 = vmatmul.mubr.msk.f32.gmra.mrb[2].mxu1 %vm292_vm1, %v288_v15  ;;  %s7192_s3 = sld [smem:[#allocation6 + $0x107]]  ;;  %s7194_s23 = sld [smem:[#allocation6 + $0x184]]  ;;  %v7251_v50 = vstv %s7150_s4 }
  0x8a   : > { %6151 = vmatprep.mubr.msk.f32.mxu0 %vm6708_vm0, %v6709_v4  ;;  %6164 = vmatprep.mubr.msk.f32.mxu1 %vm6708_vm0, %v6709_v4  ;;  %s7196_s22 = sld [smem:[#allocation6 + $0x187]]  ;;  %s7198_s9 = sld [smem:[#allocation6 + $0x204]]  ;;  %v7264_v53 = vstv %s7156_s16  ;;  %v7299_v62 = vstv %s7174_s12 }
  0x8b   : > { %s7200_s20 = sld [smem:[#allocation6 + $0x207]]  ;;  %s7202_s5 = sld [smem:[#allocation6 + $0x284]]  ;;  %v7306_v63 = vstv %s7176_s15  ;;  %v7309_v0 = vstv %s7178_s26 }
  0x8c   : > { %s7204_s11 = sld [smem:[#allocation6 + $0x287]]  ;;  %s7206_s25 = sld [smem:[#allocation6 + $0x304]]  ;;  %v7312_v1 = vstv %s7180_s17 }
  0x8d   : > { %6152 = vmatmul.mubr.msk.f32.gmra.mrb[4].mxu0 %vm292_vm1, %v289_v16  ;;  %6165 = vmatmul.mubr.msk.f32.gmra.mrb[4].mxu1 %vm292_vm1, %v289_v16  ;;  %s7208_s24 = sld [smem:[#allocation6 + $0x307]]  ;;  %s7210_s19 = sld [smem:[#allocation6 + $0x384]]  ;;  %v7322_v3 = vstv %s7184_s1 }
  0x8e   : > { %6171 = vmatprep.mubr.msk.f32.mxu0 %vm6708_vm0, %v6709_v4  ;;  %6184 = vmatprep.mubr.msk.f32.mxu1 %vm6708_vm0, %v6709_v4  ;;  %10728 = sst [smem:[#allocation32_spill]] %s7190_s27  ;;  %s7212_s27 = sld [smem:[#allocation6 + $0x387]]  ;;  %v7328_v5 = vstv %s7188_s14 }
  0x8f   : > { %10729 = sst [smem:[#allocation33_spill]] %s7192_s3  ;;  %s7214_s3 = sld [smem:[#allocation7]] }
  0x90   : > { %10730 = sst [smem:[#allocation34_spill]] %s7194_s23  ;;  %s7216_s23 = sld [smem:[#allocation6]]  ;;  %v7347_v10 = vstv %s7198_s9 }
  0x91   : > { %6172 = vmatmul.mubr.msk.f32.vlgmr.msra.gmra.mrb[6].mxu0 %vm292_vm1, %v287_v8  ;;  %6185 = vmatmul.mubr.msk.f32.vlgmr.msra.gmra.mrb[6].mxu1 %vm292_vm1, %v287_v8  ;;  %10731 = sst [smem:[#allocation35_spill]] %s7196_s22  ;;  %s7218_s22 = sld [smem:[#allocation6 + $0x1]] }
  0x92   : > { %6174 = vmatprep.mubr.msk.f32.mxu0 %vm6708_vm0, %v6709_v4  ;;  %6187 = vmatprep.mubr.msk.f32.mxu1 %vm6708_vm0, %v6709_v4  ;;  %10732 = sst [smem:[#allocation36_spill]] %s7200_s20  ;;  %s7220_s20 = sld [smem:[#allocation6 + $0x80]] }
  0x93   : > { %6363 = vmatpush3.bf16.msra.mxu0 %v6984_v21  ;;  %6366 = vmatpush3.bf16.msra.mxu1 %v6986_v22  ;;  %10733 = sst [smem:[#allocation37_spill]] %s7202_s5  ;;  %s7222_s5 = sld [smem:[#allocation7 + $0x1]] }
  0x94   : > { %6367 = vmatprep.subr.bf16.mxu0 %v6707_v2  ;;  %6370 = vmatprep.subr.bf16.mxu1 %v6707_v2  ;;  %10734 = sst [smem:[#allocation38_spill]] %s7204_s11  ;;  %s7224_s11 = sld [smem:[#allocation6 + $0x81]] }
  0x95   : > { %6175 = vmatmul.mubr.msk.f32.gmra.mrb[8].mxu0 %vm292_vm1, %v288_v15  ;;  %6188 = vmatmul.mubr.msk.f32.gmra.mrb[8].mxu1 %vm292_vm1, %v288_v15  ;;  %10735 = sst [smem:[#allocation39_spill]] %s7206_s25  ;;  %s7226_s25 = sld [smem:[#allocation6 + $0x2]]  ;;  %v7370_v15 = vstv %s7208_s24 }
  0x96   : > { %6177 = vmatprep.mubr.msk.f32.mxu0 %vm6708_vm0, %v6709_v4  ;;  %6190 = vmatprep.mubr.msk.f32.mxu1 %vm6708_vm0, %v6709_v4  ;;  %10736 = sst [smem:[#allocation40_spill]] %s7210_s19  ;;  %s7285_s18 = sld [smem:[#allocation6 + $0x105]] }
  0x97   : > { %10737 = sst [smem:[#allocation41_spill]] %s7212_s27  ;;  %s7228_s19 = sld [smem:[#allocation6 + $0x100]] }
  0x98   : > { %10738 = sst [smem:[#allocation42_spill]] %s7214_s3  ;;  %s7230_s27 = sld [smem:[#allocation6 + $0x5]] }
  0x99   : > { %6178 = vmatmul.mubr.msk.f32.gmra.mrb[10].mxu0 %vm292_vm1, %v289_v16  ;;  %6191 = vmatmul.mubr.msk.f32.gmra.mrb[10].mxu1 %vm292_vm1, %v289_v16  ;;  %10739 = sst [smem:[#allocation43_spill]] %s7216_s23  ;;  %s7232_s3 = sld [smem:[#allocation7 + $0x2]] }
  0x9a   : > { %6197 = vmatprep.mubr.msk.f32.mxu0 %vm6708_vm0, %v6709_v4  ;;  %6210 = vmatprep.mubr.msk.f32.mxu1 %vm6708_vm0, %v6709_v4  ;;  %10740 = sst [smem:[#allocation44_spill]] %s7218_s22  ;;  %s7234_s22 = sld [smem:[#allocation6 + $0x8]] }
  0x9b   : > { %10741 = sst [smem:[#allocation45_spill]] %s7220_s20  ;;  %s7236_s23 = sld [smem:[#allocation6 + $0x9]] }
  0x9c   : > { %10742 = sst [smem:[#allocation46_spill]] %s7222_s5  ;;  %s7238_s20 = sld [smem:[#allocation6 + $0x82]] }
  0x9d   : > { %10743 = sst [smem:[#allocation47_spill]] %s7224_s11  ;;  %s7240_s11 = sld [smem:[#allocation6 + $0x101]] }
  0x9e   : > { %10744 = sst [smem:[#allocation48_spill]] %s7226_s25  ;;  %s7242_s25 = sld [smem:[#allocation6 + $0x85]] }
  0x9f   : > { %10745 = sst [smem:[#allocation49_spill]] %s7228_s19  ;;  %s7244_s19 = sld [smem:[#allocation6 + $0x88]] }
  0xa0   : > { %10746 = sst [smem:[#allocation50_spill]] %s7230_s27  ;;  %s7246_s27 = sld [smem:[#allocation7 + $0x3]] }
  0xa1   : > { %10747 = sst [smem:[#allocation51_spill]] %s7232_s3  ;;  %s7248_s5 = sld [smem:[#allocation6 + $0x180]] }
  0xa2   : > { %10748 = sst [smem:[#allocation52_spill]] %s7236_s23  ;;  %s7253_s23 = sld [smem:[#allocation6 + $0x89]] }
  0xa3   : > { %10749 = sst [smem:[#allocation53_spill]] %s7238_s20  ;;  %s7255_s20 = sld [smem:[#allocation6 + $0x181]] }
  0xa4   : > { %s7271_s4 = sld [smem:[#allocation6 + $0x200]]  ;;  %s10753_s7 = sld [smem:[#allocation33_spill]] }
  0xa5   : > { %s7287_s10 = sld [smem:[#allocation6 + $0x108]]  ;;  %s10754_s13 = sld [smem:[#allocation34_spill]] }
  0xa6   : > { %10750 = sst [smem:[#allocation54_spill]] %s7246_s27  ;;  %s7269_s27 = sld [smem:[#allocation6 + $0x102]] }
  0xa7   : > { %s10752_s16 = sld [smem:[#allocation32_spill]]  ;;  %s7301_s29 = sld [smem:[#allocation6 + $0x109]] }
  0xa8   : > { %s10756_s30 = sld [smem:[#allocation35_spill]]  ;;  %s7303_s6 = sld [smem:[#allocation7 + $0x4]] }
  0xa9   : > { %s10757_s8 = sld [smem:[#allocation36_spill]]  ;;  %s10758_s28 = sld [smem:[#allocation37_spill]] }
  0xaa   : > { %s7317_s21 = sld [smem:[#allocation6 + $0x201]]  ;;  %s10760_s12 = sld [smem:[#allocation38_spill]]  ;;  %v7338_v7 = vstv %s10753_s7 }
  0xab   : > { %10751 = sst [smem:[#allocation55_spill]] %s7287_s10  ;;  %s7319_s10 = sld [smem:[#allocation6 + $0x280]]  ;;  %v7341_v8 = vstv %s10754_s13 }
  0xac   : > { %s10763_s15 = sld [smem:[#allocation40_spill]]  ;;  %s7333_s26 = sld [smem:[#allocation6 + $0x182]] }
  0xad   : > { %10755 = sst [smem:[#allocation32_spill]] %s7301_s29  ;;  %s10762_s29 = sld [smem:[#allocation39_spill]]  ;;  %v7331_v6 = vstv %s10752_s16 }
  0xae   : > { %s7335_s17 = sld [smem:[#allocation6 + $0x185]]  ;;  %v7344_v9 = vstv %s10756_s30  ;;  %s7349_s14 = sld [smem:[#allocation6 + $0x188]] }
  0xaf   : > { %v7354_v11 = vstv %s10757_s8  ;;  %v7357_v12 = vstv %s10758_s28  ;;  %s7365_s30 = sld [smem:[#allocation6 + $0x189]]  ;;  %s10776_s8 = sld [smem:[#allocation50_spill]] }
  0xb0   : > { %10759 = sst [smem:[#allocation33_spill]] %s7317_s21  ;;  %s10766_s21 = sld [smem:[#allocation43_spill]]  ;;  %v7360_v13 = vstv %s10760_s12 }
  0xb1   : > { %10761 = sst [smem:[#allocation34_spill]] %s7319_s10  ;;  %s7351_s10 = sld [smem:[#allocation7 + $0x5]] }
  0xb2   : > { %10764 = sst [smem:[#allocation35_spill]] %s7333_s26  ;;  %s7367_s9 = sld [smem:[#allocation6 + $0x281]]  ;;  %v7373_v16 = vstv %s10763_s15 }
  0xb3   : > { %v7363_v14 = vstv %s10762_s29  ;;  %s7379_s28 = sld [smem:[#allocation6 + $0x202]]  ;;  %s10777_s29 = sld [smem:[#allocation52_spill]] }
  0xb4   : > { %10769 = sst [smem:[#allocation36_spill]] %s7349_s14  ;;  %s7381_s12 = sld [smem:[#allocation6 + $0x300]] }
  0xb5   : > { %s7387_s24 = sld [smem:[#allocation6 + $0x205]]  ;;  %s7389_s15 = sld [smem:[#allocation6 + $0x208]] }
  0xb6   : > { %s7395_s1 = sld [smem:[#allocation6 + $0x209]]  ;;  %s7397_s16 = sld [smem:[#allocation7 + $0x6]] }
  0xb7   : > { %10771 = sst [smem:[#allocation37_spill]] %s7351_s10  ;;  %s10780_s26 = sld [smem:[#allocation55_spill]] }
  0xb8   : > { %s10778_s10 = sld [smem:[#allocation53_spill]]  ;;  %s10784_s7 = sld [smem:[#allocation35_spill]] }
  0xb9   : > { %s10785_s13 = sld [smem:[#allocation33_spill]]  ;;  %s10786_s14 = sld [smem:[#allocation34_spill]] }
  0xba   : > { %s7407_s3 = sld [smem:[#allocation6 + $0x301]] }
 0x158   : > { %v368_v26 = vpop.f32.mrb[0].mxu0  ;;  %v451_v28 = vpop.f32.mrb[0].mxu1 }
 0x159   : > { %v6147_v27 = vpop.f32.mrb[1].mxu0  ;;  %6198 = vmatmul.mubr.msk.f32.vlgmr.msra.gmra.mrb[12].mxu0 %vm292_vm1, %v368_v26  ;;  %6211 = vmatmul.mubr.msk.f32.vlgmr.msra.gmra.mrb[12].mxu1 %vm292_vm1, %v368_v26  ;;  %v6160_v29 = vpop.f32.mrb[1].mxu1 }
 0x15a   : > { %6369 = vmatpush3.bf16.msra.mxu0 %v7016_v25  ;;  %6200 = vmatprep.mubr.msk.f32.mxu0 %vm6708_vm0, %v6709_v4  ;;  %v7400_v27 = vstv %s10776_s8  ;;  %s10789_s8 = sld [smem:[#allocation36_spill]] }
 0x15b   : > { %6213 = vmatprep.mubr.msk.f32.mxu1 %vm6708_vm0, %v6709_v4  ;;  %6372 = vmatpush3.bf16.msra.mxu1 %v6984_v21  ;;  %10781 = vst [vmem:[#allocation56_spill] sm:$0xff] %v7400_v27 }
 0x15c   : > { %v373_v30 = vpop.f32.mrb[2].mxu0  ;;  %6373 = vmatprep.subr.bf16.mxu0 %v6707_v2  ;;  %6376 = vmatprep.subr.bf16.mxu1 %v6707_v2  ;;  %v456_v32 = vpop.f32.mrb[2].mxu1 }
 0x15d   : > { %v6150_v31 = vpop.f32.mrb[3].mxu0  ;;  %6201 = vmatmul.mubr.msk.f32.gmra.mrb[14].mxu0 %vm292_vm1, %v373_v30  ;;  %6214 = vmatmul.mubr.msk.f32.gmra.mrb[14].mxu1 %vm292_vm1, %v373_v30  ;;  %v6163_v33 = vpop.f32.mrb[3].mxu1 }
 0x15e   : > { %6203 = vmatprep.mubr.msk.f32.mxu0 %vm6708_vm0, %v6709_v4  ;;  %6216 = vmatprep.mubr.msk.f32.mxu1 %vm6708_vm0, %v6709_v4  ;;  %v7414_v33 = vstv %s7244_s19  ;;  %s10824_s19 = sld [smem:[#allocation44_spill]] }
 0x15f   : > { %10788 = vst [vmem:[#allocation59_spill] sm:$0xff] %v7414_v33 }
 0x160   : > { %v378_v34 = vpop.f32.mrb[4].mxu0  ;;  %v461_v36 = vpop.f32.mrb[4].mxu1 }
 0x161   : > { %v6153_v35 = vpop.f32.mrb[5].mxu0  ;;  %6204 = vmatmul.mubr.msk.f32.gmra.mrb[16].mxu0 %vm292_vm1, %v378_v34  ;;  %6217 = vmatmul.mubr.msk.f32.gmra.mrb[16].mxu1 %vm292_vm1, %v378_v34  ;;  %v6166_v37 = vpop.f32.mrb[5].mxu1 }
 0x162   : > { %6223 = vmatprep.mubr.msk.f32.mxu0 %vm6708_vm0, %v6709_v4  ;;  %6236 = vmatprep.mubr.msk.f32.mxu1 %vm6708_vm0, %v6709_v4 }
 0x164   : > { %v534_v38 = vpop.f32.mrb[6].mxu0  ;;  %v7042_v40 = vpop.f32.mrb[6].mxu1 }
 0x165   : > { %6224 = vmatmul.mubr.msk.f32.vlgmr.msra.gmra.mrb[18].mxu0 %vm292_vm1, %v368_v26  ;;  %6237 = vmatmul.mubr.msk.f32.vlgmr.msra.gmra.mrb[18].mxu1 %vm292_vm1, %v451_v28  ;;  %v6173_v39 = vpop.f32.mrb[7].mxu0  ;;  %v6186_v41 = vpop.f32.mrb[7].mxu1 }
 0x166   : > { %6375 = vmatpush3.bf16.msra.mxu0 %v6986_v22  ;;  %6226 = vmatprep.mubr.msk.f32.mxu0 %vm6708_vm0, %v6709_v4  ;;  %v7426_v41 = vstv %s10780_s26  ;;  %s10850_s26 = sld [smem:[#allocation47_spill]] }
 0x167   : > { %6239 = vmatprep.mubr.msk.f32.mxu1 %vm6708_vm0, %v6709_v4  ;;  %6378 = vmatpush3.bf16.msra.mxu1 %v7016_v25  ;;  %10792 = vst [vmem:[#allocation61_spill] sm:$0xff] %v7426_v41 }
 0x168   : > { %6379 = vmatprep.subr.bf16.mxu0 %v6707_v2  ;;  %6382 = vmatprep.subr.bf16.mxu1 %v6707_v2  ;;  %v539_v42 = vpop.f32.mrb[8].mxu0  ;;  %v7054_v44 = vpop.f32.mrb[8].mxu1 }
 0x169   : > { %6227 = vmatmul.mubr.msk.f32.gmra.mrb[20].mxu0 %vm292_vm1, %v373_v30  ;;  %6240 = vmatmul.mubr.msk.f32.gmra.mrb[20].mxu1 %vm292_vm1, %v456_v32  ;;  %v6176_v43 = vpop.f32.mrb[9].mxu0  ;;  %v6189_v45 = vpop.f32.mrb[9].mxu1 }
 0x16a   : > { %6229 = vmatprep.mubr.msk.f32.mxu0 %vm6708_vm0, %v6709_v4  ;;  %6242 = vmatprep.mubr.msk.f32.mxu1 %vm6708_vm0, %v6709_v4  ;;  %v7452_v45 = vstv %s7389_s15  ;;  %s8328_s15 = sld [smem:[#allocation6 + $0x10c]] }
 0x16b   : > { %10796 = vst [vmem:[#allocation65_spill] sm:$0xff] %v7452_v45 }
 0x16c   : > { %v544_v46 = vpop.f32.mrb[10].mxu0  ;;  %v627_v48 = vpop.f32.mrb[10].mxu1 }
 0x16d   : > { %6230 = vmatmul.mubr.msk.f32.gmra.mrb[22].mxu0 %vm292_vm1, %v378_v34  ;;  %6243 = vmatmul.mubr.msk.f32.gmra.mrb[22].mxu1 %vm292_vm1, %v461_v36  ;;  %v6179_v47 = vpop.f32.mrb[11].mxu0  ;;  %v6192_v49 = vpop.f32.mrb[11].mxu1 }
 0x16e   : > { %6249 = vmatprep.mubr.msk.f32.mxu0 %vm6708_vm0, %v6709_v4  ;;  %6262 = vmatprep.mubr.msk.f32.mxu1 %vm6708_vm0, %v6709_v4  ;;  %v7434_v47 = vstv %s7335_s17  ;;  %s10851_s17 = sld [smem:[#allocation46_spill]] }
 0x16f   : > { %10793 = vst [vmem:[#allocation62_spill] sm:$0xff] %v7434_v47 }
 0x171   : > { %6250 = vmatmul.mubr.msk.f32.vlgmr.msra.gmra.mrb[24].mxu0 %vm292_vm1, %v451_v28  ;;  %6263 = vmatmul.mubr.msk.f32.vlgmr.msra.gmra.mrb[24].mxu1 %vm292_vm1, %v451_v28  ;;  %v7403_v28 = vstv %s7234_s22  ;;  %s10790_s22 = sld [smem:[#allocation37_spill]] }
 0x172   : > { %6381 = vmatpush3.bf16.msra.mxu0 %v6984_v21  ;;  %6252 = vmatprep.mubr.msk.f32.mxu0 %vm6708_vm0, %v6709_v4  ;;  %10782 = vst [vmem:[#allocation57_spill] sm:$0xff] %v7403_v28 }
 0x173   : > { %6265 = vmatprep.mubr.msk.f32.mxu1 %vm6708_vm0, %v6709_v4  ;;  %6384 = vmatpush3.bf16.msra.mxu1 %v6986_v22 }
 0x174   : > { %6385 = vmatprep.subr.bf16.mxu0 %v6707_v2  ;;  %6388 = vmatprep.subr.bf16.mxu1 %v6707_v2 }
 0x175   : > { %6253 = vmatmul.mubr.msk.f32.gmra.mrb[26].mxu0 %vm292_vm1, %v456_v32  ;;  %6266 = vmatmul.mubr.msk.f32.gmra.mrb[26].mxu1 %vm292_vm1, %v456_v32  ;;  %v7411_v32 = vstv %s7242_s25  ;;  %s10826_s25 = sld [smem:[#allocation42_spill]] }
 0x176   : > { %6255 = vmatprep.mubr.msk.f32.mxu0 %vm6708_vm0, %v6709_v4  ;;  %6268 = vmatprep.mubr.msk.f32.mxu1 %vm6708_vm0, %v6709_v4  ;;  %10787 = vst [vmem:[#allocation58_spill] sm:$0xff] %v7411_v32 }
 0x179   : > { %6256 = vmatmul.mubr.msk.f32.gmra.mrb[28].mxu0 %vm292_vm1, %v461_v36  ;;  %6269 = vmatmul.mubr.msk.f32.gmra.mrb[28].mxu1 %vm292_vm1, %v461_v36  ;;  %v7443_v36 = vstv %s7387_s24  ;;  %s8318_s24 = sld [smem:[#allocation6 + $0x8f]] }
 0x17a   : > { %6275 = vmatprep.mubr.msk.f32.mxu0 %vm6708_vm0, %v6709_v4  ;;  %6288 = vmatprep.mubr.msk.f32.mxu1 %vm6708_vm0, %v6709_v4  ;;  %10795 = vst [vmem:[#allocation64_spill] sm:$0xff] %v7443_v36 }
 0x17d   : > { %6276 = vmatmul.mubr.msk.f32.vlgmr.msra.gmra.mrb[30].mxu0 %vm292_vm1, %v534_v38  ;;  %6289 = vmatmul.mubr.msk.f32.vlgmr.msra.gmra.mrb[30].mxu1 %vm292_vm1, %v534_v38 }
 0x17e   : > { %6387 = vmatpush3.bf16.msra.mxu0 %v7016_v25  ;;  %6278 = vmatprep.mubr.msk.f32.mxu0 %vm6708_vm0, %v6709_v4 }
 0x17f   : > { %6291 = vmatprep.mubr.msk.f32.mxu1 %vm6708_vm0, %v6709_v4  ;;  %6390 = vmatpush3.bf16.msra.mxu1 %v6984_v21 }
 0x180   : > { %6391 = vmatprep.subr.bf16.mxu0 %v6707_v2  ;;  %6394 = vmatprep.subr.bf16.mxu1 %v6707_v2  ;;  %v7315_v2 = vstv %s7182_s0  ;;  %s10765_s0 = sld [smem:[#allocation41_spill]] }
 0x181   : > { %6279 = vmatmul.mubr.msk.f32.gmra.mrb[32].mxu0 %vm292_vm1, %v539_v42  ;;  %6292 = vmatmul.mubr.msk.f32.gmra.mrb[32].mxu1 %vm292_vm1, %v539_v42 }
 0x182   : > { %6281 = vmatprep.mubr.msk.f32.mxu0 %vm6708_vm0, %v6709_v4  ;;  %6294 = vmatprep.mubr.msk.f32.mxu1 %vm6708_vm0, %v6709_v4 }
 0x185   : > { %6282 = vmatmul.mubr.msk.f32.gmra.mrb[34].mxu0 %vm292_vm1, %v544_v46  ;;  %6295 = vmatmul.mubr.msk.f32.gmra.mrb[34].mxu1 %vm292_vm1, %v544_v46 }
 0x186   : > { %6301 = vmatprep.mubr.msk.f32.mxu0 %vm6708_vm0, %v6709_v4  ;;  %6314 = vmatprep.mubr.msk.f32.mxu1 %vm6708_vm0, %v6709_v4  ;;  %v7376_v17 = vstv %s10765_s0  ;;  %s10779_s0 = sld [smem:[#allocation54_spill]] }
 0x189   : > { %6302 = vmatmul.mubr.msk.f32.vlgmr.msra.gmra.mrb[36].mxu0 %vm292_vm1, %v534_v38  ;;  %6315 = vmatmul.mubr.msk.f32.vlgmr.msra.gmra.mrb[36].mxu1 %vm292_vm1, %v7042_v40 }
 0x18a   : > { %6304 = vmatprep.mubr.msk.f32.mxu0 %vm6708_vm0, %v6709_v4  ;;  %6317 = vmatprep.mubr.msk.f32.mxu1 %vm6708_vm0, %v6709_v4 }
 0x18b   : > { %6393 = vmatpush3.bf16.msra.mxu0 %v6986_v22  ;;  %6396 = vmatpush3.bf16.msra.mxu1 %v7016_v25 }
 0x18d   : > { %6305 = vmatmul.mubr.msk.f32.gmra.mrb[38].mxu0 %vm292_vm1, %v539_v42  ;;  %6318 = vmatmul.mubr.msk.f32.gmra.mrb[38].mxu1 %vm292_vm1, %v7054_v44 }
 0x18e   : > { %6307 = vmatprep.mubr.msk.f32.mxu0 %vm6708_vm0, %v6709_v4  ;;  %6320 = vmatprep.mubr.msk.f32.mxu1 %vm6708_vm0, %v6709_v4 }
 0x191   : > { %6308 = vmatmul.mubr.msk.f32.gmra.mrb[40].mxu0 %vm292_vm1, %v544_v46  ;;  %6321 = vmatmul.mubr.msk.f32.gmra.mrb[40].mxu1 %vm292_vm1, %v627_v48 }
 0x192   : > { %6327 = vmatprep.mubr.msk.f32.mxu0 %vm6708_vm0, %v6709_v4  ;;  %6340 = vmatprep.mubr.msk.f32.mxu1 %vm6708_vm0, %v6709_v4 }
 0x195   : > { %6328 = vmatmul.mubr.msk.f32.vlgmr.msra.gmra.mrb[42].mxu0 %vm292_vm1, %v7042_v40  ;;  %6341 = vmatmul.mubr.msk.f32.vlgmr.msra.gmra.mrb[42].mxu1 %vm292_vm1, %v7042_v40  ;;  %v7423_v40 = vstv %s7285_s18  ;;  %s10827_s18 = sld [smem:[#allocation48_spill]] }
 0x196   : > { %6330 = vmatprep.mubr.msk.f32.mxu0 %vm6708_vm0, %v6709_v4  ;;  %6343 = vmatprep.mubr.msk.f32.mxu1 %vm6708_vm0, %v6709_v4  ;;  %10791 = vst [vmem:[#allocation60_spill] sm:$0xff] %v7423_v40 }
 0x199   : > { %6331 = vmatmul.mubr.msk.f32.gmra.mrb[44].mxu0 %vm292_vm1, %v7054_v44  ;;  %6344 = vmatmul.mubr.msk.f32.gmra.mrb[44].mxu1 %vm292_vm1, %v7054_v44 }
 0x19a   : > { %6333 = vmatprep.mubr.msk.f32.mxu0 %vm6708_vm0, %v6709_v4  ;;  %6346 = vmatprep.mubr.msk.f32.mxu1 %vm6708_vm0, %v6709_v4  ;;  %v7325_v4 = vstv %s7186_s2  ;;  %s10783_s2 = sld [smem:[#allocation32_spill]] }
 0x19d   : > { %6334 = vmatmul.mubr.msk.f32.gmra.mrb[46].mxu0 %vm292_vm1, %v627_v48  ;;  %6347 = vmatmul.mubr.msk.f32.gmra.mrb[46].mxu1 %vm292_vm1, %v627_v48  ;;  %v7437_v48 = vstv %s10789_s8  ;;  %s8347_s8 = sld [smem:[#allocation6 + $0x18c]] }
 0x19e   : > { %10794 = vst [vmem:[#allocation63_spill] sm:$0xff] %v7437_v48 }
 0x22c   : > { %v7447_v43 = vpop.f32.mrb[12].mxu0  ;;  %v7449_v44 = vpop.f32.mrb[12].mxu1 }
 0x22d   : > { %v6199_v30 = vpop.f32.mrb[13].mxu0  ;;  %v6212_v26 = vpop.f32.mrb[13].mxu1  ;;  %v1657_v49 = vmul.f32 %v7251_v50, %v7447_v43  ;;  %v1709_v38 = vmul.f32 %v7258_v51, %v7447_v43  ;;  %v2144_v34 = vmul.f32 %v7261_v52, %v7447_v43  ;;  %v2195_v42 = vmul.f32 %v7264_v53, %v7447_v43 }
 0x22e   : > { %v2629_v37 = vmul.f32 %v7267_v54, %v7447_v43  ;;  %v2680_v25 = vmul.f32 %v7274_v55, %v7447_v43  ;;  %v7471_v26 = vmul.f32 %v7277_v56, %v7447_v43  ;;  %v7475_v30 = vmul.f32 %v7280_v57, %v7447_v43 }
 0x22f   : > { %v1664_v39 = vrot.slane %v1657_v49, 1  ;;  %v1716_v46 = vrot.slane %v1709_v38, 2  ;;  %v2150_v35 = vrot.slane %v2144_v34, 1  ;;  %v2201_v31 = vrot.slane %v2195_v42, 2 }
 0x230   : > { %v7477_v21 = vpop.f32.mrb[14].mxu0  ;;  %v7479_v24 = vpop.f32.mrb[14].mxu1  ;;  %v2635_v22 = vrot.slane %v2629_v37, 1  ;;  %v2686_v29 = vrot.slane %v2680_v25, 2  ;;  %v3120_v23 = vrot.slane %v7471_v26, 1  ;;  %v3171_v19 = vrot.slane %v7475_v30, 2 }
 0x231   : > { %v6202_v20 = vpop.f32.mrb[15].mxu0  ;;  %v6215_v18 = vpop.f32.mrb[15].mxu1  ;;  %v1658_v45 = vmul.f32 %v7251_v50, %v7477_v21  ;;  %v1710_v38 = vmul.f32 %v7258_v51, %v7477_v21  ;;  %v2145_v34 = vmul.f32 %v7261_v52, %v7477_v21  ;;  %v2196_v42 = vmul.f32 %v7264_v53, %v7477_v21 }
 0x232   : > { %v2630_v25 = vmul.f32 %v7267_v54, %v7477_v21  ;;  %v2681_v37 = vmul.f32 %v7274_v55, %v7477_v21  ;;  %v3115_v18 = vmul.f32 %v7277_v56, %v7477_v21  ;;  %v7499_v20 = vmul.f32 %v7280_v57, %v7477_v21 }
 0x233   : > { %v1665_v49 = vrot.slane %v1658_v45, 1  ;;  %v1717_v26 = vrot.slane %v1710_v38, 2  ;;  %v2151_v30 = vrot.slane %v2145_v34, 1  ;;  %v2202_v36 = vrot.slane %v2196_v42, 2 }
 0x234   : > { %v7501_v48 = vpop.f32.mrb[16].mxu0  ;;  %v2636_v47 = vrot.slane %v2630_v25, 1  ;;  %v2687_v41 = vrot.slane %v2681_v37, 2  ;;  %v3121_v40 = vrot.slane %v3115_v18, 1  ;;  %v3172_v33 = vrot.slane %v7499_v20, 2  ;;  %v7504_v32 = vpop.f32.mrb[16].mxu1 }
 0x235   : > { %v1659_v28 = vmul.f32 %v7251_v50, %v7501_v48  ;;  %v7509_v27 = vsel %vm1663_vm2, %v1664_v39, %v1665_v49  ;;  %v1711_v45 = vmul.f32 %v7258_v51, %v7501_v48  ;;  %v7514_v38 = vsel %vm1715_vm3, %v1716_v46, %v1717_v26  ;;  %v6205_v34 = vpop.f32.mrb[17].mxu0  ;;  %v6218_v42 = vpop.f32.mrb[17].mxu1 }
 0x236   : > { %v2146_v25 = vmul.f32 %v7261_v52, %v7501_v48  ;;  %v7519_v37 = vsel %vm1663_vm2, %v2150_v35, %v2151_v30  ;;  %v2197_v50 = vmul.f32 %v7264_v53, %v7501_v48  ;;  %v7524_v39 = vsel %vm1715_vm3, %v2201_v31, %v2202_v36 }
 0x237   : > { %v1667_v18 = vrot.slane %v1659_v28, 1  ;;  %v1719_v20 = vrot.slane %v1711_v45, 2  ;;  %v2631_v51 = vmul.f32 %v7267_v54, %v7501_v48  ;;  %v7529_v46 = vsel %vm1663_vm2, %v2635_v22, %v2636_v47 }
 0x238   : > { %10797 = vst [vmem:[#allocation66_spill] sm:$0xff] %v7529_v46  ;;  %v2153_v34 = vrot.slane %v2146_v25, 1  ;;  %v2204_v42 = vrot.slane %v2197_v50, 2  ;;  %v2682_v52 = vmul.f32 %v7274_v55, %v7501_v48  ;;  %v7534_v35 = vsel %vm1715_vm3, %v2686_v29, %v2687_v41  ;;  %v7536_v53 = vpop.f32.mrb[18].mxu0  ;;  %v7538_v31 = vpop.f32.mrb[18].mxu1 }
 0x239   : > { %10798 = vst [vmem:[#allocation67_spill] sm:$0xff] %v7534_v35  ;;  %v7541_v28 = vsel %vm1663_vm2, %v1665_v49, %v1667_v18  ;;  %v7544_v54 = vsel %vm1715_vm3, %v1717_v26, %v1719_v20  ;;  %v2638_v22 = vrot.slane %v2631_v51, 1  ;;  %v3116_v45 = vmul.f32 %v7277_v56, %v7501_v48  ;;  %v6225_v25 = vpop.f32.mrb[19].mxu0  ;;  %v6238_v50 = vpop.f32.mrb[19].mxu1 }
 0x23a   : > { %v7549_v55 = vsel %vm1663_vm2, %v2151_v30, %v2153_v34  ;;  %v7552_v29 = vsel %vm1715_vm3, %v2202_v36, %v2204_v42  ;;  %v2689_v35 = vrot.slane %v2682_v52, 2  ;;  %v7555_v46 = vsel %vm1663_vm2, %v3120_v23, %v3121_v40 }
 0x23b   : > { %v7558_v49 = vsel %vm1663_vm2, %v2636_v47, %v2638_v22  ;;  %v3123_v26 = vrot.slane %v3116_v45, 1  ;;  %v3167_v18 = vmul.f32 %v7280_v57, %v7501_v48  ;;  %v7563_v56 = vsel %vm1715_vm3, %v3171_v19, %v3172_v33 }
 0x23c   : > { %v7566_v30 = vsel %vm1715_vm3, %v2687_v41, %v2689_v35  ;;  %v3599_v36 = vmul.f32 %v7283_v58, %v7447_v43  ;;  %v3600_v23 = vmul.f32 %v7283_v58, %v7477_v21  ;;  %v3601_v47 = vmul.f32 %v7283_v58, %v7501_v48  ;;  %v7574_v20 = vpop.f32.mrb[20].mxu0  ;;  %v7576_v51 = vpop.f32.mrb[20].mxu1 }
 0x23d   : > { %v7579_v57 = vsel %vm1663_vm2, %v3121_v40, %v3123_v26  ;;  %v3174_v19 = vrot.slane %v3167_v18, 2  ;;  %v3650_v41 = vmul.f32 %v7290_v59, %v7447_v43  ;;  %v3651_v34 = vmul.f32 %v7290_v59, %v7477_v21  ;;  %v6228_v42 = vpop.f32.mrb[21].mxu0  ;;  %v6241_v52 = vpop.f32.mrb[21].mxu1 }
 0x23e   : > { %v3605_v35 = vrot.slane %v3599_v36, 1  ;;  %v3606_v22 = vrot.slane %v3600_v23, 1  ;;  %v3608_v45 = vrot.slane %v3601_v47, 1  ;;  %v3652_v58 = vmul.f32 %v7290_v59, %v7501_v48 }
 0x23f   : > { %v7588_v25 = vsel %vm1715_vm3, %v3172_v33, %v3174_v19  ;;  %v3656_v40 = vrot.slane %v3650_v41, 2  ;;  %v3657_v50 = vrot.slane %v3651_v34, 2  ;;  %v4084_v26 = vmul.f32 %v7293_v60, %v7447_v43 }
 0x240   : > { %v7593_v18 = vsel %vm1663_vm2, %v3605_v35, %v3606_v22  ;;  %v7596_v42 = vsel %vm1663_vm2, %v3606_v22, %v3608_v45  ;;  %v3659_v36 = vrot.slane %v3652_v58, 2  ;;  %v4085_v23 = vmul.f32 %v7293_v60, %v7477_v21  ;;  %v7600_v47 = vpop.f32.mrb[22].mxu0 }
 0x241   : > { %10799 = vst [vmem:[#allocation68_spill] sm:$0xff] %v7596_v42  ;;  %v7603_v59 = vsel %vm1715_vm3, %v3656_v40, %v3657_v50  ;;  %v4086_v33 = vmul.f32 %v7293_v60, %v7501_v48  ;;  %v4090_v19 = vrot.slane %v4084_v26, 1  ;;  %v4135_v41 = vmul.f32 %v7296_v61, %v7447_v43  ;;  %v6231_v34 = vpop.f32.mrb[23].mxu0 }
 0x242   : > { %10800 = vst [vmem:[#allocation69_spill] sm:$0xff] %v7603_v59  ;;  %v7610_v52 = vsel %vm1715_vm3, %v3657_v50, %v3659_v36  ;;  %v4091_v35 = vrot.slane %v4085_v23, 1  ;;  %v4136_v22 = vmul.f32 %v7296_v61, %v7477_v21  ;;  %v4137_v45 = vmul.f32 %v7296_v61, %v7501_v48 }
 0x243   : > { %10801 = vst [vmem:[#allocation70_spill] sm:$0xff] %v7610_v52  ;;  %v4093_v58 = vrot.slane %v4086_v33, 1  ;;  %v4141_v40 = vrot.slane %v4135_v41, 2  ;;  %v4569_v60 = vmul.f32 %v7299_v62, %v7447_v43  ;;  %v4570_v26 = vmul.f32 %v7299_v62, %v7477_v21 }
 0x244   : > { %v7621_v34 = vsel %vm1663_vm2, %v4090_v19, %v4091_v35  ;;  %v4142_v50 = vrot.slane %v4136_v22, 2  ;;  %v4144_v36 = vrot.slane %v4137_v45, 2  ;;  %v4571_v23 = vmul.f32 %v7299_v62, %v7501_v48 }
 0x245   : > { %10802 = vst [vmem:[#allocation71_spill] sm:$0xff] %v7621_v34  ;;  %v7626_v52 = vsel %vm1663_vm2, %v4091_v35, %v4093_v58  ;;  %v4575_v61 = vrot.slane %v4569_v60, 1  ;;  %v4576_v33 = vrot.slane %v4570_v26, 1  ;;  %v4620_v41 = vmul.f32 %v7306_v63, %v7447_v43 }
 0x246   : > { %10803 = vst [vmem:[#allocation72_spill] sm:$0xff] %v7626_v52  ;;  %v7631_v59 = vsel %vm1715_vm3, %v4141_v40, %v4142_v50  ;;  %v7634_v42 = vsel %vm1715_vm3, %v4142_v50, %v4144_v36  ;;  %v4578_v19 = vrot.slane %v4571_v23, 1  ;;  %v4621_v22 = vmul.f32 %v7306_v63, %v7477_v21 }
 0x247   : > { %10804 = vst [vmem:[#allocation73_spill] sm:$0xff] %v7631_v59  ;;  %10805 = vst [vmem:[#allocation74_spill] sm:$0xff] %v7634_v42  ;;  %v7639_v62 = vsel %vm1663_vm2, %v4575_v61, %v4576_v33  ;;  %v4622_v35 = vmul.f32 %v7306_v63, %v7501_v48  ;;  %v4626_v45 = vrot.slane %v4620_v41, 2  ;;  %v5054_v58 = vmul.f32 %v7309_v0, %v7447_v43 }
 0x248   : > { %10806 = vst [vmem:[#allocation75_spill] sm:$0xff] %v7639_v62  ;;  %v7646_v40 = vsel %vm1663_vm2, %v4576_v33, %v4578_v19  ;;  %v4627_v60 = vrot.slane %v4621_v22, 2  ;;  %v5055_v26 = vmul.f32 %v7309_v0, %v7477_v21  ;;  %v5056_v50 = vmul.f32 %v7309_v0, %v7501_v48 }
 0x249   : > { %10807 = vst [vmem:[#allocation76_spill] sm:$0xff] %v7646_v40  ;;  %v4629_v36 = vrot.slane %v4622_v35, 2  ;;  %v5060_v23 = vrot.slane %v5054_v58, 1  ;;  %v5105_v61 = vmul.f32 %v7312_v1, %v7447_v43  ;;  %v5106_v63 = vmul.f32 %v7312_v1, %v7477_v21 }
 0x24a   : > { %v7657_v41 = vsel %vm1715_vm3, %v4626_v45, %v4627_v60  ;;  %v5061_v33 = vrot.slane %v5055_v26, 1  ;;  %v5063_v19 = vrot.slane %v5056_v50, 1  ;;  %v5107_v22 = vmul.f32 %v7312_v1, %v7501_v48 }
 0x24b   : > { %10808 = vst [vmem:[#allocation77_spill] sm:$0xff] %v7657_v41  ;;  %v7662_v40 = vsel %vm1715_vm3, %v4627_v60, %v4629_v36  ;;  %v5111_v0 = vrot.slane %v5105_v61, 2  ;;  %v5112_v35 = vrot.slane %v5106_v63, 2  ;;  %v1675_v58 = vmul.f32 %v7315_v2, %v7449_v44 }
 0x24c   : > { %10809 = vst [vmem:[#allocation78_spill] sm:$0xff] %v7662_v40  ;;  %v7667_v62 = vsel %vm1663_vm2, %v5060_v23, %v5061_v33  ;;  %v7670_v42 = vsel %vm1663_vm2, %v5061_v33, %v5063_v19  ;;  %v5114_v45 = vrot.slane %v5107_v22, 2  ;;  %v1676_v26 = vmul.f32 %v7315_v2, %v7479_v24 }
 0x24d   : > { %10810 = vst [vmem:[#allocation79_spill] sm:$0xff] %v7667_v62  ;;  %10811 = vst [vmem:[#allocation80_spill] sm:$0xff] %v7670_v42  ;;  %v7675_v1 = vsel %vm1715_vm3, %v5111_v0, %v5112_v35  ;;  %v1677_v48 = vmul.f32 %v7315_v2, %v7504_v32  ;;  %v1681_v60 = vrot.slane %v1675_v58, 1  ;;  %v1727_v50 = vmul.f32 %v7322_v3, %v7449_v44  ;;  %v7692_v0 = vpop.f32.mrb[22].mxu1 }
 0x24e   : > { %10812 = vst [vmem:[#allocation81_spill] sm:$0xff] %v7675_v1  ;;  %v7682_v36 = vsel %vm1715_vm3, %v5112_v35, %v5114_v45  ;;  %v1682_v23 = vrot.slane %v1676_v26, 1  ;;  %v1728_v61 = vmul.f32 %v7322_v3, %v7479_v24  ;;  %v1729_v63 = vmul.f32 %v7322_v3, %v7504_v32  ;;  %10814 = vst [vmem:[#allocation83_spill] sm:$0xff] %v7692_v0 }
 0x24f   : > { %10813 = vst [vmem:[#allocation82_spill] sm:$0xff] %v7682_v36  ;;  %v1684_v33 = vrot.slane %v1677_v48, 1  ;;  %v1733_v19 = vrot.slane %v1727_v50, 2  ;;  %v2161_v22 = vmul.f32 %v7325_v4, %v7449_v44  ;;  %v2162_v2 = vmul.f32 %v7325_v4, %v7479_v24  ;;  %v6244_v36 = vpop.f32.mrb[23].mxu1 }
 0x250   : > { %v7695_v35 = vsel %vm1663_vm2, %v1681_v60, %v1682_v23  ;;  %v1734_v58 = vrot.slane %v1728_v61, 2  ;;  %v1736_v45 = vrot.slane %v1729_v63, 2  ;;  %v2163_v26 = vmul.f32 %v7325_v4, %v7504_v32 }
 0x251   : > { %v7700_v3 = vsel %vm1663_vm2, %v1682_v23, %v1684_v33  ;;  %v2167_v48 = vrot.slane %v2161_v22, 1  ;;  %v2168_v50 = vrot.slane %v2162_v2, 1  ;;  %v2212_v1 = vmul.f32 %v7328_v5, %v7449_v44 }
 0x252   : > { %v7705_v42 = vsel %vm1715_vm3, %v1733_v19, %v1734_v58  ;;  %v7708_v60 = vsel %vm1715_vm3, %v1734_v58, %v1736_v45  ;;  %v2170_v61 = vrot.slane %v2163_v26, 1  ;;  %v2213_v63 = vmul.f32 %v7328_v5, %v7479_v24 }
 0x253   : > { %v7713_v4 = vsel %vm1663_vm2, %v2167_v48, %v2168_v50  ;;  %v2214_v36 = vmul.f32 %v7328_v5, %v7504_v32  ;;  %v2218_v23 = vrot.slane %v2212_v1, 2  ;;  %v2646_v33 = vmul.f32 %v7331_v6, %v7449_v44 }
 0x254   : > { %v7720_v19 = vsel %vm1663_vm2, %v2168_v50, %v2170_v61  ;;  %v2219_v22 = vrot.slane %v2213_v63, 2  ;;  %v2647_v2 = vmul.f32 %v7331_v6, %v7479_v24  ;;  %v2648_v58 = vmul.f32 %v7331_v6, %v7504_v32 }
 0x255   : > { %v2221_v45 = vrot.slane %v2214_v36, 2  ;;  %v2652_v26 = vrot.slane %v2646_v33, 1  ;;  %v2697_v48 = vmul.f32 %v7338_v7, %v7449_v44  ;;  %v2698_v5 = vmul.f32 %v7338_v7, %v7479_v24 }
 0x256   : > { %v7731_v1 = vsel %vm1715_vm3, %v2218_v23, %v2219_v22  ;;  %v2653_v50 = vrot.slane %v2647_v2, 1  ;;  %v2655_v61 = vrot.slane %v2648_v58, 1  ;;  %v2699_v63 = vmul.f32 %v7338_v7, %v7504_v32 }
 0x257   : > { %v7736_v0 = vsel %vm1715_vm3, %v2219_v22, %v2221_v45  ;;  %v2703_v6 = vrot.slane %v2697_v48, 2  ;;  %v2704_v36 = vrot.slane %v2698_v5, 2  ;;  %v3131_v33 = vmul.f32 %v7341_v8, %v7449_v44 }
 0x258   : > { %v7741_v62 = vsel %vm1663_vm2, %v2652_v26, %v2653_v50  ;;  %v7744_v40 = vsel %vm1663_vm2, %v2653_v50, %v2655_v61  ;;  %v2706_v23 = vrot.slane %v2699_v63, 2  ;;  %v3132_v2 = vmul.f32 %v7341_v8, %v7479_v24 }
 0x259   : > { %v7749_v7 = vsel %vm1715_vm3, %v2703_v6, %v2704_v36  ;;  %v3133_v22 = vmul.f32 %v7341_v8, %v7504_v32  ;;  %v3137_v58 = vrot.slane %v3131_v33, 1  ;;  %v3182_v45 = vmul.f32 %v7344_v9, %v7449_v44 }
 0x25a   : > { %v7756_v26 = vsel %vm1715_vm3, %v2704_v36, %v2706_v23  ;;  %v3138_v48 = vrot.slane %v3132_v2, 1  ;;  %v3183_v5 = vmul.f32 %v7344_v9, %v7479_v24  ;;  %v3184_v50 = vmul.f32 %v7344_v9, %v7504_v32 }
 0x25b   : > { %v3140_v61 = vrot.slane %v3133_v22, 1  ;;  %v3188_v63 = vrot.slane %v3182_v45, 2  ;;  %v3616_v6 = vmul.f32 %v7347_v10, %v7449_v44  ;;  %v3617_v8 = vmul.f32 %v7347_v10, %v7479_v24 }
 0x25c   : > { %v7767_v33 = vsel %vm1663_vm2, %v3137_v58, %v3138_v48  ;;  %v3189_v36 = vrot.slane %v3183_v5, 2  ;;  %v3191_v23 = vrot.slane %v3184_v50, 2  ;;  %v3618_v2 = vmul.f32 %v7347_v10, %v7504_v32 }
 0x25d   : > { %v7772_v41 = vsel %vm1663_vm2, %v3138_v48, %v3140_v61  ;;  %v3622_v9 = vrot.slane %v3616_v6, 1  ;;  %v3623_v22 = vrot.slane %v3617_v8, 1  ;;  %v3667_v45 = vmul.f32 %v7354_v11, %v7449_v44 }
 0x25e   : > { %v7777_v59 = vsel %vm1715_vm3, %v3188_v63, %v3189_v36  ;;  %v7780_v52 = vsel %vm1715_vm3, %v3189_v36, %v3191_v23  ;;  %v3625_v58 = vrot.slane %v3618_v2, 1  ;;  %v3668_v5 = vmul.f32 %v7354_v11, %v7479_v24 }
 0x25f   : > { %v7785_v10 = vsel %vm1663_vm2, %v3622_v9, %v3623_v22  ;;  %v3669_v48 = vmul.f32 %v7354_v11, %v7504_v32  ;;  %v3673_v50 = vrot.slane %v3667_v45, 2  ;;  %v4101_v61 = vmul.f32 %v7357_v12, %v7449_v44 }
 0x260   : > { %10815 = vst [vmem:[#allocation84_spill] sm:$0xff] %v7785_v10  ;;  %v7792_v63 = vsel %vm1663_vm2, %v3623_v22, %v3625_v58  ;;  %v3674_v6 = vrot.slane %v3668_v5, 2  ;;  %v4102_v8 = vmul.f32 %v7357_v12, %v7479_v24  ;;  %v4103_v36 = vmul.f32 %v7357_v12, %v7504_v32 }
 0x261   : > { %10816 = vst [vmem:[#allocation85_spill] sm:$0xff] %v7792_v63  ;;  %v3676_v23 = vrot.slane %v3669_v48, 2  ;;  %v4107_v2 = vrot.slane %v4101_v61, 1  ;;  %v4152_v9 = vmul.f32 %v7360_v13, %v7449_v44  ;;  %v4153_v11 = vmul.f32 %v7360_v13, %v7479_v24 }
 0x262   : > { %v7803_v45 = vsel %vm1715_vm3, %v3673_v50, %v3674_v6  ;;  %v4108_v22 = vrot.slane %v4102_v8, 1  ;;  %v4110_v58 = vrot.slane %v4103_v36, 1  ;;  %v4154_v5 = vmul.f32 %v7360_v13, %v7504_v32 }
 0x263   : > { %10817 = vst [vmem:[#allocation86_spill] sm:$0xff] %v7803_v45  ;;  %v7808_v34 = vsel %vm1715_vm3, %v3674_v6, %v3676_v23  ;;  %v4158_v12 = vrot.slane %v4152_v9, 2  ;;  %v4159_v48 = vrot.slane %v4153_v11, 2  ;;  %v4586_v61 = vmul.f32 %v7363_v14, %v7449_v44 }
 0x264   : > { %10818 = vst [vmem:[#allocation87_spill] sm:$0xff] %v7808_v34  ;;  %v7813_v63 = vsel %vm1663_vm2, %v4107_v2, %v4108_v22  ;;  %v7816_v10 = vsel %vm1663_vm2, %v4108_v22, %v4110_v58  ;;  %v4161_v50 = vrot.slane %v4154_v5, 2  ;;  %v4587_v8 = vmul.f32 %v7363_v14, %v7479_v24 }
 0x265   : > { %10819 = vst [vmem:[#allocation88_spill] sm:$0xff] %v7813_v63  ;;  %10820 = vst [vmem:[#allocation89_spill] sm:$0xff] %v7816_v10  ;;  %v7821_v13 = vsel %vm1715_vm3, %v4158_v12, %v4159_v48  ;;  %v4588_v6 = vmul.f32 %v7363_v14, %v7504_v32  ;;  %v4592_v36 = vrot.slane %v4586_v61, 1  ;;  %v4637_v23 = vmul.f32 %v7370_v15, %v7449_v44 }
 0x266   : > { %10821 = vst [vmem:[#allocation90_spill] sm:$0xff] %v7821_v13  ;;  %v7828_v2 = vsel %vm1715_vm3, %v4159_v48, %v4161_v50  ;;  %v4593_v9 = vrot.slane %v4587_v8, 1  ;;  %v4638_v11 = vmul.f32 %v7370_v15, %v7479_v24  ;;  %v4639_v22 = vmul.f32 %v7370_v15, %v7504_v32 }
 0x267   : > { %10822 = vst [vmem:[#allocation91_spill] sm:$0xff] %v7828_v2  ;;  %v4595_v58 = vrot.slane %v4588_v6, 1  ;;  %v4643_v5 = vrot.slane %v4637_v23, 2  ;;  %v5071_v12 = vmul.f32 %v7373_v16, %v7449_v44  ;;  %v5072_v14 = vmul.f32 %v7373_v16, %v7479_v24 }
 0x268   : > { %v7839_v61 = vsel %vm1663_vm2, %v4592_v36, %v4593_v9  ;;  %v4644_v48 = vrot.slane %v4638_v11, 2  ;;  %v4646_v50 = vrot.slane %v4639_v22, 2  ;;  %v5073_v8 = vmul.f32 %v7373_v16, %v7504_v32 }
 0x269   : > { %10823 = vst [vmem:[#allocation92_spill] sm:$0xff] %v7839_v61  ;;  %v7844_v15 = vsel %vm1663_vm2, %v4593_v9, %v4595_v58  ;;  %v5077_v6 = vrot.slane %v5071_v12, 1  ;;  %v5078_v23 = vrot.slane %v5072_v14, 1  ;;  %v5122_v2 = vmul.f32 %v7376_v17, %v7449_v44 }
 0x26a   : > { %10825 = vst [vmem:[#allocation93_spill] sm:$0xff] %v7844_v15  ;;  %v7849_v36 = vsel %vm1715_vm3, %v4643_v5, %v4644_v48  ;;  %v7852_v11 = vsel %vm1715_vm3, %v4644_v48, %v4646_v50  ;;  %v5080_v16 = vrot.slane %v5073_v8, 1  ;;  %v5123_v9 = vmul.f32 %v7376_v17, %v7479_v24 }
 0x26b   : > { %10828 = vst [vmem:[#allocation94_spill] sm:$0xff] %v7849_v36  ;;  %10829 = vst [vmem:[#allocation95_spill] sm:$0xff] %v7852_v11  ;;  %v7857_v22 = vsel %vm1663_vm2, %v5077_v6, %v5078_v23  ;;  %v5124_v58 = vmul.f32 %v7376_v17, %v7504_v32  ;;  %v5128_v12 = vrot.slane %v5122_v2, 2  ;;  %v10831_v14 = vstv %s10766_s21  ;;  %s10847_s21 = sld [smem:[#allocation45_spill]] }
 0x26c   : > { %10830 = vst [vmem:[#allocation96_spill] sm:$0xff] %v7857_v22  ;;  %v1639_v5 = vmul.f32 %v10831_v14, %v7447_v43  ;;  %v7865_v36 = vsel %vm1663_vm2, %v5078_v23, %v5080_v16  ;;  %v5129_v48 = vrot.slane %v5123_v9, 2  ;;  %v10833_v50 = vmov %v10831_v14 }
 0x26d   : > { %10832 = vst [vmem:[#allocation97_spill] sm:$0xff] %v7865_v36  ;;  %v1640_v8 = vmul.f32 %v10833_v50, %v7477_v21  ;;  %v10834_v11 = vstv %s10824_s19  ;;  %v5131_v61 = vrot.slane %v5124_v58, 2  ;;  %v10835_v6 = vstv %s10826_s25  ;;  %v10841_v36 = vld [vmem:[#allocation56_spill] sm:$0xff]  ;;  %s8358_s19 = sld [smem:[#allocation6 + $0x20c]]  ;;  %s8387_s25 = sld [smem:[#allocation6 + $0x20f]] }
 0x26e   : > { %v1645_v15 = vmul.f32 %v10834_v11, %v7449_v44  ;;  %v1641_v22 = vadd.f32 %v1639_v5, %v10835_v6  ;;  %v10836_v13 = vmov %v10834_v11  ;;  %v10837_v32 = vstv %s10827_s18  ;;  %s8392_s18 = sld [smem:[#allocation6 + $0x28c]] }
 0x26f   : > { %v1646_v17 = vmul.f32 %v10836_v13, %v7479_v24  ;;  %v1651_v2 = vmul.f32 %v10837_v32, %v7536_v53  ;;  %v7882_v14 = vsel %vm1715_vm3, %v5128_v12, %v5129_v48  ;;  %v10839_v23 = vmov %v10835_v6  ;;  %v7898_v12 = vpop.f32.mrb[24].mxu0 }
 0x270   : > { %10838 = vst [vmem:[#allocation98_spill] sm:$0xff] %v7882_v14  ;;  %v1642_v16 = vadd.f32 %v1640_v8, %v10839_v23  ;;  %v10840_v9 = vmov %v10837_v32  ;;  %v1692_v11 = vmul.f32 %v10841_v36, %v7536_v53  ;;  %v7892_v58 = vsel %vm1715_vm3, %v5129_v48, %v5131_v61  ;;  %10843 = vst [vmem:[#allocation99_spill] sm:$0xff] %v7898_v12  ;;  %v7900_v32 = vpop.f32.mrb[24].mxu1 }
 0x271   : > { %v1652_v50 = vmul.f32 %v10840_v9, %v7574_v20  ;;  %10842 = vst [vmem:[#allocation56_spill] sm:$0xff] %v7892_v58  ;;  %v1647_v5 = vadd.f32 %v1645_v15, %v1641_v22  ;;  %v1693_v13 = vmul.f32 %v10841_v36, %v7574_v20  ;;  %v1694_v6 = vmul.f32 %v10841_v36, %v7600_v47  ;;  %v10845_v9 = vld [vmem:[#allocation57_spill] sm:$0xff]  ;;  %v6251_v15 = vpop.f32.mrb[25].mxu0  ;;  %v6264_v22 = vpop.f32.mrb[25].mxu1 }
 0x272   : > { %10844 = vst [vmem:[#allocation100_spill] sm:$0xff] %v7900_v32  ;;  %v1648_v8 = vadd.f32 %v1646_v17, %v1642_v16  ;;  %v1698_v23 = vrot.slane %v1692_v11, 1  ;;  %v1744_v14 = vmul.f32 %v10845_v9, %v7536_v53  ;;  %v1745_v61 = vmul.f32 %v10845_v9, %v7574_v20  ;;  %v7908_v12 = vpop.f32.mrb[26].mxu0  ;;  %v7910_v17 = vpop.f32.mrb[26].mxu1 }
 0x273   : > { %v1653_v48 = vadd.f32 %v1651_v2, %v1647_v5  ;;  %v1699_v58 = vrot.slane %v1693_v13, 1  ;;  %v1701_v10 = vrot.slane %v1694_v6, 1  ;;  %v1746_v36 = vmul.f32 %v10845_v9, %v7600_v47  ;;  %10846 = vst [vmem:[#allocation57_spill] sm:$0xff] %v7908_v12  ;;  %10848 = vst [vmem:[#allocation101_spill] sm:$0xff] %v7910_v17  ;;  %v6254_v2 = vpop.f32.mrb[27].mxu0  ;;  %v6267_v5 = vpop.f32.mrb[27].mxu1 }
 0x274   : > { %v1654_v16 = vadd.f32 %v1652_v50, %v1648_v8  ;;  %v1750_v11 = vrot.slane %v1744_v14, 2  ;;  %v1751_v32 = vrot.slane %v1745_v61, 2  ;;  %v10849_v63 = vstv %s10777_s29  ;;  %v7918_v14 = vpop.f32.mrb[28].mxu0 }
 0x275   : > { %v1761_v15 = vmul.f32 %v10849_v63, %v7538_v31  ;;  %v1671_v13 = vadd.f32 %v7509_v27, %v1653_v48  ;;  %v1700_v6 = vsel %vm1663_vm2, %v1698_v23, %v1699_v58  ;;  %v1702_v9 = vsel %vm1663_vm2, %v1699_v58, %v1701_v10  ;;  %10852 = vst [vmem:[#allocation102_spill] sm:$0xff] %v7918_v14  ;;  %v6257_v2 = vpop.f32.mrb[29].mxu0 }
 0x276   : > { %v1753_v22 = vrot.slane %v1746_v36, 2  ;;  %v1672_v50 = vadd.f32 %v7541_v28, %v1654_v16  ;;  %v1752_v63 = vsel %vm1715_vm3, %v1750_v11, %v1751_v32  ;;  %v10853_v8 = vstv %s10777_s29  ;;  %s10865_s29 = sld [smem:[#allocation51_spill]] }
 0x277   : > { %v1762_v61 = vmul.f32 %v10853_v8, %v7576_v51  ;;  %v10854_v27 = vstv %s10847_s21  ;;  %v1688_v23 = vadd.f32 %v7695_v35, %v1671_v13  ;;  %v10856_v5 = vstv %s10850_s26  ;;  %s8410_s21 = sld [smem:[#allocation6 + $0x28f]]  ;;  %s8417_s26 = sld [smem:[#allocation6 + $0x30c]] }
 0x278   : > { %v2126_v48 = vmul.f32 %v10854_v27, %v7447_v43  ;;  %v1754_v10 = vsel %vm1715_vm3, %v1751_v32, %v1753_v22  ;;  %v10855_v58 = vmov %v10854_v27  ;;  %v2132_v14 = vmul.f32 %v10856_v5, %v7449_v44 }
 0x279   : > { %v2127_v36 = vmul.f32 %v10855_v58, %v7477_v21  ;;  %v1689_v28 = vadd.f32 %v7700_v3, %v1672_v50  ;;  %v10857_v16 = vstv %s10851_s17  ;;  %v10858_v8 = vmov %v10856_v5  ;;  %v10862_v58 = vld [vmem:[#allocation58_spill] sm:$0xff]  ;;  %s8433_s17 = sld [smem:[#allocation6 + $0x30f]] }
 0x27a   : > { %v2128_v11 = vadd.f32 %v2126_v48, %v10857_v16  ;;  %v2133_v17 = vmul.f32 %v10858_v8, %v7479_v24  ;;  %v10859_v27 = vstv %s10778_s10  ;;  %v1705_v12 = vadd.f32 %v1700_v6, %v1688_v23  ;;  %v10863_v23 = vld [vmem:[#allocation59_spill] sm:$0xff]  ;;  %s10864_s10 = sld [smem:[#allocation49_spill]] }
 0x27b   : > { %v2138_v2 = vmul.f32 %v10859_v27, %v7536_v53  ;;  %v10860_v35 = vmov %v10857_v16  ;;  %v10861_v32 = vmov %v10859_v27  ;;  %v2178_v34 = vmul.f32 %v10862_v58, %v7536_v53 }
 0x27c   : > { %v2129_v13 = vadd.f32 %v2127_v36, %v10860_v35  ;;  %v2139_v22 = vmul.f32 %v10861_v32, %v7574_v20  ;;  %v1706_v5 = vadd.f32 %v1702_v9, %v1689_v28  ;;  %v2134_v45 = vadd.f32 %v2132_v14, %v2128_v11 }
 0x27d   : > { %v2179_v3 = vmul.f32 %v10862_v58, %v7574_v20  ;;  %v2180_v50 = vmul.f32 %v10862_v58, %v7600_v47  ;;  %v1723_v48 = vadd.f32 %v7514_v38, %v1705_v12  ;;  %v2184_v6 = vrot.slane %v2178_v34, 1 }
 0x27e   : > { %v2135_v16 = vadd.f32 %v2133_v17, %v2129_v13  ;;  %v2229_v36 = vmul.f32 %v10863_v23, %v7536_v53  ;;  %v1724_v8 = vadd.f32 %v7544_v54, %v1706_v5  ;;  %v2140_v27 = vadd.f32 %v2138_v2, %v2134_v45 }
 0x27f   : > { %v2185_v35 = vrot.slane %v2179_v3, 1  ;;  %v2187_v32 = vrot.slane %v2180_v50, 1  ;;  %v1740_v9 = vadd.f32 %v7705_v42, %v1723_v48  ;;  %v2230_v28 = vmul.f32 %v10863_v23, %v7574_v20 }
 0x280   : > { %v2141_v14 = vadd.f32 %v2139_v22, %v2135_v16  ;;  %v2231_v38 = vmul.f32 %v10863_v23, %v7600_v47  ;;  %v1741_v34 = vadd.f32 %v7708_v60, %v1724_v8  ;;  %v2157_v12 = vadd.f32 %v7519_v37, %v2140_v27 }
 0x281   : > { %v2186_v54 = vsel %vm1663_vm2, %v2184_v6, %v2185_v35  ;;  %v2188_v45 = vsel %vm1663_vm2, %v2185_v35, %v2187_v32  ;;  %v1757_v17 = vadd.f32 %v1752_v63, %v1740_v9  ;;  %v2235_v11 = vrot.slane %v2229_v36, 2 }
 0x282   : > { %v2158_v42 = vadd.f32 %v7549_v55, %v2141_v14  ;;  %v2236_v2 = vrot.slane %v2230_v28, 2  ;;  %v1758_v13 = vadd.f32 %v1754_v10, %v1741_v34  ;;  %v2174_v22 = vadd.f32 %v7713_v4, %v2157_v12 }
 0x283   : > { %v2238_v60 = vrot.slane %v2231_v38, 2  ;;  %v10866_v37 = vstv %s7253_s23  ;;  %v7974_v5 = vadd.f32 %v1761_v15, %v1757_v17  ;;  %v10868_v16 = vstv %s10864_s10  ;;  %v10876_v17 = vld [vmem:[#allocation60_spill] sm:$0xff]  ;;  %s8143_s23 = sld [smem:[#allocation6 + $0x288]]  ;;  %s8435_s10 = sld [smem:[#allocation6 + $0x38c]] }
 0x284   : > { %v2246_v58 = vmul.f32 %v10866_v37, %v7538_v31  ;;  %v2175_v63 = vadd.f32 %v7720_v19, %v2158_v42  ;;  %v2237_v55 = vsel %vm1715_vm3, %v2235_v11, %v2236_v2  ;;  %v10867_v3 = vmov %v10866_v37 }
 0x285   : > { %v2247_v50 = vmul.f32 %v10867_v3, %v7576_v51  ;;  %v7981_v10 = vadd.f32 %v1762_v61, %v1758_v13  ;;  %v2191_v4 = vadd.f32 %v2186_v54, %v2174_v22  ;;  %v2239_v48 = vsel %vm1715_vm3, %v2236_v2, %v2238_v60  ;;  %v10877_v22 = vld [vmem:[#allocation61_spill] sm:$0xff] }
 0x286   : > { %v2611_v6 = vmul.f32 %v10868_v16, %v7447_v43  ;;  %v2192_v23 = vadd.f32 %v2188_v45, %v2175_v63  ;;  %v10869_v15 = vmov %v10868_v16  ;;  %v10870_v19 = vstv %s7240_s11  ;;  %s8188_s11 = sld [smem:[#allocation6 + $0x302]] }
 0x287   : > { %v2612_v36 = vmul.f32 %v10869_v15, %v7477_v21  ;;  %v2617_v8 = vmul.f32 %v10870_v19, %v7449_v44  ;;  %v10871_v27 = vmov %v10870_v19  ;;  %v2208_v32 = vadd.f32 %v7524_v39, %v2191_v4 }
 0x288   : > { %v2618_v35 = vmul.f32 %v10871_v27, %v7479_v24  ;;  %v10872_v61 = vstv %s10865_s29  ;;  %v10873_v14 = vstv %s7269_s27  ;;  %v2209_v12 = vadd.f32 %v7552_v29, %v2192_v23  ;;  %s8179_s27 = sld [smem:[#allocation6 + $0x289]]  ;;  %s8459_s29 = sld [smem:[#allocation6 + $0x38f]] }
 0x289   : > { %v2613_v9 = vadd.f32 %v2611_v6, %v10872_v61  ;;  %v2623_v28 = vmul.f32 %v10873_v14, %v7536_v53  ;;  %v10874_v38 = vmov %v10873_v14  ;;  %v10875_v54 = vmov %v10872_v61 }
 0x28a   : > { %v2624_v34 = vmul.f32 %v10874_v38, %v7574_v20  ;;  %v2614_v45 = vadd.f32 %v2612_v36, %v10875_v54  ;;  %v2663_v42 = vmul.f32 %v10876_v17, %v7536_v53  ;;  %v2664_v11 = vmul.f32 %v10876_v17, %v7574_v20 }
 0x28b   : > { %v2225_v39 = vadd.f32 %v7731_v1, %v2208_v32  ;;  %v2619_v2 = vadd.f32 %v2617_v8, %v2613_v9  ;;  %v2665_v13 = vmul.f32 %v10876_v17, %v7600_v47  ;;  %v2714_v60 = vmul.f32 %v10877_v22, %v7536_v53  ;;  %v10878_v8 = vld [vmem:[#allocation66_spill] sm:$0xff] }
 0x28c   : > { %v2226_v37 = vadd.f32 %v7736_v0, %v2209_v12  ;;  %v2620_v29 = vadd.f32 %v2618_v35, %v2614_v45  ;;  %v2669_v63 = vrot.slane %v2663_v42, 1  ;;  %v2670_v3 = vrot.slane %v2664_v11, 1 }
 0x28d   : > { %v2242_v4 = vadd.f32 %v2237_v55, %v2225_v39  ;;  %v2625_v16 = vadd.f32 %v2623_v28, %v2619_v2  ;;  %v2672_v6 = vrot.slane %v2665_v13, 1  ;;  %v2715_v1 = vmul.f32 %v10877_v22, %v7574_v20 }
 0x28e   : > { %v2243_v23 = vadd.f32 %v2239_v48, %v2226_v37  ;;  %v2626_v15 = vadd.f32 %v2624_v34, %v2620_v29  ;;  %v2671_v36 = vsel %vm1663_vm2, %v2669_v63, %v2670_v3  ;;  %v2716_v19 = vmul.f32 %v10877_v22, %v7600_v47 }
 0x28f   : > { %v8023_v0 = vadd.f32 %v2246_v58, %v2242_v4  ;;  %v2642_v55 = vadd.f32 %v10878_v8, %v2625_v16  ;;  %v2673_v27 = vsel %vm1663_vm2, %v2670_v3, %v2672_v6  ;;  %v2720_v35 = vrot.slane %v2714_v60, 2  ;;  %v10889_v6 = vld [vmem:[#allocation67_spill] sm:$0xff] }
 0x290   : > { %v8027_v32 = vadd.f32 %v2247_v50, %v2243_v23  ;;  %v2643_v48 = vadd.f32 %v7558_v49, %v2626_v15  ;;  %v2721_v61 = vrot.slane %v2715_v1, 2  ;;  %v2723_v9 = vrot.slane %v2716_v19, 2  ;;  %v10890_v15 = vld [vmem:[#allocation62_spill] sm:$0xff] }
 0x291   : > { %v2659_v58 = vadd.f32 %v7741_v62, %v2642_v55  ;;  %v10879_v14 = vstv %s10783_s2  ;;  %v10881_v12 = vstv %s7248_s5  ;;  %v10883_v62 = vstv %s10779_s0  ;;  %s8130_s5 = sld [smem:[#allocation6 + $0x282]]  ;;  %s8241_s2 = sld [smem:[#allocation7 + $0x7]] }
 0x292   : > { %v2731_v28 = vmul.f32 %v10879_v14, %v7538_v31  ;;  %v10880_v38 = vmov %v10879_v14  ;;  %v3096_v54 = vmul.f32 %v10881_v12, %v7447_v43  ;;  %v2660_v50 = vadd.f32 %v7744_v40, %v2643_v48  ;;  %s8330_s0 = sld [smem:[#allocation6 + $0x10f]] }
 0x293   : > { %v2732_v34 = vmul.f32 %v10880_v38, %v7576_v51  ;;  %v2722_v49 = vsel %vm1715_vm3, %v2720_v35, %v2721_v61  ;;  %v2724_v45 = vsel %vm1715_vm3, %v2721_v61, %v2723_v9  ;;  %v10882_v17 = vmov %v10881_v12  ;;  %v10891_v35 = vld [vmem:[#allocation63_spill] sm:$0xff] }
 0x294   : > { %v3097_v42 = vmul.f32 %v10882_v17, %v7477_v21  ;;  %v2676_v11 = vadd.f32 %v2671_v36, %v2659_v58  ;;  %v3098_v39 = vadd.f32 %v3096_v54, %v10883_v62  ;;  %v10884_v2 = vstv %s7255_s20  ;;  %s8132_s20 = sld [smem:[#allocation6 + $0x285]] }
 0x295   : > { %v3102_v13 = vmul.f32 %v10884_v2, %v7449_v44  ;;  %v10885_v22 = vmov %v10884_v2  ;;  %v2677_v37 = vadd.f32 %v2673_v27, %v2660_v50  ;;  %v10886_v29 = vmov %v10883_v62 }
 0x296   : > { %v3103_v60 = vmul.f32 %v10885_v22, %v7479_v24  ;;  %v3099_v63 = vadd.f32 %v3097_v42, %v10886_v29  ;;  %v10887_v40 = vstv %s10784_s7  ;;  %v2693_v1 = vadd.f32 %v10889_v6, %v2676_v11  ;;  %s8253_s7 = sld [smem:[#allocation6 + $0x385]] }
 0x297   : > { %v3108_v3 = vmul.f32 %v10887_v40, %v7536_v53  ;;  %v10888_v4 = vmov %v10887_v40  ;;  %v3104_v23 = vadd.f32 %v3102_v13, %v3098_v39  ;;  %v3148_v36 = vmul.f32 %v10890_v15, %v7536_v53 }
 0x298   : > { %v3109_v16 = vmul.f32 %v10888_v4, %v7574_v20  ;;  %v3149_v19 = vmul.f32 %v10890_v15, %v7574_v20  ;;  %v2694_v8 = vadd.f32 %v7566_v30, %v2677_v37  ;;  %v3105_v55 = vadd.f32 %v3103_v60, %v3099_v63 }
 0x299   : > { %v3150_v27 = vmul.f32 %v10890_v15, %v7600_v47  ;;  %v3199_v48 = vmul.f32 %v10891_v35, %v7536_v53  ;;  %v2710_v61 = vadd.f32 %v7749_v7, %v2693_v1  ;;  %v3110_v9 = vadd.f32 %v3108_v3, %v3104_v23 }
 0x29a   : > { %v3154_v58 = vrot.slane %v3148_v36, 1  ;;  %v3155_v14 = vrot.slane %v3149_v19, 1  ;;  %v2711_v38 = vadd.f32 %v7756_v26, %v2694_v8  ;;  %v3111_v12 = vadd.f32 %v3109_v16, %v3105_v55 }
 0x29b   : > { %v3157_v54 = vrot.slane %v3150_v27, 1  ;;  %v3200_v30 = vmul.f32 %v10891_v35, %v7574_v20  ;;  %v2727_v50 = vadd.f32 %v2722_v49, %v2710_v61  ;;  %v3127_v17 = vadd.f32 %v7555_v46, %v3110_v9 }
 0x29c   : > { %v3156_v42 = vsel %vm1663_vm2, %v3154_v58, %v3155_v14  ;;  %v3201_v7 = vmul.f32 %v10891_v35, %v7600_v47  ;;  %v2728_v11 = vadd.f32 %v2724_v45, %v2711_v38  ;;  %v3128_v62 = vadd.f32 %v7579_v57, %v3111_v12  ;;  %v10902_v58 = vld [vmem:[#allocation64_spill] sm:$0xff] }
 0x29d   : > { %v3158_v26 = vsel %vm1663_vm2, %v3155_v14, %v3157_v54  ;;  %v3205_v39 = vrot.slane %v3199_v48, 2  ;;  %v8082_v2 = vadd.f32 %v2731_v28, %v2727_v50  ;;  %v3144_v49 = vadd.f32 %v7767_v33, %v3127_v17 }
 0x29e   : > { %v3206_v46 = vrot.slane %v3200_v30, 2  ;;  %v3208_v13 = vrot.slane %v3201_v7, 2  ;;  %v8085_v22 = vadd.f32 %v2732_v34, %v2728_v11  ;;  %v3145_v45 = vadd.f32 %v7772_v41, %v3128_v62  ;;  %v10903_v30 = vld [vmem:[#allocation65_spill] sm:$0xff] }
 0x29f   : > { %v10892_v57 = vstv %s7365_s30  ;;  %v3161_v28 = vadd.f32 %v3156_v42, %v3144_v49  ;;  %v10894_v40 = vstv %s7271_s4  ;;  %v10896_v41 = vstv %s10785_s13  ;;  %s8195_s4 = sld [smem:[#allocation6 + $0x305]]  ;;  %s8267_s13 = sld [smem:[#allocation6 + $0x388]] }
 0x2a0   : > { %v3216_v60 = vmul.f32 %v10892_v57, %v7538_v31  ;;  %v10893_v37 = vmov %v10892_v57  ;;  %v3207_v63 = vsel %vm1715_vm3, %v3205_v39, %v3206_v46  ;;  %v3209_v33 = vsel %vm1715_vm3, %v3206_v46, %v3208_v13  ;;  %s8284_s30 = sld [smem:[#allocation6 + $0x389]] }
 0x2a1   : > { %v3217_v29 = vmul.f32 %v10893_v37, %v7576_v51  ;;  %v3581_v3 = vmul.f32 %v10894_v40, %v7447_v43  ;;  %v3162_v4 = vadd.f32 %v3158_v26, %v3145_v45  ;;  %v10895_v34 = vmov %v10894_v40 }
 0x2a2   : > { %v3582_v16 = vmul.f32 %v10895_v34, %v7477_v21  ;;  %v3587_v6 = vmul.f32 %v10896_v41, %v7449_v44  ;;  %v10897_v1 = vmov %v10896_v41  ;;  %v3178_v15 = vadd.f32 %v7563_v56, %v3161_v28 }
 0x2a3   : > { %v3588_v23 = vmul.f32 %v10897_v1, %v7479_v24  ;;  %v10898_v36 = vstv %s7303_s6  ;;  %v10899_v8 = vstv %s7379_s28  ;;  %v3179_v48 = vadd.f32 %v7588_v25, %v3162_v4  ;;  %s8197_s6 = sld [smem:[#allocation6 + $0x308]]  ;;  %s8297_s28 = sld [smem:[#allocation6 + $0xf]] }
 0x2a4   : > { %v3583_v19 = vadd.f32 %v3581_v3, %v10898_v36  ;;  %v3593_v55 = vmul.f32 %v10899_v8, %v7536_v53  ;;  %v10900_v27 = vmov %v10899_v8  ;;  %v10901_v61 = vmov %v10898_v36  ;;  %v10905_v3 = vld [vmem:[#allocation84_spill] sm:$0xff] }
 0x2a5   : > { %v3594_v35 = vmul.f32 %v10900_v27, %v7574_v20  ;;  %v3584_v9 = vadd.f32 %v3582_v16, %v10901_v61  ;;  %v3633_v14 = vmul.f32 %v10902_v58, %v7536_v53  ;;  %v3634_v38 = vmul.f32 %v10902_v58, %v7574_v20 }
 0x2a6   : > { %v3195_v56 = vadd.f32 %v7777_v59, %v3178_v15  ;;  %v3589_v12 = vadd.f32 %v3587_v6, %v3583_v19  ;;  %v3635_v54 = vmul.f32 %v10902_v58, %v7600_v47  ;;  %v3684_v50 = vmul.f32 %v10903_v30, %v7536_v53 }
 0x2a7   : > { %v3196_v17 = vadd.f32 %v7780_v52, %v3179_v48  ;;  %v3590_v25 = vadd.f32 %v3588_v23, %v3584_v9  ;;  %v3639_v42 = vrot.slane %v3633_v14, 1  ;;  %v3640_v7 = vrot.slane %v3634_v38, 1 }
 0x2a8   : > { %v3212_v11 = vadd.f32 %v3207_v63, %v3195_v56  ;;  %v3595_v62 = vadd.f32 %v3593_v55, %v3589_v12  ;;  %v3642_v26 = vrot.slane %v3635_v54, 1  ;;  %v3685_v59 = vmul.f32 %v10903_v30, %v7574_v20  ;;  %v10904_v63 = vld [vmem:[#allocation68_spill] sm:$0xff] }
 0x2a9   : > { %v3213_v39 = vadd.f32 %v3209_v33, %v3196_v17  ;;  %v3596_v49 = vadd.f32 %v3594_v35, %v3590_v25  ;;  %v3641_v52 = vsel %vm1663_vm2, %v3639_v42, %v3640_v7  ;;  %v3686_v46 = vmul.f32 %v10903_v30, %v7600_v47  ;;  %v10915_v30 = vld [vmem:[#allocation69_spill] sm:$0xff] }
 0x2aa   : > { %v8139_v13 = vadd.f32 %v3216_v60, %v3212_v11  ;;  %v3612_v45 = vadd.f32 %v7593_v18, %v3595_v62  ;;  %v3643_v57 = vsel %vm1663_vm2, %v3640_v7, %v3642_v26  ;;  %v3690_v37 = vrot.slane %v3684_v50, 2  ;;  %v10916_v7 = vld [vmem:[#allocation70_spill] sm:$0xff] }
 0x2ab   : > { %v8145_v28 = vadd.f32 %v3217_v29, %v3213_v39  ;;  %v3613_v33 = vadd.f32 %v10904_v63, %v3596_v49  ;;  %v3691_v40 = vrot.slane %v3685_v59, 2  ;;  %v3693_v60 = vrot.slane %v3686_v46, 2  ;;  %v10909_v29 = vld [vmem:[#allocation85_spill] sm:$0xff]  ;;  %v10917_v39 = vld [vmem:[#allocation86_spill] sm:$0xff] }
 0x2ac   : > { %v3629_v4 = vadd.f32 %v10905_v3, %v3612_v45  ;;  %v10906_v18 = vstv %s7395_s1  ;;  %v10908_v6 = vstv %s10786_s14  ;;  %v10911_v27 = vstv %s10790_s22  ;;  %v10919_v3 = vld [vmem:[#allocation71_spill] sm:$0xff]  ;;  %s8231_s1 = sld [smem:[#allocation6 + $0x309]]  ;;  %s8356_s22 = sld [smem:[#allocation6 + $0x18f]] }
 0x2ad   : > { %v3701_v34 = vmul.f32 %v10906_v18, %v7538_v31  ;;  %v10907_v16 = vmov %v10906_v18  ;;  %v4066_v1 = vmul.f32 %v10908_v6, %v7447_v43  ;;  %v3630_v23 = vadd.f32 %v10909_v29, %v3613_v33  ;;  %s8247_s14 = sld [smem:[#allocation6 + $0x381]] }
 0x2ae   : > { %v3702_v41 = vmul.f32 %v10907_v16, %v7576_v51  ;;  %v3692_v15 = vsel %vm1715_vm3, %v3690_v37, %v3691_v40  ;;  %v3694_v36 = vsel %vm1715_vm3, %v3691_v40, %v3693_v60  ;;  %v10910_v19 = vmov %v10908_v6 }
 0x2af   : > { %v4067_v8 = vmul.f32 %v10910_v19, %v7477_v21  ;;  %v3646_v55 = vadd.f32 %v3641_v52, %v3629_v4  ;;  %v4068_v35 = vadd.f32 %v4066_v1, %v10911_v27  ;;  %v10912_v48 = vstv %s7367_s9  ;;  %v10920_v1 = vld [vmem:[#allocation72_spill] sm:$0xff]  ;;  %s8286_s9 = sld [smem:[#allocation6 + $0xc]] }
 0x2b0   : > { %v4072_v61 = vmul.f32 %v10912_v48, %v7449_v44  ;;  %v10913_v9 = vmov %v10912_v48  ;;  %v3647_v14 = vadd.f32 %v3643_v57, %v3630_v23  ;;  %v10914_v38 = vmov %v10911_v27  ;;  %v10918_v57 = vld [vmem:[#allocation87_spill] sm:$0xff]  ;;  %v10922_v48 = vld [vmem:[#allocation89_spill] sm:$0xff] }
 0x2b1   : > { %v4073_v58 = vmul.f32 %v10913_v9, %v7479_v24  ;;  %v4069_v56 = vadd.f32 %v4067_v8, %v10914_v38  ;;  %v4077_v12 = vstv %s8130_s5  ;;  %v4117_v54 = vstv %s8132_s20  ;;  %s8461_s5 = sld [smem:[#allocation6 + $0xa]]  ;;  %s8478_s20 = sld [smem:[#allocation6 + $0xb]] }
 0x2b2   : > { %v3663_v50 = vadd.f32 %v10915_v30, %v3646_v55  ;;  %v4074_v17 = vadd.f32 %v4072_v61, %v4068_v35  ;;  %v4078_v25 = vmul.f32 %v4077_v12, %v7536_v53  ;;  %v4079_v42 = vmul.f32 %v4077_v12, %v7574_v20 }
 0x2b3   : > { %v3664_v11 = vadd.f32 %v10916_v7, %v3647_v14  ;;  %v4075_v62 = vadd.f32 %v4073_v58, %v4069_v56  ;;  %v4118_v26 = vmul.f32 %v4117_v54, %v7536_v53  ;;  %v4119_v59 = vmul.f32 %v4117_v54, %v7574_v20 }
 0x2b4   : > { %v3680_v49 = vadd.f32 %v10917_v39, %v3663_v50  ;;  %v4080_v52 = vadd.f32 %v4078_v25, %v4074_v17  ;;  %v4120_v46 = vmul.f32 %v4117_v54, %v7600_v47  ;;  %v4168_v45 = vstv %s8143_s23  ;;  %v8214_v17 = vpop.f32.mrb[28].mxu1  ;;  %v10924_v25 = vld [vmem:[#allocation73_spill] sm:$0xff]  ;;  %s8488_s23 = sld [smem:[#allocation6 + $0xd]] }
 0x2b5   : > { %v3681_v37 = vadd.f32 %v10918_v57, %v3664_v11  ;;  %v4081_v63 = vadd.f32 %v4079_v42, %v4075_v62  ;;  %v4124_v33 = vrot.slane %v4118_v26, 1  ;;  %v4125_v40 = vrot.slane %v4119_v59, 1  ;;  %v6270_v39 = vpop.f32.mrb[29].mxu1 }
 0x2b6   : > { %v3697_v60 = vadd.f32 %v3692_v15, %v3680_v49  ;;  %v4097_v4 = vadd.f32 %v10919_v3, %v4080_v52  ;;  %v4127_v18 = vrot.slane %v4120_v46, 1  ;;  %v4169_v16 = vmul.f32 %v4168_v45, %v7536_v53  ;;  %v10921_v15 = vld [vmem:[#allocation88_spill] sm:$0xff]  ;;  %v10927_v49 = vld [vmem:[#allocation74_spill] sm:$0xff] }
 0x2b7   : > { %v3698_v6 = vadd.f32 %v3694_v36, %v3681_v37  ;;  %v4098_v29 = vadd.f32 %v10920_v1, %v4081_v63  ;;  %v4126_v23 = vsel %vm1663_vm2, %v4124_v33, %v4125_v40  ;;  %v4170_v19 = vmul.f32 %v4168_v45, %v7574_v20  ;;  %v10930_v33 = vld [vmem:[#allocation90_spill] sm:$0xff] }
 0x2b8   : > { %v8199_v8 = vadd.f32 %v3701_v34, %v3697_v60  ;;  %v4114_v55 = vadd.f32 %v10921_v15, %v4097_v4  ;;  %v4128_v27 = vsel %vm1663_vm2, %v4125_v40, %v4127_v18  ;;  %v4171_v36 = vmul.f32 %v4168_v45, %v7600_v47 }
 0x2b9   : > { %v8204_v35 = vadd.f32 %v3702_v41, %v3698_v6  ;;  %v4115_v61 = vadd.f32 %v10922_v48, %v4098_v29  ;;  %v4175_v9 = vrot.slane %v4169_v16, 2  ;;  %v4176_v58 = vrot.slane %v4170_v19, 2  ;;  %v10932_v16 = vld [vmem:[#allocation91_spill] sm:$0xff] }
 0x2ba   : > { %v4131_v14 = vadd.f32 %v4126_v23, %v4114_v55  ;;  %v4178_v38 = vrot.slane %v4171_v36, 2  ;;  %v4185_v34 = vstv %s8179_s27  ;;  %v10923_v56 = vstv %s7381_s12  ;;  %s8307_s12 = sld [smem:[#allocation6 + $0x8c]]  ;;  %s8493_s27 = sld [smem:[#allocation6 + $0x10]] }
 0x2bb   : > { %v4551_v12 = vmul.f32 %v10923_v56, %v7447_v43  ;;  %v4132_v54 = vadd.f32 %v4128_v27, %v4115_v61  ;;  %v4177_v30 = vsel %vm1715_vm3, %v4175_v9, %v4176_v58  ;;  %v4186_v41 = vmul.f32 %v4185_v34, %v7538_v31 }
 0x2bc   : > { %v4187_v50 = vmul.f32 %v4185_v34, %v7576_v51  ;;  %v4148_v42 = vadd.f32 %v10924_v25, %v4131_v14  ;;  %v4179_v7 = vsel %vm1715_vm3, %v4176_v58, %v4178_v38  ;;  %v10925_v11 = vmov %v10923_v56 }
 0x2bd   : > { %v4552_v62 = vmul.f32 %v10925_v11, %v7477_v21  ;;  %v10926_v26 = vstv %s7397_s16  ;;  %v4149_v52 = vadd.f32 %v10927_v49, %v4132_v54  ;;  %v10928_v46 = vstv %s7407_s3  ;;  %s8243_s3 = sld [smem:[#allocation6 + $0x380]]  ;;  %s8251_s16 = sld [smem:[#allocation6 + $0x382]] }
 0x2be   : > { %v4553_v59 = vadd.f32 %v4551_v12, %v10926_v26  ;;  %v4557_v45 = vmul.f32 %v10928_v46, %v7449_v44  ;;  %v10929_v57 = vmov %v10928_v46  ;;  %v4562_v63 = vstv %s8188_s11  ;;  %v10933_v12 = vld [vmem:[#allocation75_spill] sm:$0xff]  ;;  %s8527_s11 = sld [smem:[#allocation6 + $0x8a]] }
 0x2bf   : > { %v4558_v37 = vmul.f32 %v10929_v57, %v7479_v24  ;;  %v4165_v40 = vadd.f32 %v10930_v33, %v4148_v42  ;;  %v10931_v60 = vmov %v10926_v26  ;;  %v4563_v4 = vmul.f32 %v4562_v63, %v7536_v53  ;;  %v10934_v42 = vld [vmem:[#allocation76_spill] sm:$0xff] }
 0x2c0   : > { %v4554_v3 = vadd.f32 %v4552_v62, %v10931_v60  ;;  %v4564_v18 = vmul.f32 %v4562_v63, %v7574_v20  ;;  %v4166_v6 = vadd.f32 %v10932_v16, %v4149_v52  ;;  %v4559_v1 = vadd.f32 %v4557_v45, %v4553_v59  ;;  %v10935_v26 = vld [vmem:[#allocation92_spill] sm:$0xff]  ;;  %v10936_v52 = vld [vmem:[#allocation93_spill] sm:$0xff] }
 0x2c1   : > { %v4602_v29 = vstv %s8195_s4  ;;  %v4653_v23 = vstv %s8197_s6  ;;  %v4182_v19 = vadd.f32 %v4177_v30, %v4165_v40  ;;  %v4670_v49 = vstv %s8231_s1  ;;  %s8529_s4 = sld [smem:[#allocation6 + $0x8b]]  ;;  %s8542_s6 = sld [smem:[#allocation6 + $0x8d]] }
 0x2c2   : > { %v4560_v15 = vadd.f32 %v4558_v37, %v4554_v3  ;;  %v4603_v55 = vmul.f32 %v4602_v29, %v7536_v53  ;;  %v4604_v27 = vmul.f32 %v4602_v29, %v7574_v20  ;;  %v4183_v36 = vadd.f32 %v4179_v7, %v4166_v6  ;;  %v10937_v6 = vld [vmem:[#allocation77_spill] sm:$0xff]  ;;  %s8544_s1 = sld [smem:[#allocation6 + $0x90]] }
 0x2c3   : > { %v4565_v48 = vadd.f32 %v4563_v4, %v4559_v1  ;;  %v4605_v61 = vmul.f32 %v4602_v29, %v7600_v47  ;;  %v4654_v9 = vmul.f32 %v4653_v23, %v7536_v53  ;;  %v8255_v58 = vadd.f32 %v4186_v41, %v4182_v19 }
 0x2c4   : > { %v4566_v14 = vadd.f32 %v4564_v18, %v4560_v15  ;;  %v4609_v38 = vrot.slane %v4603_v55, 1  ;;  %v4610_v34 = vrot.slane %v4604_v27, 1  ;;  %v8257_v56 = vadd.f32 %v4187_v50, %v4183_v36  ;;  %v10938_v15 = vld [vmem:[#allocation78_spill] sm:$0xff] }
 0x2c5   : > { %v4582_v54 = vadd.f32 %v10933_v12, %v4565_v48  ;;  %v4612_v30 = vrot.slane %v4605_v61, 1  ;;  %v4655_v25 = vmul.f32 %v4653_v23, %v7574_v20  ;;  %v4656_v62 = vmul.f32 %v4653_v23, %v7600_v47  ;;  %v10939_v61 = vld [vmem:[#allocation94_spill] sm:$0xff] }
 0x2c6   : > { %v4583_v7 = vadd.f32 %v10934_v42, %v4566_v14  ;;  %v4611_v11 = vsel %vm1663_vm2, %v4609_v38, %v4610_v34  ;;  %v4660_v41 = vrot.slane %v4654_v9, 2  ;;  %v4671_v57 = vmul.f32 %v4670_v49, %v7538_v31  ;;  %v10940_v38 = vld [vmem:[#allocation95_spill] sm:$0xff] }
 0x2c7   : > { %v4599_v59 = vadd.f32 %v10935_v26, %v4582_v54  ;;  %v4613_v39 = vsel %vm1663_vm2, %v4610_v34, %v4612_v30  ;;  %v4661_v50 = vrot.slane %v4655_v25, 2  ;;  %v4663_v45 = vrot.slane %v4656_v62, 2 }
 0x2c8   : > { %v4600_v46 = vadd.f32 %v10936_v52, %v4583_v7  ;;  %v4672_v37 = vmul.f32 %v4670_v49, %v7576_v51  ;;  %v5033_v40 = vstv %s8241_s2  ;;  %v5035_v60 = vstv %s8243_s3  ;;  %v10941_v52 = vld [vmem:[#allocation79_spill] sm:$0xff]  ;;  %s8560_s2 = sld [smem:[#allocation6 + $0x10a]]  ;;  %s8576_s3 = sld [smem:[#allocation6 + $0x10b]] }
 0x2c9   : > { %v4616_v63 = vadd.f32 %v4611_v11, %v4599_v59  ;;  %v4662_v33 = vsel %vm1715_vm3, %v4660_v41, %v4661_v50  ;;  %v4664_v4 = vsel %vm1715_vm3, %v4661_v50, %v4663_v45  ;;  %v5036_v18 = vmul.f32 %v5035_v60, %v7447_v43 }
 0x2ca   : > { %v4617_v3 = vadd.f32 %v4613_v39, %v4600_v46  ;;  %v5037_v16 = vmul.f32 %v5035_v60, %v7477_v21  ;;  %v5041_v29 = vstv %s8247_s14  ;;  %v5047_v23 = vstv %s8251_s16  ;;  %s8578_s14 = sld [smem:[#allocation6 + $0x10d]]  ;;  %s8588_s16 = sld [smem:[#allocation6 + $0x110]] }
 0x2cb   : > { %v4633_v1 = vadd.f32 %v10937_v6, %v4616_v63  ;;  %v5087_v19 = vstv %s8253_s7  ;;  %v5038_v27 = vadd.f32 %v5036_v18, %v5033_v40  ;;  %v5042_v48 = vmul.f32 %v5041_v29, %v7449_v44  ;;  %v10944_v6 = vld [vmem:[#allocation97_spill] sm:$0xff]  ;;  %s8594_s7 = sld [smem:[#allocation6 + $0x18a]] }
 0x2cc   : > { %v4634_v55 = vadd.f32 %v10938_v15, %v4617_v3  ;;  %v5039_v36 = vadd.f32 %v5037_v16, %v5033_v40  ;;  %v5043_v21 = vmul.f32 %v5041_v29, %v7479_v24  ;;  %v5048_v9 = vmul.f32 %v5047_v23, %v7536_v53 }
 0x2cd   : > { %v4650_v43 = vadd.f32 %v10939_v61, %v4633_v1  ;;  %v5049_v14 = vmul.f32 %v5047_v23, %v7574_v20  ;;  %v5044_v12 = vadd.f32 %v5042_v48, %v5038_v27  ;;  %v5088_v54 = vmul.f32 %v5087_v19, %v7536_v53  ;;  %v10945_v48 = vld [vmem:[#allocation83_spill] sm:$0xff] }
 0x2ce   : > { %v4651_v34 = vadd.f32 %v10940_v38, %v4634_v55  ;;  %v5089_v30 = vmul.f32 %v5087_v19, %v7574_v20  ;;  %v5045_v25 = vadd.f32 %v5043_v21, %v5039_v36  ;;  %v5090_v42 = vmul.f32 %v5087_v19, %v7600_v47  ;;  %v10946_v21 = vld [vmem:[#allocation81_spill] sm:$0xff] }
 0x2cf   : > { %v4667_v44 = vadd.f32 %v4662_v33, %v4650_v43  ;;  %v5138_v7 = vstv %s8267_s13  ;;  %v5050_v24 = vadd.f32 %v5048_v9, %v5044_v12  ;;  %v5094_v62 = vrot.slane %v5088_v54, 1  ;;  %v10942_v33 = vld [vmem:[#allocation80_spill] sm:$0xff]  ;;  %v10947_v12 = vld [vmem:[#allocation82_spill] sm:$0xff]  ;;  %s8614_s13 = sld [smem:[#allocation6 + $0x18b]] }
 0x2d0   : > { %v4668_v11 = vadd.f32 %v4664_v4, %v4651_v34  ;;  %v5095_v41 = vrot.slane %v5089_v30, 1  ;;  %v5051_v59 = vadd.f32 %v5049_v14, %v5045_v25  ;;  %v5097_v39 = vrot.slane %v5090_v42, 1  ;;  %v10943_v4 = vld [vmem:[#allocation96_spill] sm:$0xff]  ;;  %v10948_v42 = vld [vmem:[#allocation98_spill] sm:$0xff] }
 0x2d1   : > { %v8299_v26 = vadd.f32 %v4671_v57, %v4667_v44  ;;  %v5139_v50 = vmul.f32 %v5138_v7, %v7536_v53  ;;  %v5067_v46 = vadd.f32 %v10941_v52, %v5050_v24  ;;  %v5140_v63 = vmul.f32 %v5138_v7, %v7574_v20 }
 0x2d2   : > { %v8302_v49 = vadd.f32 %v4672_v37, %v4668_v11  ;;  %v5096_v45 = vsel %vm1663_vm2, %v5094_v62, %v5095_v41  ;;  %v5068_v40 = vadd.f32 %v10942_v33, %v5051_v59  ;;  %v5098_v57 = vsel %vm1663_vm2, %v5095_v41, %v5097_v39  ;;  %v10949_v41 = vld [vmem:[#allocation56_spill] sm:$0xff] }
 0x2d3   : > { %v5141_v60 = vmul.f32 %v5138_v7, %v7600_v47  ;;  %v5145_v3 = vrot.slane %v5139_v50, 2  ;;  %v5084_v18 = vadd.f32 %v10943_v4, %v5067_v46  ;;  %v5146_v53 = vrot.slane %v5140_v63, 2 }
 0x2d4   : > { %v5155_v37 = vstv %s8284_s30  ;;  %v1778_v16 = vstv %s8286_s9  ;;  %v5085_v1 = vadd.f32 %v10944_v6, %v5068_v40  ;;  %v1829_v43 = vstv %s8297_s28  ;;  %s8616_s30 = sld [smem:[#allocation6 + $0x18d]]  ;;  %s8626_s9 = sld [smem:[#allocation6 + $0x190]] }
 0x2d5   : > { %v5148_v29 = vrot.slane %v5141_v60, 2  ;;  %v5156_v20 = vmul.f32 %v5155_v37, %v7538_v31  ;;  %v5157_v23 = vmul.f32 %v5155_v37, %v7576_v51  ;;  %v5101_v19 = vadd.f32 %v5096_v45, %v5084_v18  ;;  %s8636_s28 = sld [smem:[#allocation6 + $0x20a]] }
 0x2d6   : > { %v5147_v15 = vsel %vm1715_vm3, %v5145_v3, %v5146_v53  ;;  %v1779_v47 = vmul.f32 %v1778_v16, %v7538_v31  ;;  %v1780_v55 = vmul.f32 %v1778_v16, %v7576_v51  ;;  %v5102_v27 = vadd.f32 %v5098_v57, %v5085_v1 }
 0x2d7   : > { %v5149_v36 = vsel %vm1715_vm3, %v5146_v53, %v5148_v29  ;;  %v1781_v61 = vmul.f32 %v1778_v16, %v10945_v48  ;;  %v5118_v9 = vadd.f32 %v10946_v21, %v5101_v19  ;;  %v1830_v34 = vmul.f32 %v1829_v43, %v7538_v31 }
 0x2d8   : > { %v1785_v14 = vrot.slane %v1779_v47, 1  ;;  %v1786_v38 = vrot.slane %v1780_v55, 1  ;;  %v5119_v54 = vadd.f32 %v10947_v12, %v5102_v27  ;;  %v1831_v44 = vmul.f32 %v1829_v43, %v7576_v51 }
 0x2d9   : > { %v1788_v30 = vrot.slane %v1781_v61, 1  ;;  %v1832_v25 = vmul.f32 %v1829_v43, %v10945_v48  ;;  %v5135_v7 = vadd.f32 %v10948_v42, %v5118_v9  ;;  %v1836_v24 = vrot.slane %v1830_v34, 2 }
 0x2da   : > { %v8337_v11 = vsel %vm1663_vm2, %v1785_v14, %v1786_v38  ;;  %v2263_v62 = vstv %s8307_s12  ;;  %v5136_v59 = vadd.f32 %v10949_v41, %v5119_v54  ;;  %v1837_v50 = vrot.slane %v1831_v44, 2  ;;  %s8652_s12 = sld [smem:[#allocation6 + $0x20b]] }
 0x2db   : > { %v8342_v39 = vsel %vm1663_vm2, %v1786_v38, %v1788_v30  ;;  %v1839_v52 = vrot.slane %v1832_v25, 2  ;;  %v5152_v46 = vadd.f32 %v5147_v15, %v5135_v7  ;;  %v2264_v45 = vmul.f32 %v2263_v62, %v7538_v31 }
 0x2dc   : > { %v2265_v63 = vmul.f32 %v2263_v62, %v7576_v51  ;;  %v2266_v33 = vmul.f32 %v2263_v62, %v10945_v48  ;;  %v5153_v40 = vadd.f32 %v5149_v36, %v5136_v59  ;;  %v8350_v57 = vsel %vm1715_vm3, %v1836_v24, %v1837_v50 }
 0x2dd   : > { %v8353_v60 = vsel %vm1715_vm3, %v1837_v50, %v1839_v52  ;;  %v2314_v3 = vstv %s8318_s24  ;;  %v8360_v4 = vadd.f32 %v5156_v20, %v5152_v46  ;;  %v2270_v18 = vrot.slane %v2264_v45, 1  ;;  %s8654_s24 = sld [smem:[#allocation6 + $0x20d]] }
 0x2de   : > { %v2271_v53 = vrot.slane %v2265_v63, 1  ;;  %v2273_v37 = vrot.slane %v2266_v33, 1  ;;  %v8362_v16 = vadd.f32 %v5157_v23, %v5153_v40  ;;  %v2315_v6 = vmul.f32 %v2314_v3, %v7538_v31 }
 0x2df   : > { %v2316_v1 = vmul.f32 %v2314_v3, %v7576_v51  ;;  %v2317_v29 = vmul.f32 %v2314_v3, %v10945_v48  ;;  %v2748_v47 = vstv %s8328_s15  ;;  %v2799_v20 = vstv %s8330_s0  ;;  %s8666_s15 = sld [smem:[#allocation6 + $0x210]]  ;;  %s8673_s0 = sld [smem:[#allocation6 + $0x28a]] }
 0x2e0   : > { %v8368_v19 = vsel %vm1663_vm2, %v2270_v18, %v2271_v53  ;;  %v8371_v15 = vsel %vm1663_vm2, %v2271_v53, %v2273_v37  ;;  %v2321_v55 = vrot.slane %v2315_v6, 2  ;;  %v2749_v23 = vmul.f32 %v2748_v47, %v7538_v31 }
 0x2e1   : > { %v2322_v27 = vrot.slane %v2316_v1, 2  ;;  %v2324_v36 = vrot.slane %v2317_v29, 2  ;;  %v2750_v61 = vmul.f32 %v2748_v47, %v7576_v51  ;;  %v2751_v43 = vmul.f32 %v2748_v47, %v10945_v48 }
 0x2e2   : > { %v2800_v21 = vmul.f32 %v2799_v20, %v7538_v31  ;;  %v2801_v9 = vmul.f32 %v2799_v20, %v7576_v51  ;;  %v2755_v34 = vrot.slane %v2749_v23, 1  ;;  %v2802_v12 = vmul.f32 %v2799_v20, %v10945_v48 }
 0x2e3   : > { %v8381_v14 = vsel %vm1715_vm3, %v2321_v55, %v2322_v27  ;;  %v8384_v38 = vsel %vm1715_vm3, %v2322_v27, %v2324_v36  ;;  %v2756_v54 = vrot.slane %v2750_v61, 1  ;;  %v2758_v30 = vrot.slane %v2751_v43, 1 }
 0x2e4   : > { %v2806_v44 = vrot.slane %v2800_v21, 2  ;;  %v2807_v25 = vrot.slane %v2801_v9, 2  ;;  %v2809_v42 = vrot.slane %v2802_v12, 2  ;;  %v3233_v7 = vstv %s8347_s8  ;;  %s8692_s8 = sld [smem:[#allocation6 + $0x28b]] }
 0x2e5   : > { %v3284_v24 = vstv %s8356_s22  ;;  %v3718_v62 = vstv %s8358_s19  ;;  %v8395_v41 = vsel %vm1663_vm2, %v2755_v34, %v2756_v54  ;;  %v8398_v59 = vsel %vm1663_vm2, %v2756_v54, %v2758_v30  ;;  %s8694_s22 = sld [smem:[#allocation6 + $0x28d]]  ;;  %s8704_s19 = sld [smem:[#allocation6 + $0x290]] }
 0x2e6   : > { %v8401_v50 = vsel %vm1715_vm3, %v2806_v44, %v2807_v25  ;;  %v3234_v52 = vmul.f32 %v3233_v7, %v7538_v31  ;;  %v8405_v46 = vsel %vm1715_vm3, %v2807_v25, %v2809_v42  ;;  %v3235_v45 = vmul.f32 %v3233_v7, %v7576_v51 }
 0x2e7   : > { %v3236_v63 = vmul.f32 %v3233_v7, %v10945_v48  ;;  %v3285_v33 = vmul.f32 %v3284_v24, %v7538_v31  ;;  %v3286_v3 = vmul.f32 %v3284_v24, %v7576_v51  ;;  %v3287_v18 = vmul.f32 %v3284_v24, %v10945_v48 }
 0x2e8   : > { %v3240_v40 = vrot.slane %v3234_v52, 1  ;;  %v3719_v53 = vmul.f32 %v3718_v62, %v7538_v31  ;;  %v3241_v37 = vrot.slane %v3235_v45, 1  ;;  %v3720_v29 = vmul.f32 %v3718_v62, %v7576_v51 }
 0x2e9   : > { %v3243_v6 = vrot.slane %v3236_v63, 1  ;;  %v3291_v1 = vrot.slane %v3285_v33, 2  ;;  %v3292_v47 = vrot.slane %v3286_v3, 2  ;;  %v3294_v20 = vrot.slane %v3287_v18, 2 }
 0x2ea   : > { %v3721_v55 = vmul.f32 %v3718_v62, %v10945_v48  ;;  %v3725_v27 = vrot.slane %v3719_v53, 1  ;;  %v8420_v36 = vsel %vm1663_vm2, %v3240_v40, %v3241_v37  ;;  %v3726_v61 = vrot.slane %v3720_v29, 1 }
 0x2eb   : > { %v8423_v23 = vsel %vm1663_vm2, %v3241_v37, %v3243_v6  ;;  %v3769_v43 = vstv %s8387_s25  ;;  %v8427_v21 = vsel %vm1715_vm3, %v3291_v1, %v3292_v47  ;;  %v8430_v9 = vsel %vm1715_vm3, %v3292_v47, %v3294_v20  ;;  %s8714_s25 = sld [smem:[#allocation6 + $0x30a]] }
 0x2ec   : > { %10950 = vst [vmem:[#allocation58_spill] sm:$0xff] %v8430_v9  ;;  %v3728_v34 = vrot.slane %v3721_v55, 1  ;;  %v3770_v12 = vmul.f32 %v3769_v43, %v7538_v31  ;;  %v8438_v54 = vsel %vm1663_vm2, %v3725_v27, %v3726_v61  ;;  %v3771_v30 = vmul.f32 %v3769_v43, %v7576_v51 }
 0x2ed   : > { %v3772_v44 = vmul.f32 %v3769_v43, %v10945_v48  ;;  %v4203_v25 = vstv %s8392_s18  ;;  %v4254_v33 = vstv %s8410_s21  ;;  %v4688_v27 = vstv %s8417_s26  ;;  %s8730_s18 = sld [smem:[#allocation6 + $0x30b]]  ;;  %s8732_s21 = sld [smem:[#allocation6 + $0x30d]] }
 0x2ee   : > { %v8444_v42 = vsel %vm1663_vm2, %v3726_v61, %v3728_v34  ;;  %v3776_v7 = vrot.slane %v3770_v12, 2  ;;  %v4204_v24 = vmul.f32 %v4203_v25, %v7538_v31  ;;  %v4205_v62 = vmul.f32 %v4203_v25, %v7576_v51  ;;  %s8742_s26 = sld [smem:[#allocation6 + $0x310]] }
 0x2ef   : > { %v3777_v52 = vrot.slane %v3771_v30, 2  ;;  %v3779_v45 = vrot.slane %v3772_v44, 2  ;;  %v4206_v63 = vmul.f32 %v4203_v25, %v10945_v48  ;;  %v4255_v18 = vmul.f32 %v4254_v33, %v7538_v31 }
 0x2f0   : > { %v4210_v40 = vrot.slane %v4204_v24, 1  ;;  %v4211_v3 = vrot.slane %v4205_v62, 1  ;;  %v4256_v53 = vmul.f32 %v4254_v33, %v7576_v51  ;;  %v4257_v29 = vmul.f32 %v4254_v33, %v10945_v48  ;;  %v8480_v24 = vpop.f32.mrb[30].mxu0  ;;  %v8482_v62 = vpop.f32.mrb[30].mxu1 }
 0x2f1   : > { %v8453_v37 = vsel %vm1715_vm3, %v3776_v7, %v3777_v52  ;;  %v8456_v6 = vsel %vm1715_vm3, %v3777_v52, %v3779_v45  ;;  %v4213_v1 = vrot.slane %v4206_v63, 1  ;;  %v4261_v20 = vrot.slane %v4255_v18, 2  ;;  %10954 = vst [vmem:[#allocation66_spill] sm:$0xff] %v8480_v24  ;;  %10955 = vst [vmem:[#allocation67_spill] sm:$0xff] %v8482_v62 }
 0x2f2   : > { %10951 = vst [vmem:[#allocation59_spill] sm:$0xff] %v8453_v37  ;;  %10952 = vst [vmem:[#allocation60_spill] sm:$0xff] %v8456_v6  ;;  %v8464_v47 = vsel %vm1663_vm2, %v4210_v40, %v4211_v3  ;;  %v4262_v55 = vrot.slane %v4256_v53, 2  ;;  %v4264_v43 = vrot.slane %v4257_v29, 2  ;;  %v4689_v34 = vmul.f32 %v4688_v27, %v7538_v31  ;;  %v6277_v40 = vpop.f32.mrb[31].mxu0 }
 0x2f3   : > { %v8468_v61 = vsel %vm1663_vm2, %v4211_v3, %v4213_v1  ;;  %v4690_v12 = vmul.f32 %v4688_v27, %v7576_v51  ;;  %v4691_v44 = vmul.f32 %v4688_v27, %v10945_v48  ;;  %v4739_v25 = vstv %s8433_s17  ;;  %v6290_v3 = vpop.f32.mrb[31].mxu1  ;;  %s8749_s17 = sld [smem:[#allocation6 + $0x38a]] }
 0x2f4   : > { %v8473_v30 = vsel %vm1715_vm3, %v4261_v20, %v4262_v55  ;;  %v5173_v7 = vstv %s8435_s10  ;;  %v8485_v52 = vsel %vm1715_vm3, %v4262_v55, %v4264_v43  ;;  %v4695_v45 = vrot.slane %v4689_v34, 1  ;;  %v8495_v20 = vpop.f32.mrb[32].mxu0  ;;  %v8497_v55 = vpop.f32.mrb[32].mxu1  ;;  %s8768_s10 = sld [smem:[#allocation6 + $0x38b]] }
 0x2f5   : > { %10953 = vst [vmem:[#allocation61_spill] sm:$0xff] %v8473_v30  ;;  %10956 = vst [vmem:[#allocation62_spill] sm:$0xff] %v8485_v52  ;;  %v4696_v63 = vrot.slane %v4690_v12, 1  ;;  %v4740_v33 = vmul.f32 %v4739_v25, %v7538_v31  ;;  %v4698_v18 = vrot.slane %v4691_v44, 1  ;;  %v4741_v53 = vmul.f32 %v4739_v25, %v7576_v51  ;;  %v6280_v44 = vpop.f32.mrb[33].mxu0 }
 0x2f6   : > { %v4742_v1 = vmul.f32 %v4739_v25, %v10945_v48  ;;  %v5174_v29 = vmul.f32 %v5173_v7, %v7538_v31  ;;  %10957 = vst [vmem:[#allocation63_spill] sm:$0xff] %v8495_v20  ;;  %10958 = vst [vmem:[#allocation64_spill] sm:$0xff] %v8497_v55  ;;  %v5175_v34 = vmul.f32 %v5173_v7, %v7576_v51  ;;  %v6293_v25 = vpop.f32.mrb[33].mxu1  ;;  %v8507_v20 = vpop.f32.mrb[34].mxu0  ;;  %v5224_v30 = vstv %s8459_s29  ;;  %s8770_s29 = sld [smem:[#allocation6 + $0x38d]] }
 0x2f7   : > { %v8500_v27 = vsel %vm1663_vm2, %v4695_v45, %v4696_v63  ;;  %v4746_v43 = vrot.slane %v4740_v33, 2  ;;  %v5176_v12 = vmul.f32 %v5173_v7, %v10945_v48  ;;  %v8505_v40 = vsel %vm1663_vm2, %v4696_v63, %v4698_v18  ;;  %10959 = vst [vmem:[#allocation65_spill] sm:$0xff] %v8507_v20  ;;  %v6283_v33 = vpop.f32.mrb[35].mxu0 }
 0x2f8   : > { %v4747_v3 = vrot.slane %v4741_v53, 2  ;;  %v4749_v62 = vrot.slane %v4742_v1, 2  ;;  %v5180_v24 = vrot.slane %v5174_v29, 1  ;;  %v5181_v52 = vrot.slane %v5175_v34, 1  ;;  %v10962_v34 = vld [vmem:[#allocation99_spill] sm:$0xff] }
 0x2f9   : > { %v5183_v55 = vrot.slane %v5176_v12, 1  ;;  %v1766_v45 = vstv %s8461_s5  ;;  %v5225_v63 = vmul.f32 %v5224_v30, %v7538_v31  ;;  %v5226_v18 = vmul.f32 %v5224_v30, %v7576_v51  ;;  %v10963_v12 = vld [vmem:[#allocation57_spill] sm:$0xff]  ;;  %s8780_s5 = sld [smem:[#allocation6 + $0x390]] }
 0x2fa   : > { %v8512_v6 = vsel %vm1715_vm3, %v4746_v43, %v4747_v3  ;;  %v8515_v7 = vsel %vm1715_vm3, %v4747_v3, %v4749_v62  ;;  %v8520_v53 = vsel %vm1663_vm2, %v5180_v24, %v5181_v52  ;;  %v5227_v29 = vmul.f32 %v5224_v30, %v10945_v48  ;;  %v10964_v3 = vld [vmem:[#allocation100_spill] sm:$0xff] }
 0x2fb   : > { %10960 = vst [vmem:[#allocation68_spill] sm:$0xff] %v8512_v6  ;;  %10961 = vst [vmem:[#allocation84_spill] sm:$0xff] %v8515_v7  ;;  %v8523_v1 = vsel %vm1663_vm2, %v5181_v52, %v5183_v55  ;;  %v1767_v43 = vmul.f32 %v1766_v45, %v10962_v34  ;;  %v5231_v62 = vrot.slane %v5225_v63, 2  ;;  %v5232_v31 = vrot.slane %v5226_v18, 2  ;;  %v10965_v55 = vld [vmem:[#allocation101_spill] sm:$0xff] }
 0x2fc   : > { %v1768_v51 = vmul.f32 %v1766_v45, %v10963_v12  ;;  %v1772_v44 = vstv %s8478_s20  ;;  %v5234_v24 = vrot.slane %v5227_v29, 2  ;;  %v1795_v20 = vstv %s8488_s23  ;;  %s8790_s20 = sld [smem:[#allocation6 + $0xe]]  ;;  %s8806_s23 = sld [smem:[#allocation6 + $0x11]] }
 0x2fd   : > { %v1769_v25 = vadd.f32 %v1767_v43, %v7974_v5  ;;  %v1773_v52 = vmul.f32 %v1772_v44, %v10964_v3  ;;  %v1774_v33 = vmul.f32 %v1772_v44, %v10965_v55  ;;  %v8537_v48 = vsel %vm1715_vm3, %v5231_v62, %v5232_v31  ;;  %v10968_v43 = vld [vmem:[#allocation102_spill] sm:$0xff] }
 0x2fe   : > { %10966 = vst [vmem:[#allocation85_spill] sm:$0xff] %v8537_v48  ;;  %v1770_v30 = vadd.f32 %v1768_v51, %v7981_v10  ;;  %v1846_v7 = vstv %s8493_s27  ;;  %v8547_v45 = vsel %vm1715_vm3, %v5232_v31, %v5234_v24  ;;  %v1796_v5 = vmul.f32 %v1795_v20, %v10962_v34  ;;  %s8816_s27 = sld [smem:[#allocation6 + $0x8e]] }
 0x2ff   : > { %10967 = vst [vmem:[#allocation69_spill] sm:$0xff] %v8547_v45  ;;  %v1775_v63 = vadd.f32 %v1773_v52, %v1769_v25  ;;  %v1797_v18 = vmul.f32 %v1795_v20, %v10963_v12  ;;  %v1798_v62 = vmul.f32 %v1795_v20, %v10968_v43  ;;  %v1847_v10 = vmul.f32 %v1846_v7, %v10962_v34 }
 0x300   : > { %v1776_v29 = vadd.f32 %v1774_v33, %v1770_v30  ;;  %v1848_v51 = vmul.f32 %v1846_v7, %v10963_v12  ;;  %v1802_v48 = vrot.slane %v1796_v5, 1  ;;  %v1849_v31 = vmul.f32 %v1846_v7, %v10968_v43 }
 0x301   : > { %v1792_v44 = vadd.f32 %v8337_v11, %v1775_v63  ;;  %v1803_v6 = vrot.slane %v1797_v18, 1  ;;  %v1805_v25 = vrot.slane %v1798_v62, 1  ;;  %v1853_v52 = vrot.slane %v1847_v10, 2 }
 0x302   : > { %v1793_v24 = vadd.f32 %v8342_v39, %v1776_v29  ;;  %v1854_v45 = vrot.slane %v1848_v51, 2  ;;  %v1856_v33 = vrot.slane %v1849_v31, 2  ;;  %v2251_v20 = vstv %s8527_s11  ;;  %s8818_s11 = sld [smem:[#allocation6 + $0x91]] }
 0x303   : > { %v1804_v37 = vsel %vm1663_vm2, %v1802_v48, %v1803_v6  ;;  %v2257_v30 = vstv %s8529_s4  ;;  %v1806_v11 = vsel %vm1663_vm2, %v1803_v6, %v1805_v25  ;;  %v2252_v39 = vmul.f32 %v2251_v20, %v10962_v34  ;;  %s8850_s4 = sld [smem:[#allocation6 + $0x10e]] }
 0x304   : > { %v8563_v63 = vadd.f32 %v1804_v37, %v1792_v44  ;;  %v8566_v7 = vsel %vm1715_vm3, %v1853_v52, %v1854_v45  ;;  %v8569_v5 = vadd.f32 %v1806_v11, %v1793_v24  ;;  %v8572_v48 = vsel %vm1715_vm3, %v1854_v45, %v1856_v33 }
 0x305   : > { %v2253_v18 = vmul.f32 %v2251_v20, %v10963_v12  ;;  %v2258_v29 = vmul.f32 %v2257_v30, %v10964_v3  ;;  %v2254_v37 = vadd.f32 %v2252_v39, %v8023_v0  ;;  %v2259_v6 = vmul.f32 %v2257_v30, %v10965_v55 }
 0x306   : > { %v2280_v62 = vstv %s8542_s6  ;;  %v2331_v10 = vstv %s8544_s1  ;;  %s8868_s6 = sld [smem:[#allocation6 + $0x111]]  ;;  %s8875_s1 = sld [smem:[#allocation6 + $0x18e]] }
 0x307   : > { %v2255_v51 = vadd.f32 %v2253_v18, %v8027_v32  ;;  %v2281_v44 = vmul.f32 %v2280_v62, %v10962_v34  ;;  %v2282_v45 = vmul.f32 %v2280_v62, %v10963_v12  ;;  %v2283_v31 = vmul.f32 %v2280_v62, %v10968_v43 }
 0x308   : > { %v2260_v24 = vadd.f32 %v2258_v29, %v2254_v37  ;;  %v2332_v25 = vmul.f32 %v2331_v10, %v10962_v34  ;;  %v2333_v0 = vmul.f32 %v2331_v10, %v10963_v12  ;;  %v2334_v52 = vmul.f32 %v2331_v10, %v10968_v43 }
 0x309   : > { %v2261_v33 = vadd.f32 %v2259_v6, %v2255_v51  ;;  %v2287_v20 = vrot.slane %v2281_v44, 1  ;;  %v2288_v30 = vrot.slane %v2282_v45, 1  ;;  %v2290_v32 = vrot.slane %v2283_v31, 1 }
 0x30a   : > { %v2277_v11 = vadd.f32 %v8368_v19, %v2260_v24  ;;  %v2338_v39 = vrot.slane %v2332_v25, 2  ;;  %v2339_v18 = vrot.slane %v2333_v0, 2  ;;  %v2341_v62 = vrot.slane %v2334_v52, 2 }
 0x30b   : > { %v2278_v29 = vadd.f32 %v8371_v15, %v2261_v33  ;;  %v2289_v37 = vsel %vm1663_vm2, %v2287_v20, %v2288_v30  ;;  %v2291_v9 = vsel %vm1663_vm2, %v2288_v30, %v2290_v32  ;;  %v2736_v10 = vstv %s8560_s2  ;;  %s8886_s2 = sld [smem:[#allocation6 + $0x191]] }
 0x30c   : > { %v8600_v6 = vadd.f32 %v2289_v37, %v2277_v11  ;;  %v8603_v51 = vsel %vm1715_vm3, %v2338_v39, %v2339_v18  ;;  %v8606_v19 = vsel %vm1715_vm3, %v2339_v18, %v2341_v62  ;;  %v2737_v44 = vmul.f32 %v2736_v10, %v10962_v34 }
 0x30d   : > { %v8609_v45 = vadd.f32 %v2291_v9, %v2278_v29  ;;  %v2738_v15 = vmul.f32 %v2736_v10, %v10963_v12  ;;  %v2742_v31 = vstv %s8576_s3  ;;  %v2765_v24 = vstv %s8578_s14  ;;  %s8900_s3 = sld [smem:[#allocation6 + $0x20e]]  ;;  %s8916_s14 = sld [smem:[#allocation6 + $0x211]] }
 0x30e   : > { %v2739_v25 = vadd.f32 %v2737_v44, %v8082_v2  ;;  %v2743_v0 = vmul.f32 %v2742_v31, %v10964_v3  ;;  %v2744_v52 = vmul.f32 %v2742_v31, %v10965_v55  ;;  %v2766_v33 = vmul.f32 %v2765_v24, %v10962_v34 }
 0x30f   : > { %v2740_v20 = vadd.f32 %v2738_v15, %v8085_v22  ;;  %v2767_v9 = vmul.f32 %v2765_v24, %v10963_v12  ;;  %v2768_v30 = vmul.f32 %v2765_v24, %v10968_v43  ;;  %v2816_v32 = vstv %s8588_s16  ;;  %s8927_s16 = sld [smem:[#allocation6 + $0x28e]] }
 0x310   : > { %v2745_v11 = vadd.f32 %v2743_v0, %v2739_v25  ;;  %v2772_v39 = vrot.slane %v2766_v33, 1  ;;  %v2817_v2 = vmul.f32 %v2816_v32, %v10962_v34  ;;  %v2818_v18 = vmul.f32 %v2816_v32, %v10963_v12 }
 0x311   : > { %v2746_v62 = vadd.f32 %v2744_v52, %v2740_v20  ;;  %v2773_v29 = vrot.slane %v2767_v9, 1  ;;  %v2775_v37 = vrot.slane %v2768_v30, 1  ;;  %v2819_v10 = vmul.f32 %v2816_v32, %v10968_v43 }
 0x312   : > { %v2762_v22 = vadd.f32 %v8395_v41, %v2745_v11  ;;  %v2823_v44 = vrot.slane %v2817_v2, 2  ;;  %v2824_v15 = vrot.slane %v2818_v18, 2  ;;  %v3221_v31 = vstv %s8594_s7  ;;  %s8940_s7 = sld [smem:[#allocation6 + $0x291]] }
 0x313   : > { %v2763_v24 = vadd.f32 %v8398_v59, %v2746_v62  ;;  %v2774_v25 = vsel %vm1663_vm2, %v2772_v39, %v2773_v29  ;;  %v2776_v0 = vsel %vm1663_vm2, %v2773_v29, %v2775_v37  ;;  %v2826_v33 = vrot.slane %v2819_v10, 2  ;;  %v8660_v29 = vpop.f32.mrb[34].mxu1 }
 0x314   : > { %v8638_v52 = vadd.f32 %v2774_v25, %v2762_v22  ;;  %v8641_v20 = vsel %vm1715_vm3, %v2823_v44, %v2824_v15  ;;  %v3222_v41 = vmul.f32 %v3221_v31, %v10962_v34  ;;  %v3223_v9 = vmul.f32 %v3221_v31, %v10963_v12  ;;  %10969 = vst [vmem:[#allocation70_spill] sm:$0xff] %v8660_v29 }
 0x315   : > { %v8645_v30 = vadd.f32 %v2776_v0, %v2763_v24  ;;  %v8648_v59 = vsel %vm1715_vm3, %v2824_v15, %v2826_v33  ;;  %v3227_v32 = vstv %s8614_s13  ;;  %v3250_v11 = vstv %s8616_s30  ;;  %v6296_v15 = vpop.f32.mrb[35].mxu1  ;;  %s8951_s13 = sld [smem:[#allocation6 + $0x30e]]  ;;  %s8968_s30 = sld [smem:[#allocation6 + $0x311]] }
 0x316   : > { %v3224_v39 = vadd.f32 %v3222_v41, %v8139_v13  ;;  %v3225_v2 = vadd.f32 %v3223_v9, %v8145_v28  ;;  %v3228_v18 = vmul.f32 %v3227_v32, %v10964_v3  ;;  %v3229_v62 = vmul.f32 %v3227_v32, %v10965_v55 }
 0x317   : > { %v3251_v37 = vmul.f32 %v3250_v11, %v10962_v34  ;;  %v3252_v10 = vmul.f32 %v3250_v11, %v10963_v12  ;;  %v3253_v22 = vmul.f32 %v3250_v11, %v10968_v43  ;;  %v3301_v44 = vstv %s8626_s9  ;;  %s8979_s9 = sld [smem:[#allocation6 + $0x38e]] }
 0x318   : > { %v3230_v31 = vadd.f32 %v3228_v18, %v3224_v39  ;;  %v3231_v13 = vadd.f32 %v3229_v62, %v3225_v2  ;;  %v3302_v28 = vmul.f32 %v3301_v44, %v10962_v34  ;;  %v3303_v24 = vmul.f32 %v3301_v44, %v10963_v12 }
 0x319   : > { %v3257_v25 = vrot.slane %v3251_v37, 1  ;;  %v3258_v0 = vrot.slane %v3252_v10, 1  ;;  %v3260_v33 = vrot.slane %v3253_v22, 1  ;;  %v3304_v41 = vmul.f32 %v3301_v44, %v10968_v43 }
 0x31a   : > { %v3247_v9 = vadd.f32 %v8420_v36, %v3230_v31  ;;  %v3248_v32 = vadd.f32 %v8423_v23, %v3231_v13  ;;  %v3308_v11 = vrot.slane %v3302_v28, 2  ;;  %v3309_v15 = vrot.slane %v3303_v24, 2 }
 0x31b   : > { %v3259_v39 = vsel %vm1663_vm2, %v3257_v25, %v3258_v0  ;;  %v3261_v2 = vsel %vm1663_vm2, %v3258_v0, %v3260_v33  ;;  %v3311_v18 = vrot.slane %v3304_v41, 2  ;;  %v3706_v62 = vstv %s8636_s28  ;;  %s8992_s28 = sld [smem:[#allocation6 + $0x391]] }
 0x31c   : > { %v8678_v37 = vadd.f32 %v3259_v39, %v3247_v9  ;;  %v8680_v10 = vadd.f32 %v3261_v2, %v3248_v32  ;;  %v8683_v36 = vsel %vm1715_vm3, %v3308_v11, %v3309_v15  ;;  %v3707_v23 = vmul.f32 %v3706_v62, %v10962_v34 }
 0x31d   : > { %v8687_v22 = vsel %vm1715_vm3, %v3309_v15, %v3311_v18  ;;  %v3708_v44 = vmul.f32 %v3706_v62, %v10963_v12  ;;  %v3712_v31 = vstv %s8652_s12  ;;  %v3735_v13 = vstv %s8654_s24  ;;  %s9003_s12 = sld [smem:[#allocation6 + $0x15]]  ;;  %s9020_s24 = sld [smem:[#allocation6 + $0x18]] }
 0x31e   : > { %v3709_v28 = vadd.f32 %v3707_v23, %v8199_v8  ;;  %v3713_v24 = vmul.f32 %v3712_v31, %v10964_v3  ;;  %v3714_v25 = vmul.f32 %v3712_v31, %v10965_v55  ;;  %v3736_v0 = vmul.f32 %v3735_v13, %v10962_v34 }
 0x31f   : > { %v3710_v33 = vadd.f32 %v3708_v44, %v8204_v35  ;;  %v3737_v41 = vmul.f32 %v3735_v13, %v10963_v12  ;;  %v3738_v9 = vmul.f32 %v3735_v13, %v10968_v43  ;;  %v3786_v32 = vstv %s8666_s15  ;;  %s9031_s15 = sld [smem:[#allocation6 + $0x95]] }
 0x320   : > { %v3715_v11 = vadd.f32 %v3713_v24, %v3709_v28  ;;  %v3742_v15 = vrot.slane %v3736_v0, 1  ;;  %v3787_v8 = vmul.f32 %v3786_v32, %v10962_v34  ;;  %v3788_v39 = vmul.f32 %v3786_v32, %v10963_v12 }
 0x321   : > { %v3716_v2 = vadd.f32 %v3714_v25, %v3710_v33  ;;  %v3743_v18 = vrot.slane %v3737_v41, 1  ;;  %v3745_v62 = vrot.slane %v3738_v9, 1  ;;  %v3789_v23 = vmul.f32 %v3786_v32, %v10968_v43 }
 0x322   : > { %v3732_v35 = vadd.f32 %v8438_v54, %v3715_v11  ;;  %v3793_v44 = vrot.slane %v3787_v8, 2  ;;  %v3794_v31 = vrot.slane %v3788_v39, 2  ;;  %v4191_v13 = vstv %s8673_s0  ;;  %s9043_s0 = sld [smem:[#allocation6 + $0x98]] }
 0x323   : > { %v3733_v29 = vadd.f32 %v8444_v42, %v3716_v2  ;;  %v3744_v28 = vsel %vm1663_vm2, %v3742_v15, %v3743_v18  ;;  %v3746_v24 = vsel %vm1663_vm2, %v3743_v18, %v3745_v62  ;;  %v3796_v0 = vrot.slane %v3789_v23, 2 }
 0x324   : > { %v8716_v25 = vadd.f32 %v3744_v28, %v3732_v35  ;;  %v8719_v33 = vsel %vm1715_vm3, %v3793_v44, %v3794_v31  ;;  %v4192_v54 = vmul.f32 %v4191_v13, %v10962_v34  ;;  %v4193_v41 = vmul.f32 %v4191_v13, %v10963_v12 }
 0x325   : > { %v8723_v9 = vadd.f32 %v3746_v24, %v3733_v29  ;;  %v8726_v42 = vsel %vm1715_vm3, %v3794_v31, %v3796_v0  ;;  %v4197_v32 = vstv %s8692_s8  ;;  %v4220_v11 = vstv %s8694_s22  ;;  %s9054_s8 = sld [smem:[#allocation6 + $0x115]]  ;;  %s9056_s22 = sld [smem:[#allocation6 + $0x118]] }
 0x326   : > { %v4194_v15 = vadd.f32 %v4192_v54, %v8255_v58  ;;  %v4195_v8 = vadd.f32 %v4193_v41, %v8257_v56  ;;  %v4198_v39 = vmul.f32 %v4197_v32, %v10964_v3  ;;  %v4199_v2 = vmul.f32 %v4197_v32, %v10965_v55 }
 0x327   : > { %v4221_v29 = vmul.f32 %v4220_v11, %v10962_v34  ;;  %v4222_v18 = vmul.f32 %v4220_v11, %v10963_v12  ;;  %v4223_v62 = vmul.f32 %v4220_v11, %v10968_v43  ;;  %v4271_v23 = vstv %s8704_s19  ;;  %s9074_s19 = sld [smem:[#allocation6 + $0x195]] }
 0x328   : > { %v4200_v35 = vadd.f32 %v4198_v39, %v4194_v15  ;;  %v4201_v44 = vadd.f32 %v4199_v2, %v4195_v8  ;;  %v4272_v58 = vmul.f32 %v4271_v23, %v10962_v34  ;;  %v4273_v56 = vmul.f32 %v4271_v23, %v10963_v12 }
 0x329   : > { %v4227_v31 = vrot.slane %v4221_v29, 1  ;;  %v4228_v13 = vrot.slane %v4222_v18, 1  ;;  %v4230_v28 = vrot.slane %v4223_v62, 1  ;;  %v4274_v24 = vmul.f32 %v4271_v23, %v10968_v43 }
 0x32a   : > { %v4217_v0 = vadd.f32 %v8464_v47, %v4200_v35  ;;  %v4218_v54 = vadd.f32 %v8468_v61, %v4201_v44  ;;  %v4278_v41 = vrot.slane %v4272_v58, 2  ;;  %v4279_v32 = vrot.slane %v4273_v56, 2 }
 0x32b   : > { %v4229_v11 = vsel %vm1663_vm2, %v4227_v31, %v4228_v13  ;;  %v4231_v15 = vsel %vm1663_vm2, %v4228_v13, %v4230_v28  ;;  %v4281_v8 = vrot.slane %v4274_v24, 2  ;;  %v4676_v39 = vstv %s8714_s25  ;;  %s9088_s25 = sld [smem:[#allocation6 + $0x198]] }
 0x32c   : > { %v8754_v2 = vadd.f32 %v4229_v11, %v4217_v0  ;;  %v8756_v29 = vadd.f32 %v4231_v15, %v4218_v54  ;;  %v8759_v47 = vsel %vm1715_vm3, %v4278_v41, %v4279_v32  ;;  %v4677_v61 = vmul.f32 %v4676_v39, %v10962_v34 }
 0x32d   : > { %v8763_v18 = vsel %vm1715_vm3, %v4279_v32, %v4281_v8  ;;  %v4678_v62 = vmul.f32 %v4676_v39, %v10963_v12  ;;  %v4682_v23 = vstv %s8730_s18  ;;  %v4705_v35 = vstv %s8732_s21  ;;  %s9093_s18 = sld [smem:[#allocation6 + $0x215]]  ;;  %s9102_s21 = sld [smem:[#allocation6 + $0x218]] }
 0x32e   : > { %v4679_v44 = vadd.f32 %v4677_v61, %v8299_v26  ;;  %v4683_v58 = vmul.f32 %v4682_v23, %v10964_v3  ;;  %v4684_v56 = vmul.f32 %v4682_v23, %v10965_v55  ;;  %v4706_v31 = vmul.f32 %v4705_v35, %v10962_v34 }
 0x32f   : > { %v4680_v13 = vadd.f32 %v4678_v62, %v8302_v49  ;;  %v4707_v28 = vmul.f32 %v4705_v35, %v10963_v12  ;;  %v4708_v24 = vmul.f32 %v4705_v35, %v10968_v43  ;;  %v4756_v0 = vstv %s8742_s26  ;;  %s9104_s26 = sld [smem:[#allocation6 + $0x295]] }
 0x330   : > { %v4685_v54 = vadd.f32 %v4683_v58, %v4679_v44  ;;  %v4712_v41 = vrot.slane %v4706_v31, 1  ;;  %v4757_v26 = vmul.f32 %v4756_v0, %v10962_v34  ;;  %v4758_v32 = vmul.f32 %v4756_v0, %v10963_v12 }
 0x331   : > { %v4686_v11 = vadd.f32 %v4684_v56, %v4680_v13  ;;  %v4713_v15 = vrot.slane %v4707_v28, 1  ;;  %v4715_v8 = vrot.slane %v4708_v24, 1  ;;  %v4759_v39 = vmul.f32 %v4756_v0, %v10968_v43 }
 0x332   : > { %v4702_v49 = vadd.f32 %v8500_v27, %v4685_v54  ;;  %v4763_v61 = vrot.slane %v4757_v26, 2  ;;  %v4764_v62 = vrot.slane %v4758_v32, 2  ;;  %v5161_v23 = vstv %s8749_s17  ;;  %s9134_s17 = sld [smem:[#allocation6 + $0x298]] }
 0x333   : > { %v4703_v35 = vadd.f32 %v8505_v40, %v4686_v11  ;;  %v4714_v44 = vsel %vm1663_vm2, %v4712_v41, %v4713_v15  ;;  %v4716_v58 = vsel %vm1663_vm2, %v4713_v15, %v4715_v8  ;;  %v4766_v31 = vrot.slane %v4759_v39, 2 }
 0x334   : > { %v8792_v56 = vadd.f32 %v4714_v44, %v4702_v49  ;;  %v8795_v13 = vsel %vm1715_vm3, %v4763_v61, %v4764_v62  ;;  %v5162_v27 = vmul.f32 %v5161_v23, %v10962_v34  ;;  %v5163_v28 = vmul.f32 %v5161_v23, %v10963_v12 }
 0x335   : > { %v8799_v24 = vadd.f32 %v4716_v58, %v4703_v35  ;;  %v8802_v40 = vsel %vm1715_vm3, %v4764_v62, %v4766_v31  ;;  %v5167_v0 = vstv %s8768_s10  ;;  %v5190_v54 = vstv %s8770_s29  ;;  %s9145_s10 = sld [smem:[#allocation6 + $0x315]]  ;;  %s9147_s29 = sld [smem:[#allocation6 + $0x318]] }
 0x336   : > { %v5164_v41 = vadd.f32 %v5162_v27, %v8360_v4  ;;  %v5165_v26 = vadd.f32 %v5163_v28, %v8362_v16  ;;  %v5168_v32 = vmul.f32 %v5167_v0, %v10964_v3  ;;  %v5169_v11 = vmul.f32 %v5167_v0, %v10965_v55 }
 0x337   : > { %v5191_v15 = vmul.f32 %v5190_v54, %v10962_v34  ;;  %v5192_v8 = vmul.f32 %v5190_v54, %v10963_v12  ;;  %v5193_v39 = vmul.f32 %v5190_v54, %v10968_v43  ;;  %v5241_v49 = vstv %s8780_s5  ;;  %v8825_v54 = vpop.f32.mrb[36].mxu0  ;;  %s9152_s5 = sld [smem:[#allocation6 + $0x395]] }
 0x338   : > { %v5170_v61 = vadd.f32 %v5168_v32, %v5164_v41  ;;  %v5171_v62 = vadd.f32 %v5169_v11, %v5165_v26  ;;  %v5242_v4 = vmul.f32 %v5241_v49, %v10962_v34  ;;  %v5243_v16 = vmul.f32 %v5241_v49, %v10963_v12  ;;  %v8827_v41 = vpop.f32.mrb[36].mxu1  ;;  %v6303_v11 = vpop.f32.mrb[37].mxu0 }
 0x339   : > { %v5197_v23 = vrot.slane %v5191_v15, 1  ;;  %v5198_v35 = vrot.slane %v5192_v8, 1  ;;  %v5200_v44 = vrot.slane %v5193_v39, 1  ;;  %v5244_v58 = vmul.f32 %v5241_v49, %v10968_v43  ;;  %10970 = vst [vmem:[#allocation86_spill] sm:$0xff] %v8827_v41  ;;  %v6316_v15 = vpop.f32.mrb[37].mxu1  ;;  %v8840_v39 = vpop.f32.mrb[38].mxu0 }
 0x33a   : > { %v5187_v31 = vadd.f32 %v8520_v53, %v5170_v61  ;;  %v5188_v27 = vadd.f32 %v8523_v1, %v5171_v62  ;;  %v5248_v28 = vrot.slane %v5242_v4, 2  ;;  %v5249_v0 = vrot.slane %v5243_v16, 2  ;;  %v8842_v49 = vpop.f32.mrb[38].mxu1 }
 0x33b   : > { %v5199_v34 = vsel %vm1663_vm2, %v5197_v23, %v5198_v35  ;;  %v5201_v12 = vsel %vm1663_vm2, %v5198_v35, %v5200_v44  ;;  %v5251_v26 = vrot.slane %v5244_v58, 2  ;;  %v1812_v32 = vstv %s8790_s20  ;;  %10971 = vst [vmem:[#allocation87_spill] sm:$0xff] %v8842_v49  ;;  %v6306_v23 = vpop.f32.mrb[39].mxu0  ;;  %v6319_v35 = vpop.f32.mrb[39].mxu1  ;;  %s9182_s20 = sld [smem:[#allocation6 + $0x398]] }
 0x33c   : > { %v8832_v43 = vadd.f32 %v5199_v34, %v5187_v31  ;;  %v8834_v53 = vadd.f32 %v5201_v12, %v5188_v27  ;;  %v8837_v1 = vsel %vm1715_vm3, %v5248_v28, %v5249_v0  ;;  %v1813_v8 = vmul.f32 %v1812_v32, %v10964_v3  ;;  %v8855_v28 = vpop.f32.mrb[40].mxu0 }
 0x33d   : > { %v8845_v61 = vsel %vm1715_vm3, %v5249_v0, %v5251_v26  ;;  %v1814_v62 = vmul.f32 %v1812_v32, %v10965_v55  ;;  %v1815_v4 = vmul.f32 %v1812_v32, %v8214_v17  ;;  %v1863_v16 = vstv %s8806_s23  ;;  %10972 = vst [vmem:[#allocation71_spill] sm:$0xff] %v8855_v28  ;;  %v6309_v11 = vpop.f32.mrb[41].mxu0  ;;  %s9193_s23 = sld [smem:[#allocation6 + $0x16]] }
 0x33e   : > { %v1819_v44 = vrot.slane %v1813_v8, 1  ;;  %v1864_v58 = vmul.f32 %v1863_v16, %v10964_v3  ;;  %v1865_v31 = vmul.f32 %v1863_v16, %v10965_v55  ;;  %v1866_v27 = vmul.f32 %v1863_v16, %v8214_v17 }
 0x33f   : > { %v1820_v0 = vrot.slane %v1814_v62, 1  ;;  %v1822_v34 = vrot.slane %v1815_v4, 1  ;;  %v2297_v12 = vstv %s8816_s27  ;;  %v2348_v26 = vstv %s8818_s11  ;;  %s9195_s27 = sld [smem:[#allocation6 + $0x19]]  ;;  %s9200_s11 = sld [smem:[#allocation6 + $0x96]] }
 0x340   : > { %v1870_v32 = vrot.slane %v1864_v58, 2  ;;  %v1871_v15 = vrot.slane %v1865_v31, 2  ;;  %v1873_v49 = vrot.slane %v1866_v27, 2  ;;  %v2298_v23 = vmul.f32 %v2297_v12, %v10964_v3 }
 0x341   : > { %v1821_v8 = vsel %vm1663_vm2, %v1819_v44, %v1820_v0  ;;  %v1823_v35 = vsel %vm1663_vm2, %v1820_v0, %v1822_v34  ;;  %v2299_v41 = vmul.f32 %v2297_v12, %v10965_v55  ;;  %v2300_v16 = vmul.f32 %v2297_v12, %v8214_v17 }
 0x342   : > { %v1826_v28 = vadd.f32 %v1821_v8, %v8563_v63  ;;  %v1827_v62 = vadd.f32 %v1823_v35, %v8569_v5  ;;  %v1872_v4 = vsel %vm1715_vm3, %v1870_v32, %v1871_v15  ;;  %v1874_v58 = vsel %vm1715_vm3, %v1871_v15, %v1873_v49 }
 0x343   : > { %v2304_v31 = vrot.slane %v2298_v23, 1  ;;  %v2305_v27 = vrot.slane %v2299_v41, 1  ;;  %v2307_v44 = vrot.slane %v2300_v16, 1  ;;  %v2349_v0 = vmul.f32 %v2348_v26, %v10964_v3 }
 0x344   : > { %v1843_v34 = vadd.f32 %v8350_v57, %v1826_v28  ;;  %v1844_v12 = vadd.f32 %v8353_v60, %v1827_v62  ;;  %v2350_v63 = vmul.f32 %v2348_v26, %v10965_v55  ;;  %v2351_v5 = vmul.f32 %v2348_v26, %v8214_v17 }
 0x345   : > { %v2306_v11 = vsel %vm1663_vm2, %v2304_v31, %v2305_v27  ;;  %v2308_v49 = vsel %vm1663_vm2, %v2305_v27, %v2307_v44  ;;  %v2355_v32 = vrot.slane %v2349_v0, 2  ;;  %v2782_v15 = vstv %s8850_s4  ;;  %s9230_s4 = sld [smem:[#allocation6 + $0x99]] }
 0x346   : > { %v1860_v41 = vadd.f32 %v8566_v7, %v1843_v34  ;;  %v1861_v23 = vadd.f32 %v8572_v48, %v1844_v12  ;;  %v2311_v57 = vadd.f32 %v2306_v11, %v8600_v6  ;;  %v2312_v60 = vadd.f32 %v2308_v49, %v8609_v45 }
 0x347   : > { %v2356_v28 = vrot.slane %v2350_v63, 2  ;;  %v2358_v8 = vrot.slane %v2351_v5, 2  ;;  %v2783_v26 = vmul.f32 %v2782_v15, %v10964_v3  ;;  %v2784_v35 = vmul.f32 %v2782_v15, %v10965_v55 }
 0x348   : > { %v8888_v16 = vadd.f32 %v1872_v4, %v1860_v41  ;;  %v8890_v62 = vadd.f32 %v1874_v58, %v1861_v23  ;;  %v2328_v7 = vadd.f32 %v8381_v14, %v2311_v57  ;;  %v2329_v48 = vadd.f32 %v8384_v38, %v2312_v60 }
 0x349   : > { %v2357_v6 = vsel %vm1715_vm3, %v2355_v32, %v2356_v28  ;;  %v2359_v45 = vsel %vm1715_vm3, %v2356_v28, %v2358_v8  ;;  %v2785_v31 = vmul.f32 %v2782_v15, %v8214_v17  ;;  %v2789_v27 = vrot.slane %v2783_v26, 1 }
 0x34a   : > { %v2345_v44 = vadd.f32 %v8603_v51, %v2328_v7  ;;  %v2346_v0 = vadd.f32 %v8606_v19, %v2329_v48  ;;  %v2790_v4 = vrot.slane %v2784_v35, 1  ;;  %v2833_v34 = vstv %s8868_s6  ;;  %s9241_s6 = sld [smem:[#allocation6 + $0x116]] }
 0x34b   : > { %v2792_v58 = vrot.slane %v2785_v31, 1  ;;  %v2834_v14 = vmul.f32 %v2833_v34, %v10964_v3  ;;  %v2835_v38 = vmul.f32 %v2833_v34, %v10965_v55  ;;  %v2836_v12 = vmul.f32 %v2833_v34, %v8214_v17 }
 0x34c   : > { %v8905_v63 = vadd.f32 %v2357_v6, %v2345_v44  ;;  %v8907_v5 = vadd.f32 %v2359_v45, %v2346_v0  ;;  %v2791_v51 = vsel %vm1663_vm2, %v2789_v27, %v2790_v4  ;;  %v3267_v11 = vstv %s8875_s1  ;;  %s9243_s1 = sld [smem:[#allocation6 + $0x119]] }
 0x34d   : > { %v2793_v19 = vsel %vm1663_vm2, %v2790_v4, %v2792_v58  ;;  %v2796_v49 = vadd.f32 %v2791_v51, %v8638_v52  ;;  %v2840_v32 = vrot.slane %v2834_v14, 2  ;;  %v2841_v15 = vrot.slane %v2835_v38, 2 }
 0x34e   : > { %v2797_v41 = vadd.f32 %v2793_v19, %v8645_v30  ;;  %v2843_v23 = vrot.slane %v2836_v12, 2  ;;  %v3268_v57 = vmul.f32 %v3267_v11, %v10964_v3  ;;  %v3269_v60 = vmul.f32 %v3267_v11, %v10965_v55 }
 0x34f   : > { %v2813_v28 = vadd.f32 %v8401_v50, %v2796_v49  ;;  %v2842_v8 = vsel %vm1715_vm3, %v2840_v32, %v2841_v15  ;;  %v3270_v26 = vmul.f32 %v3267_v11, %v8214_v17  ;;  %v3318_v35 = vstv %s8886_s2  ;;  %v10973_v32 = vld [vmem:[#allocation58_spill] sm:$0xff]  ;;  %s9248_s2 = sld [smem:[#allocation6 + $0x196]] }
 0x350   : > { %v2814_v52 = vadd.f32 %v8405_v46, %v2797_v41  ;;  %v2844_v7 = vsel %vm1715_vm3, %v2841_v15, %v2843_v23  ;;  %v3274_v30 = vrot.slane %v3268_v57, 1  ;;  %v3275_v48 = vrot.slane %v3269_v60, 1 }
 0x351   : > { %v2830_v6 = vadd.f32 %v8641_v20, %v2813_v28  ;;  %v3277_v45 = vrot.slane %v3270_v26, 1  ;;  %v3319_v31 = vmul.f32 %v3318_v35, %v10964_v3  ;;  %v3320_v27 = vmul.f32 %v3318_v35, %v10965_v55 }
 0x352   : > { %v2831_v50 = vadd.f32 %v8648_v59, %v2814_v52  ;;  %v3276_v44 = vsel %vm1663_vm2, %v3274_v30, %v3275_v48  ;;  %v3321_v0 = vmul.f32 %v3318_v35, %v8214_v17  ;;  %v3752_v46 = vstv %s8900_s3  ;;  %s9278_s3 = sld [smem:[#allocation6 + $0x199]] }
 0x353   : > { %v8933_v4 = vadd.f32 %v2842_v8, %v2830_v6  ;;  %v3278_v34 = vsel %vm1663_vm2, %v3275_v48, %v3277_v45  ;;  %v3281_v20 = vadd.f32 %v3276_v44, %v8678_v37  ;;  %v3325_v58 = vrot.slane %v3319_v31, 2 }
 0x354   : > { %v8937_v14 = vadd.f32 %v2844_v7, %v2831_v50  ;;  %v3282_v38 = vadd.f32 %v3278_v34, %v8680_v10  ;;  %v3326_v12 = vrot.slane %v3320_v27, 2  ;;  %v3328_v51 = vrot.slane %v3321_v0, 2  ;;  %v10974_v0 = vld [vmem:[#allocation59_spill] sm:$0xff]  ;;  %v10975_v34 = vld [vmem:[#allocation60_spill] sm:$0xff] }
 0x355   : > { %v3298_v59 = vadd.f32 %v8427_v21, %v3281_v20  ;;  %v3753_v11 = vmul.f32 %v3752_v46, %v10964_v3  ;;  %v3754_v19 = vmul.f32 %v3752_v46, %v10965_v55  ;;  %v3755_v49 = vmul.f32 %v3752_v46, %v8214_v17 }
 0x356   : > { %v3299_v15 = vadd.f32 %v10973_v32, %v3282_v38  ;;  %v3327_v37 = vsel %vm1715_vm3, %v3325_v58, %v3326_v12  ;;  %v3329_v41 = vsel %vm1715_vm3, %v3326_v12, %v3328_v51  ;;  %v3803_v10 = vstv %s8916_s14  ;;  %s9289_s14 = sld [smem:[#allocation6 + $0x216]] }
 0x357   : > { %v3315_v23 = vadd.f32 %v8683_v36, %v3298_v59  ;;  %v3759_v57 = vrot.slane %v3753_v11, 1  ;;  %v3760_v60 = vrot.slane %v3754_v19, 1  ;;  %v3762_v28 = vrot.slane %v3755_v49, 1 }
 0x358   : > { %v3316_v21 = vadd.f32 %v8687_v22, %v3299_v15  ;;  %v3804_v8 = vmul.f32 %v3803_v10, %v10964_v3  ;;  %v3805_v26 = vmul.f32 %v3803_v10, %v10965_v55  ;;  %v3806_v35 = vmul.f32 %v3803_v10, %v8214_v17 }
 0x359   : > { %v8957_v52 = vadd.f32 %v3327_v37, %v3315_v23  ;;  %v3761_v7 = vsel %vm1663_vm2, %v3759_v57, %v3760_v60  ;;  %v3763_v36 = vsel %vm1663_vm2, %v3760_v60, %v3762_v28  ;;  %v4237_v30 = vstv %s8927_s16  ;;  %s9291_s16 = sld [smem:[#allocation6 + $0x219]] }
 0x35a   : > { %v8962_v48 = vadd.f32 %v3329_v41, %v3316_v21  ;;  %v3766_v6 = vadd.f32 %v3761_v7, %v8716_v25  ;;  %v3767_v22 = vadd.f32 %v3763_v36, %v8723_v9  ;;  %v3810_v45 = vrot.slane %v3804_v8, 2  ;;  %v10978_v8 = vld [vmem:[#allocation61_spill] sm:$0xff] }
 0x35b   : > { %v3811_v31 = vrot.slane %v3805_v26, 2  ;;  %v3813_v27 = vrot.slane %v3806_v35, 2  ;;  %v4238_v50 = vmul.f32 %v4237_v30, %v10964_v3  ;;  %v4239_v44 = vmul.f32 %v4237_v30, %v10965_v55 }
 0x35c   : > { %v3783_v46 = vadd.f32 %v10974_v0, %v3766_v6  ;;  %v3784_v20 = vadd.f32 %v10975_v34, %v3767_v22  ;;  %v4240_v58 = vmul.f32 %v4237_v30, %v8214_v17  ;;  %v4288_v38 = vstv %s8940_s7  ;;  %v10979_v30 = vld [vmem:[#allocation62_spill] sm:$0xff]  ;;  %s9296_s7 = sld [smem:[#allocation6 + $0x296]] }
 0x35d   : > { %v3812_v25 = vsel %vm1715_vm3, %v3810_v45, %v3811_v31  ;;  %v3814_v9 = vsel %vm1715_vm3, %v3811_v31, %v3813_v27  ;;  %v4244_v12 = vrot.slane %v4238_v50, 1  ;;  %v4245_v51 = vrot.slane %v4239_v44, 1 }
 0x35e   : > { %v3800_v59 = vadd.f32 %v8719_v33, %v3783_v46  ;;  %v3801_v11 = vadd.f32 %v8726_v42, %v3784_v20  ;;  %v4247_v19 = vrot.slane %v4240_v58, 1  ;;  %v4289_v49 = vmul.f32 %v4288_v38, %v10964_v3 }
 0x35f   : > { %v4246_v32 = vsel %vm1663_vm2, %v4244_v12, %v4245_v51  ;;  %v4290_v15 = vmul.f32 %v4288_v38, %v10965_v55  ;;  %v4291_v37 = vmul.f32 %v4288_v38, %v8214_v17  ;;  %v4722_v41 = vstv %s8951_s13  ;;  %s9326_s13 = sld [smem:[#allocation6 + $0x299]] }
 0x360   : > { %v8985_v10 = vadd.f32 %v3812_v25, %v3800_v59  ;;  %v8987_v23 = vadd.f32 %v3814_v9, %v3801_v11  ;;  %v4248_v33 = vsel %vm1663_vm2, %v4245_v51, %v4247_v19  ;;  %v4251_v42 = vadd.f32 %v4246_v32, %v8754_v2 }
 0x361   : > { %v4252_v57 = vadd.f32 %v4248_v33, %v8756_v29  ;;  %v4295_v60 = vrot.slane %v4289_v49, 2  ;;  %v4296_v28 = vrot.slane %v4290_v15, 2  ;;  %v4298_v21 = vrot.slane %v4291_v37, 2  ;;  %v10982_v49 = vld [vmem:[#allocation68_spill] sm:$0xff] }
 0x362   : > { %10976 = vst [vmem:[#allocation72_spill] sm:$0xff] %v8985_v10  ;;  %10977 = vst [vmem:[#allocation88_spill] sm:$0xff] %v8987_v23  ;;  %v4268_v26 = vadd.f32 %v10978_v8, %v4251_v42  ;;  %v4723_v35 = vmul.f32 %v4722_v41, %v10964_v3  ;;  %v4724_v7 = vmul.f32 %v4722_v41, %v10965_v55  ;;  %v4773_v22 = vstv %s8968_s30  ;;  %v10983_v15 = vld [vmem:[#allocation84_spill] sm:$0xff]  ;;  %s9339_s30 = sld [smem:[#allocation6 + $0x316]] }
 0x363   : > { %v4725_v36 = vmul.f32 %v4722_v41, %v8214_v17  ;;  %v4269_v6 = vadd.f32 %v10979_v30, %v4252_v57  ;;  %v4297_v2 = vsel %vm1715_vm3, %v4295_v60, %v4296_v28  ;;  %v4299_v29 = vsel %vm1715_vm3, %v4296_v28, %v4298_v21 }
 0x364   : > { %v4285_v45 = vadd.f32 %v8759_v47, %v4268_v26  ;;  %v4729_v31 = vrot.slane %v4723_v35, 1  ;;  %v4730_v27 = vrot.slane %v4724_v7, 1  ;;  %v4774_v0 = vmul.f32 %v4773_v22, %v10964_v3 }
 0x365   : > { %v4732_v50 = vrot.slane %v4725_v36, 1  ;;  %v4286_v44 = vadd.f32 %v8763_v18, %v4269_v6  ;;  %v4775_v46 = vmul.f32 %v4773_v22, %v10965_v55  ;;  %v4776_v34 = vmul.f32 %v4773_v22, %v8214_v17 }
 0x366   : > { %v9009_v20 = vadd.f32 %v4297_v2, %v4285_v45  ;;  %v4731_v58 = vsel %vm1663_vm2, %v4729_v31, %v4730_v27  ;;  %v5207_v38 = vstv %s8979_s9  ;;  %v4780_v12 = vrot.slane %v4774_v0, 2  ;;  %s9341_s9 = sld [smem:[#allocation6 + $0x319]] }
 0x367   : > { %v4733_v47 = vsel %vm1663_vm2, %v4730_v27, %v4732_v50  ;;  %v9014_v25 = vadd.f32 %v4299_v29, %v4286_v44  ;;  %v4736_v9 = vadd.f32 %v4731_v58, %v8792_v56  ;;  %v4781_v51 = vrot.slane %v4775_v46, 2  ;;  %v10988_v27 = vld [vmem:[#allocation63_spill] sm:$0xff]  ;;  %v10989_v44 = vld [vmem:[#allocation65_spill] sm:$0xff] }
 0x368   : > { %10980 = vst [vmem:[#allocation89_spill] sm:$0xff] %v9009_v20  ;;  %v4737_v18 = vadd.f32 %v4733_v47, %v8799_v24  ;;  %v4783_v59 = vrot.slane %v4776_v34, 2  ;;  %v5208_v11 = vmul.f32 %v5207_v38, %v10964_v3  ;;  %v5209_v19 = vmul.f32 %v5207_v38, %v10965_v55  ;;  %v10990_v46 = vld [vmem:[#allocation69_spill] sm:$0xff] }
 0x369   : > { %10981 = vst [vmem:[#allocation73_spill] sm:$0xff] %v9014_v25  ;;  %v4753_v32 = vadd.f32 %v10982_v49, %v4736_v9  ;;  %v5210_v41 = vmul.f32 %v5207_v38, %v8214_v17  ;;  %v5258_v33 = vstv %s8992_s28  ;;  %v4782_v56 = vsel %vm1715_vm3, %v4780_v12, %v4781_v51  ;;  %s9346_s28 = sld [smem:[#allocation6 + $0x396]] }
 0x36a   : > { %v4754_v37 = vadd.f32 %v10983_v15, %v4737_v18  ;;  %v4784_v24 = vsel %vm1715_vm3, %v4781_v51, %v4783_v59  ;;  %v5214_v42 = vrot.slane %v5208_v11, 1  ;;  %v5215_v57 = vrot.slane %v5209_v19, 1 }
 0x36b   : > { %v4770_v60 = vadd.f32 %v8795_v13, %v4753_v32  ;;  %v5217_v21 = vrot.slane %v5210_v41, 1  ;;  %v5259_v8 = vmul.f32 %v5258_v33, %v10964_v3  ;;  %v5260_v35 = vmul.f32 %v5258_v33, %v10965_v55  ;;  %v10986_v55 = vld [vmem:[#allocation85_spill] sm:$0xff] }
 0x36c   : > { %v4771_v28 = vadd.f32 %v8802_v40, %v4754_v37  ;;  %v5216_v26 = vsel %vm1663_vm2, %v5214_v42, %v5215_v57  ;;  %v5261_v7 = vmul.f32 %v5258_v33, %v8214_v17  ;;  %v1898_v36 = vstv %s9003_s12  ;;  %v10987_v17 = vld [vmem:[#allocation66_spill] sm:$0xff]  ;;  %s9376_s12 = sld [smem:[#allocation6 + $0x399]] }
 0x36d   : > { %v9037_v30 = vadd.f32 %v4782_v56, %v4770_v60  ;;  %v5218_v13 = vsel %vm1663_vm2, %v5215_v57, %v5217_v21  ;;  %v5221_v40 = vadd.f32 %v5216_v26, %v8832_v43  ;;  %v5265_v2 = vrot.slane %v5259_v8, 2 }
 0x36e   : > { %v9039_v6 = vadd.f32 %v4784_v24, %v4771_v28  ;;  %v5222_v3 = vadd.f32 %v5218_v13, %v8834_v53  ;;  %v5266_v29 = vrot.slane %v5260_v35, 2  ;;  %v5268_v22 = vrot.slane %v5261_v7, 2 }
 0x36f   : > { %10984 = vst [vmem:[#allocation74_spill] sm:$0xff] %v9037_v30  ;;  %v5238_v45 = vadd.f32 %v10986_v55, %v5221_v40  ;;  %v1899_v31 = vmul.f32 %v1898_v36, %v10987_v17  ;;  %v1900_v50 = vmul.f32 %v1898_v36, %v10988_v27  ;;  %v1901_v0 = vmul.f32 %v1898_v36, %v10989_v44 }
 0x370   : > { %10985 = vst [vmem:[#allocation90_spill] sm:$0xff] %v9039_v6  ;;  %v5239_v34 = vadd.f32 %v10990_v46, %v5222_v3  ;;  %v5267_v58 = vsel %vm1715_vm3, %v5265_v2, %v5266_v29  ;;  %v5269_v43 = vsel %vm1715_vm3, %v5266_v29, %v5268_v22  ;;  %v1949_v47 = vstv %s9020_s24  ;;  %s9387_s24 = sld [smem:[#allocation6 + $0x12]] }
 0x371   : > { %v5255_v53 = vadd.f32 %v8837_v1, %v5238_v45  ;;  %v1905_v38 = vrot.slane %v1899_v31, 1  ;;  %v1906_v9 = vrot.slane %v1900_v50, 1  ;;  %v1908_v18 = vrot.slane %v1901_v0, 1 }
 0x372   : > { %v5256_v12 = vadd.f32 %v8845_v61, %v5239_v34  ;;  %v1950_v51 = vmul.f32 %v1949_v47, %v10987_v17  ;;  %v1951_v59 = vmul.f32 %v1949_v47, %v10988_v27  ;;  %v1952_v11 = vmul.f32 %v1949_v47, %v10989_v44 }
 0x373   : > { %v9063_v19 = vadd.f32 %v5267_v58, %v5255_v53  ;;  %v9066_v49 = vsel %vm1663_vm2, %v1905_v38, %v1906_v9  ;;  %v9069_v32 = vsel %vm1663_vm2, %v1906_v9, %v1908_v18  ;;  %v2383_v1 = vstv %s9031_s15  ;;  %s9389_s15 = sld [smem:[#allocation6 + $0x13]] }
 0x374   : > { %v9072_v15 = vadd.f32 %v5269_v43, %v5256_v12  ;;  %v1956_v37 = vrot.slane %v1950_v51, 2  ;;  %v1957_v61 = vrot.slane %v1951_v59, 2  ;;  %v1959_v41 = vrot.slane %v1952_v11, 2 }
 0x375   : > { %10991 = vst [vmem:[#allocation91_spill] sm:$0xff] %v9063_v19  ;;  %v2384_v33 = vmul.f32 %v2383_v1, %v10987_v17  ;;  %v2385_v56 = vmul.f32 %v2383_v1, %v10988_v27  ;;  %v2386_v24 = vmul.f32 %v2383_v1, %v10989_v44  ;;  %v2434_v42 = vstv %s9043_s0  ;;  %s9394_s0 = sld [smem:[#allocation6 + $0x14]] }
 0x376   : > { %10992 = vst [vmem:[#allocation75_spill] sm:$0xff] %v9072_v15  ;;  %v9081_v57 = vsel %vm1715_vm3, %v1956_v37, %v1957_v61  ;;  %v9084_v60 = vsel %vm1715_vm3, %v1957_v61, %v1959_v41  ;;  %v2435_v28 = vmul.f32 %v2434_v42, %v10987_v17  ;;  %v2436_v21 = vmul.f32 %v2434_v42, %v10988_v27 }
 0x377   : > { %v2390_v8 = vrot.slane %v2384_v33, 1  ;;  %v2391_v26 = vrot.slane %v2385_v56, 1  ;;  %v2393_v35 = vrot.slane %v2386_v24, 1  ;;  %v2437_v7 = vmul.f32 %v2434_v42, %v10989_v44 }
 0x378   : > { %v2441_v36 = vrot.slane %v2435_v28, 2  ;;  %v2442_v13 = vrot.slane %v2436_v21, 2  ;;  %v2868_v40 = vstv %s9054_s8  ;;  %v2919_v3 = vstv %s9056_s22  ;;  %s9410_s8 = sld [smem:[#allocation6 + $0x17]]  ;;  %s9412_s22 = sld [smem:[#allocation6 + $0x1a]] }
 0x379   : > { %v9096_v2 = vsel %vm1663_vm2, %v2390_v8, %v2391_v26  ;;  %v9099_v29 = vsel %vm1663_vm2, %v2391_v26, %v2393_v35  ;;  %v2444_v22 = vrot.slane %v2437_v7, 2  ;;  %v2869_v55 = vmul.f32 %v2868_v40, %v10987_v17 }
 0x37a   : > { %v9107_v45 = vsel %vm1715_vm3, %v2441_v36, %v2442_v13  ;;  %v2870_v31 = vmul.f32 %v2868_v40, %v10988_v27  ;;  %v2871_v50 = vmul.f32 %v2868_v40, %v10989_v44  ;;  %v2920_v0 = vmul.f32 %v2919_v3, %v10987_v17 }
 0x37b   : > { %v9113_v46 = vsel %vm1715_vm3, %v2442_v13, %v2444_v22  ;;  %v2875_v34 = vrot.slane %v2869_v55, 1  ;;  %v2921_v58 = vmul.f32 %v2919_v3, %v10988_v27  ;;  %v2922_v43 = vmul.f32 %v2919_v3, %v10989_v44 }
 0x37c   : > { %v2876_v47 = vrot.slane %v2870_v31, 1  ;;  %v2878_v53 = vrot.slane %v2871_v50, 1  ;;  %v2926_v38 = vrot.slane %v2920_v0, 2  ;;  %v3353_v9 = vstv %s9074_s19  ;;  %s9437_s19 = sld [smem:[#allocation6 + $0x92]] }
 0x37d   : > { %v2927_v18 = vrot.slane %v2921_v58, 2  ;;  %v2929_v12 = vrot.slane %v2922_v43, 2  ;;  %v3354_v51 = vmul.f32 %v3353_v9, %v10987_v17  ;;  %v3355_v59 = vmul.f32 %v3353_v9, %v10988_v27 }
 0x37e   : > { %v9121_v11 = vsel %vm1663_vm2, %v2875_v34, %v2876_v47  ;;  %v9124_v1 = vsel %vm1663_vm2, %v2876_v47, %v2878_v53  ;;  %v3356_v37 = vmul.f32 %v3353_v9, %v10989_v44  ;;  %v3404_v61 = vstv %s9088_s25  ;;  %s9442_s25 = sld [smem:[#allocation6 + $0x1b]] }
 0x37f   : > { %v9129_v41 = vsel %vm1715_vm3, %v2926_v38, %v2927_v18  ;;  %v9132_v33 = vsel %vm1715_vm3, %v2927_v18, %v2929_v12  ;;  %v3360_v56 = vrot.slane %v3354_v51, 1  ;;  %v3361_v24 = vrot.slane %v3355_v59, 1 }
 0x380   : > { %v3363_v42 = vrot.slane %v3356_v37, 1  ;;  %v3405_v28 = vmul.f32 %v3404_v61, %v10987_v17  ;;  %v3406_v21 = vmul.f32 %v3404_v61, %v10988_v27  ;;  %v3407_v8 = vmul.f32 %v3404_v61, %v10989_v44 }
 0x381   : > { %v9140_v26 = vsel %vm1663_vm2, %v3360_v56, %v3361_v24  ;;  %v3838_v35 = vstv %s9093_s18  ;;  %v3889_v7 = vstv %s9102_s21  ;;  %v4323_v36 = vstv %s9104_s26  ;;  %s9460_s18 = sld [smem:[#allocation6 + $0x93]]  ;;  %s9462_s21 = sld [smem:[#allocation6 + $0x94]] }
 0x382   : > { %v9150_v13 = vsel %vm1663_vm2, %v3361_v24, %v3363_v42  ;;  %v3411_v40 = vrot.slane %v3405_v28, 2  ;;  %v3412_v3 = vrot.slane %v3406_v21, 2  ;;  %v3414_v22 = vrot.slane %v3407_v8, 2  ;;  %s9470_s26 = sld [smem:[#allocation6 + $0x97]] }
 0x383   : > { %v3839_v55 = vmul.f32 %v3838_v35, %v10987_v17  ;;  %v3840_v31 = vmul.f32 %v3838_v35, %v10988_v27  ;;  %v3841_v50 = vmul.f32 %v3838_v35, %v10989_v44  ;;  %v3890_v0 = vmul.f32 %v3889_v7, %v10987_v17 }
 0x384   : > { %v9159_v34 = vsel %vm1715_vm3, %v3411_v40, %v3412_v3  ;;  %v9162_v58 = vsel %vm1715_vm3, %v3412_v3, %v3414_v22  ;;  %v3891_v43 = vmul.f32 %v3889_v7, %v10988_v27  ;;  %v3892_v47 = vmul.f32 %v3889_v7, %v10989_v44 }
 0x385   : > { %10993 = vst [vmem:[#allocation76_spill] sm:$0xff] %v9159_v34  ;;  %10994 = vst [vmem:[#allocation92_spill] sm:$0xff] %v9162_v58  ;;  %v3845_v53 = vrot.slane %v3839_v55, 1  ;;  %v3846_v38 = vrot.slane %v3840_v31, 1  ;;  %v3848_v9 = vrot.slane %v3841_v50, 1  ;;  %v3896_v18 = vrot.slane %v3890_v0, 2 }
 0x386   : > { %v3897_v12 = vrot.slane %v3891_v43, 2  ;;  %v3899_v51 = vrot.slane %v3892_v47, 2  ;;  %v4324_v59 = vmul.f32 %v4323_v36, %v10987_v17  ;;  %v4325_v37 = vmul.f32 %v4323_v36, %v10988_v27 }
 0x387   : > { %v9169_v61 = vsel %vm1663_vm2, %v3845_v53, %v3846_v38  ;;  %v9172_v56 = vsel %vm1663_vm2, %v3846_v38, %v3848_v9  ;;  %v4326_v24 = vmul.f32 %v4323_v36, %v10989_v44  ;;  %v4374_v42 = vstv %s9134_s17  ;;  %s9472_s17 = sld [smem:[#allocation6 + $0x9a]] }
 0x388   : > { %10995 = vst [vmem:[#allocation93_spill] sm:$0xff] %v9169_v61  ;;  %10996 = vst [vmem:[#allocation77_spill] sm:$0xff] %v9172_v56  ;;  %v9177_v28 = vsel %vm1715_vm3, %v3896_v18, %v3897_v12  ;;  %v9180_v21 = vsel %vm1715_vm3, %v3897_v12, %v3899_v51  ;;  %v4330_v8 = vrot.slane %v4324_v59, 1  ;;  %v4331_v35 = vrot.slane %v4325_v37, 1 }
 0x389   : > { %10997 = vst [vmem:[#allocation78_spill] sm:$0xff] %v9177_v28  ;;  %10998 = vst [vmem:[#allocation94_spill] sm:$0xff] %v9180_v21  ;;  %v4333_v7 = vrot.slane %v4326_v24, 1  ;;  %v4375_v40 = vmul.f32 %v4374_v42, %v10987_v17  ;;  %v4376_v3 = vmul.f32 %v4374_v42, %v10988_v27  ;;  %v4377_v22 = vmul.f32 %v4374_v42, %v10989_v44 }
 0x38a   : > { %v9188_v36 = vsel %vm1663_vm2, %v4330_v8, %v4331_v35  ;;  %v4808_v55 = vstv %s9145_s10  ;;  %v4859_v31 = vstv %s9147_s29  ;;  %v5293_v50 = vstv %s9152_s5  ;;  %s9506_s10 = sld [smem:[#allocation6 + $0x9b]]  ;;  %s9508_s29 = sld [smem:[#allocation6 + $0x112]] }
 0x38b   : > { %10999 = vst [vmem:[#allocation95_spill] sm:$0xff] %v9188_v36  ;;  %v9198_v0 = vsel %vm1663_vm2, %v4331_v35, %v4333_v7  ;;  %v4381_v43 = vrot.slane %v4375_v40, 2  ;;  %v4382_v47 = vrot.slane %v4376_v3, 2  ;;  %v4384_v53 = vrot.slane %v4377_v22, 2  ;;  %s9518_s5 = sld [smem:[#allocation6 + $0x113]] }
 0x38c   : > { %11000 = vst [vmem:[#allocation79_spill] sm:$0xff] %v9198_v0  ;;  %v4809_v38 = vmul.f32 %v4808_v55, %v10987_v17  ;;  %v4810_v9 = vmul.f32 %v4808_v55, %v10988_v27  ;;  %v4811_v18 = vmul.f32 %v4808_v55, %v10989_v44  ;;  %v4860_v12 = vmul.f32 %v4859_v31, %v10987_v17 }
 0x38d   : > { %v9207_v51 = vsel %vm1715_vm3, %v4381_v43, %v4382_v47  ;;  %v9210_v59 = vsel %vm1715_vm3, %v4382_v47, %v4384_v53  ;;  %v4861_v37 = vmul.f32 %v4859_v31, %v10988_v27  ;;  %v4862_v24 = vmul.f32 %v4859_v31, %v10989_v44 }
 0x38e   : > { %11001 = vst [vmem:[#allocation80_spill] sm:$0xff] %v9207_v51  ;;  %11002 = vst [vmem:[#allocation96_spill] sm:$0xff] %v9210_v59  ;;  %v4815_v42 = vrot.slane %v4809_v38, 1  ;;  %v4816_v8 = vrot.slane %v4810_v9, 1  ;;  %v4818_v35 = vrot.slane %v4811_v18, 1  ;;  %v4866_v7 = vrot.slane %v4860_v12, 2 }
 0x38f   : > { %v4867_v40 = vrot.slane %v4861_v37, 2  ;;  %v4869_v3 = vrot.slane %v4862_v24, 2  ;;  %v5294_v22 = vmul.f32 %v5293_v50, %v10987_v17  ;;  %v5295_v55 = vmul.f32 %v5293_v50, %v10988_v27 }
 0x390   : > { %v9217_v43 = vsel %vm1663_vm2, %v4815_v42, %v4816_v8  ;;  %v9220_v47 = vsel %vm1663_vm2, %v4816_v8, %v4818_v35  ;;  %v5296_v31 = vmul.f32 %v5293_v50, %v10989_v44  ;;  %v5344_v53 = vstv %s9182_s20  ;;  %s9520_s20 = sld [smem:[#allocation6 + $0x114]] }
 0x391   : > { %11003 = vst [vmem:[#allocation97_spill] sm:$0xff] %v9217_v43  ;;  %11004 = vst [vmem:[#allocation83_spill] sm:$0xff] %v9220_v47  ;;  %v9225_v38 = vsel %vm1715_vm3, %v4866_v7, %v4867_v40  ;;  %v9228_v9 = vsel %vm1715_vm3, %v4867_v40, %v4869_v3  ;;  %v5300_v18 = vrot.slane %v5294_v22, 1  ;;  %v5301_v12 = vrot.slane %v5295_v55, 1 }
 0x392   : > { %11005 = vst [vmem:[#allocation81_spill] sm:$0xff] %v9225_v38  ;;  %11006 = vst [vmem:[#allocation82_spill] sm:$0xff] %v9228_v9  ;;  %v5303_v37 = vrot.slane %v5296_v31, 1  ;;  %v5345_v24 = vmul.f32 %v5344_v53, %v10987_v17  ;;  %v5346_v42 = vmul.f32 %v5344_v53, %v10988_v27  ;;  %v5347_v8 = vmul.f32 %v5344_v53, %v10989_v44  ;;  %v11009_v31 = vld [vmem:[#allocation67_spill] sm:$0xff]  ;;  %v11010_v53 = vld [vmem:[#allocation64_spill] sm:$0xff] }
 0x393   : > { %v9236_v50 = vsel %vm1663_vm2, %v5300_v18, %v5301_v12  ;;  %v1915_v35 = vstv %s9193_s23  ;;  %v1966_v7 = vstv %s9195_s27  ;;  %v2400_v15 = vstv %s9200_s11  ;;  %s9524_s23 = sld [smem:[#allocation6 + $0x117]]  ;;  %s9526_s27 = sld [smem:[#allocation6 + $0x11a]] }
 0x394   : > { %11007 = vst [vmem:[#allocation98_spill] sm:$0xff] %v9236_v50  ;;  %v9246_v40 = vsel %vm1663_vm2, %v5301_v12, %v5303_v37  ;;  %v5351_v3 = vrot.slane %v5345_v24, 2  ;;  %v5352_v22 = vrot.slane %v5346_v42, 2  ;;  %v5354_v55 = vrot.slane %v5347_v8, 2  ;;  %v11011_v50 = vld [vmem:[#allocation70_spill] sm:$0xff]  ;;  %s9550_s11 = sld [smem:[#allocation6 + $0x11b]] }
 0x395   : > { %11008 = vst [vmem:[#allocation56_spill] sm:$0xff] %v9246_v40  ;;  %v1916_v44 = vmul.f32 %v1915_v35, %v11009_v31  ;;  %v1917_v18 = vmul.f32 %v1915_v35, %v11010_v53  ;;  %v1918_v19 = vmul.f32 %v1915_v35, %v11011_v50  ;;  %v1967_v9 = vmul.f32 %v1966_v7, %v11009_v31 }
 0x396   : > { %v9255_v38 = vsel %vm1715_vm3, %v5351_v3, %v5352_v22  ;;  %v9258_v12 = vsel %vm1715_vm3, %v5352_v22, %v5354_v55  ;;  %v1968_v37 = vmul.f32 %v1966_v7, %v11010_v53  ;;  %v1969_v24 = vmul.f32 %v1966_v7, %v11011_v50 }
 0x397   : > { %11012 = vst [vmem:[#allocation99_spill] sm:$0xff] %v9255_v38  ;;  %11013 = vst [vmem:[#allocation57_spill] sm:$0xff] %v9258_v12  ;;  %v1922_v42 = vrot.slane %v1916_v44, 1  ;;  %v1923_v8 = vrot.slane %v1917_v18, 1  ;;  %v1925_v40 = vrot.slane %v1918_v19, 1  ;;  %v1973_v47 = vrot.slane %v1967_v9, 2 }
 0x398   : > { %v1974_v43 = vrot.slane %v1968_v37, 2  ;;  %v1976_v6 = vrot.slane %v1969_v24, 2  ;;  %v2401_v35 = vmul.f32 %v2400_v15, %v11009_v31  ;;  %v2402_v59 = vmul.f32 %v2400_v15, %v11010_v53 }
 0x399   : > { %v9265_v3 = vsel %vm1663_vm2, %v1922_v42, %v1923_v8  ;;  %v9268_v22 = vsel %vm1663_vm2, %v1923_v8, %v1925_v40  ;;  %v2403_v7 = vmul.f32 %v2400_v15, %v11011_v50  ;;  %v2451_v55 = vstv %s9230_s4  ;;  %s9560_s4 = sld [smem:[#allocation6 + $0x192]] }
 0x39a   : > { %v9273_v19 = vsel %vm1715_vm3, %v1973_v47, %v1974_v43  ;;  %v9276_v9 = vsel %vm1715_vm3, %v1974_v43, %v1976_v6  ;;  %v2407_v44 = vrot.slane %v2401_v35, 1  ;;  %v2408_v18 = vrot.slane %v2402_v59, 1 }
 0x39b   : > { %v2410_v37 = vrot.slane %v2403_v7, 1  ;;  %v2452_v24 = vmul.f32 %v2451_v55, %v11009_v31  ;;  %v2453_v42 = vmul.f32 %v2451_v55, %v11010_v53  ;;  %v2454_v40 = vmul.f32 %v2451_v55, %v11011_v50 }
 0x39c   : > { %v9284_v15 = vsel %vm1663_vm2, %v2407_v44, %v2408_v18  ;;  %v2885_v8 = vstv %s9241_s6  ;;  %v2936_v47 = vstv %s9243_s1  ;;  %v3370_v12 = vstv %s9248_s2  ;;  %s9568_s6 = sld [smem:[#allocation6 + $0x193]]  ;;  %s9570_s1 = sld [smem:[#allocation6 + $0x194]] }
 0x39d   : > { %v9294_v6 = vsel %vm1663_vm2, %v2408_v18, %v2410_v37  ;;  %v2458_v59 = vrot.slane %v2452_v24, 2  ;;  %v2459_v43 = vrot.slane %v2453_v42, 2  ;;  %v2461_v35 = vrot.slane %v2454_v40, 2  ;;  %s9579_s2 = sld [smem:[#allocation6 + $0x197]] }
 0x39e   : > { %v2886_v7 = vmul.f32 %v2885_v8, %v11009_v31  ;;  %v2887_v55 = vmul.f32 %v2885_v8, %v11010_v53  ;;  %v2888_v44 = vmul.f32 %v2885_v8, %v11011_v50  ;;  %v2937_v38 = vmul.f32 %v2936_v47, %v11009_v31 }
 0x39f   : > { %v9303_v30 = vsel %vm1715_vm3, %v2458_v59, %v2459_v43  ;;  %v9306_v18 = vsel %vm1715_vm3, %v2459_v43, %v2461_v35  ;;  %v2938_v37 = vmul.f32 %v2936_v47, %v11010_v53  ;;  %v2939_v24 = vmul.f32 %v2936_v47, %v11011_v50 }
 0x3a0   : > { %v2892_v42 = vrot.slane %v2886_v7, 1  ;;  %v2893_v40 = vrot.slane %v2887_v55, 1  ;;  %v2895_v51 = vrot.slane %v2888_v44, 1  ;;  %v2943_v0 = vrot.slane %v2937_v38, 2 }
 0x3a1   : > { %v2944_v36 = vrot.slane %v2938_v37, 2  ;;  %v2946_v25 = vrot.slane %v2939_v24, 2  ;;  %v3371_v8 = vmul.f32 %v3370_v12, %v11009_v31  ;;  %v3372_v20 = vmul.f32 %v3370_v12, %v11010_v53  ;;  %v9328_v37 = vpop.f32.mrb[40].mxu1 }
 0x3a2   : > { %v9313_v59 = vsel %vm1663_vm2, %v2892_v42, %v2893_v40  ;;  %v9316_v43 = vsel %vm1663_vm2, %v2893_v40, %v2895_v51  ;;  %v3373_v47 = vmul.f32 %v3370_v12, %v11011_v50  ;;  %v3421_v35 = vstv %s9278_s3  ;;  %11014 = vst [vmem:[#allocation100_spill] sm:$0xff] %v9328_v37  ;;  %v6322_v40 = vpop.f32.mrb[41].mxu1  ;;  %s9587_s3 = sld [smem:[#allocation6 + $0x19a]] }
 0x3a3   : > { %v9321_v38 = vsel %vm1715_vm3, %v2943_v0, %v2944_v36  ;;  %v9324_v7 = vsel %vm1715_vm3, %v2944_v36, %v2946_v25  ;;  %v3377_v55 = vrot.slane %v3371_v8, 1  ;;  %v3378_v44 = vrot.slane %v3372_v20, 1 }
 0x3a4   : > { %v3380_v24 = vrot.slane %v3373_v47, 1  ;;  %v3422_v51 = vmul.f32 %v3421_v35, %v11009_v31  ;;  %v3423_v42 = vmul.f32 %v3421_v35, %v11010_v53  ;;  %v3424_v12 = vmul.f32 %v3421_v35, %v11011_v50 }
 0x3a5   : > { %v9334_v0 = vsel %vm1663_vm2, %v3377_v55, %v3378_v44  ;;  %v3855_v21 = vstv %s9289_s14  ;;  %v3906_v25 = vstv %s9291_s16  ;;  %v4340_v36 = vstv %s9296_s7  ;;  %s9606_s14 = sld [smem:[#allocation6 + $0x19b]]  ;;  %s9614_s16 = sld [smem:[#allocation6 + $0x212]] }
 0x3a6   : > { %v9344_v20 = vsel %vm1663_vm2, %v3378_v44, %v3380_v24  ;;  %v3428_v8 = vrot.slane %v3422_v51, 2  ;;  %v3429_v47 = vrot.slane %v3423_v42, 2  ;;  %v3431_v37 = vrot.slane %v3424_v12, 2  ;;  %s9616_s7 = sld [smem:[#allocation6 + $0x213]] }
 0x3a7   : > { %v3856_v35 = vmul.f32 %v3855_v21, %v11009_v31  ;;  %v3857_v55 = vmul.f32 %v3855_v21, %v11010_v53  ;;  %v3858_v40 = vmul.f32 %v3855_v21, %v11011_v50  ;;  %v3907_v28 = vmul.f32 %v3906_v25, %v11009_v31 }
 0x3a8   : > { %v9353_v56 = vsel %vm1715_vm3, %v3428_v8, %v3429_v47  ;;  %v9356_v44 = vsel %vm1715_vm3, %v3429_v47, %v3431_v37  ;;  %v3908_v24 = vmul.f32 %v3906_v25, %v11010_v53  ;;  %v3909_v51 = vmul.f32 %v3906_v25, %v11011_v50 }
 0x3a9   : > { %11015 = vst [vmem:[#allocation101_spill] sm:$0xff] %v9353_v56  ;;  %11016 = vst [vmem:[#allocation102_spill] sm:$0xff] %v9356_v44  ;;  %v3862_v42 = vrot.slane %v3856_v35, 1  ;;  %v3863_v12 = vrot.slane %v3857_v55, 1  ;;  %v3865_v61 = vrot.slane %v3858_v40, 1  ;;  %v3913_v23 = vrot.slane %v3907_v28, 2 }
 0x3aa   : > { %v3914_v10 = vrot.slane %v3908_v24, 2  ;;  %v3916_v58 = vrot.slane %v3909_v51, 2  ;;  %v4341_v21 = vmul.f32 %v4340_v36, %v11009_v31  ;;  %v4342_v34 = vmul.f32 %v4340_v36, %v11010_v53 }
 0x3ab   : > { %v9363_v8 = vsel %vm1663_vm2, %v3862_v42, %v3863_v12  ;;  %v9366_v37 = vsel %vm1663_vm2, %v3863_v12, %v3865_v61  ;;  %v4343_v25 = vmul.f32 %v4340_v36, %v11011_v50  ;;  %v4391_v47 = vstv %s9326_s13  ;;  %s9621_s13 = sld [smem:[#allocation6 + $0x214]] }
 0x3ac   : > { %11017 = vst [vmem:[#allocation58_spill] sm:$0xff] %v9363_v8  ;;  %11018 = vst [vmem:[#allocation59_spill] sm:$0xff] %v9366_v37  ;;  %v9371_v28 = vsel %vm1715_vm3, %v3913_v23, %v3914_v10  ;;  %v9374_v35 = vsel %vm1715_vm3, %v3914_v10, %v3916_v58  ;;  %v4347_v55 = vrot.slane %v4341_v21, 1  ;;  %v4348_v40 = vrot.slane %v4342_v34, 1 }
 0x3ad   : > { %11019 = vst [vmem:[#allocation60_spill] sm:$0xff] %v9371_v28  ;;  %11020 = vst [vmem:[#allocation61_spill] sm:$0xff] %v9374_v35  ;;  %v4350_v24 = vrot.slane %v4343_v25, 1  ;;  %v4392_v51 = vmul.f32 %v4391_v47, %v11009_v31  ;;  %v4393_v42 = vmul.f32 %v4391_v47, %v11010_v53  ;;  %v4394_v61 = vmul.f32 %v4391_v47, %v11011_v50 }
 0x3ae   : > { %v9382_v36 = vsel %vm1663_vm2, %v4347_v55, %v4348_v40  ;;  %v4825_v12 = vstv %s9339_s30  ;;  %v4876_v23 = vstv %s9341_s9  ;;  %v5310_v28 = vstv %s9346_s28  ;;  %s9629_s30 = sld [smem:[#allocation6 + $0x217]]  ;;  %s9631_s9 = sld [smem:[#allocation6 + $0x21a]] }
 0x3af   : > { %11021 = vst [vmem:[#allocation62_spill] sm:$0xff] %v9382_v36  ;;  %v9392_v10 = vsel %vm1663_vm2, %v4348_v40, %v4350_v24  ;;  %v4398_v34 = vrot.slane %v4392_v51, 2  ;;  %v4399_v58 = vrot.slane %v4393_v42, 2  ;;  %v4401_v21 = vrot.slane %v4394_v61, 2  ;;  %s9654_s28 = sld [smem:[#allocation6 + $0x21b]] }
 0x3b0   : > { %11022 = vst [vmem:[#allocation68_spill] sm:$0xff] %v9392_v10  ;;  %v4826_v25 = vmul.f32 %v4825_v12, %v11009_v31  ;;  %v4827_v47 = vmul.f32 %v4825_v12, %v11010_v53  ;;  %v4828_v55 = vmul.f32 %v4825_v12, %v11011_v50  ;;  %v4877_v36 = vmul.f32 %v4876_v23, %v11009_v31 }
 0x3b1   : > { %v9401_v35 = vsel %vm1715_vm3, %v4398_v34, %v4399_v58  ;;  %v9404_v37 = vsel %vm1715_vm3, %v4399_v58, %v4401_v21  ;;  %v4878_v40 = vmul.f32 %v4876_v23, %v11010_v53  ;;  %v4879_v24 = vmul.f32 %v4876_v23, %v11011_v50 }
 0x3b2   : > { %11023 = vst [vmem:[#allocation84_spill] sm:$0xff] %v9401_v35  ;;  %11024 = vst [vmem:[#allocation85_spill] sm:$0xff] %v9404_v37  ;;  %v4832_v51 = vrot.slane %v4826_v25, 1  ;;  %v4833_v42 = vrot.slane %v4827_v47, 1  ;;  %v4835_v61 = vrot.slane %v4828_v55, 1  ;;  %v4883_v10 = vrot.slane %v4877_v36, 2 }
 0x3b3   : > { %v4884_v8 = vrot.slane %v4878_v40, 2  ;;  %v4886_v44 = vrot.slane %v4879_v24, 2  ;;  %v5311_v12 = vmul.f32 %v5310_v28, %v11009_v31  ;;  %v5312_v56 = vmul.f32 %v5310_v28, %v11010_v53 }
 0x3b4   : > { %v9415_v34 = vsel %vm1663_vm2, %v4832_v51, %v4833_v42  ;;  %v9418_v23 = vsel %vm1663_vm2, %v4833_v42, %v4835_v61  ;;  %v5313_v36 = vmul.f32 %v5310_v28, %v11011_v50  ;;  %v5361_v58 = vstv %s9376_s12  ;;  %s9664_s12 = sld [smem:[#allocation6 + $0x292]] }
 0x3b5   : > { %11025 = vst [vmem:[#allocation66_spill] sm:$0xff] %v9415_v34  ;;  %11026 = vst [vmem:[#allocation63_spill] sm:$0xff] %v9418_v23  ;;  %v9423_v21 = vsel %vm1715_vm3, %v4883_v10, %v4884_v8  ;;  %v9426_v25 = vsel %vm1715_vm3, %v4884_v8, %v4886_v44  ;;  %v5317_v47 = vrot.slane %v5311_v12, 1  ;;  %v5318_v55 = vrot.slane %v5312_v56, 1 }
 0x3b6   : > { %11027 = vst [vmem:[#allocation65_spill] sm:$0xff] %v9423_v21  ;;  %11028 = vst [vmem:[#allocation69_spill] sm:$0xff] %v9426_v25  ;;  %v5320_v40 = vrot.slane %v5313_v36, 1  ;;  %v5362_v24 = vmul.f32 %v5361_v58, %v11009_v31  ;;  %v5363_v51 = vmul.f32 %v5361_v58, %v11010_v53  ;;  %v5364_v34 = vmul.f32 %v5361_v58, %v11011_v50 }
 0x3b7   : > { %v9432_v42 = vsel %vm1663_vm2, %v5317_v47, %v5318_v55  ;;  %v1880_v28 = vstv %s9387_s24  ;;  %v1886_v61 = vstv %s9389_s15  ;;  %v1892_v23 = vstv %s9394_s0  ;;  %s9666_s24 = sld [smem:[#allocation6 + $0x293]]  ;;  %s9672_s15 = sld [smem:[#allocation6 + $0x294]] }
 0x3b8   : > { %11029 = vst [vmem:[#allocation67_spill] sm:$0xff] %v9432_v42  ;;  %v9440_v44 = vsel %vm1663_vm2, %v5318_v55, %v5320_v40  ;;  %v5368_v56 = vrot.slane %v5362_v24, 2  ;;  %v5369_v8 = vrot.slane %v5363_v51, 2  ;;  %v5371_v10 = vrot.slane %v5364_v34, 2  ;;  %s9679_s0 = sld [smem:[#allocation6 + $0x297]] }
 0x3b9   : > { %11030 = vst [vmem:[#allocation64_spill] sm:$0xff] %v9440_v44  ;;  %v1881_v50 = vmul.f32 %v1880_v28, %v10987_v17  ;;  %v1882_v12 = vmul.f32 %v1880_v28, %v10988_v27  ;;  %v1887_v36 = vmul.f32 %v1886_v61, %v11009_v31  ;;  %v1888_v58 = vmul.f32 %v1886_v61, %v11010_v53 }
 0x3ba   : > { %v9449_v47 = vsel %vm1715_vm3, %v5368_v56, %v5369_v8  ;;  %v9452_v55 = vsel %vm1715_vm3, %v5369_v8, %v5371_v10  ;;  %v1893_v40 = vmul.f32 %v1892_v23, %v8825_v54  ;;  %v1894_v34 = vmul.f32 %v1892_v23, %v8840_v39  ;;  %v11033_v8 = vld [vmem:[#allocation71_spill] sm:$0xff] }
 0x3bb   : > { %11031 = vst [vmem:[#allocation70_spill] sm:$0xff] %v9449_v47  ;;  %11032 = vst [vmem:[#allocation103_spill] sm:$0xff] %v9452_v55  ;;  %v1883_v24 = vadd.f32 %v1881_v50, %v8888_v16  ;;  %v1884_v51 = vadd.f32 %v1882_v12, %v8890_v62  ;;  %v1932_v44 = vstv %s9410_s8  ;;  %v1983_v28 = vstv %s9412_s22  ;;  %s9681_s8 = sld [smem:[#allocation6 + $0x29a]]  ;;  %s9706_s22 = sld [smem:[#allocation6 + $0x29b]] }
 0x3bc   : > { %v1933_v61 = vmul.f32 %v1932_v44, %v8825_v54  ;;  %v1934_v56 = vmul.f32 %v1932_v44, %v8840_v39  ;;  %v1935_v10 = vmul.f32 %v1932_v44, %v11033_v8  ;;  %v1984_v55 = vmul.f32 %v1983_v28, %v8825_v54 }
 0x3bd   : > { %v1889_v47 = vadd.f32 %v1887_v36, %v1883_v24  ;;  %v1890_v23 = vadd.f32 %v1888_v58, %v1884_v51  ;;  %v1985_v16 = vmul.f32 %v1983_v28, %v8840_v39  ;;  %v1986_v62 = vmul.f32 %v1983_v28, %v11033_v8 }
 0x3be   : > { %v1939_v50 = vrot.slane %v1933_v61, 1  ;;  %v1940_v12 = vrot.slane %v1934_v56, 1  ;;  %v1942_v42 = vrot.slane %v1935_v10, 1  ;;  %v1990_v25 = vrot.slane %v1984_v55, 2 }
 0x3bf   : > { %v1895_v21 = vadd.f32 %v1893_v40, %v1889_v47  ;;  %v1896_v44 = vadd.f32 %v1894_v34, %v1890_v23  ;;  %v1991_v37 = vrot.slane %v1985_v16, 2  ;;  %v1993_v36 = vrot.slane %v1986_v62, 2  ;;  %v11034_v47 = vld [vmem:[#allocation86_spill] sm:$0xff]  ;;  %v11035_v34 = vld [vmem:[#allocation87_spill] sm:$0xff] }
 0x3c0   : > { %v1941_v58 = vsel %vm1663_vm2, %v1939_v50, %v1940_v12  ;;  %v1943_v24 = vsel %vm1663_vm2, %v1940_v12, %v1942_v42  ;;  %v2000_v51 = vstv %s9442_s25  ;;  %v2365_v28 = vstv %s9437_s19  ;;  %s9712_s19 = sld [smem:[#allocation6 + $0x312]]  ;;  %s9720_s25 = sld [smem:[#allocation6 + $0x313]] }
 0x3c1   : > { %v1912_v35 = vadd.f32 %v9066_v49, %v1895_v21  ;;  %v1913_v61 = vadd.f32 %v9069_v32, %v1896_v44  ;;  %v1992_v55 = vsel %vm1715_vm3, %v1990_v25, %v1991_v37  ;;  %v1994_v56 = vsel %vm1715_vm3, %v1991_v37, %v1993_v36  ;;  %v9490_v21 = vpop.f32.mrb[42].mxu0  ;;  %v9492_v32 = vpop.f32.mrb[42].mxu1 }
 0x3c2   : > { %v2001_v40 = vmul.f32 %v2000_v51, %v11034_v47  ;;  %v2002_v10 = vmul.f32 %v2000_v51, %v11035_v34  ;;  %v2366_v23 = vmul.f32 %v2365_v28, %v10987_v17  ;;  %v2367_v16 = vmul.f32 %v2365_v28, %v10988_v27  ;;  %11036 = vst [vmem:[#allocation71_spill] sm:$0xff] %v9490_v21  ;;  %v6329_v36 = vpop.f32.mrb[43].mxu0 }
 0x3c3   : > { %v1929_v42 = vadd.f32 %v9265_v3, %v1912_v35  ;;  %v1930_v62 = vadd.f32 %v9268_v22, %v1913_v61  ;;  %v2371_v50 = vstv %s9460_s18  ;;  %v2377_v49 = vstv %s9462_s21  ;;  %11037 = vst [vmem:[#allocation86_spill] sm:$0xff] %v9492_v32  ;;  %v6342_v3 = vpop.f32.mrb[43].mxu1  ;;  %v9500_v61 = vpop.f32.mrb[44].mxu0  ;;  %s9722_s18 = sld [smem:[#allocation6 + $0x314]]  ;;  %s9731_s21 = sld [smem:[#allocation6 + $0x317]] }
 0x3c4   : > { %v2368_v37 = vadd.f32 %v2366_v23, %v8905_v63  ;;  %v2369_v25 = vadd.f32 %v2367_v16, %v8907_v5  ;;  %v2372_v12 = vmul.f32 %v2371_v50, %v11009_v31  ;;  %v2373_v44 = vmul.f32 %v2371_v50, %v11010_v53  ;;  %v9502_v32 = vpop.f32.mrb[44].mxu1  ;;  %v6332_v16 = vpop.f32.mrb[45].mxu0 }
 0x3c5   : > { %v1946_v35 = vadd.f32 %v1941_v58, %v1929_v42  ;;  %v1947_v22 = vadd.f32 %v1943_v24, %v1930_v62  ;;  %v2378_v51 = vmul.f32 %v2377_v49, %v8825_v54  ;;  %v2379_v28 = vmul.f32 %v2377_v49, %v8840_v39  ;;  %v6345_v50 = vpop.f32.mrb[45].mxu1  ;;  %v9514_v49 = vpop.f32.mrb[46].mxu0 }
 0x3c6   : > { %v2374_v21 = vadd.f32 %v2372_v12, %v2368_v37  ;;  %v2375_v63 = vadd.f32 %v2373_v44, %v2369_v25  ;;  %v2417_v23 = vstv %s9470_s26  ;;  %v2468_v5 = vstv %s9472_s17  ;;  %v6335_v36 = vpop.f32.mrb[47].mxu0  ;;  %s9733_s26 = sld [smem:[#allocation6 + $0x31a]]  ;;  %s9760_s17 = sld [smem:[#allocation6 + $0x31b]] }
 0x3c7   : > { %v1963_v58 = vadd.f32 %v9081_v57, %v1946_v35  ;;  %v1964_v24 = vadd.f32 %v9084_v60, %v1947_v22  ;;  %v2418_v42 = vmul.f32 %v2417_v23, %v8825_v54  ;;  %v2419_v62 = vmul.f32 %v2417_v23, %v8840_v39 }
 0x3c8   : > { %v2380_v37 = vadd.f32 %v2378_v51, %v2374_v21  ;;  %v2381_v25 = vadd.f32 %v2379_v28, %v2375_v63  ;;  %v2420_v12 = vmul.f32 %v2417_v23, %v11033_v8  ;;  %v2469_v44 = vmul.f32 %v2468_v5, %v8825_v54 }
 0x3c9   : > { %v1980_v57 = vadd.f32 %v9273_v19, %v1963_v58  ;;  %v1981_v60 = vadd.f32 %v9276_v9, %v1964_v24  ;;  %v2424_v3 = vrot.slane %v2418_v42, 1  ;;  %v2425_v35 = vrot.slane %v2419_v62, 1 }
 0x3ca   : > { %v2397_v21 = vadd.f32 %v9096_v2, %v2380_v37  ;;  %v2398_v22 = vadd.f32 %v9099_v29, %v2381_v25  ;;  %v2427_v51 = vrot.slane %v2420_v12, 1  ;;  %v2470_v28 = vmul.f32 %v2468_v5, %v8840_v39 }
 0x3cb   : > { %v1997_v63 = vadd.f32 %v1992_v55, %v1980_v57  ;;  %v1998_v23 = vadd.f32 %v1994_v56, %v1981_v60  ;;  %v2426_v19 = vsel %vm1663_vm2, %v2424_v3, %v2425_v35  ;;  %v2471_v9 = vmul.f32 %v2468_v5, %v11033_v8 }
 0x3cc   : > { %v2414_v16 = vadd.f32 %v9284_v15, %v2397_v21  ;;  %v2415_v50 = vadd.f32 %v9294_v6, %v2398_v22  ;;  %v2428_v58 = vsel %vm1663_vm2, %v2425_v35, %v2427_v51  ;;  %v2475_v2 = vrot.slane %v2469_v44, 2 }
 0x3cd   : > { %v9536_v24 = vadd.f32 %v2001_v40, %v1997_v63  ;;  %v9538_v29 = vadd.f32 %v2002_v10, %v1998_v23  ;;  %v2476_v42 = vrot.slane %v2470_v28, 2  ;;  %v2478_v55 = vrot.slane %v2471_v9, 2 }
 0x3ce   : > { %v2431_v56 = vadd.f32 %v2426_v19, %v2414_v16  ;;  %v2432_v62 = vadd.f32 %v2428_v58, %v2415_v50  ;;  %v2485_v5 = vstv %s9506_s10  ;;  %v2850_v37 = vstv %s9508_s29  ;;  %s9762_s10 = sld [smem:[#allocation6 + $0x392]]  ;;  %s9770_s29 = sld [smem:[#allocation6 + $0x393]] }
 0x3cf   : > { %v2477_v15 = vsel %vm1715_vm3, %v2475_v2, %v2476_v42  ;;  %v2479_v6 = vsel %vm1715_vm3, %v2476_v42, %v2478_v55  ;;  %v2486_v25 = vmul.f32 %v2485_v5, %v11034_v47  ;;  %v2487_v40 = vmul.f32 %v2485_v5, %v11035_v34 }
 0x3d0   : > { %v2448_v10 = vadd.f32 %v9107_v45, %v2431_v56  ;;  %v2449_v12 = vadd.f32 %v9113_v46, %v2432_v62  ;;  %v2851_v44 = vmul.f32 %v2850_v37, %v10987_v17  ;;  %v2852_v36 = vmul.f32 %v2850_v37, %v10988_v27 }
 0x3d1   : > { %v2856_v57 = vstv %s9518_s5  ;;  %v2862_v60 = vstv %s9520_s20  ;;  %v2902_v3 = vstv %s9524_s23  ;;  %v2953_v35 = vstv %s9526_s27  ;;  %s9774_s5 = sld [smem:[#allocation6 + $0x394]]  ;;  %s9776_s20 = sld [smem:[#allocation6 + $0x397]] }
 0x3d2   : > { %v2465_v21 = vadd.f32 %v9303_v30, %v2448_v10  ;;  %v2466_v22 = vadd.f32 %v9306_v18, %v2449_v12  ;;  %v2853_v51 = vadd.f32 %v2851_v44, %v8933_v4  ;;  %v2854_v45 = vadd.f32 %v2852_v36, %v8937_v14  ;;  %s9789_s23 = sld [smem:[#allocation6 + $0x39a]]  ;;  %s9808_s27 = sld [smem:[#allocation6 + $0x39b]] }
 0x3d3   : > { %v2857_v46 = vmul.f32 %v2856_v57, %v11009_v31  ;;  %v2858_v28 = vmul.f32 %v2856_v57, %v11010_v53  ;;  %v2863_v63 = vmul.f32 %v2862_v60, %v8825_v54  ;;  %v2864_v23 = vmul.f32 %v2862_v60, %v8840_v39 }
 0x3d4   : > { %v2482_v19 = vadd.f32 %v2477_v15, %v2465_v21  ;;  %v2483_v9 = vadd.f32 %v2479_v6, %v2466_v22  ;;  %v2903_v30 = vmul.f32 %v2902_v3, %v8825_v54  ;;  %v2904_v18 = vmul.f32 %v2902_v3, %v8840_v39 }
 0x3d5   : > { %v2859_v4 = vadd.f32 %v2857_v46, %v2853_v51  ;;  %v2860_v14 = vadd.f32 %v2858_v28, %v2854_v45  ;;  %v2905_v16 = vmul.f32 %v2902_v3, %v11033_v8  ;;  %v2954_v50 = vmul.f32 %v2953_v35, %v8825_v54 }
 0x3d6   : > { %v9574_v58 = vadd.f32 %v2486_v25, %v2482_v19  ;;  %v9576_v2 = vadd.f32 %v2487_v40, %v2483_v9  ;;  %v2909_v42 = vrot.slane %v2903_v30, 1  ;;  %v2910_v55 = vrot.slane %v2904_v18, 1 }
 0x3d7   : > { %v2865_v56 = vadd.f32 %v2863_v63, %v2859_v4  ;;  %v2866_v62 = vadd.f32 %v2864_v23, %v2860_v14  ;;  %v2912_v5 = vrot.slane %v2905_v16, 1  ;;  %v2955_v37 = vmul.f32 %v2953_v35, %v8840_v39 }
 0x3d8   : > { %v2911_v15 = vsel %vm1663_vm2, %v2909_v42, %v2910_v55  ;;  %v2956_v6 = vmul.f32 %v2953_v35, %v11033_v8  ;;  %v2960_v10 = vrot.slane %v2954_v50, 2  ;;  %v2970_v12 = vstv %s9550_s11  ;;  %s9810_s11 = sld [smem:[#allocation6 + $0x1e]] }
 0x3d9   : > { %v2882_v25 = vadd.f32 %v9121_v11, %v2865_v56  ;;  %v2883_v40 = vadd.f32 %v9124_v1, %v2866_v62  ;;  %v2913_v44 = vsel %vm1663_vm2, %v2910_v55, %v2912_v5  ;;  %v2961_v36 = vrot.slane %v2955_v37, 2 }
 0x3da   : > { %v2963_v57 = vrot.slane %v2956_v6, 2  ;;  %v2971_v60 = vmul.f32 %v2970_v12, %v11034_v47  ;;  %v2972_v3 = vmul.f32 %v2970_v12, %v11035_v34  ;;  %v3335_v21 = vstv %s9560_s4  ;;  %s9821_s4 = sld [smem:[#allocation6 + $0x21]] }
 0x3db   : > { %v2899_v35 = vadd.f32 %v9313_v59, %v2882_v25  ;;  %v2900_v22 = vadd.f32 %v9316_v43, %v2883_v40  ;;  %v2962_v11 = vsel %vm1715_vm3, %v2960_v10, %v2961_v36  ;;  %v3336_v51 = vmul.f32 %v3335_v21, %v10987_v17 }
 0x3dc   : > { %v2964_v1 = vsel %vm1715_vm3, %v2961_v36, %v2963_v57  ;;  %v3337_v45 = vmul.f32 %v3335_v21, %v10988_v27  ;;  %v3341_v46 = vstv %s9568_s6  ;;  %v3347_v28 = vstv %s9570_s1  ;;  %s9831_s6 = sld [smem:[#allocation6 + $0x9e]]  ;;  %s9842_s1 = sld [smem:[#allocation6 + $0xa1]] }
 0x3dd   : > { %v2916_v63 = vadd.f32 %v2911_v15, %v2899_v35  ;;  %v2917_v23 = vadd.f32 %v2913_v44, %v2900_v22  ;;  %v3338_v19 = vadd.f32 %v3336_v51, %v8957_v52  ;;  %v3342_v9 = vmul.f32 %v3341_v46, %v11009_v31 }
 0x3de   : > { %v3339_v59 = vadd.f32 %v3337_v45, %v8962_v48  ;;  %v3343_v43 = vmul.f32 %v3341_v46, %v11010_v53  ;;  %v3348_v30 = vmul.f32 %v3347_v28, %v8825_v54  ;;  %v3349_v18 = vmul.f32 %v3347_v28, %v8840_v39 }
 0x3df   : > { %v2933_v4 = vadd.f32 %v9129_v41, %v2916_v63  ;;  %v2934_v14 = vadd.f32 %v9132_v33, %v2917_v23  ;;  %v3344_v16 = vadd.f32 %v3342_v9, %v3338_v19  ;;  %v3387_v50 = vstv %s9579_s2  ;;  %s9852_s2 = sld [smem:[#allocation6 + $0x11e]] }
 0x3e0   : > { %v3345_v52 = vadd.f32 %v3343_v43, %v3339_v59  ;;  %v3388_v42 = vmul.f32 %v3387_v50, %v8825_v54  ;;  %v3389_v48 = vmul.f32 %v3387_v50, %v8840_v39  ;;  %v3390_v55 = vmul.f32 %v3387_v50, %v11033_v8  ;;  %v11039_v43 = vld [vmem:[#allocation92_spill] sm:$0xff] }
 0x3e1   : > { %v2950_v56 = vadd.f32 %v9321_v38, %v2933_v4  ;;  %v2951_v62 = vadd.f32 %v9324_v7, %v2934_v14  ;;  %v3350_v41 = vadd.f32 %v3348_v30, %v3344_v16  ;;  %v3438_v5 = vstv %s9587_s3  ;;  %v11040_v16 = vld [vmem:[#allocation101_spill] sm:$0xff]  ;;  %s9854_s3 = sld [smem:[#allocation6 + $0x121]] }
 0x3e2   : > { %v3351_v33 = vadd.f32 %v3349_v18, %v3345_v52  ;;  %v3394_v37 = vrot.slane %v3388_v42, 1  ;;  %v3395_v15 = vrot.slane %v3389_v48, 1  ;;  %v3397_v6 = vrot.slane %v3390_v55, 1  ;;  %v11041_v52 = vld [vmem:[#allocation72_spill] sm:$0xff] }
 0x3e3   : > { %v2967_v10 = vadd.f32 %v2962_v11, %v2950_v56  ;;  %v2968_v12 = vadd.f32 %v2964_v1, %v2951_v62  ;;  %v3367_v25 = vadd.f32 %v9140_v26, %v3350_v41  ;;  %v3439_v40 = vmul.f32 %v3438_v5, %v8825_v54  ;;  %v11042_v48 = vld [vmem:[#allocation88_spill] sm:$0xff]  ;;  %v11043_v62 = vld [vmem:[#allocation102_spill] sm:$0xff] }
 0x3e4   : > { %v3368_v44 = vadd.f32 %v9150_v13, %v3351_v33  ;;  %v3396_v38 = vsel %vm1663_vm2, %v3394_v37, %v3395_v15  ;;  %v3398_v7 = vsel %vm1663_vm2, %v3395_v15, %v3397_v6  ;;  %v3440_v36 = vmul.f32 %v3438_v5, %v8840_v39 }
 0x3e5   : > { %v9633_v57 = vadd.f32 %v2971_v60, %v2967_v10  ;;  %v9635_v21 = vadd.f32 %v2972_v3, %v2968_v12  ;;  %v3384_v26 = vadd.f32 %v9334_v0, %v3367_v25  ;;  %v3441_v13 = vmul.f32 %v3438_v5, %v11033_v8  ;;  %v11038_v0 = vld [vmem:[#allocation76_spill] sm:$0xff] }
 0x3e6   : > { %v3385_v35 = vadd.f32 %v9344_v20, %v3368_v44  ;;  %v3445_v22 = vrot.slane %v3439_v40, 2  ;;  %v3446_v11 = vrot.slane %v3440_v36, 2  ;;  %v3455_v51 = vstv %s9606_s14  ;;  %s9871_s14 = sld [smem:[#allocation6 + $0x19e]] }
 0x3e7   : > { %v3401_v1 = vadd.f32 %v3396_v38, %v3384_v26  ;;  %v3448_v45 = vrot.slane %v3441_v13, 2  ;;  %v3456_v46 = vmul.f32 %v3455_v51, %v11034_v47  ;;  %v3457_v28 = vmul.f32 %v3455_v51, %v11035_v34 }
 0x3e8   : > { %v3402_v60 = vadd.f32 %v3398_v7, %v3385_v35  ;;  %v3447_v3 = vsel %vm1715_vm3, %v3445_v22, %v3446_v11  ;;  %v3820_v63 = vstv %s9614_s16  ;;  %v3826_v23 = vstv %s9616_s7  ;;  %s9880_s16 = sld [smem:[#allocation6 + $0x1a1]]  ;;  %s9882_s7 = sld [smem:[#allocation6 + $0x21e]] }
 0x3e9   : > { %v3418_v19 = vadd.f32 %v11038_v0, %v3401_v1  ;;  %v3449_v20 = vsel %vm1715_vm3, %v3446_v11, %v3448_v45  ;;  %v3821_v9 = vmul.f32 %v3820_v63, %v10987_v17  ;;  %v3822_v59 = vmul.f32 %v3820_v63, %v10988_v27  ;;  %v11044_v1 = vld [vmem:[#allocation93_spill] sm:$0xff] }
 0x3ea   : > { %v3419_v30 = vadd.f32 %v11039_v43, %v3402_v60  ;;  %v3827_v18 = vmul.f32 %v3826_v23, %v11009_v31  ;;  %v3828_v4 = vmul.f32 %v3826_v23, %v11010_v53  ;;  %v3832_v14 = vstv %s9621_s13  ;;  %s9911_s13 = sld [smem:[#allocation6 + $0x221]] }
 0x3eb   : > { %v3435_v50 = vadd.f32 %v11040_v16, %v3418_v19  ;;  %v3823_v42 = vadd.f32 %v3821_v9, %v11041_v52  ;;  %v3824_v55 = vadd.f32 %v3822_v59, %v11042_v48  ;;  %v3833_v56 = vmul.f32 %v3832_v14, %v8825_v54  ;;  %v11047_v59 = vld [vmem:[#allocation59_spill] sm:$0xff] }
 0x3ec   : > { %v3436_v41 = vadd.f32 %v11043_v62, %v3419_v30  ;;  %v3834_v5 = vmul.f32 %v3832_v14, %v8840_v39  ;;  %v3872_v33 = vstv %s9629_s30  ;;  %v3923_v37 = vstv %s9631_s9  ;;  %s9916_s30 = sld [smem:[#allocation6 + $0x29e]]  ;;  %s9934_s9 = sld [smem:[#allocation6 + $0x2a1]] }
 0x3ed   : > { %v3452_v15 = vadd.f32 %v3447_v3, %v3435_v50  ;;  %v3829_v6 = vadd.f32 %v3827_v18, %v3823_v42  ;;  %v3830_v10 = vadd.f32 %v3828_v4, %v3824_v55  ;;  %v3873_v12 = vmul.f32 %v3872_v33, %v8825_v54 }
 0x3ee   : > { %v3453_v25 = vadd.f32 %v3449_v20, %v3436_v41  ;;  %v3874_v40 = vmul.f32 %v3872_v33, %v8840_v39  ;;  %v3875_v44 = vmul.f32 %v3872_v33, %v11033_v8  ;;  %v3924_v38 = vmul.f32 %v3923_v37, %v8825_v54  ;;  %v11046_v20 = vld [vmem:[#allocation58_spill] sm:$0xff] }
 0x3ef   : > { %v9674_v7 = vadd.f32 %v3456_v46, %v3452_v15  ;;  %v3835_v36 = vadd.f32 %v3833_v56, %v3829_v6  ;;  %v3836_v26 = vadd.f32 %v3834_v5, %v3830_v10  ;;  %v3879_v13 = vrot.slane %v3873_v12, 1  ;;  %v11045_v46 = vld [vmem:[#allocation77_spill] sm:$0xff]  ;;  %v11048_v33 = vld [vmem:[#allocation78_spill] sm:$0xff] }
 0x3f0   : > { %v9676_v35 = vadd.f32 %v3457_v28, %v3453_v25  ;;  %v3880_v22 = vrot.slane %v3874_v40, 1  ;;  %v3882_v11 = vrot.slane %v3875_v44, 1  ;;  %v3925_v51 = vmul.f32 %v3923_v37, %v8840_v39  ;;  %v11049_v15 = vld [vmem:[#allocation94_spill] sm:$0xff]  ;;  %v11050_v10 = vld [vmem:[#allocation89_spill] sm:$0xff] }
 0x3f1   : > { %v3852_v45 = vadd.f32 %v11044_v1, %v3835_v36  ;;  %v3853_v60 = vadd.f32 %v11045_v46, %v3836_v26  ;;  %v3926_v3 = vmul.f32 %v3923_v37, %v11033_v8  ;;  %v3930_v63 = vrot.slane %v3924_v38, 2  ;;  %v11051_v40 = vld [vmem:[#allocation73_spill] sm:$0xff] }
 0x3f2   : > { %v3881_v28 = vsel %vm1663_vm2, %v3879_v13, %v3880_v22  ;;  %v3883_v23 = vsel %vm1663_vm2, %v3880_v22, %v3882_v11  ;;  %v3931_v0 = vrot.slane %v3925_v51, 2  ;;  %v3940_v19 = vstv %s9654_s28  ;;  %v11052_v13 = vld [vmem:[#allocation60_spill] sm:$0xff]  ;;  %v11053_v11 = vld [vmem:[#allocation61_spill] sm:$0xff]  ;;  %s9941_s28 = sld [smem:[#allocation6 + $0x31e]] }
 0x3f3   : > { %v3869_v9 = vadd.f32 %v11046_v20, %v3852_v45  ;;  %v3870_v43 = vadd.f32 %v11047_v59, %v3853_v60  ;;  %v3933_v30 = vrot.slane %v3926_v3, 2  ;;  %v3941_v18 = vmul.f32 %v3940_v19, %v11034_v47 }
 0x3f4   : > { %v3932_v4 = vsel %vm1715_vm3, %v3930_v63, %v3931_v0  ;;  %v3942_v14 = vmul.f32 %v3940_v19, %v11035_v34  ;;  %v4305_v16 = vstv %s9664_s12  ;;  %v4311_v50 = vstv %s9666_s24  ;;  %s9957_s12 = sld [smem:[#allocation6 + $0x321]]  ;;  %s9959_s24 = sld [smem:[#allocation6 + $0x39e]] }
 0x3f5   : > { %v3886_v52 = vadd.f32 %v3881_v28, %v3869_v9  ;;  %v3887_v42 = vadd.f32 %v3883_v23, %v3870_v43  ;;  %v3934_v48 = vsel %vm1715_vm3, %v3931_v0, %v3933_v30  ;;  %v4306_v55 = vmul.f32 %v4305_v16, %v10987_v17 }
 0x3f6   : > { %v4307_v56 = vmul.f32 %v4305_v16, %v10988_v27  ;;  %v4312_v62 = vmul.f32 %v4311_v50, %v11009_v31  ;;  %v4313_v41 = vmul.f32 %v4311_v50, %v11010_v53  ;;  %v4317_v5 = vstv %s9672_s15  ;;  %v11054_v50 = vld [vmem:[#allocation95_spill] sm:$0xff]  ;;  %s9983_s15 = sld [smem:[#allocation6 + $0x3a1]] }
 0x3f7   : > { %v3903_v37 = vadd.f32 %v11048_v33, %v3886_v52  ;;  %v3904_v6 = vadd.f32 %v11049_v15, %v3887_v42  ;;  %v4308_v12 = vadd.f32 %v4306_v55, %v11050_v10  ;;  %v4318_v25 = vmul.f32 %v4317_v5, %v8825_v54 }
 0x3f8   : > { %v4309_v44 = vadd.f32 %v4307_v56, %v11051_v40  ;;  %v4319_v38 = vmul.f32 %v4317_v5, %v8840_v39  ;;  %v4357_v36 = vstv %s9679_s0  ;;  %v4408_v26 = vstv %s9681_s8  ;;  %s9985_s0 = sld [smem:[#allocation6 + $0x1c]]  ;;  %s11086_s8 = sld [smem:[#allocation17_spill]] }
 0x3f9   : > { %v3920_v22 = vadd.f32 %v11052_v13, %v3903_v37  ;;  %v3921_v51 = vadd.f32 %v11053_v11, %v3904_v6  ;;  %v4314_v1 = vadd.f32 %v4312_v62, %v4308_v12  ;;  %v4358_v45 = vmul.f32 %v4357_v36, %v8825_v54  ;;  %v11057_v37 = vld [vmem:[#allocation68_spill] sm:$0xff] }
 0x3fa   : > { %v4315_v46 = vadd.f32 %v4313_v41, %v4309_v44  ;;  %v4359_v60 = vmul.f32 %v4357_v36, %v8840_v39  ;;  %v4360_v3 = vmul.f32 %v4357_v36, %v11033_v8  ;;  %v4409_v63 = vmul.f32 %v4408_v26, %v8825_v54  ;;  %v9747_v36 = vpop.f32.mrb[46].mxu1 }
 0x3fb   : > { %v3937_v28 = vadd.f32 %v3932_v4, %v3920_v22  ;;  %v3938_v23 = vadd.f32 %v3934_v48, %v3921_v51  ;;  %v4320_v0 = vadd.f32 %v4318_v25, %v4314_v1  ;;  %v4364_v19 = vrot.slane %v4358_v45, 1  ;;  %v11055_v4 = vld [vmem:[#allocation79_spill] sm:$0xff]  ;;  %v6348_v51 = vpop.f32.mrb[47].mxu1  ;;  %v11058_v1 = vld [vmem:[#allocation80_spill] sm:$0xff] }
 0x3fc   : > { %v4321_v20 = vadd.f32 %v4319_v38, %v4315_v46  ;;  %v4365_v9 = vrot.slane %v4359_v60, 1  ;;  %v4367_v59 = vrot.slane %v4360_v3, 1  ;;  %v4410_v43 = vmul.f32 %v4408_v26, %v8840_v39  ;;  %v11059_v46 = vld [vmem:[#allocation74_spill] sm:$0xff] }
 0x3fd   : > { %v9725_v30 = vadd.f32 %v3941_v18, %v3937_v28  ;;  %v9727_v16 = vadd.f32 %v3942_v14, %v3938_v23  ;;  %v4337_v52 = vadd.f32 %v11054_v50, %v4320_v0  ;;  %v4411_v42 = vmul.f32 %v4408_v26, %v11033_v8  ;;  %v11056_v18 = vld [vmem:[#allocation62_spill] sm:$0xff]  ;;  %v11060_v28 = vld [vmem:[#allocation96_spill] sm:$0xff] }
 0x3fe   : > { %v4338_v48 = vadd.f32 %v11055_v4, %v4321_v20  ;;  %v4366_v55 = vsel %vm1663_vm2, %v4364_v19, %v4365_v9  ;;  %v4368_v56 = vsel %vm1663_vm2, %v4365_v9, %v4367_v59  ;;  %v4415_v62 = vrot.slane %v4409_v63, 2  ;;  %v11061_v0 = vld [vmem:[#allocation90_spill] sm:$0xff]  ;;  %v11062_v59 = vld [vmem:[#allocation84_spill] sm:$0xff]  ;;  %v11063_v4 = vld [vmem:[#allocation85_spill] sm:$0xff] }
 0x3ff   : > { %v4354_v14 = vadd.f32 %v11056_v18, %v4337_v52  ;;  %v4416_v41 = vrot.slane %v4410_v43, 2  ;;  %v4418_v5 = vrot.slane %v4411_v42, 2  ;;  %v4425_v33 = vstv %s9706_s22  ;;  %s10002_s22 = sld [smem:[#allocation6 + $0x1d]] }
 0x400   : > { %v4355_v15 = vadd.f32 %v11057_v37, %v4338_v48  ;;  %v4426_v6 = vmul.f32 %v4425_v33, %v11034_v47  ;;  %v4427_v10 = vmul.f32 %v4425_v33, %v11035_v34  ;;  %v4790_v12 = vstv %s9712_s19  ;;  %s10008_s19 = sld [smem:[#allocation6 + $0x1f]] }
 0x401   : > { %v4371_v25 = vadd.f32 %v4366_v55, %v4354_v14  ;;  %v4417_v40 = vsel %vm1715_vm3, %v4415_v62, %v4416_v41  ;;  %v4419_v44 = vsel %vm1715_vm3, %v4416_v41, %v4418_v5  ;;  %v4791_v38 = vmul.f32 %v4790_v12, %v10987_v17 }
 0x402   : > { %v4372_v26 = vadd.f32 %v4368_v56, %v4355_v15  ;;  %v4792_v13 = vmul.f32 %v4790_v12, %v10988_v27  ;;  %v4796_v22 = vstv %s9720_s25  ;;  %v4802_v11 = vstv %s9722_s18  ;;  %s281_s25 = sand.u32 1, %s11086_s8   ;;  %s10014_s18 = sld [smem:[#allocation6 + $0x22]] }
 0x403   : > { %v4388_v45 = vadd.f32 %v11058_v1, %v4371_v25  ;;  %v4793_v60 = vadd.f32 %v4791_v38, %v11059_v46  ;;  %v4797_v3 = vmul.f32 %v4796_v22, %v11009_v31  ;;  %v4798_v63 = vmul.f32 %v4796_v22, %v11010_v53  ;;  %v11064_v38 = vld [vmem:[#allocation97_spill] sm:$0xff] }
 0x404   : > { %v4389_v23 = vadd.f32 %v11060_v28, %v4372_v26  ;;  %v4794_v19 = vadd.f32 %v4792_v13, %v11061_v0  ;;  %v4803_v20 = vmul.f32 %v4802_v11, %v8825_v54  ;;  %v4804_v9 = vmul.f32 %v4802_v11, %v8840_v39  ;;  %v11065_v11 = vld [vmem:[#allocation83_spill] sm:$0xff] }
 0x405   : > { %v4405_v43 = vadd.f32 %v11062_v59, %v4388_v45  ;;  %v4799_v50 = vadd.f32 %v4797_v3, %v4793_v60  ;;  %v4842_v52 = vstv %s9731_s21  ;;  %v4893_v42 = vstv %s9733_s26  ;;  %v11066_v45 = vld [vmem:[#allocation66_spill] sm:$0xff]  ;;  %s10042_s21 = sld [smem:[#allocation6 + $0x9c]]  ;;  %s10044_s26 = sld [smem:[#allocation6 + $0x9d]] }
 0x406   : > { %v4406_v48 = vadd.f32 %v11063_v4, %v4389_v23  ;;  %v4800_v55 = vadd.f32 %v4798_v63, %v4794_v19  ;;  %v4843_v56 = vmul.f32 %v4842_v52, %v8825_v54  ;;  %v4844_v62 = vmul.f32 %v4842_v52, %v8840_v39  ;;  %v11067_v63 = vld [vmem:[#allocation63_spill] sm:$0xff]  ;;  %v11068_v4 = vld [vmem:[#allocation81_spill] sm:$0xff] }
 0x407   : > { %v4422_v18 = vadd.f32 %v4417_v40, %v4405_v43  ;;  %v4805_v14 = vadd.f32 %v4803_v20, %v4799_v50  ;;  %v4845_v41 = vmul.f32 %v4842_v52, %v11033_v8  ;;  %v4894_v5 = vmul.f32 %v4893_v42, %v8825_v54 }
 0x408   : > { %v4423_v33 = vadd.f32 %v4419_v44, %v4406_v48  ;;  %v4806_v37 = vadd.f32 %v4804_v9, %v4800_v55  ;;  %v4849_v15 = vrot.slane %v4843_v56, 1  ;;  %v4850_v12 = vrot.slane %v4844_v62, 1 }
 0x409   : > { %v9778_v25 = vadd.f32 %v4426_v6, %v4422_v18  ;;  %v4822_v26 = vadd.f32 %v11064_v38, %v4805_v14  ;;  %v4852_v40 = vrot.slane %v4845_v41, 1  ;;  %v4895_v13 = vmul.f32 %v4893_v42, %v8840_v39  ;;  %v11069_v18 = vld [vmem:[#allocation82_spill] sm:$0xff]  ;;  %v11070_v41 = vld [vmem:[#allocation91_spill] sm:$0xff] }
 0x40a   : > { %v9782_v22 = vadd.f32 %v4427_v10, %v4423_v33  ;;  %v4823_v51 = vadd.f32 %v11065_v11, %v4806_v37  ;;  %v4851_v1 = vsel %vm1663_vm2, %v4849_v15, %v4850_v12  ;;  %v4896_v44 = vmul.f32 %v4893_v42, %v11033_v8  ;;  %v11071_v33 = vld [vmem:[#allocation75_spill] sm:$0xff] }
 0x40b   : > { %v4839_v46 = vadd.f32 %v11066_v45, %v4822_v26  ;;  %v4853_v60 = vsel %vm1663_vm2, %v4850_v12, %v4852_v40  ;;  %v4900_v6 = vrot.slane %v4894_v5, 2  ;;  %v4901_v3 = vrot.slane %v4895_v13, 2  ;;  %v11073_v40 = vld [vmem:[#allocation69_spill] sm:$0xff] }
 0x40c   : > { %v4840_v10 = vadd.f32 %v11067_v63, %v4823_v51  ;;  %v4903_v28 = vrot.slane %v4896_v44, 2  ;;  %v4910_v23 = vstv %s9760_s17  ;;  %v5275_v0 = vstv %s9762_s10  ;;  %s10057_s17 = sld [smem:[#allocation6 + $0x9f]]  ;;  %s10059_s10 = sld [smem:[#allocation6 + $0xa2]] }
 0x40d   : > { %v4856_v19 = vadd.f32 %v4851_v1, %v4839_v46  ;;  %v4902_v20 = vsel %vm1715_vm3, %v4900_v6, %v4901_v3  ;;  %v4911_v9 = vmul.f32 %v4910_v23, %v11034_v47  ;;  %v4912_v59 = vmul.f32 %v4910_v23, %v11035_v34 }
 0x40e   : > { %v4857_v43 = vadd.f32 %v4853_v60, %v4840_v10  ;;  %v4904_v50 = vsel %vm1715_vm3, %v4901_v3, %v4903_v28  ;;  %v5276_v52 = vmul.f32 %v5275_v0, %v10987_v17  ;;  %v5277_v42 = vmul.f32 %v5275_v0, %v10988_v27  ;;  %v11072_v17 = vld [vmem:[#allocation65_spill] sm:$0xff] }
 0x40f   : > { %v4873_v48 = vadd.f32 %v11068_v4, %v4856_v19  ;;  %v5281_v55 = vstv %s9770_s29  ;;  %v5287_v56 = vstv %s9774_s5  ;;  %v5327_v62 = vstv %s9776_s20  ;;  %v11074_v19 = vld [vmem:[#allocation98_spill] sm:$0xff]  ;;  %s10075_s29 = sld [smem:[#allocation6 + $0x11c]]  ;;  %s10091_s5 = sld [smem:[#allocation6 + $0x11d]] }
 0x410   : > { %v4874_v14 = vadd.f32 %v11069_v18, %v4857_v43  ;;  %v5278_v5 = vadd.f32 %v5276_v52, %v11070_v41  ;;  %v5279_v37 = vadd.f32 %v5277_v42, %v11071_v33  ;;  %v5282_v15 = vmul.f32 %v5281_v55, %v11009_v31  ;;  %v11077_v18 = vld [vmem:[#allocation64_spill] sm:$0xff]  ;;  %s10093_s20 = sld [smem:[#allocation6 + $0x11f]] }
 0x411   : > { %v4890_v27 = vadd.f32 %v11072_v17, %v4873_v48  ;;  %v5283_v12 = vmul.f32 %v5281_v55, %v11010_v53  ;;  %v5288_v38 = vmul.f32 %v5287_v56, %v8825_v54  ;;  %v5289_v26 = vmul.f32 %v5287_v56, %v8840_v39  ;;  %v11076_v55 = vld [vmem:[#allocation67_spill] sm:$0xff] }
 0x412   : > { %v4891_v13 = vadd.f32 %v11073_v40, %v4874_v14  ;;  %v5284_v11 = vadd.f32 %v5282_v15, %v5278_v5  ;;  %v5328_v51 = vmul.f32 %v5327_v62, %v8825_v54  ;;  %v5329_v1 = vmul.f32 %v5327_v62, %v8840_v39  ;;  %v11079_v40 = vld [vmem:[#allocation99_spill] sm:$0xff] }
 0x413   : > { %v4907_v31 = vadd.f32 %v4902_v20, %v4890_v27  ;;  %v5285_v44 = vadd.f32 %v5283_v12, %v5279_v37  ;;  %v5330_v45 = vmul.f32 %v5327_v62, %v11033_v8  ;;  %v5378_v46 = vstv %s9789_s23  ;;  %v11078_v12 = vld [vmem:[#allocation100_spill] sm:$0xff]  ;;  %s10103_s23 = sld [smem:[#allocation6 + $0x122]] }
 0x414   : > { %v4908_v60 = vadd.f32 %v4904_v50, %v4891_v13  ;;  %v5290_v53 = vadd.f32 %v5288_v38, %v5284_v11  ;;  %v5334_v6 = vrot.slane %v5328_v51, 1  ;;  %v5335_v3 = vrot.slane %v5329_v1, 1  ;;  %v11075_v50 = vld [vmem:[#allocation56_spill] sm:$0xff] }
 0x415   : > { %v9823_v63 = vadd.f32 %v4911_v9, %v4907_v31  ;;  %v5291_v10 = vadd.f32 %v5289_v26, %v5285_v44  ;;  %v5337_v28 = vrot.slane %v5330_v45, 1  ;;  %v5379_v23 = vmul.f32 %v5378_v46, %v8825_v54  ;;  %v11080_v31 = vld [vmem:[#allocation57_spill] sm:$0xff] }
 0x416   : > { %v9826_v0 = vadd.f32 %v4912_v59, %v4908_v60  ;;  %v5307_v20 = vadd.f32 %v11074_v19, %v5290_v53  ;;  %v5336_v43 = vsel %vm1663_vm2, %v5334_v6, %v5335_v3  ;;  %v5380_v52 = vmul.f32 %v5378_v46, %v8840_v39  ;;  %v11081_v53 = vld [vmem:[#allocation70_spill] sm:$0xff] }
 0x417   : > { %v5308_v42 = vadd.f32 %v11075_v50, %v5291_v10  ;;  %v5338_v9 = vsel %vm1663_vm2, %v5335_v3, %v5337_v28  ;;  %v5381_v4 = vmul.f32 %v5378_v46, %v11033_v8  ;;  %v5385_v48 = vrot.slane %v5379_v23, 2  ;;  %v11082_v23 = vld [vmem:[#allocation103_spill] sm:$0xff] }
 0x418   : > { %v5324_v56 = vadd.f32 %v11076_v55, %v5307_v20  ;;  %v5386_v54 = vrot.slane %v5380_v52, 2  ;;  %v5395_v59 = vstv %s9808_s27  ;;  %v2018_v62 = vstv %s9810_s11  ;;  %s10109_s27 = sld [smem:[#allocation6 + $0x19c]]  ;;  %s10129_s11 = sld [smem:[#allocation6 + $0x19d]] }
 0x419   : > { %v5325_v14 = vadd.f32 %v11077_v18, %v5308_v42  ;;  %v5388_v41 = vrot.slane %v5381_v4, 2  ;;  %v5396_v39 = vmul.f32 %v5395_v59, %v11034_v47  ;;  %v5397_v5 = vmul.f32 %v5395_v59, %v11035_v34 }
 0x41a   : > { %v5341_v33 = vadd.f32 %v5336_v43, %v5324_v56  ;;  %v5387_v37 = vsel %vm1715_vm3, %v5385_v48, %v5386_v54  ;;  %v2019_v8 = vmul.f32 %v2018_v62, %v11034_v47  ;;  %v2020_v15 = vmul.f32 %v2018_v62, %v11035_v34 }
 0x41b   : > { %v5342_v17 = vadd.f32 %v5338_v9, %v5325_v14  ;;  %v5389_v27 = vsel %vm1715_vm3, %v5386_v54, %v5388_v41  ;;  %v2021_v38 = vmul.f32 %v2018_v62, %v11078_v12  ;;  %v2069_v26 = vstv %s9821_s4  ;;  %s10131_s4 = sld [smem:[#allocation6 + $0x19f]] }
 0x41c   : > { %v5358_v13 = vadd.f32 %v11079_v40, %v5341_v33  ;;  %v2025_v11 = vrot.slane %v2019_v8, 1  ;;  %v2026_v51 = vrot.slane %v2020_v15, 1  ;;  %v2070_v1 = vmul.f32 %v2069_v26, %v11034_v47 }
 0x41d   : > { %v5359_v44 = vadd.f32 %v11080_v31, %v5342_v17  ;;  %v2028_v45 = vrot.slane %v2021_v38, 1  ;;  %v2071_v46 = vmul.f32 %v2069_v26, %v11035_v34  ;;  %v2072_v60 = vmul.f32 %v2069_v26, %v11078_v12 }
 0x41e   : > { %v5375_v6 = vadd.f32 %v11081_v53, %v5358_v13  ;;  %v9861_v3 = vsel %vm1663_vm2, %v2025_v11, %v2026_v51  ;;  %v2076_v10 = vrot.slane %v2070_v1, 2  ;;  %v2503_v28 = vstv %s9831_s6  ;;  %s10141_s6 = sld [smem:[#allocation6 + $0x1a2]] }
 0x41f   : > { %v5376_v19 = vadd.f32 %v11082_v23, %v5359_v44  ;;  %v9866_v20 = vsel %vm1663_vm2, %v2026_v51, %v2028_v45  ;;  %v2077_v43 = vrot.slane %v2071_v46, 2  ;;  %v2079_v52 = vrot.slane %v2072_v60, 2 }
 0x420   : > { %v5392_v50 = vadd.f32 %v5387_v37, %v5375_v6  ;;  %v2504_v42 = vmul.f32 %v2503_v28, %v11034_v47  ;;  %v2505_v9 = vmul.f32 %v2503_v28, %v11035_v34  ;;  %v2506_v4 = vmul.f32 %v2503_v28, %v11078_v12 }
 0x421   : > { %v5393_v48 = vadd.f32 %v5389_v27, %v5376_v19  ;;  %v9874_v55 = vsel %vm1715_vm3, %v2076_v10, %v2077_v43  ;;  %v9877_v56 = vsel %vm1715_vm3, %v2077_v43, %v2079_v52  ;;  %v2554_v54 = vstv %s9842_s1  ;;  %s10151_s1 = sld [smem:[#allocation6 + $0x21c]] }
 0x422   : > { %v9884_v59 = vadd.f32 %v5396_v39, %v5392_v50  ;;  %v2510_v62 = vrot.slane %v2504_v42, 1  ;;  %v2511_v18 = vrot.slane %v2505_v9, 1  ;;  %v2513_v14 = vrot.slane %v2506_v4, 1 }
 0x423   : > { %v9886_v41 = vadd.f32 %v5397_v5, %v5393_v48  ;;  %v2555_v33 = vmul.f32 %v2554_v54, %v11034_v47  ;;  %v2556_v37 = vmul.f32 %v2554_v54, %v11035_v34  ;;  %v2557_v8 = vmul.f32 %v2554_v54, %v11078_v12 }
 0x424   : > { %v9892_v15 = vsel %vm1663_vm2, %v2510_v62, %v2511_v18  ;;  %v9895_v17 = vsel %vm1663_vm2, %v2511_v18, %v2513_v14  ;;  %v2988_v27 = vstv %s9852_s2  ;;  %v3039_v39 = vstv %s9854_s3  ;;  %s10167_s2 = sld [smem:[#allocation6 + $0x21d]]  ;;  %s10169_s3 = sld [smem:[#allocation6 + $0x21f]] }
 0x425   : > { %v2561_v38 = vrot.slane %v2555_v33, 2  ;;  %v2562_v26 = vrot.slane %v2556_v37, 2  ;;  %v2564_v40 = vrot.slane %v2557_v8, 2  ;;  %v2989_v5 = vmul.f32 %v2988_v27, %v11034_v47 }
 0x426   : > { %v2990_v13 = vmul.f32 %v2988_v27, %v11035_v34  ;;  %v2991_v11 = vmul.f32 %v2988_v27, %v11078_v12  ;;  %v3040_v51 = vmul.f32 %v3039_v39, %v11034_v47  ;;  %v3041_v1 = vmul.f32 %v3039_v39, %v11035_v34 }
 0x427   : > { %v9905_v31 = vsel %vm1715_vm3, %v2561_v38, %v2562_v26  ;;  %v9908_v44 = vsel %vm1715_vm3, %v2562_v26, %v2564_v40  ;;  %v2995_v45 = vrot.slane %v2989_v5, 1  ;;  %v3042_v46 = vmul.f32 %v3039_v39, %v11078_v12 }
 0x428   : > { %v2996_v60 = vrot.slane %v2990_v13, 1  ;;  %v2998_v53 = vrot.slane %v2991_v11, 1  ;;  %v3046_v6 = vrot.slane %v3040_v51, 2  ;;  %v3047_v10 = vrot.slane %v3041_v1, 2 }
 0x429   : > { %v3049_v28 = vrot.slane %v3042_v46, 2  ;;  %v3473_v23 = vstv %s9871_s14  ;;  %v3524_v19 = vstv %s9880_s16  ;;  %v3958_v43 = vstv %s9882_s7  ;;  %s10179_s14 = sld [smem:[#allocation6 + $0x222]]  ;;  %s10186_s16 = sld [smem:[#allocation6 + $0x29c]] }
 0x42a   : > { %v9919_v52 = vsel %vm1663_vm2, %v2995_v45, %v2996_v60  ;;  %v9922_v50 = vsel %vm1663_vm2, %v2996_v60, %v2998_v53  ;;  %v9925_v42 = vsel %vm1715_vm3, %v3046_v6, %v3047_v10  ;;  %v3474_v9 = vmul.f32 %v3473_v23, %v11034_v47  ;;  %s10205_s7 = sld [smem:[#allocation6 + $0x29d]] }
 0x42b   : > { %v9929_v4 = vsel %vm1715_vm3, %v3047_v10, %v3049_v28  ;;  %v3475_v48 = vmul.f32 %v3473_v23, %v11035_v34  ;;  %v3476_v54 = vmul.f32 %v3473_v23, %v11078_v12  ;;  %v3525_v62 = vmul.f32 %v3524_v19, %v11034_v47 }
 0x42c   : > { %v3480_v18 = vrot.slane %v3474_v9, 1  ;;  %v3526_v14 = vmul.f32 %v3524_v19, %v11035_v34  ;;  %v3527_v33 = vmul.f32 %v3524_v19, %v11078_v12  ;;  %v3959_v37 = vmul.f32 %v3958_v43, %v11034_v47 }
 0x42d   : > { %v3481_v8 = vrot.slane %v3475_v48, 1  ;;  %v3483_v27 = vrot.slane %v3476_v54, 1  ;;  %v3531_v39 = vrot.slane %v3525_v62, 2  ;;  %v3960_v38 = vmul.f32 %v3958_v43, %v11035_v34 }
 0x42e   : > { %v3532_v26 = vrot.slane %v3526_v14, 2  ;;  %v3534_v40 = vrot.slane %v3527_v33, 2  ;;  %v3961_v5 = vmul.f32 %v3958_v43, %v11078_v12  ;;  %v3965_v13 = vrot.slane %v3959_v37, 1 }
 0x42f   : > { %v9944_v11 = vsel %vm1663_vm2, %v3480_v18, %v3481_v8  ;;  %v9947_v51 = vsel %vm1663_vm2, %v3481_v8, %v3483_v27  ;;  %v3966_v1 = vrot.slane %v3960_v38, 1  ;;  %v4009_v45 = vstv %s9911_s13  ;;  %s10207_s13 = sld [smem:[#allocation6 + $0x29f]] }
 0x430   : > { %v9951_v46 = vsel %vm1715_vm3, %v3531_v39, %v3532_v26  ;;  %v9954_v60 = vsel %vm1715_vm3, %v3532_v26, %v3534_v40  ;;  %v3968_v53 = vrot.slane %v3961_v5, 1  ;;  %v4010_v6 = vmul.f32 %v4009_v45, %v11034_v47 }
 0x431   : > { %11083 = vst [vmem:[#allocation87_spill] sm:$0xff] %v9954_v60  ;;  %v9962_v10 = vsel %vm1663_vm2, %v3965_v13, %v3966_v1  ;;  %v4011_v28 = vmul.f32 %v4009_v45, %v11035_v34  ;;  %v4012_v23 = vmul.f32 %v4009_v45, %v11078_v12  ;;  %v4443_v19 = vstv %s9916_s30  ;;  %s10217_s30 = sld [smem:[#allocation6 + $0x2a2]] }
 0x432   : > { %v9968_v43 = vsel %vm1663_vm2, %v3966_v1, %v3968_v53  ;;  %v4016_v9 = vrot.slane %v4010_v6, 2  ;;  %v4444_v48 = vmul.f32 %v4443_v19, %v11034_v47  ;;  %v4445_v54 = vmul.f32 %v4443_v19, %v11035_v34 }
 0x433   : > { %v4017_v62 = vrot.slane %v4011_v28, 2  ;;  %v4019_v18 = vrot.slane %v4012_v23, 2  ;;  %v4446_v14 = vmul.f32 %v4443_v19, %v11078_v12  ;;  %v4494_v33 = vstv %s9934_s9  ;;  %s10227_s9 = sld [smem:[#allocation6 + $0x31c]] }
 0x434   : > { %v4450_v37 = vrot.slane %v4444_v48, 1  ;;  %v4451_v8 = vrot.slane %v4445_v54, 1  ;;  %v4495_v27 = vmul.f32 %v4494_v33, %v11034_v47  ;;  %v4496_v39 = vmul.f32 %v4494_v33, %v11035_v34 }
 0x435   : > { %v9977_v38 = vsel %vm1715_vm3, %v4016_v9, %v4017_v62  ;;  %v9980_v26 = vsel %vm1715_vm3, %v4017_v62, %v4019_v18  ;;  %v4453_v40 = vrot.slane %v4446_v14, 1  ;;  %v4497_v5 = vmul.f32 %v4494_v33, %v11078_v12 }
 0x436   : > { %11084 = vst [vmem:[#allocation76_spill] sm:$0xff] %v9977_v38  ;;  %11085 = vst [vmem:[#allocation92_spill] sm:$0xff] %v9980_v26  ;;  %v9988_v13 = vsel %vm1663_vm2, %v4450_v37, %v4451_v8  ;;  %v4501_v1 = vrot.slane %v4495_v27, 2  ;;  %v4502_v45 = vrot.slane %v4496_v39, 2  ;;  %v4928_v53 = vstv %s9941_s28  ;;  %s10243_s28 = sld [smem:[#allocation6 + $0x31d]] }
 0x437   : > { %v9992_v6 = vsel %vm1663_vm2, %v4451_v8, %v4453_v40  ;;  %v4504_v28 = vrot.slane %v4497_v5, 2  ;;  %v4929_v23 = vmul.f32 %v4928_v53, %v11034_v47  ;;  %v4930_v19 = vmul.f32 %v4928_v53, %v11035_v34 }
 0x438   : > { %v9997_v9 = vsel %vm1715_vm3, %v4501_v1, %v4502_v45  ;;  %v4931_v48 = vmul.f32 %v4928_v53, %v11078_v12  ;;  %v4979_v54 = vstv %s9957_s12  ;;  %v5413_v62 = vstv %s9959_s24  ;;  %s10245_s12 = sld [smem:[#allocation6 + $0x31f]]  ;;  %s10255_s24 = sld [smem:[#allocation6 + $0x322]] }
 0x439   : > { %11087 = vst [vmem:[#allocation101_spill] sm:$0xff] %v9997_v9  ;;  %v10005_v18 = vsel %vm1715_vm3, %v4502_v45, %v4504_v28  ;;  %v4935_v14 = vrot.slane %v4929_v23, 1  ;;  %v4936_v33 = vrot.slane %v4930_v19, 1  ;;  %v4980_v37 = vmul.f32 %v4979_v54, %v11034_v47 }
 0x43a   : > { %11088 = vst [vmem:[#allocation72_spill] sm:$0xff] %v10005_v18  ;;  %v4938_v8 = vrot.slane %v4931_v48, 1  ;;  %v4981_v27 = vmul.f32 %v4979_v54, %v11035_v34  ;;  %v4982_v39 = vmul.f32 %v4979_v54, %v11078_v12  ;;  %v5414_v40 = vmul.f32 %v5413_v62, %v11034_v47 }
 0x43b   : > { %v10017_v5 = vsel %vm1663_vm2, %v4935_v14, %v4936_v33  ;;  %v4986_v1 = vrot.slane %v4980_v37, 2  ;;  %v5415_v45 = vmul.f32 %v5413_v62, %v11035_v34  ;;  %v5416_v53 = vmul.f32 %v5413_v62, %v11078_v12 }
 0x43c   : > { %v10022_v28 = vsel %vm1663_vm2, %v4936_v33, %v4938_v8  ;;  %v4987_v23 = vrot.slane %v4981_v27, 2  ;;  %v4989_v19 = vrot.slane %v4982_v39, 2  ;;  %v5420_v48 = vrot.slane %v5414_v40, 1  ;;  %v11091_v39 = vld [vmem:[#allocation71_spill] sm:$0xff] }
 0x43d   : > { %v5421_v18 = vrot.slane %v5415_v45, 1  ;;  %v5423_v54 = vrot.slane %v5416_v53, 1  ;;  %v5464_v9 = vstv %s9983_s15  ;;  %v2006_v26 = vstv %s9985_s0  ;;  %s10262_s15 = sld [smem:[#allocation6 + $0x39c]]  ;;  %s10281_s0 = sld [smem:[#allocation6 + $0x39d]] }
 0x43e   : > { %v10027_v38 = vsel %vm1715_vm3, %v4986_v1, %v4987_v23  ;;  %v10030_v14 = vsel %vm1715_vm3, %v4987_v23, %v4989_v19  ;;  %v5465_v37 = vmul.f32 %v5464_v9, %v11034_v47  ;;  %v5466_v62 = vmul.f32 %v5464_v9, %v11035_v34  ;;  %v11092_v19 = vld [vmem:[#allocation86_spill] sm:$0xff] }
 0x43f   : > { %11089 = vst [vmem:[#allocation88_spill] sm:$0xff] %v10027_v38  ;;  %11090 = vst [vmem:[#allocation102_spill] sm:$0xff] %v10030_v14  ;;  %v10035_v33 = vsel %vm1663_vm2, %v5420_v48, %v5421_v18  ;;  %v10038_v8 = vsel %vm1663_vm2, %v5421_v18, %v5423_v54  ;;  %v5467_v27 = vmul.f32 %v5464_v9, %v11078_v12  ;;  %v2012_v45 = vstv %s10002_s22  ;;  %s10283_s22 = sld [smem:[#allocation6 + $0x39f]] }
 0x440   : > { %v2007_v40 = vmul.f32 %v2006_v26, %v11091_v39  ;;  %v5471_v1 = vrot.slane %v5465_v37, 2  ;;  %v5472_v47 = vrot.slane %v5466_v62, 2  ;;  %v2008_v34 = vmul.f32 %v2006_v26, %v9500_v61 }
 0x441   : > { %v5474_v53 = vrot.slane %v5467_v27, 2  ;;  %v2013_v18 = vmul.f32 %v2012_v45, %v11092_v19  ;;  %v2014_v48 = vmul.f32 %v2012_v45, %v9502_v32  ;;  %v2035_v54 = vstv %s10008_s19  ;;  %s10293_s19 = sld [smem:[#allocation6 + $0x3a2]] }
 0x442   : > { %v2009_v23 = vadd.f32 %v2007_v40, %v9536_v24  ;;  %v10052_v12 = vsel %vm1715_vm3, %v5471_v1, %v5472_v47  ;;  %v2010_v9 = vadd.f32 %v2008_v34, %v9538_v29  ;;  %v2086_v14 = vstv %s10014_s18  ;;  %s10303_s18 = sld [smem:[#allocation6 + $0x20]] }
 0x443   : > { %11093 = vst [vmem:[#allocation93_spill] sm:$0xff] %v10052_v12  ;;  %v10062_v26 = vsel %vm1715_vm3, %v5472_v47, %v5474_v53  ;;  %v2036_v24 = vmul.f32 %v2035_v54, %v11091_v39  ;;  %v2037_v62 = vmul.f32 %v2035_v54, %v9500_v61  ;;  %v2038_v40 = vmul.f32 %v2035_v54, %v9514_v49 }
 0x444   : > { %11094 = vst [vmem:[#allocation77_spill] sm:$0xff] %v10062_v26  ;;  %v2015_v37 = vadd.f32 %v2013_v18, %v2009_v23  ;;  %v2016_v27 = vadd.f32 %v2014_v48, %v2010_v9  ;;  %v2087_v29 = vmul.f32 %v2086_v14, %v11091_v39  ;;  %v2088_v1 = vmul.f32 %v2086_v14, %v9500_v61 }
 0x445   : > { %v2042_v45 = vrot.slane %v2036_v24, 1  ;;  %v2043_v12 = vrot.slane %v2037_v62, 1  ;;  %v2089_v47 = vmul.f32 %v2086_v14, %v9514_v49  ;;  %v2045_v23 = vrot.slane %v2038_v40, 1 }
 0x446   : > { %v2032_v34 = vadd.f32 %v9861_v3, %v2015_v37  ;;  %v2033_v53 = vadd.f32 %v9866_v20, %v2016_v27  ;;  %v2093_v18 = vrot.slane %v2087_v29, 2  ;;  %v2094_v26 = vrot.slane %v2088_v1, 2 }
 0x447   : > { %v2044_v38 = vsel %vm1663_vm2, %v2042_v45, %v2043_v12  ;;  %v2096_v48 = vrot.slane %v2089_v47, 2  ;;  %v2491_v9 = vstv %s10042_s21  ;;  %v2497_v54 = vstv %s10044_s26  ;;  %s10319_s21 = sld [smem:[#allocation6 + $0x23]]  ;;  %s10329_s26 = sld [smem:[#allocation6 + $0xa0]] }
 0x448   : > { %v2046_v3 = vsel %vm1663_vm2, %v2043_v12, %v2045_v23  ;;  %v10078_v37 = vadd.f32 %v2044_v38, %v2032_v34  ;;  %v10081_v14 = vsel %vm1715_vm3, %v2093_v18, %v2094_v26  ;;  %v2492_v20 = vmul.f32 %v2491_v9, %v11091_v39 }
 0x449   : > { %v10084_v24 = vadd.f32 %v2046_v3, %v2033_v53  ;;  %v10087_v62 = vsel %vm1715_vm3, %v2094_v26, %v2096_v48  ;;  %v2493_v27 = vmul.f32 %v2491_v9, %v9500_v61  ;;  %v2498_v40 = vmul.f32 %v2497_v54, %v11092_v19 }
 0x44a   : > { %v2494_v38 = vadd.f32 %v2492_v20, %v9574_v58  ;;  %v2499_v12 = vmul.f32 %v2497_v54, %v9502_v32  ;;  %v2520_v29 = vstv %s10057_s17  ;;  %v2571_v1 = vstv %s10059_s10  ;;  %s10339_s17 = sld [smem:[#allocation6 + $0xa3]]  ;;  %s10355_s10 = sld [smem:[#allocation6 + $0x120]] }
 0x44b   : > { %v2495_v34 = vadd.f32 %v2493_v27, %v9576_v2  ;;  %v2521_v45 = vmul.f32 %v2520_v29, %v11091_v39  ;;  %v2522_v26 = vmul.f32 %v2520_v29, %v9500_v61  ;;  %v2523_v47 = vmul.f32 %v2520_v29, %v9514_v49 }
 0x44c   : > { %v2500_v53 = vadd.f32 %v2498_v40, %v2494_v38  ;;  %v2572_v23 = vmul.f32 %v2571_v1, %v11091_v39  ;;  %v2573_v58 = vmul.f32 %v2571_v1, %v9500_v61  ;;  %v2574_v18 = vmul.f32 %v2571_v1, %v9514_v49 }
 0x44d   : > { %v2501_v48 = vadd.f32 %v2499_v12, %v2495_v34  ;;  %v2527_v9 = vrot.slane %v2521_v45, 1  ;;  %v2528_v54 = vrot.slane %v2522_v26, 1  ;;  %v2530_v2 = vrot.slane %v2523_v47, 1 }
 0x44e   : > { %v2517_v3 = vadd.f32 %v9892_v15, %v2500_v53  ;;  %v2578_v20 = vrot.slane %v2572_v23, 2  ;;  %v2579_v27 = vrot.slane %v2573_v58, 2  ;;  %v2581_v29 = vrot.slane %v2574_v18, 2 }
 0x44f   : > { %v2518_v40 = vadd.f32 %v9895_v17, %v2501_v48  ;;  %v2529_v38 = vsel %vm1663_vm2, %v2527_v9, %v2528_v54  ;;  %v2531_v60 = vsel %vm1663_vm2, %v2528_v54, %v2530_v2  ;;  %v2976_v1 = vstv %s10075_s29  ;;  %s10370_s29 = sld [smem:[#allocation6 + $0x123]] }
 0x450   : > { %v10115_v12 = vadd.f32 %v2529_v38, %v2517_v3  ;;  %v10118_v34 = vsel %vm1715_vm3, %v2578_v20, %v2579_v27  ;;  %v10121_v15 = vsel %vm1715_vm3, %v2579_v27, %v2581_v29  ;;  %v2977_v45 = vmul.f32 %v2976_v1, %v11091_v39 }
 0x451   : > { %v10124_v26 = vadd.f32 %v2531_v60, %v2518_v40  ;;  %v2978_v17 = vmul.f32 %v2976_v1, %v9500_v61  ;;  %v2982_v47 = vstv %s10091_s5  ;;  %v3005_v53 = vstv %s10093_s20  ;;  %s5686_s5 = sshll.u32 %s281_s25, 7  ;;  %s10379_s20 = sld [smem:[#allocation6 + $0x1a0]] }
 0x452   : > { %v2979_v23 = vadd.f32 %v2977_v45, %v9633_v57  ;;  %v2983_v58 = vmul.f32 %v2982_v47, %v11092_v19  ;;  %v2984_v18 = vmul.f32 %v2982_v47, %v9502_v32  ;;  %v3006_v48 = vmul.f32 %v3005_v53, %v11091_v39 }
 0x453   : > { %v2980_v9 = vadd.f32 %v2978_v17, %v9635_v21  ;;  %v3007_v60 = vmul.f32 %v3005_v53, %v9500_v61  ;;  %v3008_v54 = vmul.f32 %v3005_v53, %v9514_v49  ;;  %v3056_v2 = vstv %s10103_s23  ;;  %s10390_s23 = sld [smem:[#allocation6 + $0x1a3]] }
 0x454   : > { %v2985_v3 = vadd.f32 %v2983_v58, %v2979_v23  ;;  %v3012_v20 = vrot.slane %v3006_v48, 1  ;;  %v3057_v57 = vmul.f32 %v3056_v2, %v11091_v39  ;;  %v3058_v27 = vmul.f32 %v3056_v2, %v9500_v61 }
 0x455   : > { %v2986_v29 = vadd.f32 %v2984_v18, %v2980_v9  ;;  %v3013_v40 = vrot.slane %v3007_v60, 1  ;;  %v3015_v38 = vrot.slane %v3008_v54, 1  ;;  %v3059_v1 = vmul.f32 %v3056_v2, %v9514_v49 }
 0x456   : > { %v3002_v21 = vadd.f32 %v9919_v52, %v2985_v3  ;;  %v3063_v45 = vrot.slane %v3057_v57, 2  ;;  %v3064_v17 = vrot.slane %v3058_v27, 2  ;;  %v3461_v47 = vstv %s10109_s27  ;;  %s10398_s27 = scalar_lea.vmem [#allocation9], %s5686_s5 }
 0x457   : > { %v3003_v53 = vadd.f32 %v9922_v50, %v2986_v29  ;;  %v3014_v23 = vsel %vm1663_vm2, %v3012_v20, %v3013_v40  ;;  %v3016_v58 = vsel %vm1663_vm2, %v3013_v40, %v3015_v38  ;;  %v3066_v48 = vrot.slane %v3059_v1, 2 }
 0x458   : > { %v10153_v18 = vadd.f32 %v3014_v23, %v3002_v21  ;;  %v10156_v9 = vsel %vm1715_vm3, %v3063_v45, %v3064_v17  ;;  %v3462_v52 = vmul.f32 %v3461_v47, %v11091_v39  ;;  %v3463_v60 = vmul.f32 %v3461_v47, %v9500_v61 }
 0x459   : > { %v10160_v54 = vadd.f32 %v3016_v58, %v3003_v53  ;;  %v10163_v50 = vsel %vm1715_vm3, %v3064_v17, %v3066_v48  ;;  %v3467_v2 = vstv %s10129_s11  ;;  %v3490_v3 = vstv %s10131_s4  ;;  %s10407_s11 = sld [smem:[#allocation6 + $0x220]]  ;;  %s10422_s4 = sld [smem:[#allocation6 + $0x223]] }
 0x45a   : > { %v3464_v20 = vadd.f32 %v3462_v52, %v9674_v7  ;;  %v3465_v57 = vadd.f32 %v3463_v60, %v9676_v35  ;;  %v3468_v27 = vmul.f32 %v3467_v2, %v11092_v19  ;;  %v3469_v29 = vmul.f32 %v3467_v2, %v9502_v32 }
 0x45b   : > { %v3491_v40 = vmul.f32 %v3490_v3, %v11091_v39  ;;  %v3492_v38 = vmul.f32 %v3490_v3, %v9500_v61  ;;  %v3493_v1 = vmul.f32 %v3490_v3, %v9514_v49  ;;  %v3541_v21 = vstv %s10141_s6  ;;  %s10433_s6 = sld [smem:[#allocation6 + $0x2a0]] }
 0x45c   : > { %v3470_v45 = vadd.f32 %v3468_v27, %v3464_v20  ;;  %v3471_v17 = vadd.f32 %v3469_v29, %v3465_v57  ;;  %v3542_v7 = vmul.f32 %v3541_v21, %v11091_v39  ;;  %v3543_v35 = vmul.f32 %v3541_v21, %v9500_v61 }
 0x45d   : > { %v3497_v47 = vrot.slane %v3491_v40, 1  ;;  %v3498_v53 = vrot.slane %v3492_v38, 1  ;;  %v3500_v23 = vrot.slane %v3493_v1, 1  ;;  %v3544_v58 = vmul.f32 %v3541_v21, %v9514_v49 }
 0x45e   : > { %v3487_v48 = vadd.f32 %v9944_v11, %v3470_v45  ;;  %v3488_v52 = vadd.f32 %v9947_v51, %v3471_v17  ;;  %v3548_v60 = vrot.slane %v3542_v7, 2  ;;  %v3549_v2 = vrot.slane %v3543_v35, 2 }
 0x45f   : > { %v3499_v3 = vsel %vm1663_vm2, %v3497_v47, %v3498_v53  ;;  %v3501_v20 = vsel %vm1663_vm2, %v3498_v53, %v3500_v23  ;;  %v3551_v57 = vrot.slane %v3544_v58, 2  ;;  %v3946_v27 = vstv %s10151_s1  ;;  %s10443_s1 = sld [smem:[#allocation6 + $0x2a3]] }
 0x460   : > { %v10191_v29 = vadd.f32 %v3499_v3, %v3487_v48  ;;  %v10193_v40 = vadd.f32 %v3501_v20, %v3488_v52  ;;  %v10196_v11 = vsel %vm1715_vm3, %v3548_v60, %v3549_v2  ;;  %v3947_v51 = vmul.f32 %v3946_v27, %v11091_v39 }
 0x461   : > { %v10200_v38 = vsel %vm1715_vm3, %v3549_v2, %v3551_v57  ;;  %v3948_v1 = vmul.f32 %v3946_v27, %v9500_v61  ;;  %v3952_v21 = vstv %s10167_s2  ;;  %v3975_v45 = vstv %s10169_s3  ;;  %s10458_s2 = sld [smem:[#allocation6 + $0x320]]  ;;  %s10470_s3 = sld [smem:[#allocation6 + $0x323]] }
 0x462   : > { %v3949_v17 = vadd.f32 %v3947_v51, %v9725_v30  ;;  %v3953_v7 = vmul.f32 %v3952_v21, %v11092_v19  ;;  %v3954_v35 = vmul.f32 %v3952_v21, %v9502_v32  ;;  %v3976_v47 = vmul.f32 %v3975_v45, %v11091_v39 }
 0x463   : > { %v3950_v53 = vadd.f32 %v3948_v1, %v9727_v16  ;;  %v3977_v23 = vmul.f32 %v3975_v45, %v9500_v61  ;;  %v3978_v58 = vmul.f32 %v3975_v45, %v9514_v49  ;;  %v4026_v48 = vstv %s10179_s14  ;;  %s10485_s14 = sld [smem:[#allocation6 + $0x3a0]] }
 0x464   : > { %v3955_v52 = vadd.f32 %v3953_v7, %v3949_v17  ;;  %v3982_v60 = vrot.slane %v3976_v47, 1  ;;  %v4027_v30 = vmul.f32 %v4026_v48, %v11091_v39  ;;  %v4028_v2 = vmul.f32 %v4026_v48, %v9500_v61 }
 0x465   : > { %v3956_v3 = vadd.f32 %v3954_v35, %v3950_v53  ;;  %v3983_v20 = vrot.slane %v3977_v23, 1  ;;  %v3985_v57 = vrot.slane %v3978_v58, 1  ;;  %v4029_v27 = vmul.f32 %v4026_v48, %v9514_v49 }
 0x466   : > { %v3972_v16 = vadd.f32 %v9962_v10, %v3955_v52  ;;  %v4033_v51 = vrot.slane %v4027_v30, 2  ;;  %v4034_v1 = vrot.slane %v4028_v2, 2  ;;  %v4431_v21 = vstv %s10186_s16  ;;  %s10500_s16 = sld [smem:[#allocation6 + $0x3a3]] }
 0x467   : > { %v3973_v45 = vadd.f32 %v9968_v43, %v3956_v3  ;;  %v3984_v17 = vsel %vm1663_vm2, %v3982_v60, %v3983_v20  ;;  %v3986_v7 = vsel %vm1663_vm2, %v3983_v20, %v3985_v57  ;;  %v4036_v47 = vrot.slane %v4029_v27, 2 }
 0x468   : > { %v10229_v35 = vadd.f32 %v3984_v17, %v3972_v16  ;;  %v10232_v53 = vsel %vm1715_vm3, %v4033_v51, %v4034_v1  ;;  %v4432_v10 = vmul.f32 %v4431_v21, %v11091_v39  ;;  %v4433_v23 = vmul.f32 %v4431_v21, %v9500_v61 }
 0x469   : > { %v10236_v58 = vadd.f32 %v3986_v7, %v3973_v45  ;;  %v10239_v43 = vsel %vm1715_vm3, %v4034_v1, %v4036_v47  ;;  %v4437_v48 = vstv %s10205_s7  ;;  %v4460_v52 = vstv %s10207_s13  ;;  %s5518_s7 = scalar_lea.sflag [#allocation4], %s281_s25 }
 0x46a   : > { %v4434_v60 = vadd.f32 %v4432_v10, %v9778_v25  ;;  %v4435_v30 = vadd.f32 %v4433_v23, %v9782_v22  ;;  %v4438_v2 = vmul.f32 %v4437_v48, %v11092_v19  ;;  %v4439_v3 = vmul.f32 %v4437_v48, %v9502_v32 }
 0x46b   : > { %v4461_v20 = vmul.f32 %v4460_v52, %v11091_v39  ;;  %v4462_v57 = vmul.f32 %v4460_v52, %v9500_v61  ;;  %v4463_v27 = vmul.f32 %v4460_v52, %v9514_v49  ;;  %v4511_v16 = vstv %s10217_s30 }
 0x46c   : > { %v4440_v51 = vadd.f32 %v4438_v2, %v4434_v60  ;;  %v4441_v1 = vadd.f32 %v4439_v3, %v4435_v30  ;;  %v4512_v25 = vmul.f32 %v4511_v16, %v11091_v39  ;;  %v4513_v22 = vmul.f32 %v4511_v16, %v9500_v61 }
 0x46d   : > { %v4467_v21 = vrot.slane %v4461_v20, 1  ;;  %v4468_v45 = vrot.slane %v4462_v57, 1  ;;  %v4470_v17 = vrot.slane %v4463_v27, 1  ;;  %v4514_v7 = vmul.f32 %v4511_v16, %v9514_v49 }
 0x46e   : > { %v4457_v47 = vadd.f32 %v9988_v13, %v4440_v51  ;;  %v4458_v10 = vadd.f32 %v9992_v6, %v4441_v1  ;;  %v4518_v23 = vrot.slane %v4512_v25, 2  ;;  %v4519_v48 = vrot.slane %v4513_v22, 2 }
 0x46f   : > { %v4469_v52 = vsel %vm1663_vm2, %v4467_v21, %v4468_v45  ;;  %v4471_v60 = vsel %vm1663_vm2, %v4468_v45, %v4470_v17  ;;  %v4521_v30 = vrot.slane %v4514_v7, 2  ;;  %v4916_v2 = vstv %s10227_s9 }
 0x470   : > { %v10267_v3 = vadd.f32 %v4469_v52, %v4457_v47  ;;  %v10269_v20 = vadd.f32 %v4471_v60, %v4458_v10  ;;  %v10272_v13 = vsel %vm1715_vm3, %v4518_v23, %v4519_v48  ;;  %v4917_v6 = vmul.f32 %v4916_v2, %v11091_v39 }
 0x471   : > { %v10276_v57 = vsel %vm1715_vm3, %v4519_v48, %v4521_v30  ;;  %v4918_v27 = vmul.f32 %v4916_v2, %v9500_v61  ;;  %v4922_v16 = vstv %s10243_s28  ;;  %v4945_v51 = vstv %s10245_s12 }
 0x472   : > { %v4919_v1 = vadd.f32 %v4917_v6, %v9823_v63  ;;  %v4923_v25 = vmul.f32 %v4922_v16, %v11092_v19  ;;  %v4924_v22 = vmul.f32 %v4922_v16, %v9502_v32  ;;  %v4946_v21 = vmul.f32 %v4945_v51, %v11091_v39 }
 0x473   : > { %v4920_v45 = vadd.f32 %v4918_v27, %v9826_v0  ;;  %v4947_v17 = vmul.f32 %v4945_v51, %v9500_v61  ;;  %v4948_v7 = vmul.f32 %v4945_v51, %v9514_v49  ;;  %v4996_v47 = vstv %s10255_s24 }
 0x474   : > { %v4925_v10 = vadd.f32 %v4923_v25, %v4919_v1  ;;  %v4952_v23 = vrot.slane %v4946_v21, 1  ;;  %v4997_v63 = vmul.f32 %v4996_v47, %v11091_v39  ;;  %v4998_v48 = vmul.f32 %v4996_v47, %v9500_v61 }
 0x475   : > { %v4926_v52 = vadd.f32 %v4924_v22, %v4920_v45  ;;  %v4953_v60 = vrot.slane %v4947_v17, 1  ;;  %v4955_v30 = vrot.slane %v4948_v7, 1  ;;  %v4999_v2 = vmul.f32 %v4996_v47, %v9514_v49 }
 0x476   : > { %v4942_v0 = vadd.f32 %v10017_v5, %v4925_v10  ;;  %v5003_v6 = vrot.slane %v4997_v63, 2  ;;  %v5004_v27 = vrot.slane %v4998_v48, 2  ;;  %v5401_v16 = vstv %s10262_s15 }
 0x477   : > { %v4943_v51 = vadd.f32 %v10022_v28, %v4926_v52  ;;  %v4954_v1 = vsel %vm1663_vm2, %v4952_v23, %v4953_v60  ;;  %v4956_v25 = vsel %vm1663_vm2, %v4953_v60, %v4955_v30  ;;  %v5006_v21 = vrot.slane %v4999_v2, 2 }
 0x478   : > { %v10305_v22 = vadd.f32 %v4954_v1, %v4942_v0  ;;  %v10308_v45 = vsel %vm1715_vm3, %v5003_v6, %v5004_v27  ;;  %v5402_v5 = vmul.f32 %v5401_v16, %v11091_v39  ;;  %v5403_v17 = vmul.f32 %v5401_v16, %v9500_v61 }
 0x479   : > { %v10312_v7 = vadd.f32 %v4956_v25, %v4943_v51  ;;  %v10315_v28 = vsel %vm1715_vm3, %v5004_v27, %v5006_v21  ;;  %v5407_v47 = vstv %s10281_s0  ;;  %v5430_v10 = vstv %s10283_s22 }
 0x47a   : > { %v5404_v23 = vadd.f32 %v5402_v5, %v9884_v59  ;;  %v5405_v63 = vadd.f32 %v5403_v17, %v9886_v41  ;;  %v5408_v48 = vmul.f32 %v5407_v47, %v11092_v19  ;;  %v5409_v52 = vmul.f32 %v5407_v47, %v9502_v32 }
 0x47b   : > { %v5431_v60 = vmul.f32 %v5430_v10, %v11091_v39  ;;  %v5432_v30 = vmul.f32 %v5430_v10, %v9500_v61  ;;  %v5433_v2 = vmul.f32 %v5430_v10, %v9514_v49  ;;  %v5481_v0 = vstv %s10293_s19 }
 0x47c   : > { %v5410_v6 = vadd.f32 %v5408_v48, %v5404_v23  ;;  %v5411_v27 = vadd.f32 %v5409_v52, %v5405_v63  ;;  %v5482_v59 = vmul.f32 %v5481_v0, %v11091_v39  ;;  %v5483_v41 = vmul.f32 %v5481_v0, %v9500_v61 }
 0x47d   : > { %v5437_v16 = vrot.slane %v5431_v60, 1  ;;  %v5438_v51 = vrot.slane %v5432_v30, 1  ;;  %v5440_v1 = vrot.slane %v5433_v2, 1  ;;  %v5484_v25 = vmul.f32 %v5481_v0, %v9514_v49 }
 0x47e   : > { %v5427_v21 = vadd.f32 %v10035_v33, %v5410_v6  ;;  %v5428_v5 = vadd.f32 %v10038_v8, %v5411_v27  ;;  %v5488_v17 = vrot.slane %v5482_v59, 2  ;;  %v5489_v47 = vrot.slane %v5483_v41, 2 }
 0x47f   : > { %v5439_v10 = vsel %vm1663_vm2, %v5437_v16, %v5438_v51  ;;  %v5441_v23 = vsel %vm1663_vm2, %v5438_v51, %v5440_v1  ;;  %v5491_v63 = vrot.slane %v5484_v25, 2  ;;  %v2052_v39 = vstv %s10303_s18 }
 0x480   : > { %v10341_v61 = vadd.f32 %v5439_v10, %v5427_v21  ;;  %v10343_v48 = vadd.f32 %v5441_v23, %v5428_v5  ;;  %v10346_v49 = vsel %vm1715_vm3, %v5488_v17, %v5489_v47  ;;  %v2053_v33 = vmul.f32 %v2052_v39, %v11092_v19 }
 0x481   : > { %v10350_v8 = vsel %vm1715_vm3, %v5489_v47, %v5491_v63  ;;  %v2054_v52 = vmul.f32 %v2052_v39, %v9502_v32  ;;  %v2055_v60 = vmul.f32 %v2052_v39, %v9747_v36  ;;  %v2103_v30 = vstv %s10319_s21 }
 0x482   : > { %v2059_v2 = vrot.slane %v2053_v33, 1  ;;  %v2104_v0 = vmul.f32 %v2103_v30, %v11092_v19  ;;  %v2105_v6 = vmul.f32 %v2103_v30, %v9502_v32  ;;  %v2106_v27 = vmul.f32 %v2103_v30, %v9747_v36 }
 0x483   : > { %v2060_v59 = vrot.slane %v2054_v52, 1  ;;  %v2062_v41 = vrot.slane %v2055_v60, 1  ;;  %v2537_v16 = vstv %s10329_s26 }
 0x484   : > { %v2110_v51 = vrot.slane %v2104_v0, 2  ;;  %v2111_v1 = vrot.slane %v2105_v6, 2  ;;  %v2113_v25 = vrot.slane %v2106_v27, 2  ;;  %v2538_v21 = vmul.f32 %v2537_v16, %v11092_v19 }
 0x485   : > { %v2061_v5 = vsel %vm1663_vm2, %v2059_v2, %v2060_v59  ;;  %v2063_v17 = vsel %vm1663_vm2, %v2060_v59, %v2062_v41  ;;  %v2539_v47 = vmul.f32 %v2537_v16, %v9502_v32  ;;  %v2540_v10 = vmul.f32 %v2537_v16, %v9747_v36 }
 0x486   : > { %v2066_v23 = vadd.f32 %v2061_v5, %v10078_v37  ;;  %v2067_v63 = vadd.f32 %v2063_v17, %v10084_v24  ;;  %v2112_v39 = vsel %vm1715_vm3, %v2110_v51, %v2111_v1  ;;  %v2114_v33 = vsel %vm1715_vm3, %v2111_v1, %v2113_v25 }
 0x487   : > { %v2544_v52 = vrot.slane %v2538_v21, 1  ;;  %v2545_v60 = vrot.slane %v2539_v47, 1  ;;  %v2547_v30 = vrot.slane %v2540_v10, 1  ;;  %v2588_v2 = vstv %s10339_s17 }
 0x488   : > { %v2083_v0 = vadd.f32 %v9874_v55, %v2066_v23  ;;  %v2084_v6 = vadd.f32 %v9877_v56, %v2067_v63  ;;  %v2589_v37 = vmul.f32 %v2588_v2, %v11092_v19  ;;  %v2590_v24 = vmul.f32 %v2588_v2, %v9502_v32 }
 0x489   : > { %v2546_v27 = vsel %vm1663_vm2, %v2544_v52, %v2545_v60  ;;  %v2548_v59 = vsel %vm1663_vm2, %v2545_v60, %v2547_v30  ;;  %v2591_v41 = vmul.f32 %v2588_v2, %v9747_v36  ;;  %v3022_v16 = vstv %s10355_s10 }
 0x48a   : > { %v2100_v51 = vadd.f32 %v10081_v14, %v2083_v0  ;;  %v2101_v1 = vadd.f32 %v10087_v62, %v2084_v6  ;;  %v2551_v55 = vadd.f32 %v2546_v27, %v10115_v12  ;;  %v2552_v56 = vadd.f32 %v2548_v59, %v10124_v26 }
 0x48b   : > { %v2595_v25 = vrot.slane %v2589_v37, 2  ;;  %v2596_v21 = vrot.slane %v2590_v24, 2  ;;  %v2598_v5 = vrot.slane %v2591_v41, 2  ;;  %v3023_v17 = vmul.f32 %v3022_v16, %v11092_v19 }
 0x48c   : > { %v2117_v47 = vadd.f32 %v2112_v39, %v2100_v51  ;;  %v2118_v10 = vadd.f32 %v2114_v33, %v2101_v1  ;;  %v2568_v23 = vadd.f32 %v9905_v31, %v2551_v55  ;;  %v2569_v14 = vadd.f32 %v9908_v44, %v2552_v56 }
 0x48d   : > { %v2597_v62 = vsel %vm1715_vm3, %v2595_v25, %v2596_v21  ;;  %v2599_v12 = vsel %vm1715_vm3, %v2596_v21, %v2598_v5  ;;  %v3024_v26 = vmul.f32 %v3022_v16, %v9502_v32  ;;  %v3025_v63 = vmul.f32 %v3022_v16, %v9747_v36 }
 0x48e   : > { %2120 = vst.msk [vmem:[%s10398_s27] sm:$0xff] %vm2119_vm4, %v2117_v47  ;;  %2121 = vst.msk [vmem:[%s10398_s27 + $0x8] sm:$0xff] %vm2119_vm4, %v2118_v10  ;;  %v2585_v31 = vadd.f32 %v10118_v34, %v2568_v23  ;;  %v2586_v44 = vadd.f32 %v10121_v15, %v2569_v14  ;;  %v3029_v39 = vrot.slane %v3023_v17, 1  ;;  %v3073_v33 = vstv %s10370_s29 }
 0x48f   : > { %v3030_v52 = vrot.slane %v3024_v26, 1  ;;  %v3032_v60 = vrot.slane %v3025_v63, 1  ;;  %v3074_v30 = vmul.f32 %v3073_v33, %v11092_v19  ;;  %v3075_v2 = vmul.f32 %v3073_v33, %v9502_v32 }
 0x490   : > { %v2602_v0 = vadd.f32 %v2597_v62, %v2585_v31  ;;  %v2603_v6 = vadd.f32 %v2599_v12, %v2586_v44  ;;  %v3076_v37 = vmul.f32 %v3073_v33, %v9747_v36  ;;  %v3507_v34 = vstv %s10379_s20 }
 0x491   : > { %v3031_v15 = vsel %vm1663_vm2, %v3029_v39, %v3030_v52  ;;  %v3033_v24 = vsel %vm1663_vm2, %v3030_v52, %v3032_v60  ;;  %v3080_v27 = vrot.slane %v3074_v30, 2  ;;  %v3081_v59 = vrot.slane %v3075_v2, 2 }
 0x492   : > { %5818 = vst.msk [vmem:[%s10398_s27 + $0x10] sm:$0xff] %vm2119_vm4, %v2602_v0  ;;  %5819 = vst.msk [vmem:[%s10398_s27 + $0x18] sm:$0xff] %vm2119_vm4, %v2603_v6  ;;  %v3036_v41 = vadd.f32 %v3031_v15, %v10153_v18  ;;  %v3037_v16 = vadd.f32 %v3033_v24, %v10160_v54  ;;  %v3083_v51 = vrot.slane %v3076_v37, 2  ;;  %v3508_v1 = vmul.f32 %v3507_v34, %v11092_v19  ;;  %v11095_v6 = vld [vmem:[#allocation87_spill] sm:$0xff] }
 0x493   : > { %v3082_v55 = vsel %vm1715_vm3, %v3080_v27, %v3081_v59  ;;  %v3509_v56 = vmul.f32 %v3507_v34, %v9502_v32  ;;  %v3510_v25 = vmul.f32 %v3507_v34, %v9747_v36  ;;  %v3558_v21 = vstv %s10390_s23 }
 0x494   : > { %v3053_v5 = vadd.f32 %v9925_v42, %v3036_v41  ;;  %v3054_v17 = vadd.f32 %v9929_v4, %v3037_v16  ;;  %v3084_v18 = vsel %vm1715_vm3, %v3081_v59, %v3083_v51  ;;  %v3514_v54 = vrot.slane %v3508_v1, 1 }
 0x495   : > { %v3515_v47 = vrot.slane %v3509_v56, 1  ;;  %v3517_v10 = vrot.slane %v3510_v25, 1  ;;  %v3559_v23 = vmul.f32 %v3558_v21, %v11092_v19  ;;  %v3560_v14 = vmul.f32 %v3558_v21, %v9502_v32 }
 0x496   : > { %v3070_v62 = vadd.f32 %v10156_v9, %v3053_v5  ;;  %v3071_v12 = vadd.f32 %v10163_v50, %v3054_v17  ;;  %v3561_v42 = vmul.f32 %v3558_v21, %v9747_v36  ;;  %v3992_v4 = vstv %s10407_s11 }
 0x497   : > { %v3516_v26 = vsel %vm1663_vm2, %v3514_v54, %v3515_v47  ;;  %v3518_v63 = vsel %vm1663_vm2, %v3515_v47, %v3517_v10  ;;  %v3565_v31 = vrot.slane %v3559_v23, 2  ;;  %v3566_v44 = vrot.slane %v3560_v14, 2  ;;  %v11096_v47 = vld [vmem:[#allocation76_spill] sm:$0xff] }
 0x498   : > { %v3087_v39 = vadd.f32 %v3082_v55, %v3070_v62  ;;  %v3088_v33 = vadd.f32 %v3084_v18, %v3071_v12  ;;  %v3521_v52 = vadd.f32 %v3516_v26, %v10191_v29  ;;  %v3522_v9 = vadd.f32 %v3518_v63, %v10193_v40  ;;  %v11097_v62 = vld [vmem:[#allocation92_spill] sm:$0xff] }
 0x499   : > { %v3567_v50 = vsel %vm1715_vm3, %v3565_v31, %v3566_v44  ;;  %v3568_v60 = vrot.slane %v3561_v42, 2  ;;  %v3993_v30 = vmul.f32 %v3992_v4, %v11092_v19  ;;  %v3994_v2 = vmul.f32 %v3992_v4, %v9502_v32 }
 0x49a   : > { %5857 = vst.msk [vmem:[%s10398_s27 + $0x20] sm:$0xff] %vm2119_vm4, %v3087_v39  ;;  %5858 = vst.msk [vmem:[%s10398_s27 + $0x28] sm:$0xff] %vm2119_vm4, %v3088_v33  ;;  %v3538_v0 = vadd.f32 %v9951_v46, %v3521_v52  ;;  %v3539_v29 = vadd.f32 %v11095_v6, %v3522_v9  ;;  %v3995_v40 = vmul.f32 %v3992_v4, %v9747_v36  ;;  %v4043_v37 = vstv %s10422_s4 }
 0x49b   : > { %v3569_v34 = vsel %vm1715_vm3, %v3566_v44, %v3568_v60  ;;  %v3999_v15 = vrot.slane %v3993_v30, 1  ;;  %v4000_v24 = vrot.slane %v3994_v2, 1  ;;  %v4044_v27 = vmul.f32 %v4043_v37, %v11092_v19 }
 0x49c   : > { %v3555_v59 = vadd.f32 %v10196_v11, %v3538_v0  ;;  %v3556_v41 = vadd.f32 %v10200_v38, %v3539_v29  ;;  %v4002_v46 = vrot.slane %v3995_v40, 1  ;;  %v4045_v16 = vmul.f32 %v4043_v37, %v9502_v32 }
 0x49d   : > { %v4001_v51 = vsel %vm1663_vm2, %v3999_v15, %v4000_v24  ;;  %v4046_v1 = vmul.f32 %v4043_v37, %v9747_v36  ;;  %v4050_v55 = vrot.slane %v4044_v27, 2  ;;  %v4477_v56 = vstv %s10433_s6  ;;  %v11098_v15 = vld [vmem:[#allocation101_spill] sm:$0xff] }
 0x49e   : > { %v3572_v25 = vadd.f32 %v3567_v50, %v3555_v59  ;;  %v3573_v21 = vadd.f32 %v3569_v34, %v3556_v41  ;;  %v4003_v5 = vsel %vm1663_vm2, %v4000_v24, %v4002_v46  ;;  %v4006_v11 = vadd.f32 %v4001_v51, %v10229_v35 }
 0x49f   : > { %v4007_v38 = vadd.f32 %v4003_v5, %v10236_v58  ;;  %v4051_v17 = vrot.slane %v4045_v16, 2  ;;  %v4053_v18 = vrot.slane %v4046_v1, 2  ;;  %v4478_v54 = vmul.f32 %v4477_v56, %v11092_v19 }
 0x4a0   : > { %5896 = vst.msk [vmem:[%s10398_s27 + $0x30] sm:$0xff] %vm2119_vm4, %v3572_v25  ;;  %5897 = vst.msk [vmem:[%s10398_s27 + $0x38] sm:$0xff] %vm2119_vm4, %v3573_v21  ;;  %v4023_v10 = vadd.f32 %v11096_v47, %v4006_v11  ;;  %v4479_v23 = vmul.f32 %v4477_v56, %v9502_v32  ;;  %v4480_v14 = vmul.f32 %v4477_v56, %v9747_v36  ;;  %v4528_v35 = vstv %s10443_s1 }
 0x4a1   : > { %v4024_v58 = vadd.f32 %v11097_v62, %v4007_v38  ;;  %v4052_v12 = vsel %vm1715_vm3, %v4050_v55, %v4051_v17  ;;  %v4054_v42 = vsel %vm1715_vm3, %v4051_v17, %v4053_v18  ;;  %v4484_v4 = vrot.slane %v4478_v54, 1  ;;  %v11101_v62 = vld [vmem:[#allocation102_spill] sm:$0xff] }
 0x4a2   : > { %v4040_v26 = vadd.f32 %v10232_v53, %v4023_v10  ;;  %v4485_v63 = vrot.slane %v4479_v23, 1  ;;  %v4487_v31 = vrot.slane %v4480_v14, 1  ;;  %v4529_v44 = vmul.f32 %v4528_v35, %v11092_v19  ;;  %v11100_v14 = vld [vmem:[#allocation88_spill] sm:$0xff] }
 0x4a3   : > { %v4041_v39 = vadd.f32 %v10239_v43, %v4024_v58  ;;  %v4530_v33 = vmul.f32 %v4528_v35, %v9502_v32  ;;  %v4531_v52 = vmul.f32 %v4528_v35, %v9747_v36  ;;  %v4962_v9 = vstv %s10458_s2 }
 0x4a4   : > { %v4057_v50 = vadd.f32 %v4052_v12, %v4040_v26  ;;  %v4486_v60 = vsel %vm1663_vm2, %v4484_v4, %v4485_v63  ;;  %v4488_v53 = vsel %vm1663_vm2, %v4485_v63, %v4487_v31  ;;  %v4535_v30 = vrot.slane %v4529_v44, 2 }
 0x4a5   : > { %v4058_v2 = vadd.f32 %v4054_v42, %v4041_v39  ;;  %v4491_v0 = vadd.f32 %v4486_v60, %v10267_v3  ;;  %v4492_v6 = vadd.f32 %v4488_v53, %v10269_v20  ;;  %v4536_v29 = vrot.slane %v4530_v33, 2  ;;  %v11099_v3 = vld [vmem:[#allocation72_spill] sm:$0xff] }
 0x4a6   : > { %5935 = vst.msk [vmem:[%s10398_s27 + $0x40] sm:$0xff] %vm2119_vm4, %v4057_v50  ;;  %v4538_v43 = vrot.slane %v4531_v52, 2  ;;  %v4963_v40 = vmul.f32 %v4962_v9, %v11092_v19  ;;  %v4964_v37 = vmul.f32 %v4962_v9, %v9502_v32  ;;  %v4965_v34 = vmul.f32 %v4962_v9, %v9747_v36 }
 0x4a7   : > { %5936 = vst.msk [vmem:[%s10398_s27 + $0x48] sm:$0xff] %vm2119_vm4, %v4058_v2  ;;  %v4508_v24 = vadd.f32 %v11098_v15, %v4491_v0  ;;  %v4509_v27 = vadd.f32 %v11099_v3, %v4492_v6  ;;  %v4537_v20 = vsel %vm1715_vm3, %v4535_v30, %v4536_v29  ;;  %v5013_v59 = vstv %s10470_s3  ;;  %v11103_v6 = vld [vmem:[#allocation77_spill] sm:$0xff] }
 0x4a8   : > { %v4539_v41 = vsel %vm1715_vm3, %v4536_v29, %v4538_v43  ;;  %v4969_v46 = vrot.slane %v4963_v40, 1  ;;  %v4970_v16 = vrot.slane %v4964_v37, 1  ;;  %v4972_v51 = vrot.slane %v4965_v34, 1 }
 0x4a9   : > { %v4525_v1 = vadd.f32 %v10272_v13, %v4508_v24  ;;  %v4526_v55 = vadd.f32 %v10276_v57, %v4509_v27  ;;  %v5014_v56 = vmul.f32 %v5013_v59, %v11092_v19  ;;  %v5015_v25 = vmul.f32 %v5013_v59, %v9502_v32 }
 0x4aa   : > { %v4971_v21 = vsel %vm1663_vm2, %v4969_v46, %v4970_v16  ;;  %v4973_v5 = vsel %vm1663_vm2, %v4970_v16, %v4972_v51  ;;  %v5016_v11 = vmul.f32 %v5013_v59, %v9747_v36  ;;  %v5447_v38 = vstv %s10485_s14 }
 0x4ab   : > { %v4542_v17 = vadd.f32 %v4537_v20, %v4525_v1  ;;  %v4543_v18 = vadd.f32 %v4539_v41, %v4526_v55  ;;  %v4976_v13 = vadd.f32 %v4971_v21, %v10305_v22  ;;  %v4977_v54 = vadd.f32 %v4973_v5, %v10312_v7 }
 0x4ac   : > { %v5020_v57 = vrot.slane %v5014_v56, 2  ;;  %v5021_v47 = vrot.slane %v5015_v25, 2  ;;  %v5023_v10 = vrot.slane %v5016_v11, 2  ;;  %v5448_v23 = vmul.f32 %v5447_v38, %v11092_v19 }
 0x4ad   : > { %5974 = vst.msk [vmem:[%s10398_s27 + $0x50] sm:$0xff] %vm2119_vm4, %v4542_v17  ;;  %5975 = vst.msk [vmem:[%s10398_s27 + $0x58] sm:$0xff] %vm2119_vm4, %v4543_v18  ;;  %v4993_v35 = vadd.f32 %v11100_v14, %v4976_v13  ;;  %v4994_v58 = vadd.f32 %v11101_v62, %v4977_v54  ;;  %v5449_v12 = vmul.f32 %v5447_v38, %v9502_v32  ;;  %v5498_v26 = vstv %s10500_s16 }
 0x4ae   : > { %v5450_v42 = vmul.f32 %v5447_v38, %v9747_v36  ;;  %v5022_v22 = vsel %vm1715_vm3, %v5020_v57, %v5021_v47  ;;  %v5024_v7 = vsel %vm1715_vm3, %v5021_v47, %v5023_v10  ;;  %v5454_v4 = vrot.slane %v5448_v23, 1 }
 0x4af   : > { %v5010_v63 = vadd.f32 %v10308_v45, %v4993_v35  ;;  %v5011_v31 = vadd.f32 %v10315_v28, %v4994_v58  ;;  %v5455_v44 = vrot.slane %v5449_v12, 1  ;;  %v5499_v33 = vmul.f32 %v5498_v26, %v11092_v19 }
 0x4b0   : > { %v5457_v39 = vrot.slane %v5450_v42, 1  ;;  %v5500_v52 = vmul.f32 %v5498_v26, %v9502_v32  ;;  %v5501_v9 = vmul.f32 %v5498_v26, %v9747_v36  ;;  %v11102_v36 = vld [vmem:[#allocation93_spill] sm:$0xff] }
 0x4b1   : > { %v5027_v50 = vadd.f32 %v5022_v22, %v5010_v63  ;;  %v5028_v60 = vadd.f32 %v5024_v7, %v5011_v31  ;;  %v5456_v53 = vsel %vm1663_vm2, %v5454_v4, %v5455_v44  ;;  %v5505_v2 = vrot.slane %v5499_v33, 2 }
 0x4b2   : > { %v5458_v30 = vsel %vm1663_vm2, %v5455_v44, %v5457_v39  ;;  %v5461_v45 = vadd.f32 %v5456_v53, %v10341_v61  ;;  %v5506_v0 = vrot.slane %v5500_v52, 2  ;;  %v5508_v32 = vrot.slane %v5501_v9, 2 }
 0x4b3   : > { %v5462_v28 = vadd.f32 %v5458_v30, %v10343_v48  ;;  %6013 = vst.msk [vmem:[%s10398_s27 + $0x60] sm:$0xff] %vm2119_vm4, %v5027_v50  ;;  %6014 = vst.msk [vmem:[%s10398_s27 + $0x68] sm:$0xff] %vm2119_vm4, %v5028_v60 }
 0x4b4   : > { %v5478_v19 = vadd.f32 %v11102_v36, %v5461_v45  ;;  %v5507_v43 = vsel %vm1715_vm3, %v5505_v2, %v5506_v0  ;;  %v5509_v40 = vsel %vm1715_vm3, %v5506_v0, %v5508_v32 }
 0x4b5   : > { %v5479_v29 = vadd.f32 %v11103_v6, %v5462_v28 }
 0x4b6   : > { %v5495_v61 = vadd.f32 %v10346_v49, %v5478_v19 }
 0x4b7   : > { %v5496_v48 = vadd.f32 %v10350_v8, %v5479_v29 }
 0x4b8   : > { %v5512_v37 = vadd.f32 %v5507_v43, %v5495_v61 }
 0x4b9   : > { %v5513_v34 = vadd.f32 %v5509_v40, %v5496_v48 }
 0x4ba   : > { %6052 = vst.msk [vmem:[%s10398_s27 + $0x70] sm:$0xff] %vm2119_vm4, %v5512_v37 }
 0x4bb   : > { %6053 = vst.msk [vmem:[%s10398_s27 + $0x78] sm:$0xff] %vm2119_vm4, %v5513_v34 }
 0x4bc   : > { %s11104_s13 = sld [smem:[#allocation21_spill]]  ;;  %s11105_s30 = sld [smem:[#allocation22_spill]] }
 0x4bd   : > { %s11106_s9 = sld [smem:[#allocation26_spill]]  ;;  %s5549_s15 = sshll.u32 %s10398_s27, 4  ;;  %s5550_s15 = int_to_ptr.vmem [resolvable:$true] %s5549_s15 }
 0x4be   : > { %s11107_s8 = sld [smem:[#allocation109_spill]]  ;;  %s6710_s18 = smov 256  }
 0x4bf   : > { %s6711_s21 = smov 512   ;;  %s6712_s26 = smov 2  }
 0x4c0   : > { %s6713_s17 = smov 128   ;;  %s6714_s10 = smov 8  }
 0x4c1   : > { %s6715_s29 = smov [#allocation10]   ;;  %s6716_s5 = smov 0  }
 0x4c2   : > { %s6055_s28 = sshll.u32 %s11104_s13, 1  ;;  %s6056_s12 = sshll.u32 %s11105_s30, 5 }
 0x4c3   : > { %s5530_s24 = sadd.s32 %s6056_s12, %s6055_s28  ;;  %p11108_p5 = scmp.ne.s32.totalorder %s11106_s9, 0 }
 0x4c4   : > { %s6057_s0 = sshll.u32 %s5530_s24, 7 }
 0x4c5   : > { %s5532_s25 = scalar_lea.hbm %s11107_s8, %s6057_s0  ;;  %6407 = sst [smem:[#allocation11]] (%p11108_p5), %s6710_s18 }
 0x4c6   : > { %6408 = sst [smem:[#allocation11 + $0x1]] (%p11108_p5), %s6711_s21 }
 0x4c7   : > { %6409 = sst [smem:[#allocation11 + $0x2]] (%p11108_p5), %s6712_s26 }
 0x4c8   : > { %6410 = sst [smem:[#allocation11 + $0x3]] (%p11108_p5), %s6713_s17 }
 0x4c9   : > { %6411 = sst [smem:[#allocation11 + $0x4]] (%p11108_p5), %s6713_s17 }
 0x4ca   : > { %6412 = sst [smem:[#allocation11 + $0x5]] (%p11108_p5), %s6714_s10 }
 0x4cb   : > { %6413 = dma.general (%p11108_p5), %s5550_s15, 2048, %s5532_s25, %s5518_s7, %s6715_s29, [#allocation11], %s6716_s5, 0  }
 0x4cc PF: > { %s11109_s20 = sld [smem:[#allocation25_spill]]  ;;  %s11110_s23 = sld [smem:[#allocation16_spill]] }
 0x4cd   : > { %s11111_s27 = sld [smem:[#allocation27_spill]] }
 0x4d2   : > { %p6435_p8 = scmp.ge.s32.totalorder %s11109_s20, 2  ;;  %s5577_s11 = sand.u32 1, %s11110_s23  }
 0x4d3   : > { %p11112_p11 = scmp.ne.s32.totalorder %s11111_s27, 0  ;;  %s5578_s4 = scalar_lea.sflag [#allocation4], %s5577_s11 }
 0x4d5   : > { %p6427_p6 = pnand %p6435_p8, %p11112_p11 }
 0x4d7   : > { %6655 = dma.done.wait (!%p6427_p6), %s5578_s4, 2048  }
 0x4d8   : > { %6657 = vsyncadd (!%p6427_p6), %s5578_s4, 4294965248  ;;  %s23_s28 = sadd.s32 1, %s11109_s20   ;;  %s11113_s18 = sld [smem:[#allocation17_spill]] }
 0x4d9   : > { %p20_p3 = scmp.ge.s32.totalorder %s23_s28, 6   ;;  %s11114_s19 = sld [smem:[#allocation18_spill]] }
 0x4da   : > { %s11115_s20 = sld [smem:[#allocation31_spill]]  ;;  %s11116_s21 = sld [smem:[#allocation19_spill]] }
 0x4db   : > { %s11117_s22 = sld [smem:[#allocation20_spill]]  ;;  %s11118_s23 = sld [smem:[#allocation30_spill]] }
 0x4dc   : > { %s11119_s24 = sld [smem:[#allocation23_spill]]  ;;  %s11120_s25 = sld [smem:[#allocation24_spill]] }
 0x4dd   : > { %s11121_s26 = sld [smem:[#allocation28_spill]]  ;;  %s11122_s27 = sld [smem:[#allocation29_spill]] }
 0x4de   :  { %22 = sbr.rel (!%p20_p3) target bundleno = 18 (0x12), region = 112 }
 0x4e5   :  { %5583 = vsyncpa [#allocation3], 1 }
 0x4e6   :  { %5585 = vsyncpa [#allocation3 + $0x1], 1 }
 0x4e7   :  { %5586 = vsyncpa [#allocation4], 1 }
 0x4e8   :  { %5588 = vsyncpa [#allocation4 + $0x1], 1 }
 0x4e9   :  { %5589 = vsyncpa [#allocation5], 1 }
 0x4ea   :  { %5591 = vsyncpa [#allocation5 + $0x1], 1 }
 0x4eb   :  { %5592 = vsyncpa [#allocation8], 1 }

</bundles_post_ra>
